<compile_context>
chip_gen: v6e
topology: v6e:2x2x1
jax: 0.10.0
libtpu: 0.0.40
codegen_flags: <defaults>
</compile_context>

<pallas_src>
import functools
import math

import jax
import jax.numpy as jnp
from jax.experimental import pallas as pl
from jax.experimental.pallas import tpu as pltpu


_SQRT1_2 = 0.7071067811865476


# ----------------------------------------------------------------------------
# Per-generation VMEM / tiling policy
# ----------------------------------------------------------------------------
def _pick_vmem_limit():
    """Scoped-VMEM budget: ~75% of physical VMEM, capped at 100 MiB."""
    try:
        info = pltpu.get_tpu_info()
        for name in ("vmem_capacity_bytes", "vmem_size_bytes", "vmem_bytes"):
            cap = getattr(info, name, None)
            if cap:
                return int(min(int(cap) * 3 // 4, 100 * 1024 * 1024))
    except Exception:
        pass
    return 32 * 1024 * 1024          # safe fallback on every generation


_VMEM_LIMIT = _pick_vmem_limit()
_BIG_VMEM = _VMEM_LIMIT >= 64 * 1024 * 1024      # v5e / v6e (128 MiB physical)
_TM_CAP = 512 if _BIG_VMEM else 256              # conservative on v7x (64 MiB)
_TN_CAP = 1024 if _BIG_VMEM else 512


def _tile_m(m, cap=None, other_tiles=1):
    """Sublane-aligned M tile; only split small M when the grid would be 1."""
    cap = cap if cap is not None else _TM_CAP
    if m > cap:
        return cap
    if other_tiles == 1 and m >= 64 and m % 32 == 0:
        return m // 2                 # give the second TensorCore some work
    return m


def _tile_n(n, cap=None):
    """Lane(128)-aligned N tile; prefer a divisor of N to avoid ragged tiles."""
    cap = cap if cap is not None else _TN_CAP
    if n <= cap:
        return n
    if n % cap == 0:
        return cap
    best = 0
    t = 128
    while t <= cap:
        if n % t == 0:
            best = t
        t += 128
    return best if best else cap


def _attn_block_b(B, S, D):
    """Batch tile for attention: big slabs, but keep >= 2 grid steps."""
    per_b = 2 * (S * 3 * D * 2) + 2 * (S * D * 2) + S * S * 4 + S * D * 4
    cap = max(1, (8 * 1024 * 1024) // max(per_b, 1))
    if B >= 2:
        cap = min(cap, B // 2)        # both v7x TensorCores stay busy
    cap = max(cap, 1)
    bc = 1
    for c in range(1, min(B, cap) + 1):
        if B % c == 0:
            bc = c
    return bc


# ----------------------------------------------------------------------------
# In-kernel math helpers
# ----------------------------------------------------------------------------
def _layernorm_f32(x, g, b):
    mean = jnp.mean(x, axis=-1, keepdims=True)
    xc = x - mean
    var = jnp.mean(xc * xc, axis=-1, keepdims=True)
    return (xc * jax.lax.rsqrt(var + 1e-5)) * g + b


def _apply_act(y, act):
    if act == "gelu":                 # exact erf GELU (nn.GELU default)
        return 0.5 * y * (1.0 + jax.lax.erf(y * _SQRT1_2))
    if act == "quick_gelu":           # x * sigmoid(1.702 x)
        return y * jax.nn.sigmoid(1.702 * y)
    return y


# ----------------------------------------------------------------------------
# Pallas kernels
# ----------------------------------------------------------------------------
def _fused_linear_kernel(*refs, ln, act, residual, res_scale):
    """[LayerNorm ->] x @ w + b [-> act] [-> res + res_scale * y]."""
    it = iter(refs)
    x_ref = next(it)
    g_ref = next(it) if ln else None
    be_ref = next(it) if ln else None
    w_ref = next(it)
    b_ref = next(it)
    r_ref = next(it) if residual else None
    o_ref = next(it)

    x = x_ref[...]
    if ln:
        xw = _layernorm_f32(x.astype(jnp.float32), g_ref[...], be_ref[...]
                            ).astype(w_ref.dtype)
    else:
        xw = x if x.dtype == w_ref.dtype else x.astype(w_ref.dtype)
    y = jnp.dot(xw, w_ref[...], preferred_element_type=jnp.float32) + b_ref[...]
    y = _apply_act(y, act)
    if residual:
        y = r_ref[...].astype(jnp.float32) + res_scale * y
    o_ref[...] = y.astype(o_ref.dtype)


def _adapter_kernel(*refs, skip, residual, res_scale):
    """fc2(GELU(fc1(x))) [+ x] [-> res + res_scale * y]  (one kernel)."""
    it = iter(refs)
    x_ref = next(it)
    w1_ref = next(it)
    b1_ref = next(it)
    w2_ref = next(it)
    b2_ref = next(it)
    r_ref = next(it) if residual else None
    o_ref = next(it)

    x = x_ref[...]
    xw = x if x.dtype == w1_ref.dtype else x.astype(w1_ref.dtype)
    h = jnp.dot(xw, w1_ref[...], preferred_element_type=jnp.float32) + b1_ref[...]
    h = _apply_act(h, "gelu")
    y = jnp.dot(h.astype(w2_ref.dtype), w2_ref[...],
                preferred_element_type=jnp.float32) + b2_ref[...]
    if skip:
        y = x.astype(jnp.float32) + y
    if residual:
        y = r_ref[...].astype(jnp.float32) + res_scale * y
    o_ref[...] = y.astype(o_ref.dtype)


def _mlp_block_kernel(*refs, adapter, ext_residual, scale):
    """Fused MLP chain:  ln2 -> c_fc -> QuickGELU -> c_proj  (+ adapter branch)
    with the (TM, 4d) intermediate kept in VMEM, plus residual add."""
    it = iter(refs)
    x_ref = next(it)
    g_ref = next(it)
    be_ref = next(it)
    fc_w = next(it)
    fc_b = next(it)
    pj_w = next(it)
    pj_b = next(it)
    if adapter:
        a1_w = next(it)
        a1_b = next(it)
        a2_w = next(it)
        a2_b = next(it)
    r_ref = next(it) if ext_residual else None
    o_ref = next(it)

    x = x_ref[...].astype(jnp.float32)
    xn = _layernorm_f32(x, g_ref[...], be_ref[...])
    xnb = xn.astype(fc_w.dtype)
    h = jnp.dot(xnb, fc_w[...], preferred_element_type=jnp.float32) + fc_b[...]
    h = _apply_act(h, "quick_gelu")
    y = jnp.dot(h.astype(pj_w.dtype), pj_w[...],
                preferred_element_type=jnp.float32) + pj_b[...]
    if adapter:
        a = jnp.dot(xnb, a1_w[...], preferred_element_type=jnp.float32) + a1_b[...]
        a = _apply_act(a, "gelu")
        a = jnp.dot(a.astype(a2_w.dtype), a2_w[...],
                    preferred_element_type=jnp.float32) + a2_b[...]
        y = y + scale * a
    res = r_ref[...].astype(jnp.float32) if ext_residual else x
    o_ref[...] = (res + y).astype(o_ref.dtype)


def _attention_kernel(qkv_ref, o_ref, *, n_head, d_model, scale):
    """All heads of a batch slab: softmax(q k^T * scale) v, lane-dense output."""
    x = qkv_ref[...]                               # (bc, S, 3D), bf16 at rest
    D = d_model
    Dh = D // n_head
    outs = []
    for h in range(n_head):                        # static unroll over heads
        q = x[:, :, h * Dh:(h + 1) * Dh]
        k = x[:, :, D + h * Dh:D + (h + 1) * Dh]
        v = x[:, :, 2 * D + h * Dh:2 * D + (h + 1) * Dh]
        s = jax.lax.dot_general(q, k, (((2,), (2,)), ((0,), (0,))),
                                preferred_element_type=jnp.float32) * scale
        s = s - jnp.max(s, axis=-1, keepdims=True)
        p = jnp.exp(s)
        p = p * pl.reciprocal(jnp.sum(p, axis=-1, keepdims=True), approx=True)
        outs.append(jax.lax.dot_general(p.astype(x.dtype), v,
                                        (((2,), (1,)), ((0,), (0,))),
                                        preferred_element_type=jnp.float32))
    o = outs[0] if n_head == 1 else jnp.concatenate(outs, axis=-1)
    o_ref[...] = o.astype(o_ref.dtype)             # one full-width (S, D) store


# ----------------------------------------------------------------------------
# Pallas wrappers
# ----------------------------------------------------------------------------
def pallas_fused_linear(x2d, w, b, ln=None, act=None, residual=None,
                        res_scale=1.0, out_dtype=jnp.float32):
    """x2d: (M, K); w: (K, N) bf16 pre-transposed; b: (1, N) f32.
    Weight-resident grid: N outer, M inner -> the weight block is not
    re-streamed from HBM for every M tile."""
    M, K = x2d.shape
    N = w.shape[1]
    TN = _tile_n(N)
    n_tiles = pl.cdiv(N, TN)
    TM = _tile_m(M, other_tiles=n_tiles)
    grid = (n_tiles, pl.cdiv(M, TM))

    in_specs = [pl.BlockSpec((TM, K), lambda j, i: (i, 0))]
    args = [x2d]
    if ln is not None:
        in_specs += [pl.BlockSpec((1, K), lambda j, i: (0, 0))] * 2
        args += [ln[0], ln[1]]
    in_specs += [pl.BlockSpec((K, TN), lambda j, i: (0, j)),
                 pl.BlockSpec((1, TN), lambda j, i: (0, j))]
    args += [w, b]
    if residual is not None:
        in_specs.append(pl.BlockSpec((TM, TN), lambda j, i: (i, j)))
        args.append(residual)

    kernel = functools.partial(_fused_linear_kernel, ln=ln is not None,
                               act=act, residual=residual is not None,
                               res_scale=res_scale)
    return pl.pallas_call(
        kernel,
        out_shape=jax.ShapeDtypeStruct((M, N), out_dtype),
        grid=grid,
        in_specs=in_specs,
        out_specs=pl.BlockSpec((TM, TN), lambda j, i: (i, j)),
        compiler_params=pltpu.CompilerParams(
            dimension_semantics=("parallel", "parallel"),
            vmem_limit_bytes=_VMEM_LIMIT),
    )(*args)


def pallas_adapter(x2d, p, skip, residual=None, res_scale=1.0,
                   out_dtype=jnp.float32):
    """Fused Adapter: fc1 -> GELU -> fc2 [+ skip] [+ residual] in one kernel."""
    M, D = x2d.shape
    Dh = p["fc1_w"].shape[1]
    TM = _tile_m(M)
    grid = (pl.cdiv(M, TM),)

    in_specs = [pl.BlockSpec((TM, D), lambda i: (i, 0)),
                pl.BlockSpec((D, Dh), lambda i: (0, 0)),
                pl.BlockSpec((1, Dh), lambda i: (0, 0)),
                pl.BlockSpec((Dh, D), lambda i: (0, 0)),
                pl.BlockSpec((1, D), lambda i: (0, 0))]
    args = [x2d, p["fc1_w"], p["fc1_b"], p["fc2_w"], p["fc2_b"]]
    if residual is not None:
        in_specs.append(pl.BlockSpec((TM, D), lambda i: (i, 0)))
        args.append(residual)

    kernel = functools.partial(_adapter_kernel, skip=skip,
                               residual=residual is not None,
                               res_scale=res_scale)
    return pl.pallas_call(
        kernel,
        out_shape=jax.ShapeDtypeStruct((M, D), out_dtype),
        grid=grid,
        in_specs=in_specs,
        out_specs=pl.BlockSpec((TM, D), lambda i: (i, 0)),
        compiler_params=pltpu.CompilerParams(
            dimension_semantics=("parallel",),
            vmem_limit_bytes=_VMEM_LIMIT),
    )(*args)


def pallas_mlp_block(x2d, ln, mlp_p, adapter=None, residual=None, scale=1.0,
                     out_dtype=jnp.float32):
    """One kernel for  r + c_proj(QuickGELU(c_fc(ln2(x)))) [+ scale*Adapter(ln2(x))]
    where r = x (default) or an external residual."""
    M, D = x2d.shape
    Dm = mlp_p["fc_w"].shape[1]
    TM = _tile_m(M, cap=256)          # (TM, 4d) intermediate lives in VMEM
    grid = (pl.cdiv(M, TM),)

    in_specs = [pl.BlockSpec((TM, D), lambda i: (i, 0)),
                pl.BlockSpec((1, D), lambda i: (0, 0)),
                pl.BlockSpec((1, D), lambda i: (0, 0)),
                pl.BlockSpec((D, Dm), lambda i: (0, 0)),
                pl.BlockSpec((1, Dm), lambda i: (0, 0)),
                pl.BlockSpec((Dm, D), lambda i: (0, 0)),
                pl.BlockSpec((1, D), lambda i: (0, 0))]
    args = [x2d, ln[0], ln[1], mlp_p["fc_w"], mlp_p["fc_b"],
            mlp_p["proj_w"], mlp_p["proj_b"]]
    if adapter is not None:
        Dh = adapter["fc1_w"].shape[1]
        in_specs += [pl.BlockSpec((D, Dh), lambda i: (0, 0)),
                     pl.BlockSpec((1, Dh), lambda i: (0, 0)),
                     pl.BlockSpec((Dh, D), lambda i: (0, 0)),
                     pl.BlockSpec((1, D), lambda i: (0, 0))]
        args += [adapter["fc1_w"], adapter["fc1_b"],
                 adapter["fc2_w"], adapter["fc2_b"]]
    if residual is not None:
        in_specs.append(pl.BlockSpec((TM, D), lambda i: (i, 0)))
        args.append(residual)

    kernel = functools.partial(_mlp_block_kernel, adapter=adapter is not None,
                               ext_residual=residual is not None, scale=scale)
    return pl.pallas_call(
        kernel,
        out_shape=jax.ShapeDtypeStruct((M, D), out_dtype),
        grid=grid,
        in_specs=in_specs,
        out_specs=pl.BlockSpec((TM, D), lambda i: (i, 0)),
        compiler_params=pltpu.CompilerParams(
            dimension_semantics=("parallel",),
            vmem_limit_bytes=_VMEM_LIMIT),
    )(*args)


def pallas_attention(qkv_bsd, n_head, scale, out_dtype=jnp.bfloat16):
    """qkv_bsd: (B, S, 3D) bf16 -> (B, S, D): all heads per step, grid over B."""
    B, S, D3 = qkv_bsd.shape
    D = D3 // 3
    bc = _attn_block_b(B, S, D)
    return pl.pallas_call(
        functools.partial(_attention_kernel, n_head=n_head, d_model=D,
                          scale=scale),
        out_shape=jax.ShapeDtypeStruct((B, S, D), out_dtype),
        grid=(B // bc,),
        in_specs=[pl.BlockSpec((bc, S, D3), lambda i: (i, 0, 0))],
        out_specs=pl.BlockSpec((bc, S, D), lambda i: (i, 0, 0)),
        compiler_params=pltpu.CompilerParams(
            dimension_semantics=("parallel",),
            vmem_limit_bytes=_VMEM_LIMIT),
    )(qkv_bsd)


# ----------------------------------------------------------------------------
# Module-level building blocks (semantics of the PyTorch classes)
# ----------------------------------------------------------------------------
def attention_block(x_bsd, p, n_head, ln):
    """nn.MultiheadAttention(d, n_head) applied to ln(x); x: (B, S, D) batch-major."""
    B, S, D = x_bsd.shape
    x2 = x_bsd.reshape(B * S, D)
    qkv = pallas_fused_linear(x2, p["in_w"], p["in_b"], ln=ln,
                              out_dtype=jnp.bfloat16)          # (B*S, 3D)
    o = pallas_attention(qkv.reshape(B, S, 3 * D), n_head,
                         1.0 / math.sqrt(D // n_head))          # (B, S, D) bf16
    o = pallas_fused_linear(o.reshape(B * S, D), p["out_w"], p["out_b"],
                            out_dtype=jnp.bfloat16)
    return o.reshape(B, S, D)


def resblock_forward(t3, p, n_head, num_frames, scale, compute_aux):
    x = t3[0]                                    # (bt, n, d) batch-major, f32
    bt, n, d = x.shape
    T = num_frames
    bsz = bt // T
    ln1 = (p["ln1_g"], p["ln1_b"])
    ln2 = (p["ln2_g"], p["ln2_b"])

    # ---- temporal attention:  (b, T, n, d) -> (b*n, T, d)  (one transpose)
    xt = x.reshape(bsz, T, n, d).transpose(0, 2, 1, 3).reshape(bsz * n, T, d)
    at = attention_block(xt, p["attn"], n_head, ln=ln1)
    at = pallas_adapter(at.reshape(bsz * n * T, d), p["T_Adapter"], skip=False,
                        out_dtype=jnp.bfloat16)
    at = at.reshape(bsz, n, T, d).transpose(0, 2, 1, 3).reshape(bt, n, d)
    x = x + at.astype(jnp.float32)               # drop_path == identity (eval)

    # ---- spatial attention (already batch-major: no transposes at all)
    sa = attention_block(x, p["attn"], n_head, ln=ln1)          # (bt, n, d) bf16
    sa2 = sa.reshape(bt * n, d)
    x2 = x.reshape(bt * n, d)

    if compute_aux:
        spatial = pallas_adapter(sa2, p["S_Adapter"], skip=True)
        i_ = pallas_adapter(spatial, p["I_Adapter"], skip=True)
        t_ = pallas_adapter(spatial, p["O_Adapter"], skip=True)
        xr = x2 + spatial
    else:
        # i/t of non-final blocks are never consumed downstream -> skip them
        # and fuse the `x + spatial` residual directly into the S_Adapter.
        xr = pallas_adapter(sa2, p["S_Adapter"], skip=True, residual=x2)

    # ---- x branch, fully fused:  xr + mlp(ln2(xr)) + scale * MLP_Adapter(ln2(xr))
    x_new = pallas_mlp_block(xr, ln2, p["mlp"], adapter=p["MLP_Adapter"],
                             scale=scale)
    x_new = x_new.reshape(bt, n, d)

    if not compute_aux:
        return (x_new, t3[1], t3[2])

    # ---- i branch: i = i + mlp(ln2(i))
    i_new = pallas_mlp_block(i_, ln2, p["mlp"])
    # ---- t branch: t = i + mlp(ln2(t))   (matches PyTorch: uses UPDATED i)
    t_new = pallas_mlp_block(t_, ln2, p["mlp"], residual=i_new)
    return (x_new, i_new.reshape(bt, n, d), t_new.reshape(bt, n, d))


def transformer_forward(x, layer_params, n_head, num_frames, scale=1.0):
    """x: (n, b*t, d)  — sequence-first, as in the PyTorch module."""
    # Convert ONCE to batch-major (b*t, n, d) for the whole stack.
    xb = jnp.transpose(x, (1, 0, 2))
    t3 = (xb, 0.0, 0.0)
    L = len(layer_params)
    for li, p in enumerate(layer_params):
        t3 = resblock_forward(t3, p, n_head, num_frames, scale,
                              compute_aux=(li == L - 1))
    back = lambda a: jnp.transpose(a, (1, 0, 2))
    return back(t3[0]), back(t3[1]), back(t3[2])


# ----------------------------------------------------------------------------
# Deterministic parameter initialization (shapes from the PyTorch __init__).
# Matmul weights are stored PRE-TRANSPOSED as (K, N) and in bfloat16; biases
# and LayerNorm params are f32 with shape (1, N) / (1, D).
# ----------------------------------------------------------------------------
def init_adapter(key, d):
    dh = int(d * 0.25)
    k1, k2 = jax.random.split(key)
    return {
        "fc1_w": (0.02 * jax.random.normal(k1, (d, dh), jnp.float32)
                  ).astype(jnp.bfloat16),
        "fc1_b": jnp.zeros((1, dh), jnp.float32),
        "fc2_w": (0.02 * jax.random.normal(k2, (dh, d), jnp.float32)
                  ).astype(jnp.bfloat16),
        "fc2_b": jnp.zeros((1, d), jnp.float32),
    }


def init_block(key, d):
    ks = jax.random.split(key, 9)
    return {
        "ln1_g": jnp.ones((1, d), jnp.float32),
        "ln1_b": jnp.zeros((1, d), jnp.float32),
        "ln2_g": jnp.ones((1, d), jnp.float32),
        "ln2_b": jnp.zeros((1, d), jnp.float32),
        "attn": {
            "in_w": (0.02 * jax.random.normal(ks[0], (d, 3 * d), jnp.float32)
                     ).astype(jnp.bfloat16),
            "in_b": jnp.zeros((1, 3 * d), jnp.float32),
            "out_w": (0.02 * jax.random.normal(ks[1], (d, d), jnp.float32)
                      ).astype(jnp.bfloat16),
            "out_b": jnp.zeros((1, d), jnp.float32),
        },
        "mlp": {
            "fc_w": (0.02 * jax.random.normal(ks[2], (d, 4 * d), jnp.float32)
                     ).astype(jnp.bfloat16),
            "fc_b": jnp.zeros((1, 4 * d), jnp.float32),
            "proj_w": (0.02 * jax.random.normal(ks[3], (4 * d, d), jnp.float32)
                       ).astype(jnp.bfloat16),
            "proj_b": jnp.zeros((1, d), jnp.float32),
        },
        "MLP_Adapter": init_adapter(ks[4], d),
        "S_Adapter": init_adapter(ks[5], d),
        "I_Adapter": init_adapter(ks[6], d),
        "O_Adapter": init_adapter(ks[7], d),
        "T_Adapter": init_adapter(ks[8], d),
    }


# ----------------------------------------------------------------------------
if __name__ == "__main__":
    # Small, module-consistent shapes:
    #   width (d_model) = 32, heads = 4, layers = 2, num_frames = 4,
    #   batch b = 2, spatial tokens n = 8  ->  x: (n, b*num_frames, d)
    num_frames, width, layers, heads = 4, 32, 2, 4
    b, n = 2, 8

    key = jax.random.PRNGKey(0)
    k_x, *k_layers = jax.random.split(key, layers + 1)
    x = jax.random.normal(k_x, (n, b * num_frames, width), jnp.float32)
    layer_params = [init_block(k_layers[i], width) for i in range(layers)]

    fwd = jax.jit(functools.partial(transformer_forward,
                                    n_head=heads,
                                    num_frames=num_frames,
                                    scale=1.0))
    out_x, out_i, out_t = fwd(x, layer_params)
    jax.block_until_ready((out_x, out_i, out_t))

    assert out_x.shape == (n, b * num_frames, width)
    assert out_i.shape == (n, b * num_frames, width)
    assert out_t.shape == (n, b * num_frames, width)
    assert jnp.all(jnp.isfinite(out_x)) and jnp.all(jnp.isfinite(out_i)) \
        and jnp.all(jnp.isfinite(out_t))
    print("KERNEL_OK")
</pallas_src>

<mosaic_0001>
module attributes {stable_mosaic.version = 11 : i64} {
  func.func @_fused_linear_kernel(%arg0: i32, %arg1: i32, %arg2: memref<32x32xf32, #tpu.memory_space<vmem>>, %arg3: memref<1x32xf32, #tpu.memory_space<vmem>>, %arg4: memref<1x32xf32, #tpu.memory_space<vmem>>, %arg5: memref<32x96xbf16, #tpu.memory_space<vmem>>, %arg6: memref<1x96xf32, #tpu.memory_space<vmem>>, %arg7: memref<32x96xbf16, #tpu.memory_space<vmem>>) attributes {dimension_semantics = [#tpu.dimension_semantics<parallel>, #tpu.dimension_semantics<parallel>], iteration_bounds = array<i64: 1, 2>, scalar_prefetch = 0 : i64, scratch_operands = 0 : i64, tpu.core_type = #tpu.core_type<tc>, window_params = [{transform_indices = @transform_0, window_bounds = array<i64: 32, 32>}, {pipeline_mode = #tpu.pipeline_mode<synchronous>, transform_indices = @transform_1, window_bounds = array<i64: 1, 32>}, {pipeline_mode = #tpu.pipeline_mode<synchronous>, transform_indices = @transform_2, window_bounds = array<i64: 1, 32>}, {transform_indices = @transform_3, window_bounds = array<i64: 32, 96>}, {transform_indices = @transform_4, window_bounds = array<i64: 1, 96>}, {transform_indices = @transform_5, window_bounds = array<i64: 32, 96>}]} {
    %c0 = arith.constant 0 : index
    %c0_0 = arith.constant 0 : index
    %0 = vector.load %arg2[%c0, %c0_0] : memref<32x32xf32, #tpu.memory_space<vmem>>, vector<32x32xf32>
    %c0_1 = arith.constant 0 : index
    %c0_2 = arith.constant 0 : index
    %1 = vector.load %arg3[%c0_1, %c0_2] : memref<1x32xf32, #tpu.memory_space<vmem>>, vector<1x32xf32>
    %c0_3 = arith.constant 0 : index
    %c0_4 = arith.constant 0 : index
    %2 = vector.load %arg4[%c0_3, %c0_4] : memref<1x32xf32, #tpu.memory_space<vmem>>, vector<1x32xf32>
    %cst = arith.constant dense<0.000000e+00> : vector<32xf32>
    %3 = vector.multi_reduction <add>, %0, %cst [1] : vector<32x32xf32> to vector<32xf32>
    %4 = vector.shape_cast %3 : vector<32xf32> to vector<32x1xf32>
    %cst_5 = arith.constant 3.200000e+01 : f32
    %5 = vector.broadcast %cst_5 : f32 to vector<32x1xf32>
    %6 = arith.divf %4, %5 : vector<32x1xf32>
    %7 = vector.broadcast %6 : vector<32x1xf32> to vector<32x32xf32>
    %8 = arith.subf %0, %7 : vector<32x32xf32>
    %9 = arith.mulf %8, %8 : vector<32x32xf32>
    %cst_6 = arith.constant dense<0.000000e+00> : vector<32xf32>
    %10 = vector.multi_reduction <add>, %9, %cst_6 [1] : vector<32x32xf32> to vector<32xf32>
    %11 = vector.shape_cast %10 : vector<32xf32> to vector<32x1xf32>
    %cst_7 = arith.constant 3.200000e+01 : f32
    %12 = vector.broadcast %cst_7 : f32 to vector<32x1xf32>
    %13 = arith.divf %11, %12 : vector<32x1xf32>
    %cst_8 = arith.constant 9.99999974E-6 : f32
    %14 = vector.broadcast %cst_8 : f32 to vector<32x1xf32>
    %15 = arith.addf %13, %14 : vector<32x1xf32>
    %16 = math.rsqrt %15 : vector<32x1xf32>
    %17 = vector.broadcast %16 : vector<32x1xf32> to vector<32x32xf32>
    %18 = arith.mulf %8, %17 : vector<32x32xf32>
    %19 = vector.broadcast %1 : vector<1x32xf32> to vector<32x32xf32>
    %20 = arith.mulf %18, %19 : vector<32x32xf32>
    %21 = vector.broadcast %2 : vector<1x32xf32> to vector<32x32xf32>
    %22 = arith.addf %20, %21 : vector<32x32xf32>
    %23 = arith.truncf %22 : vector<32x32xf32> to vector<32x32xbf16>
    %c0_9 = arith.constant 0 : index
    %c0_10 = arith.constant 0 : index
    %24 = vector.load %arg5[%c0_9, %c0_10] : memref<32x96xbf16, #tpu.memory_space<vmem>>, vector<32x96xbf16>
    %cst_11 = arith.constant dense<0.000000e+00> : vector<32x96xf32>
    %25 = tpu.matmul %23, %24, %cst_11 {dimension_numbers = #tpu.dot_dimension_numbers<[1], [0], [0], [1], [0, 0, 1, 1], [], []>} : vector<32x32xbf16>, vector<32x96xbf16>, vector<32x96xf32> -> vector<32x96xf32>
    %c0_12 = arith.constant 0 : index
    %c0_13 = arith.constant 0 : index
    %26 = vector.load %arg6[%c0_12, %c0_13] : memref<1x96xf32, #tpu.memory_space<vmem>>, vector<1x96xf32>
    %27 = vector.broadcast %26 : vector<1x96xf32> to vector<32x96xf32>
    %28 = arith.addf %25, %27 : vector<32x96xf32>
    %29 = arith.truncf %28 : vector<32x96xf32> to vector<32x96xbf16>
    %c0_14 = arith.constant 0 : index
    %c0_15 = arith.constant 0 : index
    %30 = vector.load %arg7[%c0_14, %c0_15] : memref<32x96xbf16, #tpu.memory_space<vmem>>, vector<32x96xbf16>
    tpu.vector_store %arg7[%c0_14, %c0_15], %29 {strides = array<i32>} : memref<32x96xbf16, #tpu.memory_space<vmem>>, vector<32x96xbf16>,
    return
  }
  func.func @transform_0(%arg0: i32, %arg1: i32) -> (i32, i32) {
    %c0_i32 = arith.constant 0 : i32
    %c0_i32_0 = arith.constant 0 : i32
    return %arg1, %c0_i32 : i32, i32
  }
  func.func @transform_1(%arg0: i32, %arg1: i32) -> (i32, i32) {
    %c0_i32 = arith.constant 0 : i32
    %c0_i32_0 = arith.constant 0 : i32
    %c0_i32_1 = arith.constant 0 : i32
    return %c0_i32, %c0_i32_0 : i32, i32
  }
  func.func @transform_2(%arg0: i32, %arg1: i32) -> (i32, i32) {
    %c0_i32 = arith.constant 0 : i32
    %c0_i32_0 = arith.constant 0 : i32
    %c0_i32_1 = arith.constant 0 : i32
    return %c0_i32, %c0_i32_0 : i32, i32
  }
  func.func @transform_3(%arg0: i32, %arg1: i32) -> (i32, i32) {
    %c0_i32 = arith.constant 0 : i32
    %c0_i32_0 = arith.constant 0 : i32
    return %c0_i32, %arg0 : i32, i32
  }
  func.func @transform_4(%arg0: i32, %arg1: i32) -> (i32, i32) {
    %c0_i32 = arith.constant 0 : i32
    %c0_i32_0 = arith.constant 0 : i32
    return %c0_i32, %arg0 : i32, i32
  }
  func.func @transform_5(%arg0: i32, %arg1: i32) -> (i32, i32) {
    %c0_i32 = arith.constant 0 : i32
    return %arg1, %arg0 : i32, i32
  }
}

module attributes {stable_mosaic.version = 11 : i64} {
  func.func @_fused_linear_kernel(%arg0: i32, %arg1: i32, %arg2: memref<32x32xbf16, #tpu.memory_space<vmem>>, %arg3: memref<32x32xbf16, #tpu.memory_space<vmem>>, %arg4: memref<1x32xf32, #tpu.memory_space<vmem>>, %arg5: memref<32x32xbf16, #tpu.memory_space<vmem>>) attributes {dimension_semantics = [#tpu.dimension_semantics<parallel>, #tpu.dimension_semantics<parallel>], iteration_bounds = array<i64: 1, 2>, scalar_prefetch = 0 : i64, scratch_operands = 0 : i64, tpu.core_type = #tpu.core_type<tc>, window_params = [{transform_indices = @transform_0, window_bounds = array<i64: 32, 32>}, {transform_indices = @transform_1, window_bounds = array<i64: 32, 32>}, {transform_indices = @transform_2, window_bounds = array<i64: 1, 32>}, {transform_indices = @transform_3, window_bounds = array<i64: 32, 32>}]} {
    %c0 = arith.constant 0 : index
    %c0_0 = arith.constant 0 : index
    %0 = vector.load %arg2[%c0, %c0_0] : memref<32x32xbf16, #tpu.memory_space<vmem>>, vector<32x32xbf16>
    %c0_1 = arith.constant 0 : index
    %c0_2 = arith.constant 0 : index
    %1 = vector.load %arg3[%c0_1, %c0_2] : memref<32x32xbf16, #tpu.memory_space<vmem>>, vector<32x32xbf16>
    %cst = arith.constant dense<0.000000e+00> : vector<32x32xf32>
    %2 = tpu.matmul %0, %1, %cst {dimension_numbers = #tpu.dot_dimension_numbers<[1], [0], [0], [1], [0, 0, 1, 1], [], []>} : vector<32x32xbf16>, vector<32x32xbf16>, vector<32x32xf32> -> vector<32x32xf32>
    %c0_3 = arith.constant 0 : index
    %c0_4 = arith.constant 0 : index
    %3 = vector.load %arg4[%c0_3, %c0_4] : memref<1x32xf32, #tpu.memory_space<vmem>>, vector<1x32xf32>
    %4 = vector.broadcast %3 : vector<1x32xf32> to vector<32x32xf32>
    %5 = arith.addf %2, %4 : vector<32x32xf32>
    %6 = arith.truncf %5 : vector<32x32xf32> to vector<32x32xbf16>
    %c0_5 = arith.constant 0 : index
    %c0_6 = arith.constant 0 : index
    %7 = vector.load %arg5[%c0_5, %c0_6] : memref<32x32xbf16, #tpu.memory_space<vmem>>, vector<32x32xbf16>
    tpu.vector_store %arg5[%c0_5, %c0_6], %6 {strides = array<i32>} : memref<32x32xbf16, #tpu.memory_space<vmem>>, vector<32x32xbf16>,
    return
  }
  func.func @transform_0(%arg0: i32, %arg1: i32) -> (i32, i32) {
    %c0_i32 = arith.constant 0 : i32
    %c0_i32_0 = arith.constant 0 : i32
    return %arg1, %c0_i32 : i32, i32
  }
  func.func @transform_1(%arg0: i32, %arg1: i32) -> (i32, i32) {
    %c0_i32 = arith.constant 0 : i32
    %c0_i32_0 = arith.constant 0 : i32
    return %c0_i32, %arg0 : i32, i32
  }
  func.func @transform_2(%arg0: i32, %arg1: i32) -> (i32, i32) {
    %c0_i32 = arith.constant 0 : i32
    %c0_i32_0 = arith.constant 0 : i32
    return %c0_i32, %arg0 : i32, i32
  }
  func.func @transform_3(%arg0: i32, %arg1: i32) -> (i32, i32) {
    %c0_i32 = arith.constant 0 : i32
    return %arg1, %arg0 : i32, i32
  }
}

module attributes {stable_mosaic.version = 11 : i64} {
  func.func @_attention_kernel(%arg0: i32, %arg1: memref<8x4x96xbf16, #tpu.memory_space<vmem>>, %arg2: memref<8x4x32xbf16, #tpu.memory_space<vmem>>) attributes {dimension_semantics = [#tpu.dimension_semantics<parallel>], iteration_bounds = array<i64: 2>, scalar_prefetch = 0 : i64, scratch_operands = 0 : i64, tpu.core_type = #tpu.core_type<tc>, window_params = [{transform_indices = @transform_0, window_bounds = array<i64: 8, 4, 96>}, {transform_indices = @transform_1, window_bounds = array<i64: 8, 4, 32>}]} {
    %c0 = arith.constant 0 : index
    %c0_0 = arith.constant 0 : index
    %c0_1 = arith.constant 0 : index
    %0 = vector.load %arg1[%c0, %c0_0, %c0_1] : memref<8x4x96xbf16, #tpu.memory_space<vmem>>, vector<8x4x96xbf16>
    %1 = vector.extract_strided_slice %0 {offsets = [0, 0, 0], sizes = [8, 4, 8], strides = [1, 1, 1]} : vector<8x4x96xbf16> to vector<8x4x8xbf16>
    %2 = vector.extract_strided_slice %0 {offsets = [0, 0, 32], sizes = [8, 4, 8], strides = [1, 1, 1]} : vector<8x4x96xbf16> to vector<8x4x8xbf16>
    %3 = vector.extract_strided_slice %0 {offsets = [0, 0, 64], sizes = [8, 4, 8], strides = [1, 1, 1]} : vector<8x4x96xbf16> to vector<8x4x8xbf16>
    %cst = arith.constant dense<0.000000e+00> : vector<8x4x4xf32>
    %4 = tpu.matmul %1, %2, %cst {dimension_numbers = #tpu.dot_dimension_numbers<[2], [2], [1], [1], [0, 0, 0, 1, 1, 1], [0], [0]>} : vector<8x4x8xbf16>, vector<8x4x8xbf16>, vector<8x4x4xf32> -> vector<8x4x4xf32>
    %cst_2 = arith.constant 0.353553385 : f32
    %5 = vector.broadcast %cst_2 : f32 to vector<8x4x4xf32>
    %6 = arith.mulf %4, %5 : vector<8x4x4xf32>
    %cst_3 = arith.constant dense<0xFF800000> : vector<8x4xf32>
    %7 = vector.multi_reduction <maximumf>, %6, %cst_3 [2] : vector<8x4x4xf32> to vector<8x4xf32>
    %8 = vector.shape_cast %7 : vector<8x4xf32> to vector<8x4x1xf32>
    %9 = vector.broadcast %8 : vector<8x4x1xf32> to vector<8x4x4xf32>
    %10 = arith.subf %6, %9 : vector<8x4x4xf32>
    %11 = math.exp %10 : vector<8x4x4xf32>
    %cst_4 = arith.constant dense<0.000000e+00> : vector<8x4xf32>
    %12 = vector.multi_reduction <add>, %11, %cst_4 [2] : vector<8x4x4xf32> to vector<8x4xf32>
    %13 = vector.shape_cast %12 : vector<8x4xf32> to vector<8x4x1xf32>
    %14 = tpu.reciprocal %13 {approx = true} : vector<8x4x1xf32> -> vector<8x4x1xf32>
    %15 = vector.broadcast %14 : vector<8x4x1xf32> to vector<8x4x4xf32>
    %16 = arith.mulf %11, %15 : vector<8x4x4xf32>
    %17 = arith.truncf %16 : vector<8x4x4xf32> to vector<8x4x4xbf16>
    %cst_5 = arith.constant dense<0.000000e+00> : vector<8x4x8xf32>
    %18 = tpu.matmul %17, %3, %cst_5 {dimension_numbers = #tpu.dot_dimension_numbers<[2], [1], [1], [2], [0, 0, 0, 1, 1, 2], [0], [0]>} : vector<8x4x4xbf16>, vector<8x4x8xbf16>, vector<8x4x8xf32> -> vector<8x4x8xf32>
    %19 = vector.extract_strided_slice %0 {offsets = [0, 0, 8], sizes = [8, 4, 8], strides = [1, 1, 1]} : vector<8x4x96xbf16> to vector<8x4x8xbf16>
    %20 = vector.extract_strided_slice %0 {offsets = [0, 0, 40], sizes = [8, 4, 8], strides = [1, 1, 1]} : vector<8x4x96xbf16> to vector<8x4x8xbf16>
    %21 = vector.extract_strided_slice %0 {offsets = [0, 0, 72], sizes = [8, 4, 8], strides = [1, 1, 1]} : vector<8x4x96xbf16> to vector<8x4x8xbf16>
    %cst_6 = arith.constant dense<0.000000e+00> : vector<8x4x4xf32>
    %22 = tpu.matmul %19, %20, %cst_6 {dimension_numbers = #tpu.dot_dimension_numbers<[2], [2], [1], [1], [0, 0, 0, 1, 1, 1], [0], [0]>} : vector<8x4x8xbf16>, vector<8x4x8xbf16>, vector<8x4x4xf32> -> vector<8x4x4xf32>
    %cst_7 = arith.constant 0.353553385 : f32
    %23 = vector.broadcast %cst_7 : f32 to vector<8x4x4xf32>
    %24 = arith.mulf %22, %23 : vector<8x4x4xf32>
    %cst_8 = arith.constant dense<0xFF800000> : vector<8x4xf32>
    %25 = vector.multi_reduction <maximumf>, %24, %cst_8 [2] : vector<8x4x4xf32> to vector<8x4xf32>
    %26 = vector.shape_cast %25 : vector<8x4xf32> to vector<8x4x1xf32>
    %27 = vector.broadcast %26 : vector<8x4x1xf32> to vector<8x4x4xf32>
    %28 = arith.subf %24, %27 : vector<8x4x4xf32>
    %29 = math.exp %28 : vector<8x4x4xf32>
    %cst_9 = arith.constant dense<0.000000e+00> : vector<8x4xf32>
    %30 = vector.multi_reduction <add>, %29, %cst_9 [2] : vector<8x4x4xf32> to vector<8x4xf32>
    %31 = vector.shape_cast %30 : vector<8x4xf32> to vector<8x4x1xf32>
    %32 = tpu.reciprocal %31 {approx = true} : vector<8x4x1xf32> -> vector<8x4x1xf32>
    %33 = vector.broadcast %32 : vector<8x4x1xf32> to vector<8x4x4xf32>
    %34 = arith.mulf %29, %33 : vector<8x4x4xf32>
    %35 = arith.truncf %34 : vector<8x4x4xf32> to vector<8x4x4xbf16>
    %cst_10 = arith.constant dense<0.000000e+00> : vector<8x4x8xf32>
    %36 = tpu.matmul %35, %21, %cst_10 {dimension_numbers = #tpu.dot_dimension_numbers<[2], [1], [1], [2], [0, 0, 0, 1, 1, 2], [0], [0]>} : vector<8x4x4xbf16>, vector<8x4x8xbf16>, vector<8x4x8xf32> -> vector<8x4x8xf32>
    %37 = vector.extract_strided_slice %0 {offsets = [0, 0, 16], sizes = [8, 4, 8], strides = [1, 1, 1]} : vector<8x4x96xbf16> to vector<8x4x8xbf16>
    %38 = vector.extract_strided_slice %0 {offsets = [0, 0, 48], sizes = [8, 4, 8], strides = [1, 1, 1]} : vector<8x4x96xbf16> to vector<8x4x8xbf16>
    %39 = vector.extract_strided_slice %0 {offsets = [0, 0, 80], sizes = [8, 4, 8], strides = [1, 1, 1]} : vector<8x4x96xbf16> to vector<8x4x8xbf16>
    %cst_11 = arith.constant dense<0.000000e+00> : vector<8x4x4xf32>
    %40 = tpu.matmul %37, %38, %cst_11 {dimension_numbers = #tpu.dot_dimension_numbers<[2], [2], [1], [1], [0, 0, 0, 1, 1, 1], [0], [0]>} : vector<8x4x8xbf16>, vector<8x4x8xbf16>, vector<8x4x4xf32> -> vector<8x4x4xf32>
    %cst_12 = arith.constant 0.353553385 : f32
    %41 = vector.broadcast %cst_12 : f32 to vector<8x4x4xf32>
    %42 = arith.mulf %40, %41 : vector<8x4x4xf32>
    %cst_13 = arith.constant dense<0xFF800000> : vector<8x4xf32>
    %43 = vector.multi_reduction <maximumf>, %42, %cst_13 [2] : vector<8x4x4xf32> to vector<8x4xf32>
    %44 = vector.shape_cast %43 : vector<8x4xf32> to vector<8x4x1xf32>
    %45 = vector.broadcast %44 : vector<8x4x1xf32> to vector<8x4x4xf32>
    %46 = arith.subf %42, %45 : vector<8x4x4xf32>
    %47 = math.exp %46 : vector<8x4x4xf32>
    %cst_14 = arith.constant dense<0.000000e+00> : vector<8x4xf32>
    %48 = vector.multi_reduction <add>, %47, %cst_14 [2] : vector<8x4x4xf32> to vector<8x4xf32>
    %49 = vector.shape_cast %48 : vector<8x4xf32> to vector<8x4x1xf32>
    %50 = tpu.reciprocal %49 {approx = true} : vector<8x4x1xf32> -> vector<8x4x1xf32>
    %51 = vector.broadcast %50 : vector<8x4x1xf32> to vector<8x4x4xf32>
    %52 = arith.mulf %47, %51 : vector<8x4x4xf32>
    %53 = arith.truncf %52 : vector<8x4x4xf32> to vector<8x4x4xbf16>
    %cst_15 = arith.constant dense<0.000000e+00> : vector<8x4x8xf32>
    %54 = tpu.matmul %53, %39, %cst_15 {dimension_numbers = #tpu.dot_dimension_numbers<[2], [1], [1], [2], [0, 0, 0, 1, 1, 2], [0], [0]>} : vector<8x4x4xbf16>, vector<8x4x8xbf16>, vector<8x4x8xf32> -> vector<8x4x8xf32>
    %55 = vector.extract_strided_slice %0 {offsets = [0, 0, 24], sizes = [8, 4, 8], strides = [1, 1, 1]} : vector<8x4x96xbf16> to vector<8x4x8xbf16>
    %56 = vector.extract_strided_slice %0 {offsets = [0, 0, 56], sizes = [8, 4, 8], strides = [1, 1, 1]} : vector<8x4x96xbf16> to vector<8x4x8xbf16>
    %57 = vector.extract_strided_slice %0 {offsets = [0, 0, 88], sizes = [8, 4, 8], strides = [1, 1, 1]} : vector<8x4x96xbf16> to vector<8x4x8xbf16>
    %cst_16 = arith.constant dense<0.000000e+00> : vector<8x4x4xf32>
    %58 = tpu.matmul %55, %56, %cst_16 {dimension_numbers = #tpu.dot_dimension_numbers<[2], [2], [1], [1], [0, 0, 0, 1, 1, 1], [0], [0]>} : vector<8x4x8xbf16>, vector<8x4x8xbf16>, vector<8x4x4xf32> -> vector<8x4x4xf32>
    %cst_17 = arith.constant 0.353553385 : f32
    %59 = vector.broadcast %cst_17 : f32 to vector<8x4x4xf32>
    %60 = arith.mulf %58, %59 : vector<8x4x4xf32>
    %cst_18 = arith.constant dense<0xFF800000> : vector<8x4xf32>
    %61 = vector.multi_reduction <maximumf>, %60, %cst_18 [2] : vector<8x4x4xf32> to vector<8x4xf32>
    %62 = vector.shape_cast %61 : vector<8x4xf32> to vector<8x4x1xf32>
    %63 = vector.broadcast %62 : vector<8x4x1xf32> to vector<8x4x4xf32>
    %64 = arith.subf %60, %63 : vector<8x4x4xf32>
    %65 = math.exp %64 : vector<8x4x4xf32>
    %cst_19 = arith.constant dense<0.000000e+00> : vector<8x4xf32>
    %66 = vector.multi_reduction <add>, %65, %cst_19 [2] : vector<8x4x4xf32> to vector<8x4xf32>
    %67 = vector.shape_cast %66 : vector<8x4xf32> to vector<8x4x1xf32>
    %68 = tpu.reciprocal %67 {approx = true} : vector<8x4x1xf32> -> vector<8x4x1xf32>
    %69 = vector.broadcast %68 : vector<8x4x1xf32> to vector<8x4x4xf32>
    %70 = arith.mulf %65, %69 : vector<8x4x4xf32>
    %71 = arith.truncf %70 : vector<8x4x4xf32> to vector<8x4x4xbf16>
    %cst_20 = arith.constant dense<0.000000e+00> : vector<8x4x8xf32>
    %72 = tpu.matmul %71, %57, %cst_20 {dimension_numbers = #tpu.dot_dimension_numbers<[2], [1], [1], [2], [0, 0, 0, 1, 1, 2], [0], [0]>} : vector<8x4x4xbf16>, vector<8x4x8xbf16>, vector<8x4x8xf32> -> vector<8x4x8xf32>
    %73 = tpu.concatenate %18, %36, %54, %72 in 2 : vector<8x4x8xf32>, vector<8x4x8xf32>, vector<8x4x8xf32>, vector<8x4x8xf32> -> vector<8x4x32xf32>
    %74 = arith.truncf %73 : vector<8x4x32xf32> to vector<8x4x32xbf16>
    %c0_21 = arith.constant 0 : index
    %c0_22 = arith.constant 0 : index
    %c0_23 = arith.constant 0 : index
    %75 = vector.load %arg2[%c0_21, %c0_22, %c0_23] : memref<8x4x32xbf16, #tpu.memory_space<vmem>>, vector<8x4x32xbf16>
    tpu.vector_store %arg2[%c0_21, %c0_22, %c0_23], %74 {strides = array<i32>} : memref<8x4x32xbf16, #tpu.memory_space<vmem>>, vector<8x4x32xbf16>,
    return
  }
  func.func @transform_0(%arg0: i32) -> (i32, i32, i32) {
    %c0_i32 = arith.constant 0 : i32
    %c0_i32_0 = arith.constant 0 : i32
    %c0_i32_1 = arith.constant 0 : i32
    return %arg0, %c0_i32, %c0_i32_0 : i32, i32, i32
  }
  func.func @transform_1(%arg0: i32) -> (i32, i32, i32) {
    %c0_i32 = arith.constant 0 : i32
    %c0_i32_0 = arith.constant 0 : i32
    %c0_i32_1 = arith.constant 0 : i32
    return %arg0, %c0_i32, %c0_i32_0 : i32, i32, i32
  }
}

module attributes {stable_mosaic.version = 11 : i64} {
  func.func @_adapter_kernel(%arg0: i32, %arg1: memref<32x32xbf16, #tpu.memory_space<vmem>>, %arg2: memref<32x8xbf16, #tpu.memory_space<vmem>>, %arg3: memref<1x8xf32, #tpu.memory_space<vmem>>, %arg4: memref<8x32xbf16, #tpu.memory_space<vmem>>, %arg5: memref<1x32xf32, #tpu.memory_space<vmem>>, %arg6: memref<32x32xbf16, #tpu.memory_space<vmem>>) attributes {dimension_semantics = [#tpu.dimension_semantics<parallel>], iteration_bounds = array<i64: 2>, scalar_prefetch = 0 : i64, scratch_operands = 0 : i64, tpu.core_type = #tpu.core_type<tc>, window_params = [{transform_indices = @transform_0, window_bounds = array<i64: 32, 32>}, {pipeline_mode = #tpu.pipeline_mode<synchronous>, transform_indices = @transform_1, window_bounds = array<i64: 32, 8>}, {pipeline_mode = #tpu.pipeline_mode<synchronous>, transform_indices = @transform_2, window_bounds = array<i64: 1, 8>}, {pipeline_mode = #tpu.pipeline_mode<synchronous>, transform_indices = @transform_3, window_bounds = array<i64: 8, 32>}, {pipeline_mode = #tpu.pipeline_mode<synchronous>, transform_indices = @transform_4, window_bounds = array<i64: 1, 32>}, {transform_indices = @transform_5, window_bounds = array<i64: 32, 32>}]} {
    %c0 = arith.constant 0 : index
    %c0_0 = arith.constant 0 : index
    %0 = vector.load %arg1[%c0, %c0_0] : memref<32x32xbf16, #tpu.memory_space<vmem>>, vector<32x32xbf16>
    %c0_1 = arith.constant 0 : index
    %c0_2 = arith.constant 0 : index
    %1 = vector.load %arg2[%c0_1, %c0_2] : memref<32x8xbf16, #tpu.memory_space<vmem>>, vector<32x8xbf16>
    %cst = arith.constant dense<0.000000e+00> : vector<32x8xf32>
    %2 = tpu.matmul %0, %1, %cst {dimension_numbers = #tpu.dot_dimension_numbers<[1], [0], [0], [1], [0, 0, 1, 1], [], []>} : vector<32x32xbf16>, vector<32x8xbf16>, vector<32x8xf32> -> vector<32x8xf32>
    %c0_3 = arith.constant 0 : index
    %c0_4 = arith.constant 0 : index
    %3 = vector.load %arg3[%c0_3, %c0_4] : memref<1x8xf32, #tpu.memory_space<vmem>>, vector<1x8xf32>
    %4 = vector.broadcast %3 : vector<1x8xf32> to vector<32x8xf32>
    %5 = arith.addf %2, %4 : vector<32x8xf32>
    %cst_5 = arith.constant 5.000000e-01 : f32
    %6 = vector.broadcast %cst_5 : f32 to vector<32x8xf32>
    %7 = arith.mulf %6, %5 : vector<32x8xf32>
    %cst_6 = arith.constant 0.707106769 : f32
    %8 = vector.broadcast %cst_6 : f32 to vector<32x8xf32>
    %9 = arith.mulf %5, %8 : vector<32x8xf32>
    %10 = math.erf %9 : vector<32x8xf32>
    %cst_7 = arith.constant 1.000000e+00 : f32
    %11 = vector.broadcast %cst_7 : f32 to vector<32x8xf32>
    %12 = arith.addf %11, %10 : vector<32x8xf32>
    %13 = arith.mulf %7, %12 : vector<32x8xf32>
    %14 = arith.truncf %13 : vector<32x8xf32> to vector<32x8xbf16>
    %c0_8 = arith.constant 0 : index
    %c0_9 = arith.constant 0 : index
    %15 = vector.load %arg4[%c0_8, %c0_9] : memref<8x32xbf16, #tpu.memory_space<vmem>>, vector<8x32xbf16>
    %cst_10 = arith.constant dense<0.000000e+00> : vector<32x32xf32>
    %16 = tpu.matmul %14, %15, %cst_10 {dimension_numbers = #tpu.dot_dimension_numbers<[1], [0], [0], [1], [0, 0, 1, 1], [], []>} : vector<32x8xbf16>, vector<8x32xbf16>, vector<32x32xf32> -> vector<32x32xf32>
    %c0_11 = arith.constant 0 : index
    %c0_12 = arith.constant 0 : index
    %17 = vector.load %arg5[%c0_11, %c0_12] : memref<1x32xf32, #tpu.memory_space<vmem>>, vector<1x32xf32>
    %18 = vector.broadcast %17 : vector<1x32xf32> to vector<32x32xf32>
    %19 = arith.addf %16, %18 : vector<32x32xf32>
    %20 = arith.truncf %19 : vector<32x32xf32> to vector<32x32xbf16>
    %c0_13 = arith.constant 0 : index
    %c0_14 = arith.constant 0 : index
    %21 = vector.load %arg6[%c0_13, %c0_14] : memref<32x32xbf16, #tpu.memory_space<vmem>>, vector<32x32xbf16>
    tpu.vector_store %arg6[%c0_13, %c0_14], %20 {strides = array<i32>} : memref<32x32xbf16, #tpu.memory_space<vmem>>, vector<32x32xbf16>,
    return
  }
  func.func @transform_0(%arg0: i32) -> (i32, i32) {
    %c0_i32 = arith.constant 0 : i32
    %c0_i32_0 = arith.constant 0 : i32
    return %arg0, %c0_i32 : i32, i32
  }
  func.func @transform_1(%arg0: i32) -> (i32, i32) {
    %c0_i32 = arith.constant 0 : i32
    %c0_i32_0 = arith.constant 0 : i32
    %c0_i32_1 = arith.constant 0 : i32
    return %c0_i32, %c0_i32_0 : i32, i32
  }
  func.func @transform_2(%arg0: i32) -> (i32, i32) {
    %c0_i32 = arith.constant 0 : i32
    %c0_i32_0 = arith.constant 0 : i32
    %c0_i32_1 = arith.constant 0 : i32
    return %c0_i32, %c0_i32_0 : i32, i32
  }
  func.func @transform_3(%arg0: i32) -> (i32, i32) {
    %c0_i32 = arith.constant 0 : i32
    %c0_i32_0 = arith.constant 0 : i32
    %c0_i32_1 = arith.constant 0 : i32
    return %c0_i32, %c0_i32_0 : i32, i32
  }
  func.func @transform_4(%arg0: i32) -> (i32, i32) {
    %c0_i32 = arith.constant 0 : i32
    %c0_i32_0 = arith.constant 0 : i32
    %c0_i32_1 = arith.constant 0 : i32
    return %c0_i32, %c0_i32_0 : i32, i32
  }
  func.func @transform_5(%arg0: i32) -> (i32, i32) {
    %c0_i32 = arith.constant 0 : i32
    %c0_i32_0 = arith.constant 0 : i32
    return %arg0, %c0_i32 : i32, i32
  }
}

module attributes {stable_mosaic.version = 11 : i64} {
  func.func @_attention_kernel(%arg0: i32, %arg1: memref<4x8x96xbf16, #tpu.memory_space<vmem>>, %arg2: memref<4x8x32xbf16, #tpu.memory_space<vmem>>) attributes {dimension_semantics = [#tpu.dimension_semantics<parallel>], iteration_bounds = array<i64: 2>, scalar_prefetch = 0 : i64, scratch_operands = 0 : i64, tpu.core_type = #tpu.core_type<tc>, window_params = [{transform_indices = @transform_0, window_bounds = array<i64: 4, 8, 96>}, {transform_indices = @transform_1, window_bounds = array<i64: 4, 8, 32>}]} {
    %c0 = arith.constant 0 : index
    %c0_0 = arith.constant 0 : index
    %c0_1 = arith.constant 0 : index
    %0 = vector.load %arg1[%c0, %c0_0, %c0_1] : memref<4x8x96xbf16, #tpu.memory_space<vmem>>, vector<4x8x96xbf16>
    %1 = vector.extract_strided_slice %0 {offsets = [0, 0, 0], sizes = [4, 8, 8], strides = [1, 1, 1]} : vector<4x8x96xbf16> to vector<4x8x8xbf16>
    %2 = vector.extract_strided_slice %0 {offsets = [0, 0, 32], sizes = [4, 8, 8], strides = [1, 1, 1]} : vector<4x8x96xbf16> to vector<4x8x8xbf16>
    %3 = vector.extract_strided_slice %0 {offsets = [0, 0, 64], sizes = [4, 8, 8], strides = [1, 1, 1]} : vector<4x8x96xbf16> to vector<4x8x8xbf16>
    %cst = arith.constant dense<0.000000e+00> : vector<4x8x8xf32>
    %4 = tpu.matmul %1, %2, %cst {dimension_numbers = #tpu.dot_dimension_numbers<[2], [2], [1], [1], [0, 0, 0, 1, 1, 1], [0], [0]>} : vector<4x8x8xbf16>, vector<4x8x8xbf16>, vector<4x8x8xf32> -> vector<4x8x8xf32>
    %cst_2 = arith.constant 0.353553385 : f32
    %5 = vector.broadcast %cst_2 : f32 to vector<4x8x8xf32>
    %6 = arith.mulf %4, %5 : vector<4x8x8xf32>
    %cst_3 = arith.constant dense<0xFF800000> : vector<4x8xf32>
    %7 = vector.multi_reduction <maximumf>, %6, %cst_3 [2] : vector<4x8x8xf32> to vector<4x8xf32>
    %8 = vector.shape_cast %7 : vector<4x8xf32> to vector<4x8x1xf32>
    %9 = vector.broadcast %8 : vector<4x8x1xf32> to vector<4x8x8xf32>
    %10 = arith.subf %6, %9 : vector<4x8x8xf32>
    %11 = math.exp %10 : vector<4x8x8xf32>
    %cst_4 = arith.constant dense<0.000000e+00> : vector<4x8xf32>
    %12 = vector.multi_reduction <add>, %11, %cst_4 [2] : vector<4x8x8xf32> to vector<4x8xf32>
    %13 = vector.shape_cast %12 : vector<4x8xf32> to vector<4x8x1xf32>
    %14 = tpu.reciprocal %13 {approx = true} : vector<4x8x1xf32> -> vector<4x8x1xf32>
    %15 = vector.broadcast %14 : vector<4x8x1xf32> to vector<4x8x8xf32>
    %16 = arith.mulf %11, %15 : vector<4x8x8xf32>
    %17 = arith.truncf %16 : vector<4x8x8xf32> to vector<4x8x8xbf16>
    %cst_5 = arith.constant dense<0.000000e+00> : vector<4x8x8xf32>
    %18 = tpu.matmul %17, %3, %cst_5 {dimension_numbers = #tpu.dot_dimension_numbers<[2], [1], [1], [2], [0, 0, 0, 1, 1, 2], [0], [0]>} : vector<4x8x8xbf16>, vector<4x8x8xbf16>, vector<4x8x8xf32> -> vector<4x8x8xf32>
    %19 = vector.extract_strided_slice %0 {offsets = [0, 0, 8], sizes = [4, 8, 8], strides = [1, 1, 1]} : vector<4x8x96xbf16> to vector<4x8x8xbf16>
    %20 = vector.extract_strided_slice %0 {offsets = [0, 0, 40], sizes = [4, 8, 8], strides = [1, 1, 1]} : vector<4x8x96xbf16> to vector<4x8x8xbf16>
    %21 = vector.extract_strided_slice %0 {offsets = [0, 0, 72], sizes = [4, 8, 8], strides = [1, 1, 1]} : vector<4x8x96xbf16> to vector<4x8x8xbf16>
    %cst_6 = arith.constant dense<0.000000e+00> : vector<4x8x8xf32>
    %22 = tpu.matmul %19, %20, %cst_6 {dimension_numbers = #tpu.dot_dimension_numbers<[2], [2], [1], [1], [0, 0, 0, 1, 1, 1], [0], [0]>} : vector<4x8x8xbf16>, vector<4x8x8xbf16>, vector<4x8x8xf32> -> vector<4x8x8xf32>
    %cst_7 = arith.constant 0.353553385 : f32
    %23 = vector.broadcast %cst_7 : f32 to vector<4x8x8xf32>
    %24 = arith.mulf %22, %23 : vector<4x8x8xf32>
    %cst_8 = arith.constant dense<0xFF800000> : vector<4x8xf32>
    %25 = vector.multi_reduction <maximumf>, %24, %cst_8 [2] : vector<4x8x8xf32> to vector<4x8xf32>
    %26 = vector.shape_cast %25 : vector<4x8xf32> to vector<4x8x1xf32>
    %27 = vector.broadcast %26 : vector<4x8x1xf32> to vector<4x8x8xf32>
    %28 = arith.subf %24, %27 : vector<4x8x8xf32>
    %29 = math.exp %28 : vector<4x8x8xf32>
    %cst_9 = arith.constant dense<0.000000e+00> : vector<4x8xf32>
    %30 = vector.multi_reduction <add>, %29, %cst_9 [2] : vector<4x8x8xf32> to vector<4x8xf32>
    %31 = vector.shape_cast %30 : vector<4x8xf32> to vector<4x8x1xf32>
    %32 = tpu.reciprocal %31 {approx = true} : vector<4x8x1xf32> -> vector<4x8x1xf32>
    %33 = vector.broadcast %32 : vector<4x8x1xf32> to vector<4x8x8xf32>
    %34 = arith.mulf %29, %33 : vector<4x8x8xf32>
    %35 = arith.truncf %34 : vector<4x8x8xf32> to vector<4x8x8xbf16>
    %cst_10 = arith.constant dense<0.000000e+00> : vector<4x8x8xf32>
    %36 = tpu.matmul %35, %21, %cst_10 {dimension_numbers = #tpu.dot_dimension_numbers<[2], [1], [1], [2], [0, 0, 0, 1, 1, 2], [0], [0]>} : vector<4x8x8xbf16>, vector<4x8x8xbf16>, vector<4x8x8xf32> -> vector<4x8x8xf32>
    %37 = vector.extract_strided_slice %0 {offsets = [0, 0, 16], sizes = [4, 8, 8], strides = [1, 1, 1]} : vector<4x8x96xbf16> to vector<4x8x8xbf16>
    %38 = vector.extract_strided_slice %0 {offsets = [0, 0, 48], sizes = [4, 8, 8], strides = [1, 1, 1]} : vector<4x8x96xbf16> to vector<4x8x8xbf16>
    %39 = vector.extract_strided_slice %0 {offsets = [0, 0, 80], sizes = [4, 8, 8], strides = [1, 1, 1]} : vector<4x8x96xbf16> to vector<4x8x8xbf16>
    %cst_11 = arith.constant dense<0.000000e+00> : vector<4x8x8xf32>
    %40 = tpu.matmul %37, %38, %cst_11 {dimension_numbers = #tpu.dot_dimension_numbers<[2], [2], [1], [1], [0, 0, 0, 1, 1, 1], [0], [0]>} : vector<4x8x8xbf16>, vector<4x8x8xbf16>, vector<4x8x8xf32> -> vector<4x8x8xf32>
    %cst_12 = arith.constant 0.353553385 : f32
    %41 = vector.broadcast %cst_12 : f32 to vector<4x8x8xf32>
    %42 = arith.mulf %40, %41 : vector<4x8x8xf32>
    %cst_13 = arith.constant dense<0xFF800000> : vector<4x8xf32>
    %43 = vector.multi_reduction <maximumf>, %42, %cst_13 [2] : vector<4x8x8xf32> to vector<4x8xf32>
    %44 = vector.shape_cast %43 : vector<4x8xf32> to vector<4x8x1xf32>
    %45 = vector.broadcast %44 : vector<4x8x1xf32> to vector<4x8x8xf32>
    %46 = arith.subf %42, %45 : vector<4x8x8xf32>
    %47 = math.exp %46 : vector<4x8x8xf32>
    %cst_14 = arith.constant dense<0.000000e+00> : vector<4x8xf32>
    %48 = vector.multi_reduction <add>, %47, %cst_14 [2] : vector<4x8x8xf32> to vector<4x8xf32>
    %49 = vector.shape_cast %48 : vector<4x8xf32> to vector<4x8x1xf32>
    %50 = tpu.reciprocal %49 {approx = true} : vector<4x8x1xf32> -> vector<4x8x1xf32>
    %51 = vector.broadcast %50 : vector<4x8x1xf32> to vector<4x8x8xf32>
    %52 = arith.mulf %47, %51 : vector<4x8x8xf32>
    %53 = arith.truncf %52 : vector<4x8x8xf32> to vector<4x8x8xbf16>
    %cst_15 = arith.constant dense<0.000000e+00> : vector<4x8x8xf32>
    %54 = tpu.matmul %53, %39, %cst_15 {dimension_numbers = #tpu.dot_dimension_numbers<[2], [1], [1], [2], [0, 0, 0, 1, 1, 2], [0], [0]>} : vector<4x8x8xbf16>, vector<4x8x8xbf16>, vector<4x8x8xf32> -> vector<4x8x8xf32>
    %55 = vector.extract_strided_slice %0 {offsets = [0, 0, 24], sizes = [4, 8, 8], strides = [1, 1, 1]} : vector<4x8x96xbf16> to vector<4x8x8xbf16>
    %56 = vector.extract_strided_slice %0 {offsets = [0, 0, 56], sizes = [4, 8, 8], strides = [1, 1, 1]} : vector<4x8x96xbf16> to vector<4x8x8xbf16>
    %57 = vector.extract_strided_slice %0 {offsets = [0, 0, 88], sizes = [4, 8, 8], strides = [1, 1, 1]} : vector<4x8x96xbf16> to vector<4x8x8xbf16>
    %cst_16 = arith.constant dense<0.000000e+00> : vector<4x8x8xf32>
    %58 = tpu.matmul %55, %56, %cst_16 {dimension_numbers = #tpu.dot_dimension_numbers<[2], [2], [1], [1], [0, 0, 0, 1, 1, 1], [0], [0]>} : vector<4x8x8xbf16>, vector<4x8x8xbf16>, vector<4x8x8xf32> -> vector<4x8x8xf32>
    %cst_17 = arith.constant 0.353553385 : f32
    %59 = vector.broadcast %cst_17 : f32 to vector<4x8x8xf32>
    %60 = arith.mulf %58, %59 : vector<4x8x8xf32>
    %cst_18 = arith.constant dense<0xFF800000> : vector<4x8xf32>
    %61 = vector.multi_reduction <maximumf>, %60, %cst_18 [2] : vector<4x8x8xf32> to vector<4x8xf32>
    %62 = vector.shape_cast %61 : vector<4x8xf32> to vector<4x8x1xf32>
    %63 = vector.broadcast %62 : vector<4x8x1xf32> to vector<4x8x8xf32>
    %64 = arith.subf %60, %63 : vector<4x8x8xf32>
    %65 = math.exp %64 : vector<4x8x8xf32>
    %cst_19 = arith.constant dense<0.000000e+00> : vector<4x8xf32>
    %66 = vector.multi_reduction <add>, %65, %cst_19 [2] : vector<4x8x8xf32> to vector<4x8xf32>
    %67 = vector.shape_cast %66 : vector<4x8xf32> to vector<4x8x1xf32>
    %68 = tpu.reciprocal %67 {approx = true} : vector<4x8x1xf32> -> vector<4x8x1xf32>
    %69 = vector.broadcast %68 : vector<4x8x1xf32> to vector<4x8x8xf32>
    %70 = arith.mulf %65, %69 : vector<4x8x8xf32>
    %71 = arith.truncf %70 : vector<4x8x8xf32> to vector<4x8x8xbf16>
    %cst_20 = arith.constant dense<0.000000e+00> : vector<4x8x8xf32>
    %72 = tpu.matmul %71, %57, %cst_20 {dimension_numbers = #tpu.dot_dimension_numbers<[2], [1], [1], [2], [0, 0, 0, 1, 1, 2], [0], [0]>} : vector<4x8x8xbf16>, vector<4x8x8xbf16>, vector<4x8x8xf32> -> vector<4x8x8xf32>
    %73 = tpu.concatenate %18, %36, %54, %72 in 2 : vector<4x8x8xf32>, vector<4x8x8xf32>, vector<4x8x8xf32>, vector<4x8x8xf32> -> vector<4x8x32xf32>
    %74 = arith.truncf %73 : vector<4x8x32xf32> to vector<4x8x32xbf16>
    %c0_21 = arith.constant 0 : index
    %c0_22 = arith.constant 0 : index
    %c0_23 = arith.constant 0 : index
    %75 = vector.load %arg2[%c0_21, %c0_22, %c0_23] : memref<4x8x32xbf16, #tpu.memory_space<vmem>>, vector<4x8x32xbf16>
    tpu.vector_store %arg2[%c0_21, %c0_22, %c0_23], %74 {strides = array<i32>} : memref<4x8x32xbf16, #tpu.memory_space<vmem>>, vector<4x8x32xbf16>,
    return
  }
  func.func @transform_0(%arg0: i32) -> (i32, i32, i32) {
    %c0_i32 = arith.constant 0 : i32
    %c0_i32_0 = arith.constant 0 : i32
    %c0_i32_1 = arith.constant 0 : i32
    return %arg0, %c0_i32, %c0_i32_0 : i32, i32, i32
  }
  func.func @transform_1(%arg0: i32) -> (i32, i32, i32) {
    %c0_i32 = arith.constant 0 : i32
    %c0_i32_0 = arith.constant 0 : i32
    %c0_i32_1 = arith.constant 0 : i32
    return %arg0, %c0_i32, %c0_i32_0 : i32, i32, i32
  }
}

module attributes {stable_mosaic.version = 11 : i64} {
  func.func @_adapter_kernel(%arg0: i32, %arg1: memref<32x32xbf16, #tpu.memory_space<vmem>>, %arg2: memref<32x8xbf16, #tpu.memory_space<vmem>>, %arg3: memref<1x8xf32, #tpu.memory_space<vmem>>, %arg4: memref<8x32xbf16, #tpu.memory_space<vmem>>, %arg5: memref<1x32xf32, #tpu.memory_space<vmem>>, %arg6: memref<32x32xf32, #tpu.memory_space<vmem>>, %arg7: memref<32x32xf32, #tpu.memory_space<vmem>>) attributes {dimension_semantics = [#tpu.dimension_semantics<parallel>], iteration_bounds = array<i64: 2>, scalar_prefetch = 0 : i64, scratch_operands = 0 : i64, tpu.core_type = #tpu.core_type<tc>, window_params = [{transform_indices = @transform_0, window_bounds = array<i64: 32, 32>}, {pipeline_mode = #tpu.pipeline_mode<synchronous>, transform_indices = @transform_1, window_bounds = array<i64: 32, 8>}, {pipeline_mode = #tpu.pipeline_mode<synchronous>, transform_indices = @transform_2, window_bounds = array<i64: 1, 8>}, {pipeline_mode = #tpu.pipeline_mode<synchronous>, transform_indices = @transform_3, window_bounds = array<i64: 8, 32>}, {pipeline_mode = #tpu.pipeline_mode<synchronous>, transform_indices = @transform_4, window_bounds = array<i64: 1, 32>}, {transform_indices = @transform_5, window_bounds = array<i64: 32, 32>}, {transform_indices = @transform_6, window_bounds = array<i64: 32, 32>}]} {
    %c0 = arith.constant 0 : index
    %c0_0 = arith.constant 0 : index
    %0 = vector.load %arg1[%c0, %c0_0] : memref<32x32xbf16, #tpu.memory_space<vmem>>, vector<32x32xbf16>
    %c0_1 = arith.constant 0 : index
    %c0_2 = arith.constant 0 : index
    %1 = vector.load %arg2[%c0_1, %c0_2] : memref<32x8xbf16, #tpu.memory_space<vmem>>, vector<32x8xbf16>
    %cst = arith.constant dense<0.000000e+00> : vector<32x8xf32>
    %2 = tpu.matmul %0, %1, %cst {dimension_numbers = #tpu.dot_dimension_numbers<[1], [0], [0], [1], [0, 0, 1, 1], [], []>} : vector<32x32xbf16>, vector<32x8xbf16>, vector<32x8xf32> -> vector<32x8xf32>
    %c0_3 = arith.constant 0 : index
    %c0_4 = arith.constant 0 : index
    %3 = vector.load %arg3[%c0_3, %c0_4] : memref<1x8xf32, #tpu.memory_space<vmem>>, vector<1x8xf32>
    %4 = vector.broadcast %3 : vector<1x8xf32> to vector<32x8xf32>
    %5 = arith.addf %2, %4 : vector<32x8xf32>
    %cst_5 = arith.constant 5.000000e-01 : f32
    %6 = vector.broadcast %cst_5 : f32 to vector<32x8xf32>
    %7 = arith.mulf %6, %5 : vector<32x8xf32>
    %cst_6 = arith.constant 0.707106769 : f32
    %8 = vector.broadcast %cst_6 : f32 to vector<32x8xf32>
    %9 = arith.mulf %5, %8 : vector<32x8xf32>
    %10 = math.erf %9 : vector<32x8xf32>
    %cst_7 = arith.constant 1.000000e+00 : f32
    %11 = vector.broadcast %cst_7 : f32 to vector<32x8xf32>
    %12 = arith.addf %11, %10 : vector<32x8xf32>
    %13 = arith.mulf %7, %12 : vector<32x8xf32>
    %14 = arith.truncf %13 : vector<32x8xf32> to vector<32x8xbf16>
    %c0_8 = arith.constant 0 : index
    %c0_9 = arith.constant 0 : index
    %15 = vector.load %arg4[%c0_8, %c0_9] : memref<8x32xbf16, #tpu.memory_space<vmem>>, vector<8x32xbf16>
    %cst_10 = arith.constant dense<0.000000e+00> : vector<32x32xf32>
    %16 = tpu.matmul %14, %15, %cst_10 {dimension_numbers = #tpu.dot_dimension_numbers<[1], [0], [0], [1], [0, 0, 1, 1], [], []>} : vector<32x8xbf16>, vector<8x32xbf16>, vector<32x32xf32> -> vector<32x32xf32>
    %c0_11 = arith.constant 0 : index
    %c0_12 = arith.constant 0 : index
    %17 = vector.load %arg5[%c0_11, %c0_12] : memref<1x32xf32, #tpu.memory_space<vmem>>, vector<1x32xf32>
    %18 = vector.broadcast %17 : vector<1x32xf32> to vector<32x32xf32>
    %19 = arith.addf %16, %18 : vector<32x32xf32>
    %20 = arith.extf %0 : vector<32x32xbf16> to vector<32x32xf32>
    %21 = arith.addf %20, %19 : vector<32x32xf32>
    %c0_13 = arith.constant 0 : index
    %c0_14 = arith.constant 0 : index
    %22 = vector.load %arg6[%c0_13, %c0_14] : memref<32x32xf32, #tpu.memory_space<vmem>>, vector<32x32xf32>
    %cst_15 = arith.constant 1.000000e+00 : f32
    %23 = vector.broadcast %cst_15 : f32 to vector<32x32xf32>
    %24 = arith.mulf %23, %21 : vector<32x32xf32>
    %25 = arith.addf %22, %24 : vector<32x32xf32>
    %c0_16 = arith.constant 0 : index
    %c0_17 = arith.constant 0 : index
    %26 = vector.load %arg7[%c0_16, %c0_17] : memref<32x32xf32, #tpu.memory_space<vmem>>, vector<32x32xf32>
    tpu.vector_store %arg7[%c0_16, %c0_17], %25 {strides = array<i32>} : memref<32x32xf32, #tpu.memory_space<vmem>>, vector<32x32xf32>,
    return
  }
  func.func @transform_0(%arg0: i32) -> (i32, i32) {
    %c0_i32 = arith.constant 0 : i32
    %c0_i32_0 = arith.constant 0 : i32
    return %arg0, %c0_i32 : i32, i32
  }
  func.func @transform_1(%arg0: i32) -> (i32, i32) {
    %c0_i32 = arith.constant 0 : i32
    %c0_i32_0 = arith.constant 0 : i32
    %c0_i32_1 = arith.constant 0 : i32
    return %c0_i32, %c0_i32_0 : i32, i32
  }
  func.func @transform_2(%arg0: i32) -> (i32, i32) {
    %c0_i32 = arith.constant 0 : i32
    %c0_i32_0 = arith.constant 0 : i32
    %c0_i32_1 = arith.constant 0 : i32
    return %c0_i32, %c0_i32_0 : i32, i32
  }
  func.func @transform_3(%arg0: i32) -> (i32, i32) {
    %c0_i32 = arith.constant 0 : i32
    %c0_i32_0 = arith.constant 0 : i32
    %c0_i32_1 = arith.constant 0 : i32
    return %c0_i32, %c0_i32_0 : i32, i32
  }
  func.func @transform_4(%arg0: i32) -> (i32, i32) {
    %c0_i32 = arith.constant 0 : i32
    %c0_i32_0 = arith.constant 0 : i32
    %c0_i32_1 = arith.constant 0 : i32
    return %c0_i32, %c0_i32_0 : i32, i32
  }
  func.func @transform_5(%arg0: i32) -> (i32, i32) {
    %c0_i32 = arith.constant 0 : i32
    %c0_i32_0 = arith.constant 0 : i32
    return %arg0, %c0_i32 : i32, i32
  }
  func.func @transform_6(%arg0: i32) -> (i32, i32) {
    %c0_i32 = arith.constant 0 : i32
    %c0_i32_0 = arith.constant 0 : i32
    return %arg0, %c0_i32 : i32, i32
  }
}

module attributes {stable_mosaic.version = 11 : i64} {
  func.func @_mlp_block_kernel(%arg0: i32, %arg1: memref<32x32xf32, #tpu.memory_space<vmem>>, %arg2: memref<1x32xf32, #tpu.memory_space<vmem>>, %arg3: memref<1x32xf32, #tpu.memory_space<vmem>>, %arg4: memref<32x128xbf16, #tpu.memory_space<vmem>>, %arg5: memref<1x128xf32, #tpu.memory_space<vmem>>, %arg6: memref<128x32xbf16, #tpu.memory_space<vmem>>, %arg7: memref<1x32xf32, #tpu.memory_space<vmem>>, %arg8: memref<32x8xbf16, #tpu.memory_space<vmem>>, %arg9: memref<1x8xf32, #tpu.memory_space<vmem>>, %arg10: memref<8x32xbf16, #tpu.memory_space<vmem>>, %arg11: memref<1x32xf32, #tpu.memory_space<vmem>>, %arg12: memref<32x32xf32, #tpu.memory_space<vmem>>) attributes {dimension_semantics = [#tpu.dimension_semantics<parallel>], iteration_bounds = array<i64: 2>, scalar_prefetch = 0 : i64, scratch_operands = 0 : i64, tpu.core_type = #tpu.core_type<tc>, window_params = [{transform_indices = @transform_0, window_bounds = array<i64: 32, 32>}, {pipeline_mode = #tpu.pipeline_mode<synchronous>, transform_indices = @transform_1, window_bounds = array<i64: 1, 32>}, {pipeline_mode = #tpu.pipeline_mode<synchronous>, transform_indices = @transform_2, window_bounds = array<i64: 1, 32>}, {pipeline_mode = #tpu.pipeline_mode<synchronous>, transform_indices = @transform_3, window_bounds = array<i64: 32, 128>}, {pipeline_mode = #tpu.pipeline_mode<synchronous>, transform_indices = @transform_4, window_bounds = array<i64: 1, 128>}, {pipeline_mode = #tpu.pipeline_mode<synchronous>, transform_indices = @transform_5, window_bounds = array<i64: 128, 32>}, {pipeline_mode = #tpu.pipeline_mode<synchronous>, transform_indices = @transform_6, window_bounds = array<i64: 1, 32>}, {pipeline_mode = #tpu.pipeline_mode<synchronous>, transform_indices = @transform_7, window_bounds = array<i64: 32, 8>}, {pipeline_mode = #tpu.pipeline_mode<synchronous>, transform_indices = @transform_8, window_bounds = array<i64: 1, 8>}, {pipeline_mode = #tpu.pipeline_mode<synchronous>, transform_indices = @transform_9, window_bounds = array<i64: 8, 32>}, {pipeline_mode = #tpu.pipeline_mode<synchronous>, transform_indices = @transform_10, window_bounds = array<i64: 1, 32>}, {transform_indices = @transform_11, window_bounds = array<i64: 32, 32>}]} {
    %c0 = arith.constant 0 : index
    %c0_0 = arith.constant 0 : index
    %0 = vector.load %arg1[%c0, %c0_0] : memref<32x32xf32, #tpu.memory_space<vmem>>, vector<32x32xf32>
    %c0_1 = arith.constant 0 : index
    %c0_2 = arith.constant 0 : index
    %1 = vector.load %arg2[%c0_1, %c0_2] : memref<1x32xf32, #tpu.memory_space<vmem>>, vector<1x32xf32>
    %c0_3 = arith.constant 0 : index
    %c0_4 = arith.constant 0 : index
    %2 = vector.load %arg3[%c0_3, %c0_4] : memref<1x32xf32, #tpu.memory_space<vmem>>, vector<1x32xf32>
    %cst = arith.constant dense<0.000000e+00> : vector<32xf32>
    %3 = vector.multi_reduction <add>, %0, %cst [1] : vector<32x32xf32> to vector<32xf32>
    %4 = vector.shape_cast %3 : vector<32xf32> to vector<32x1xf32>
    %cst_5 = arith.constant 3.200000e+01 : f32
    %5 = vector.broadcast %cst_5 : f32 to vector<32x1xf32>
    %6 = arith.divf %4, %5 : vector<32x1xf32>
    %7 = vector.broadcast %6 : vector<32x1xf32> to vector<32x32xf32>
    %8 = arith.subf %0, %7 : vector<32x32xf32>
    %9 = arith.mulf %8, %8 : vector<32x32xf32>
    %cst_6 = arith.constant dense<0.000000e+00> : vector<32xf32>
    %10 = vector.multi_reduction <add>, %9, %cst_6 [1] : vector<32x32xf32> to vector<32xf32>
    %11 = vector.shape_cast %10 : vector<32xf32> to vector<32x1xf32>
    %cst_7 = arith.constant 3.200000e+01 : f32
    %12 = vector.broadcast %cst_7 : f32 to vector<32x1xf32>
    %13 = arith.divf %11, %12 : vector<32x1xf32>
    %cst_8 = arith.constant 9.99999974E-6 : f32
    %14 = vector.broadcast %cst_8 : f32 to vector<32x1xf32>
    %15 = arith.addf %13, %14 : vector<32x1xf32>
    %16 = math.rsqrt %15 : vector<32x1xf32>
    %17 = vector.broadcast %16 : vector<32x1xf32> to vector<32x32xf32>
    %18 = arith.mulf %8, %17 : vector<32x32xf32>
    %19 = vector.broadcast %1 : vector<1x32xf32> to vector<32x32xf32>
    %20 = arith.mulf %18, %19 : vector<32x32xf32>
    %21 = vector.broadcast %2 : vector<1x32xf32> to vector<32x32xf32>
    %22 = arith.addf %20, %21 : vector<32x32xf32>
    %23 = arith.truncf %22 : vector<32x32xf32> to vector<32x32xbf16>
    %c0_9 = arith.constant 0 : index
    %c0_10 = arith.constant 0 : index
    %24 = vector.load %arg4[%c0_9, %c0_10] : memref<32x128xbf16, #tpu.memory_space<vmem>>, vector<32x128xbf16>
    %cst_11 = arith.constant dense<0.000000e+00> : vector<32x128xf32>
    %25 = tpu.matmul %23, %24, %cst_11 {dimension_numbers = #tpu.dot_dimension_numbers<[1], [0], [0], [1], [0, 0, 1, 1], [], []>} : vector<32x32xbf16>, vector<32x128xbf16>, vector<32x128xf32> -> vector<32x128xf32>
    %c0_12 = arith.constant 0 : index
    %c0_13 = arith.constant 0 : index
    %26 = vector.load %arg5[%c0_12, %c0_13] : memref<1x128xf32, #tpu.memory_space<vmem>>, vector<1x128xf32>
    %27 = vector.broadcast %26 : vector<1x128xf32> to vector<32x128xf32>
    %28 = arith.addf %25, %27 : vector<32x128xf32>
    %cst_14 = arith.constant 1.702000e+00 : f32
    %29 = vector.broadcast %cst_14 : f32 to vector<32x128xf32>
    %30 = arith.mulf %29, %28 : vector<32x128xf32>
    %31 = arith.negf %30 : vector<32x128xf32>
    %32 = math.exp %31 : vector<32x128xf32>
    %cst_15 = arith.constant 1.000000e+00 : f32
    %33 = vector.broadcast %cst_15 : f32 to vector<32x128xf32>
    %34 = arith.addf %33, %32 : vector<32x128xf32>
    %35 = arith.divf %33, %34 : vector<32x128xf32>
    %36 = arith.mulf %28, %35 : vector<32x128xf32>
    %37 = arith.truncf %36 : vector<32x128xf32> to vector<32x128xbf16>
    %c0_16 = arith.constant 0 : index
    %c0_17 = arith.constant 0 : index
    %38 = vector.load %arg6[%c0_16, %c0_17] : memref<128x32xbf16, #tpu.memory_space<vmem>>, vector<128x32xbf16>
    %cst_18 = arith.constant dense<0.000000e+00> : vector<32x32xf32>
    %39 = tpu.matmul %37, %38, %cst_18 {dimension_numbers = #tpu.dot_dimension_numbers<[1], [0], [0], [1], [0, 0, 1, 1], [], []>} : vector<32x128xbf16>, vector<128x32xbf16>, vector<32x32xf32> -> vector<32x32xf32>
    %c0_19 = arith.constant 0 : index
    %c0_20 = arith.constant 0 : index
    %40 = vector.load %arg7[%c0_19, %c0_20] : memref<1x32xf32, #tpu.memory_space<vmem>>, vector<1x32xf32>
    %41 = vector.broadcast %40 : vector<1x32xf32> to vector<32x32xf32>
    %42 = arith.addf %39, %41 : vector<32x32xf32>
    %c0_21 = arith.constant 0 : index
    %c0_22 = arith.constant 0 : index
    %43 = vector.load %arg8[%c0_21, %c0_22] : memref<32x8xbf16, #tpu.memory_space<vmem>>, vector<32x8xbf16>
    %cst_23 = arith.constant dense<0.000000e+00> : vector<32x8xf32>
    %44 = tpu.matmul %23, %43, %cst_23 {dimension_numbers = #tpu.dot_dimension_numbers<[1], [0], [0], [1], [0, 0, 1, 1], [], []>} : vector<32x32xbf16>, vector<32x8xbf16>, vector<32x8xf32> -> vector<32x8xf32>
    %c0_24 = arith.constant 0 : index
    %c0_25 = arith.constant 0 : index
    %45 = vector.load %arg9[%c0_24, %c0_25] : memref<1x8xf32, #tpu.memory_space<vmem>>, vector<1x8xf32>
    %46 = vector.broadcast %45 : vector<1x8xf32> to vector<32x8xf32>
    %47 = arith.addf %44, %46 : vector<32x8xf32>
    %cst_26 = arith.constant 5.000000e-01 : f32
    %48 = vector.broadcast %cst_26 : f32 to vector<32x8xf32>
    %49 = arith.mulf %48, %47 : vector<32x8xf32>
    %cst_27 = arith.constant 0.707106769 : f32
    %50 = vector.broadcast %cst_27 : f32 to vector<32x8xf32>
    %51 = arith.mulf %47, %50 : vector<32x8xf32>
    %52 = math.erf %51 : vector<32x8xf32>
    %cst_28 = arith.constant 1.000000e+00 : f32
    %53 = vector.broadcast %cst_28 : f32 to vector<32x8xf32>
    %54 = arith.addf %53, %52 : vector<32x8xf32>
    %55 = arith.mulf %49, %54 : vector<32x8xf32>
    %56 = arith.truncf %55 : vector<32x8xf32> to vector<32x8xbf16>
    %c0_29 = arith.constant 0 : index
    %c0_30 = arith.constant 0 : index
    %57 = vector.load %arg10[%c0_29, %c0_30] : memref<8x32xbf16, #tpu.memory_space<vmem>>, vector<8x32xbf16>
    %cst_31 = arith.constant dense<0.000000e+00> : vector<32x32xf32>
    %58 = tpu.matmul %56, %57, %cst_31 {dimension_numbers = #tpu.dot_dimension_numbers<[1], [0], [0], [1], [0, 0, 1, 1], [], []>} : vector<32x8xbf16>, vector<8x32xbf16>, vector<32x32xf32> -> vector<32x32xf32>
    %c0_32 = arith.constant 0 : index
    %c0_33 = arith.constant 0 : index
    %59 = vector.load %arg11[%c0_32, %c0_33] : memref<1x32xf32, #tpu.memory_space<vmem>>, vector<1x32xf32>
    %60 = vector.broadcast %59 : vector<1x32xf32> to vector<32x32xf32>
    %61 = arith.addf %58, %60 : vector<32x32xf32>
    %cst_34 = arith.constant 1.000000e+00 : f32
    %62 = vector.broadcast %cst_34 : f32 to vector<32x32xf32>
    %63 = arith.mulf %62, %61 : vector<32x32xf32>
    %64 = arith.addf %42, %63 : vector<32x32xf32>
    %65 = arith.addf %0, %64 : vector<32x32xf32>
    %c0_35 = arith.constant 0 : index
    %c0_36 = arith.constant 0 : index
    %66 = vector.load %arg12[%c0_35, %c0_36] : memref<32x32xf32, #tpu.memory_space<vmem>>, vector<32x32xf32>
    tpu.vector_store %arg12[%c0_35, %c0_36], %65 {strides = array<i32>} : memref<32x32xf32, #tpu.memory_space<vmem>>, vector<32x32xf32>,
    return
  }
  func.func @transform_0(%arg0: i32) -> (i32, i32) {
    %c0_i32 = arith.constant 0 : i32
    %c0_i32_0 = arith.constant 0 : i32
    return %arg0, %c0_i32 : i32, i32
  }
  func.func @transform_1(%arg0: i32) -> (i32, i32) {
    %c0_i32 = arith.constant 0 : i32
    %c0_i32_0 = arith.constant 0 : i32
    %c0_i32_1 = arith.constant 0 : i32
    return %c0_i32, %c0_i32_0 : i32, i32
  }
  func.func @transform_2(%arg0: i32) -> (i32, i32) {
    %c0_i32 = arith.constant 0 : i32
    %c0_i32_0 = arith.constant 0 : i32
    %c0_i32_1 = arith.constant 0 : i32
    return %c0_i32, %c0_i32_0 : i32, i32
  }
  func.func @transform_3(%arg0: i32) -> (i32, i32) {
    %c0_i32 = arith.constant 0 : i32
    %c0_i32_0 = arith.constant 0 : i32
    %c0_i32_1 = arith.constant 0 : i32
    return %c0_i32, %c0_i32_0 : i32, i32
  }
  func.func @transform_4(%arg0: i32) -> (i32, i32) {
    %c0_i32 = arith.constant 0 : i32
    %c0_i32_0 = arith.constant 0 : i32
    %c0_i32_1 = arith.constant 0 : i32
    return %c0_i32, %c0_i32_0 : i32, i32
  }
  func.func @transform_5(%arg0: i32) -> (i32, i32) {
    %c0_i32 = arith.constant 0 : i32
    %c0_i32_0 = arith.constant 0 : i32
    %c0_i32_1 = arith.constant 0 : i32
    return %c0_i32, %c0_i32_0 : i32, i32
  }
  func.func @transform_6(%arg0: i32) -> (i32, i32) {
    %c0_i32 = arith.constant 0 : i32
    %c0_i32_0 = arith.constant 0 : i32
    %c0_i32_1 = arith.constant 0 : i32
    return %c0_i32, %c0_i32_0 : i32, i32
  }
  func.func @transform_7(%arg0: i32) -> (i32, i32) {
    %c0_i32 = arith.constant 0 : i32
    %c0_i32_0 = arith.constant 0 : i32
    %c0_i32_1 = arith.constant 0 : i32
    return %c0_i32, %c0_i32_0 : i32, i32
  }
  func.func @transform_8(%arg0: i32) -> (i32, i32) {
    %c0_i32 = arith.constant 0 : i32
    %c0_i32_0 = arith.constant 0 : i32
    %c0_i32_1 = arith.constant 0 : i32
    return %c0_i32, %c0_i32_0 : i32, i32
  }
  func.func @transform_9(%arg0: i32) -> (i32, i32) {
    %c0_i32 = arith.constant 0 : i32
    %c0_i32_0 = arith.constant 0 : i32
    %c0_i32_1 = arith.constant 0 : i32
    return %c0_i32, %c0_i32_0 : i32, i32
  }
  func.func @transform_10(%arg0: i32) -> (i32, i32) {
    %c0_i32 = arith.constant 0 : i32
    %c0_i32_0 = arith.constant 0 : i32
    %c0_i32_1 = arith.constant 0 : i32
    return %c0_i32, %c0_i32_0 : i32, i32
  }
  func.func @transform_11(%arg0: i32) -> (i32, i32) {
    %c0_i32 = arith.constant 0 : i32
    %c0_i32_0 = arith.constant 0 : i32
    return %arg0, %c0_i32 : i32, i32
  }
}

module attributes {stable_mosaic.version = 11 : i64} {
  func.func @_adapter_kernel(%arg0: i32, %arg1: memref<32x32xbf16, #tpu.memory_space<vmem>>, %arg2: memref<32x8xbf16, #tpu.memory_space<vmem>>, %arg3: memref<1x8xf32, #tpu.memory_space<vmem>>, %arg4: memref<8x32xbf16, #tpu.memory_space<vmem>>, %arg5: memref<1x32xf32, #tpu.memory_space<vmem>>, %arg6: memref<32x32xf32, #tpu.memory_space<vmem>>) attributes {dimension_semantics = [#tpu.dimension_semantics<parallel>], iteration_bounds = array<i64: 2>, scalar_prefetch = 0 : i64, scratch_operands = 0 : i64, tpu.core_type = #tpu.core_type<tc>, window_params = [{transform_indices = @transform_0, window_bounds = array<i64: 32, 32>}, {pipeline_mode = #tpu.pipeline_mode<synchronous>, transform_indices = @transform_1, window_bounds = array<i64: 32, 8>}, {pipeline_mode = #tpu.pipeline_mode<synchronous>, transform_indices = @transform_2, window_bounds = array<i64: 1, 8>}, {pipeline_mode = #tpu.pipeline_mode<synchronous>, transform_indices = @transform_3, window_bounds = array<i64: 8, 32>}, {pipeline_mode = #tpu.pipeline_mode<synchronous>, transform_indices = @transform_4, window_bounds = array<i64: 1, 32>}, {transform_indices = @transform_5, window_bounds = array<i64: 32, 32>}]} {
    %c0 = arith.constant 0 : index
    %c0_0 = arith.constant 0 : index
    %0 = vector.load %arg1[%c0, %c0_0] : memref<32x32xbf16, #tpu.memory_space<vmem>>, vector<32x32xbf16>
    %c0_1 = arith.constant 0 : index
    %c0_2 = arith.constant 0 : index
    %1 = vector.load %arg2[%c0_1, %c0_2] : memref<32x8xbf16, #tpu.memory_space<vmem>>, vector<32x8xbf16>
    %cst = arith.constant dense<0.000000e+00> : vector<32x8xf32>
    %2 = tpu.matmul %0, %1, %cst {dimension_numbers = #tpu.dot_dimension_numbers<[1], [0], [0], [1], [0, 0, 1, 1], [], []>} : vector<32x32xbf16>, vector<32x8xbf16>, vector<32x8xf32> -> vector<32x8xf32>
    %c0_3 = arith.constant 0 : index
    %c0_4 = arith.constant 0 : index
    %3 = vector.load %arg3[%c0_3, %c0_4] : memref<1x8xf32, #tpu.memory_space<vmem>>, vector<1x8xf32>
    %4 = vector.broadcast %3 : vector<1x8xf32> to vector<32x8xf32>
    %5 = arith.addf %2, %4 : vector<32x8xf32>
    %cst_5 = arith.constant 5.000000e-01 : f32
    %6 = vector.broadcast %cst_5 : f32 to vector<32x8xf32>
    %7 = arith.mulf %6, %5 : vector<32x8xf32>
    %cst_6 = arith.constant 0.707106769 : f32
    %8 = vector.broadcast %cst_6 : f32 to vector<32x8xf32>
    %9 = arith.mulf %5, %8 : vector<32x8xf32>
    %10 = math.erf %9 : vector<32x8xf32>
    %cst_7 = arith.constant 1.000000e+00 : f32
    %11 = vector.broadcast %cst_7 : f32 to vector<32x8xf32>
    %12 = arith.addf %11, %10 : vector<32x8xf32>
    %13 = arith.mulf %7, %12 : vector<32x8xf32>
    %14 = arith.truncf %13 : vector<32x8xf32> to vector<32x8xbf16>
    %c0_8 = arith.constant 0 : index
    %c0_9 = arith.constant 0 : index
    %15 = vector.load %arg4[%c0_8, %c0_9] : memref<8x32xbf16, #tpu.memory_space<vmem>>, vector<8x32xbf16>
    %cst_10 = arith.constant dense<0.000000e+00> : vector<32x32xf32>
    %16 = tpu.matmul %14, %15, %cst_10 {dimension_numbers = #tpu.dot_dimension_numbers<[1], [0], [0], [1], [0, 0, 1, 1], [], []>} : vector<32x8xbf16>, vector<8x32xbf16>, vector<32x32xf32> -> vector<32x32xf32>
    %c0_11 = arith.constant 0 : index
    %c0_12 = arith.constant 0 : index
    %17 = vector.load %arg5[%c0_11, %c0_12] : memref<1x32xf32, #tpu.memory_space<vmem>>, vector<1x32xf32>
    %18 = vector.broadcast %17 : vector<1x32xf32> to vector<32x32xf32>
    %19 = arith.addf %16, %18 : vector<32x32xf32>
    %20 = arith.extf %0 : vector<32x32xbf16> to vector<32x32xf32>
    %21 = arith.addf %20, %19 : vector<32x32xf32>
    %c0_13 = arith.constant 0 : index
    %c0_14 = arith.constant 0 : index
    %22 = vector.load %arg6[%c0_13, %c0_14] : memref<32x32xf32, #tpu.memory_space<vmem>>, vector<32x32xf32>
    tpu.vector_store %arg6[%c0_13, %c0_14], %21 {strides = array<i32>} : memref<32x32xf32, #tpu.memory_space<vmem>>, vector<32x32xf32>,
    return
  }
  func.func @transform_0(%arg0: i32) -> (i32, i32) {
    %c0_i32 = arith.constant 0 : i32
    %c0_i32_0 = arith.constant 0 : i32
    return %arg0, %c0_i32 : i32, i32
  }
  func.func @transform_1(%arg0: i32) -> (i32, i32) {
    %c0_i32 = arith.constant 0 : i32
    %c0_i32_0 = arith.constant 0 : i32
    %c0_i32_1 = arith.constant 0 : i32
    return %c0_i32, %c0_i32_0 : i32, i32
  }
  func.func @transform_2(%arg0: i32) -> (i32, i32) {
    %c0_i32 = arith.constant 0 : i32
    %c0_i32_0 = arith.constant 0 : i32
    %c0_i32_1 = arith.constant 0 : i32
    return %c0_i32, %c0_i32_0 : i32, i32
  }
  func.func @transform_3(%arg0: i32) -> (i32, i32) {
    %c0_i32 = arith.constant 0 : i32
    %c0_i32_0 = arith.constant 0 : i32
    %c0_i32_1 = arith.constant 0 : i32
    return %c0_i32, %c0_i32_0 : i32, i32
  }
  func.func @transform_4(%arg0: i32) -> (i32, i32) {
    %c0_i32 = arith.constant 0 : i32
    %c0_i32_0 = arith.constant 0 : i32
    %c0_i32_1 = arith.constant 0 : i32
    return %c0_i32, %c0_i32_0 : i32, i32
  }
  func.func @transform_5(%arg0: i32) -> (i32, i32) {
    %c0_i32 = arith.constant 0 : i32
    %c0_i32_0 = arith.constant 0 : i32
    return %arg0, %c0_i32 : i32, i32
  }
}

module attributes {stable_mosaic.version = 11 : i64} {
  func.func @_adapter_kernel(%arg0: i32, %arg1: memref<32x32xf32, #tpu.memory_space<vmem>>, %arg2: memref<32x8xbf16, #tpu.memory_space<vmem>>, %arg3: memref<1x8xf32, #tpu.memory_space<vmem>>, %arg4: memref<8x32xbf16, #tpu.memory_space<vmem>>, %arg5: memref<1x32xf32, #tpu.memory_space<vmem>>, %arg6: memref<32x32xf32, #tpu.memory_space<vmem>>) attributes {dimension_semantics = [#tpu.dimension_semantics<parallel>], iteration_bounds = array<i64: 2>, scalar_prefetch = 0 : i64, scratch_operands = 0 : i64, tpu.core_type = #tpu.core_type<tc>, window_params = [{transform_indices = @transform_0, window_bounds = array<i64: 32, 32>}, {pipeline_mode = #tpu.pipeline_mode<synchronous>, transform_indices = @transform_1, window_bounds = array<i64: 32, 8>}, {pipeline_mode = #tpu.pipeline_mode<synchronous>, transform_indices = @transform_2, window_bounds = array<i64: 1, 8>}, {pipeline_mode = #tpu.pipeline_mode<synchronous>, transform_indices = @transform_3, window_bounds = array<i64: 8, 32>}, {pipeline_mode = #tpu.pipeline_mode<synchronous>, transform_indices = @transform_4, window_bounds = array<i64: 1, 32>}, {transform_indices = @transform_5, window_bounds = array<i64: 32, 32>}]} {
    %c0 = arith.constant 0 : index
    %c0_0 = arith.constant 0 : index
    %0 = vector.load %arg1[%c0, %c0_0] : memref<32x32xf32, #tpu.memory_space<vmem>>, vector<32x32xf32>
    %1 = arith.truncf %0 : vector<32x32xf32> to vector<32x32xbf16>
    %c0_1 = arith.constant 0 : index
    %c0_2 = arith.constant 0 : index
    %2 = vector.load %arg2[%c0_1, %c0_2] : memref<32x8xbf16, #tpu.memory_space<vmem>>, vector<32x8xbf16>
    %cst = arith.constant dense<0.000000e+00> : vector<32x8xf32>
    %3 = tpu.matmul %1, %2, %cst {dimension_numbers = #tpu.dot_dimension_numbers<[1], [0], [0], [1], [0, 0, 1, 1], [], []>} : vector<32x32xbf16>, vector<32x8xbf16>, vector<32x8xf32> -> vector<32x8xf32>
    %c0_3 = arith.constant 0 : index
    %c0_4 = arith.constant 0 : index
    %4 = vector.load %arg3[%c0_3, %c0_4] : memref<1x8xf32, #tpu.memory_space<vmem>>, vector<1x8xf32>
    %5 = vector.broadcast %4 : vector<1x8xf32> to vector<32x8xf32>
    %6 = arith.addf %3, %5 : vector<32x8xf32>
    %cst_5 = arith.constant 5.000000e-01 : f32
    %7 = vector.broadcast %cst_5 : f32 to vector<32x8xf32>
    %8 = arith.mulf %7, %6 : vector<32x8xf32>
    %cst_6 = arith.constant 0.707106769 : f32
    %9 = vector.broadcast %cst_6 : f32 to vector<32x8xf32>
    %10 = arith.mulf %6, %9 : vector<32x8xf32>
    %11 = math.erf %10 : vector<32x8xf32>
    %cst_7 = arith.constant 1.000000e+00 : f32
    %12 = vector.broadcast %cst_7 : f32 to vector<32x8xf32>
    %13 = arith.addf %12, %11 : vector<32x8xf32>
    %14 = arith.mulf %8, %13 : vector<32x8xf32>
    %15 = arith.truncf %14 : vector<32x8xf32> to vector<32x8xbf16>
    %c0_8 = arith.constant 0 : index
    %c0_9 = arith.constant 0 : index
    %16 = vector.load %arg4[%c0_8, %c0_9] : memref<8x32xbf16, #tpu.memory_space<vmem>>, vector<8x32xbf16>
    %cst_10 = arith.constant dense<0.000000e+00> : vector<32x32xf32>
    %17 = tpu.matmul %15, %16, %cst_10 {dimension_numbers = #tpu.dot_dimension_numbers<[1], [0], [0], [1], [0, 0, 1, 1], [], []>} : vector<32x8xbf16>, vector<8x32xbf16>, vector<32x32xf32> -> vector<32x32xf32>
    %c0_11 = arith.constant 0 : index
    %c0_12 = arith.constant 0 : index
    %18 = vector.load %arg5[%c0_11, %c0_12] : memref<1x32xf32, #tpu.memory_space<vmem>>, vector<1x32xf32>
    %19 = vector.broadcast %18 : vector<1x32xf32> to vector<32x32xf32>
    %20 = arith.addf %17, %19 : vector<32x32xf32>
    %21 = arith.addf %0, %20 : vector<32x32xf32>
    %c0_13 = arith.constant 0 : index
    %c0_14 = arith.constant 0 : index
    %22 = vector.load %arg6[%c0_13, %c0_14] : memref<32x32xf32, #tpu.memory_space<vmem>>, vector<32x32xf32>
    tpu.vector_store %arg6[%c0_13, %c0_14], %21 {strides = array<i32>} : memref<32x32xf32, #tpu.memory_space<vmem>>, vector<32x32xf32>,
    return
  }
  func.func @transform_0(%arg0: i32) -> (i32, i32) {
    %c0_i32 = arith.constant 0 : i32
    %c0_i32_0 = arith.constant 0 : i32
    return %arg0, %c0_i32 : i32, i32
  }
  func.func @transform_1(%arg0: i32) -> (i32, i32) {
    %c0_i32 = arith.constant 0 : i32
    %c0_i32_0 = arith.constant 0 : i32
    %c0_i32_1 = arith.constant 0 : i32
    return %c0_i32, %c0_i32_0 : i32, i32
  }
  func.func @transform_2(%arg0: i32) -> (i32, i32) {
    %c0_i32 = arith.constant 0 : i32
    %c0_i32_0 = arith.constant 0 : i32
    %c0_i32_1 = arith.constant 0 : i32
    return %c0_i32, %c0_i32_0 : i32, i32
  }
  func.func @transform_3(%arg0: i32) -> (i32, i32) {
    %c0_i32 = arith.constant 0 : i32
    %c0_i32_0 = arith.constant 0 : i32
    %c0_i32_1 = arith.constant 0 : i32
    return %c0_i32, %c0_i32_0 : i32, i32
  }
  func.func @transform_4(%arg0: i32) -> (i32, i32) {
    %c0_i32 = arith.constant 0 : i32
    %c0_i32_0 = arith.constant 0 : i32
    %c0_i32_1 = arith.constant 0 : i32
    return %c0_i32, %c0_i32_0 : i32, i32
  }
  func.func @transform_5(%arg0: i32) -> (i32, i32) {
    %c0_i32 = arith.constant 0 : i32
    %c0_i32_0 = arith.constant 0 : i32
    return %arg0, %c0_i32 : i32, i32
  }
}

module attributes {stable_mosaic.version = 11 : i64} {
  func.func @_mlp_block_kernel(%arg0: i32, %arg1: memref<32x32xf32, #tpu.memory_space<vmem>>, %arg2: memref<1x32xf32, #tpu.memory_space<vmem>>, %arg3: memref<1x32xf32, #tpu.memory_space<vmem>>, %arg4: memref<32x128xbf16, #tpu.memory_space<vmem>>, %arg5: memref<1x128xf32, #tpu.memory_space<vmem>>, %arg6: memref<128x32xbf16, #tpu.memory_space<vmem>>, %arg7: memref<1x32xf32, #tpu.memory_space<vmem>>, %arg8: memref<32x32xf32, #tpu.memory_space<vmem>>) attributes {dimension_semantics = [#tpu.dimension_semantics<parallel>], iteration_bounds = array<i64: 2>, scalar_prefetch = 0 : i64, scratch_operands = 0 : i64, tpu.core_type = #tpu.core_type<tc>, window_params = [{transform_indices = @transform_0, window_bounds = array<i64: 32, 32>}, {pipeline_mode = #tpu.pipeline_mode<synchronous>, transform_indices = @transform_1, window_bounds = array<i64: 1, 32>}, {pipeline_mode = #tpu.pipeline_mode<synchronous>, transform_indices = @transform_2, window_bounds = array<i64: 1, 32>}, {pipeline_mode = #tpu.pipeline_mode<synchronous>, transform_indices = @transform_3, window_bounds = array<i64: 32, 128>}, {pipeline_mode = #tpu.pipeline_mode<synchronous>, transform_indices = @transform_4, window_bounds = array<i64: 1, 128>}, {pipeline_mode = #tpu.pipeline_mode<synchronous>, transform_indices = @transform_5, window_bounds = array<i64: 128, 32>}, {pipeline_mode = #tpu.pipeline_mode<synchronous>, transform_indices = @transform_6, window_bounds = array<i64: 1, 32>}, {transform_indices = @transform_7, window_bounds = array<i64: 32, 32>}]} {
    %c0 = arith.constant 0 : index
    %c0_0 = arith.constant 0 : index
    %0 = vector.load %arg1[%c0, %c0_0] : memref<32x32xf32, #tpu.memory_space<vmem>>, vector<32x32xf32>
    %c0_1 = arith.constant 0 : index
    %c0_2 = arith.constant 0 : index
    %1 = vector.load %arg2[%c0_1, %c0_2] : memref<1x32xf32, #tpu.memory_space<vmem>>, vector<1x32xf32>
    %c0_3 = arith.constant 0 : index
    %c0_4 = arith.constant 0 : index
    %2 = vector.load %arg3[%c0_3, %c0_4] : memref<1x32xf32, #tpu.memory_space<vmem>>, vector<1x32xf32>
    %cst = arith.constant dense<0.000000e+00> : vector<32xf32>
    %3 = vector.multi_reduction <add>, %0, %cst [1] : vector<32x32xf32> to vector<32xf32>
    %4 = vector.shape_cast %3 : vector<32xf32> to vector<32x1xf32>
    %cst_5 = arith.constant 3.200000e+01 : f32
    %5 = vector.broadcast %cst_5 : f32 to vector<32x1xf32>
    %6 = arith.divf %4, %5 : vector<32x1xf32>
    %7 = vector.broadcast %6 : vector<32x1xf32> to vector<32x32xf32>
    %8 = arith.subf %0, %7 : vector<32x32xf32>
    %9 = arith.mulf %8, %8 : vector<32x32xf32>
    %cst_6 = arith.constant dense<0.000000e+00> : vector<32xf32>
    %10 = vector.multi_reduction <add>, %9, %cst_6 [1] : vector<32x32xf32> to vector<32xf32>
    %11 = vector.shape_cast %10 : vector<32xf32> to vector<32x1xf32>
    %cst_7 = arith.constant 3.200000e+01 : f32
    %12 = vector.broadcast %cst_7 : f32 to vector<32x1xf32>
    %13 = arith.divf %11, %12 : vector<32x1xf32>
    %cst_8 = arith.constant 9.99999974E-6 : f32
    %14 = vector.broadcast %cst_8 : f32 to vector<32x1xf32>
    %15 = arith.addf %13, %14 : vector<32x1xf32>
    %16 = math.rsqrt %15 : vector<32x1xf32>
    %17 = vector.broadcast %16 : vector<32x1xf32> to vector<32x32xf32>
    %18 = arith.mulf %8, %17 : vector<32x32xf32>
    %19 = vector.broadcast %1 : vector<1x32xf32> to vector<32x32xf32>
    %20 = arith.mulf %18, %19 : vector<32x32xf32>
    %21 = vector.broadcast %2 : vector<1x32xf32> to vector<32x32xf32>
    %22 = arith.addf %20, %21 : vector<32x32xf32>
    %23 = arith.truncf %22 : vector<32x32xf32> to vector<32x32xbf16>
    %c0_9 = arith.constant 0 : index
    %c0_10 = arith.constant 0 : index
    %24 = vector.load %arg4[%c0_9, %c0_10] : memref<32x128xbf16, #tpu.memory_space<vmem>>, vector<32x128xbf16>
    %cst_11 = arith.constant dense<0.000000e+00> : vector<32x128xf32>
    %25 = tpu.matmul %23, %24, %cst_11 {dimension_numbers = #tpu.dot_dimension_numbers<[1], [0], [0], [1], [0, 0, 1, 1], [], []>} : vector<32x32xbf16>, vector<32x128xbf16>, vector<32x128xf32> -> vector<32x128xf32>
    %c0_12 = arith.constant 0 : index
    %c0_13 = arith.constant 0 : index
    %26 = vector.load %arg5[%c0_12, %c0_13] : memref<1x128xf32, #tpu.memory_space<vmem>>, vector<1x128xf32>
    %27 = vector.broadcast %26 : vector<1x128xf32> to vector<32x128xf32>
    %28 = arith.addf %25, %27 : vector<32x128xf32>
    %cst_14 = arith.constant 1.702000e+00 : f32
    %29 = vector.broadcast %cst_14 : f32 to vector<32x128xf32>
    %30 = arith.mulf %29, %28 : vector<32x128xf32>
    %31 = arith.negf %30 : vector<32x128xf32>
    %32 = math.exp %31 : vector<32x128xf32>
    %cst_15 = arith.constant 1.000000e+00 : f32
    %33 = vector.broadcast %cst_15 : f32 to vector<32x128xf32>
    %34 = arith.addf %33, %32 : vector<32x128xf32>
    %35 = arith.divf %33, %34 : vector<32x128xf32>
    %36 = arith.mulf %28, %35 : vector<32x128xf32>
    %37 = arith.truncf %36 : vector<32x128xf32> to vector<32x128xbf16>
    %c0_16 = arith.constant 0 : index
    %c0_17 = arith.constant 0 : index
    %38 = vector.load %arg6[%c0_16, %c0_17] : memref<128x32xbf16, #tpu.memory_space<vmem>>, vector<128x32xbf16>
    %cst_18 = arith.constant dense<0.000000e+00> : vector<32x32xf32>
    %39 = tpu.matmul %37, %38, %cst_18 {dimension_numbers = #tpu.dot_dimension_numbers<[1], [0], [0], [1], [0, 0, 1, 1], [], []>} : vector<32x128xbf16>, vector<128x32xbf16>, vector<32x32xf32> -> vector<32x32xf32>
    %c0_19 = arith.constant 0 : index
    %c0_20 = arith.constant 0 : index
    %40 = vector.load %arg7[%c0_19, %c0_20] : memref<1x32xf32, #tpu.memory_space<vmem>>, vector<1x32xf32>
    %41 = vector.broadcast %40 : vector<1x32xf32> to vector<32x32xf32>
    %42 = arith.addf %39, %41 : vector<32x32xf32>
    %43 = arith.addf %0, %42 : vector<32x32xf32>
    %c0_21 = arith.constant 0 : index
    %c0_22 = arith.constant 0 : index
    %44 = vector.load %arg8[%c0_21, %c0_22] : memref<32x32xf32, #tpu.memory_space<vmem>>, vector<32x32xf32>
    tpu.vector_store %arg8[%c0_21, %c0_22], %43 {strides = array<i32>} : memref<32x32xf32, #tpu.memory_space<vmem>>, vector<32x32xf32>,
    return
  }
  func.func @transform_0(%arg0: i32) -> (i32, i32) {
    %c0_i32 = arith.constant 0 : i32
    %c0_i32_0 = arith.constant 0 : i32
    return %arg0, %c0_i32 : i32, i32
  }
  func.func @transform_1(%arg0: i32) -> (i32, i32) {
    %c0_i32 = arith.constant 0 : i32
    %c0_i32_0 = arith.constant 0 : i32
    %c0_i32_1 = arith.constant 0 : i32
    return %c0_i32, %c0_i32_0 : i32, i32
  }
  func.func @transform_2(%arg0: i32) -> (i32, i32) {
    %c0_i32 = arith.constant 0 : i32
    %c0_i32_0 = arith.constant 0 : i32
    %c0_i32_1 = arith.constant 0 : i32
    return %c0_i32, %c0_i32_0 : i32, i32
  }
  func.func @transform_3(%arg0: i32) -> (i32, i32) {
    %c0_i32 = arith.constant 0 : i32
    %c0_i32_0 = arith.constant 0 : i32
    %c0_i32_1 = arith.constant 0 : i32
    return %c0_i32, %c0_i32_0 : i32, i32
  }
  func.func @transform_4(%arg0: i32) -> (i32, i32) {
    %c0_i32 = arith.constant 0 : i32
    %c0_i32_0 = arith.constant 0 : i32
    %c0_i32_1 = arith.constant 0 : i32
    return %c0_i32, %c0_i32_0 : i32, i32
  }
  func.func @transform_5(%arg0: i32) -> (i32, i32) {
    %c0_i32 = arith.constant 0 : i32
    %c0_i32_0 = arith.constant 0 : i32
    %c0_i32_1 = arith.constant 0 : i32
    return %c0_i32, %c0_i32_0 : i32, i32
  }
  func.func @transform_6(%arg0: i32) -> (i32, i32) {
    %c0_i32 = arith.constant 0 : i32
    %c0_i32_0 = arith.constant 0 : i32
    %c0_i32_1 = arith.constant 0 : i32
    return %c0_i32, %c0_i32_0 : i32, i32
  }
  func.func @transform_7(%arg0: i32) -> (i32, i32) {
    %c0_i32 = arith.constant 0 : i32
    %c0_i32_0 = arith.constant 0 : i32
    return %arg0, %c0_i32 : i32, i32
  }
}

module attributes {stable_mosaic.version = 11 : i64} {
  func.func @_mlp_block_kernel(%arg0: i32, %arg1: memref<32x32xf32, #tpu.memory_space<vmem>>, %arg2: memref<1x32xf32, #tpu.memory_space<vmem>>, %arg3: memref<1x32xf32, #tpu.memory_space<vmem>>, %arg4: memref<32x128xbf16, #tpu.memory_space<vmem>>, %arg5: memref<1x128xf32, #tpu.memory_space<vmem>>, %arg6: memref<128x32xbf16, #tpu.memory_space<vmem>>, %arg7: memref<1x32xf32, #tpu.memory_space<vmem>>, %arg8: memref<32x32xf32, #tpu.memory_space<vmem>>, %arg9: memref<32x32xf32, #tpu.memory_space<vmem>>) attributes {dimension_semantics = [#tpu.dimension_semantics<parallel>], iteration_bounds = array<i64: 2>, scalar_prefetch = 0 : i64, scratch_operands = 0 : i64, tpu.core_type = #tpu.core_type<tc>, window_params = [{transform_indices = @transform_0, window_bounds = array<i64: 32, 32>}, {pipeline_mode = #tpu.pipeline_mode<synchronous>, transform_indices = @transform_1, window_bounds = array<i64: 1, 32>}, {pipeline_mode = #tpu.pipeline_mode<synchronous>, transform_indices = @transform_2, window_bounds = array<i64: 1, 32>}, {pipeline_mode = #tpu.pipeline_mode<synchronous>, transform_indices = @transform_3, window_bounds = array<i64: 32, 128>}, {pipeline_mode = #tpu.pipeline_mode<synchronous>, transform_indices = @transform_4, window_bounds = array<i64: 1, 128>}, {pipeline_mode = #tpu.pipeline_mode<synchronous>, transform_indices = @transform_5, window_bounds = array<i64: 128, 32>}, {pipeline_mode = #tpu.pipeline_mode<synchronous>, transform_indices = @transform_6, window_bounds = array<i64: 1, 32>}, {transform_indices = @transform_7, window_bounds = array<i64: 32, 32>}, {transform_indices = @transform_8, window_bounds = array<i64: 32, 32>}]} {
    %c0 = arith.constant 0 : index
    %c0_0 = arith.constant 0 : index
    %0 = vector.load %arg1[%c0, %c0_0] : memref<32x32xf32, #tpu.memory_space<vmem>>, vector<32x32xf32>
    %c0_1 = arith.constant 0 : index
    %c0_2 = arith.constant 0 : index
    %1 = vector.load %arg2[%c0_1, %c0_2] : memref<1x32xf32, #tpu.memory_space<vmem>>, vector<1x32xf32>
    %c0_3 = arith.constant 0 : index
    %c0_4 = arith.constant 0 : index
    %2 = vector.load %arg3[%c0_3, %c0_4] : memref<1x32xf32, #tpu.memory_space<vmem>>, vector<1x32xf32>
    %cst = arith.constant dense<0.000000e+00> : vector<32xf32>
    %3 = vector.multi_reduction <add>, %0, %cst [1] : vector<32x32xf32> to vector<32xf32>
    %4 = vector.shape_cast %3 : vector<32xf32> to vector<32x1xf32>
    %cst_5 = arith.constant 3.200000e+01 : f32
    %5 = vector.broadcast %cst_5 : f32 to vector<32x1xf32>
    %6 = arith.divf %4, %5 : vector<32x1xf32>
    %7 = vector.broadcast %6 : vector<32x1xf32> to vector<32x32xf32>
    %8 = arith.subf %0, %7 : vector<32x32xf32>
    %9 = arith.mulf %8, %8 : vector<32x32xf32>
    %cst_6 = arith.constant dense<0.000000e+00> : vector<32xf32>
    %10 = vector.multi_reduction <add>, %9, %cst_6 [1] : vector<32x32xf32> to vector<32xf32>
    %11 = vector.shape_cast %10 : vector<32xf32> to vector<32x1xf32>
    %cst_7 = arith.constant 3.200000e+01 : f32
    %12 = vector.broadcast %cst_7 : f32 to vector<32x1xf32>
    %13 = arith.divf %11, %12 : vector<32x1xf32>
    %cst_8 = arith.constant 9.99999974E-6 : f32
    %14 = vector.broadcast %cst_8 : f32 to vector<32x1xf32>
    %15 = arith.addf %13, %14 : vector<32x1xf32>
    %16 = math.rsqrt %15 : vector<32x1xf32>
    %17 = vector.broadcast %16 : vector<32x1xf32> to vector<32x32xf32>
    %18 = arith.mulf %8, %17 : vector<32x32xf32>
    %19 = vector.broadcast %1 : vector<1x32xf32> to vector<32x32xf32>
    %20 = arith.mulf %18, %19 : vector<32x32xf32>
    %21 = vector.broadcast %2 : vector<1x32xf32> to vector<32x32xf32>
    %22 = arith.addf %20, %21 : vector<32x32xf32>
    %23 = arith.truncf %22 : vector<32x32xf32> to vector<32x32xbf16>
    %c0_9 = arith.constant 0 : index
    %c0_10 = arith.constant 0 : index
    %24 = vector.load %arg4[%c0_9, %c0_10] : memref<32x128xbf16, #tpu.memory_space<vmem>>, vector<32x128xbf16>
    %cst_11 = arith.constant dense<0.000000e+00> : vector<32x128xf32>
    %25 = tpu.matmul %23, %24, %cst_11 {dimension_numbers = #tpu.dot_dimension_numbers<[1], [0], [0], [1], [0, 0, 1, 1], [], []>} : vector<32x32xbf16>, vector<32x128xbf16>, vector<32x128xf32> -> vector<32x128xf32>
    %c0_12 = arith.constant 0 : index
    %c0_13 = arith.constant 0 : index
    %26 = vector.load %arg5[%c0_12, %c0_13] : memref<1x128xf32, #tpu.memory_space<vmem>>, vector<1x128xf32>
    %27 = vector.broadcast %26 : vector<1x128xf32> to vector<32x128xf32>
    %28 = arith.addf %25, %27 : vector<32x128xf32>
    %cst_14 = arith.constant 1.702000e+00 : f32
    %29 = vector.broadcast %cst_14 : f32 to vector<32x128xf32>
    %30 = arith.mulf %29, %28 : vector<32x128xf32>
    %31 = arith.negf %30 : vector<32x128xf32>
    %32 = math.exp %31 : vector<32x128xf32>
    %cst_15 = arith.constant 1.000000e+00 : f32
    %33 = vector.broadcast %cst_15 : f32 to vector<32x128xf32>
    %34 = arith.addf %33, %32 : vector<32x128xf32>
    %35 = arith.divf %33, %34 : vector<32x128xf32>
    %36 = arith.mulf %28, %35 : vector<32x128xf32>
    %37 = arith.truncf %36 : vector<32x128xf32> to vector<32x128xbf16>
    %c0_16 = arith.constant 0 : index
    %c0_17 = arith.constant 0 : index
    %38 = vector.load %arg6[%c0_16, %c0_17] : memref<128x32xbf16, #tpu.memory_space<vmem>>, vector<128x32xbf16>
    %cst_18 = arith.constant dense<0.000000e+00> : vector<32x32xf32>
    %39 = tpu.matmul %37, %38, %cst_18 {dimension_numbers = #tpu.dot_dimension_numbers<[1], [0], [0], [1], [0, 0, 1, 1], [], []>} : vector<32x128xbf16>, vector<128x32xbf16>, vector<32x32xf32> -> vector<32x32xf32>
    %c0_19 = arith.constant 0 : index
    %c0_20 = arith.constant 0 : index
    %40 = vector.load %arg7[%c0_19, %c0_20] : memref<1x32xf32, #tpu.memory_space<vmem>>, vector<1x32xf32>
    %41 = vector.broadcast %40 : vector<1x32xf32> to vector<32x32xf32>
    %42 = arith.addf %39, %41 : vector<32x32xf32>
    %c0_21 = arith.constant 0 : index
    %c0_22 = arith.constant 0 : index
    %43 = vector.load %arg8[%c0_21, %c0_22] : memref<32x32xf32, #tpu.memory_space<vmem>>, vector<32x32xf32>
    %44 = arith.addf %43, %42 : vector<32x32xf32>
    %c0_23 = arith.constant 0 : index
    %c0_24 = arith.constant 0 : index
    %45 = vector.load %arg9[%c0_23, %c0_24] : memref<32x32xf32, #tpu.memory_space<vmem>>, vector<32x32xf32>
    tpu.vector_store %arg9[%c0_23, %c0_24], %44 {strides = array<i32>} : memref<32x32xf32, #tpu.memory_space<vmem>>, vector<32x32xf32>,
    return
  }
  func.func @transform_0(%arg0: i32) -> (i32, i32) {
    %c0_i32 = arith.constant 0 : i32
    %c0_i32_0 = arith.constant 0 : i32
    return %arg0, %c0_i32 : i32, i32
  }
  func.func @transform_1(%arg0: i32) -> (i32, i32) {
    %c0_i32 = arith.constant 0 : i32
    %c0_i32_0 = arith.constant 0 : i32
    %c0_i32_1 = arith.constant 0 : i32
    return %c0_i32, %c0_i32_0 : i32, i32
  }
  func.func @transform_2(%arg0: i32) -> (i32, i32) {
    %c0_i32 = arith.constant 0 : i32
    %c0_i32_0 = arith.constant 0 : i32
    %c0_i32_1 = arith.constant 0 : i32
    return %c0_i32, %c0_i32_0 : i32, i32
  }
  func.func @transform_3(%arg0: i32) -> (i32, i32) {
    %c0_i32 = arith.constant 0 : i32
    %c0_i32_0 = arith.constant 0 : i32
    %c0_i32_1 = arith.constant 0 : i32
    return %c0_i32, %c0_i32_0 : i32, i32
  }
  func.func @transform_4(%arg0: i32) -> (i32, i32) {
    %c0_i32 = arith.constant 0 : i32
    %c0_i32_0 = arith.constant 0 : i32
    %c0_i32_1 = arith.constant 0 : i32
    return %c0_i32, %c0_i32_0 : i32, i32
  }
  func.func @transform_5(%arg0: i32) -> (i32, i32) {
    %c0_i32 = arith.constant 0 : i32
    %c0_i32_0 = arith.constant 0 : i32
    %c0_i32_1 = arith.constant 0 : i32
    return %c0_i32, %c0_i32_0 : i32, i32
  }
  func.func @transform_6(%arg0: i32) -> (i32, i32) {
    %c0_i32 = arith.constant 0 : i32
    %c0_i32_0 = arith.constant 0 : i32
    %c0_i32_1 = arith.constant 0 : i32
    return %c0_i32, %c0_i32_0 : i32, i32
  }
  func.func @transform_7(%arg0: i32) -> (i32, i32) {
    %c0_i32 = arith.constant 0 : i32
    %c0_i32_0 = arith.constant 0 : i32
    return %arg0, %c0_i32 : i32, i32
  }
  func.func @transform_8(%arg0: i32) -> (i32, i32) {
    %c0_i32 = arith.constant 0 : i32
    %c0_i32_0 = arith.constant 0 : i32
    return %arg0, %c0_i32 : i32, i32
  }
}

</mosaic_0001>

<bundles_post_ra>
// kernel: transformer_forward.24
= control target key start
LH: loop header
LB: loop body
LE: loop exit
PB: predicated region body
PF: predicated region fallthrough
CT: control target
= control target key end

     0   :  { %s554_s12 = smov 0   ;;  %s556_s13 = smov 0   ;;  %s596_s0 = inlined_call_operand.vmem [shape: bf16[64,32], index: 0, kind: input, shape index: {}]   ;;  %s597_s1 = inlined_call_operand.vmem [shape: bf16[32,32], index: 1, kind: input, shape index: {}]   ;;  %s598_s2 = inlined_call_operand.vmem [shape: f32[1,32], index: 2, kind: input, shape index: {}]   ;;  %s599_s3 = inlined_call_operand.vmem [shape: bf16[64,32], index: 3, kind: output, shape index: {}]  }
   0x1   :  { %s558_s14 = smov 0  }
   0x2 LB: > { %s22_s15 = sadd.s32 1, %s528_s13  ;;  %p448_p0 = scmp.ge.s32.totalorder %s532_s14, 1  ;;  %s532_s14 = sphi %s558_s14, %s13_s14   ;;  %s528_s13 = sphi %s556_s13, %s601_s13   ;;  %s524_s12 = sphi %s554_s12, %s600_s12  }
   0x3   : > { %p23_p1 = scmp.ge.s32.totalorder %s22_s15, 2  ;;  %p169_p2 = scmp.lt.s32.totalorder %s532_s14, 3 }
   0x5   : > { %s603_s15 = smov (%p23_p1, %s22_s15), 0  ;;  %p170_p3 = pnand %p448_p0, %p169_p2 }
   0x6   : > { %s449_s18 = sshll.u32 (!%p170_p3), %s524_s12, 2 }
   0x7   : > { %173 = sbr.rel (%p170_p3) target bundleno = 225 (0xe1), region = 32  ;;  %p204_p4 = scmp.lt.s32.totalorder (!%p170_p3), %s449_s18, 7 }
   0xc   : > { %v506_v0 = vld [vmem:[%s597_s1 + $0x8] sm:$0xff]   ;;  %v507_v1 = vld [vmem:[%s597_s1] sm:$0xff]   ;;  %s605_s18 = smov (!%p204_p4, %s449_s18), 7  ;;  %vm263_vm0 = vcmask 261120   ;;  %vm335_vm1 = vcmask 257024  }
   0xd   : > { %474 = vmatprep.subr.bf16.mxu0 %v506_v0  ;;  %s450_s21 = sshll.u32 %s605_s18, 2  ;;  %v453_v5 = vld [vmem:[%s598_s2] ss:$0 sm:$0xff] }
   0xe   : > { %475 = vmatpush3.bf16.msra.mxu0 %v506_v0  ;;  %s207_s24 = scalar_lea.vmem %s596_s0, %s450_s21  ;;  %s223_s29 = scalar_lea.vmem %s599_s3, %s450_s21 }
   0xf   : > { %476 = vmatprep.subr.bf16.mxu0 %v507_v1  ;;  %v508_v2 = vld [vmem:[%s207_s24] sm:$0xff]   ;;  %v509_v3 = vld [vmem:[%s207_s24 + $0x8] sm:$0xff]  }
  0x10   : > { %478 = vmatprep.mubr.msk.bf16.mxu0 %vm263_vm0, %v508_v2 }
  0x12   : > { %477 = vmatpush3.bf16.msra.mxu0 %v507_v1 }
  0x15   : > { %479 = vmatmul.mubr.msk.bf16.vlgmr.msra.gmra.mxu0 %vm263_vm0, %v509_v3 }
  0xd5   : > { %v480_v4 = vpop.f32.mrf.mxu0 }
  0xd6   : > { %v313_v10 = vadd.f32 %v480_v4, %v453_v5 }
  0xd7   : > { %v304_v6 = vpop.f32.mrf.mxu0 }
  0xd8   : > { %v305_v7 = vadd.f32 %v453_v5, %v304_v6  ;;  %v468_v15 = vpack.c.bf16 %v313_v10, %v313_v10 }
  0xd9   : > { %v481_v8 = vpop.f32.mrf.mxu0 }
  0xda   : > { %v466_v9 = vpack.c.bf16 %v305_v7, %v305_v7  ;;  %v316_v12 = vadd.f32 %v481_v8, %v453_v5  ;;  %338 = vst.msk [vmem:[%s223_s29 + $0x8] sm:$0xf] %vm335_vm1, %v468_v15 }
  0xdb   : > { %v307_v11 = vpop.f32.mrf.mxu0 }
  0xdc   : > { %336 = vst.msk [vmem:[%s223_s29] sm:$0xf] %vm335_vm1, %v466_v9  ;;  %v308_v13 = vadd.f32 %v453_v5, %v307_v11  ;;  %v469_v16 = vpack.c.bf16 %v316_v12, %v316_v12 }
  0xde   : > { %v467_v14 = vpack.c.bf16 %v308_v13, %v308_v13  ;;  %339 = vst.msk [vmem:[%s223_s29 + $0xc] sm:$0xf] %vm335_vm1, %v469_v16 }
  0xe0   : > { %337 = vst.msk [vmem:[%s223_s29 + $0x4] sm:$0xf] %vm335_vm1, %v467_v14 }
  0xe1 PF: > { %s13_s14 = sadd.s32 1, %s532_s14   ;;  %s600_s12 = smov %s528_s13 }
  0xe2   : > { %p10_p5 = scmp.ge.s32.totalorder %s13_s14, 4   ;;  %s601_s13 = smov %s603_s15 }
  0xe4   :  { %12 = sbr.rel (!%p10_p5) target bundleno = 2 (0x2), region = 68 }

// kernel: transformer_forward.22
= control target key start
LH: loop header
LB: loop body
LE: loop exit
PB: predicated region body
PF: predicated region fallthrough
CT: control target
= control target key end

     0   :  { %s691_s18 = smov 0   ;;  %s693_s19 = smov 0   ;;  %s753_s0 = inlined_call_operand.vmem [shape: f32[64,32], index: 0, kind: input, shape index: {}]   ;;  %s754_s1 = inlined_call_operand.vmem [shape: f32[1,32], index: 1, kind: input, shape index: {}]   ;;  %s755_s2 = inlined_call_operand.vmem [shape: f32[1,32], index: 2, kind: input, shape index: {}]   ;;  %s756_s3 = inlined_call_operand.vmem [shape: bf16[32,96], index: 3, kind: input, shape index: {}]   ;;  %s757_s4 = inlined_call_operand.vmem [shape: f32[1,96], index: 4, kind: input, shape index: {}]   ;;  %s758_s5 = inlined_call_operand.vmem [shape: bf16[64,96], index: 5, kind: output, shape index: {}]  }
   0x1   :  { %s695_s20 = smov 0  }
   0x2 LB: > { %s24_s21 = sadd.s32 1, %s655_s19  ;;  %p569_p0 = scmp.ge.s32.totalorder %s659_s20, 1  ;;  %s659_s20 = sphi %s695_s20, %s15_s20   ;;  %s655_s19 = sphi %s693_s19, %s760_s19   ;;  %s651_s18 = sphi %s691_s18, %s759_s18  }
   0x3   : > { %p25_p1 = scmp.ge.s32.totalorder %s24_s21, 2  ;;  %p219_p2 = scmp.lt.s32.totalorder %s659_s20, 3 }
   0x5   : > { %s762_s21 = smov (%p25_p1, %s24_s21), 0  ;;  %p220_p3 = pnand %p569_p0, %p219_p2 }
   0x6   : > { %s570_s22 = sshll.u32 (!%p220_p3), %s651_s18, 2 }
   0x7   : > { %223 = sbr.rel (%p220_p3) target bundleno = 538 (0x21a), region = 40  ;;  %p258_p4 = scmp.lt.s32.totalorder (!%p220_p3), %s570_s22, 7 }
   0xc   : > { %s764_s22 = smov (!%p258_p4, %s570_s22), 7  ;;  %vm286_vm0 = vcmask 261120   ;;  %v627_v28 = vld [vmem:[%s756_s3 + $0x8] sm:$0xff]   ;;  %v628_v29 = vld [vmem:[%s756_s3] sm:$0xff]   ;;  %vm456_vm1 = vcmask 781312  }
   0xd   : > { %s571_s23 = sshll.u32 %s764_s22, 3  ;;  %595 = vmatprep.subr.bf16.mxu0 %v627_v28  ;;  %v574_v44 = vld [vmem:[%s754_s1] ss:$0 sm:$0xff]  ;;  %s573_s10 = sshll.u32 %s764_s22, 2 }
   0xe   : > { %s261_s26 = scalar_lea.vmem %s753_s0, %s571_s23  ;;  %596 = vmatpush3.bf16.msra.mxu0 %v627_v28  ;;  %v575_v49 = vld [vmem:[%s755_s2] ss:$0 sm:$0xff]  ;;  %s277_s15 = scalar_lea.vmem %s758_s5, %s573_s10 }
   0xf   : > { %v280_v0 = vld [vmem:[%s261_s26] sm:$0xff]  ;;  %v282_v1 = vld [vmem:[%s261_s26 + $0x10] sm:$0xff]  ;;  %v281_v2 = vld [vmem:[%s261_s26 + $0x8] sm:$0xff]  ;;  %597 = vmatprep.subr.bf16.mxu0 %v628_v29 }
  0x10   : > { %v287_v3 = vsel %vm286_vm0, %v280_v0, 0.0  ;;  %v293_v4 = vsel %vm286_vm0, %v282_v1, 0.0  ;;  %v283_v5 = vld [vmem:[%s261_s26 + $0x18] sm:$0xff]  ;;  %v290_v6 = vsel %vm286_vm0, %v281_v2, 0.0  ;;  %v576_v63 = vld [vmem:[%s757_s4] ss:$0 sm:$0xff] }
  0x11   : > { %288 = vadd.xlane.f32.xlu0 %v287_v3  ;;  %294 = vadd.xlane.f32.xlu1 %v293_v4  ;;  %v296_v7 = vsel %vm286_vm0, %v283_v5, 0.0 }
  0x12   : > { %598 = vmatpush3.bf16.msra.mxu0 %v628_v29 }
  0x15   : > { %291 = vadd.xlane.f32.xlu0 %v290_v6  ;;  %297 = vadd.xlane.f32.xlu1 %v296_v7 }
  0x9a   : > { %v289_v8 = vpop.xlane.xlu0 %288  ;;  %v295_v9 = vpop.xlane.xlu1 %294 }
  0x9b   : > { %v300_v10 = vmul.f32 0.03125, %v289_v8  ;;  %v302_v11 = vmul.f32 0.03125, %v295_v9 }
  0x9d   : > { %v304_v12 = vsub.f32 %v280_v0, %v300_v10  ;;  %v306_v13 = vsub.f32 %v282_v1, %v302_v11 }
  0x9e   : > { %v292_v14 = vpop.xlane.xlu0 %291  ;;  %v298_v15 = vpop.xlane.xlu1 %297 }
  0x9f   : > { %v301_v16 = vmul.f32 0.03125, %v292_v14  ;;  %v303_v17 = vmul.f32 0.03125, %v298_v15  ;;  %v308_v18 = vmul.f32 %v304_v12, %v304_v12  ;;  %v310_v19 = vmul.f32 %v306_v13, %v306_v13 }
  0xa1   : > { %v305_v20 = vsub.f32 %v281_v2, %v301_v16  ;;  %v307_v21 = vsub.f32 %v283_v5, %v303_v17  ;;  %v312_v22 = vsel %vm286_vm0, %v308_v18, 0.0  ;;  %v318_v23 = vsel %vm286_vm0, %v310_v19, 0.0 }
  0xa2   : > { %313 = vadd.xlane.f32.xlu0 %v312_v22 }
  0xa3   : > { %v309_v24 = vmul.f32 %v305_v20, %v305_v20  ;;  %v311_v25 = vmul.f32 %v307_v21, %v307_v21 }
  0xa5   : > { %v315_v26 = vsel %vm286_vm0, %v309_v24, 0.0  ;;  %v321_v27 = vsel %vm286_vm0, %v311_v25, 0.0 }
  0xa6   : > { %319 = vadd.xlane.f32.xlu0 %v318_v23  ;;  %316 = vadd.xlane.f32.xlu1 %v315_v26 }
  0xaa   : > { %322 = vadd.xlane.f32.xlu1 %v321_v27 }
 0x12b   : > { %v314_v30 = vpop.xlane.xlu0 %313 }
 0x12c   : > { %v324_v31 = vmul.f32 0.03125, %v314_v30 }
 0x12e   : > { %v328_v32 = vadd.f32 1e-05, %v324_v31 }
 0x12f   : > { %v317_v33 = vpop.xlane.xlu1 %316  ;;  %v320_v34 = vpop.xlane.xlu0 %319 }
 0x130   : > { %629 = vrsqrt.f32 %v328_v32  ;;  %v325_v35 = vmul.f32 0.03125, %v317_v33  ;;  %v326_v36 = vmul.f32 0.03125, %v320_v34 }
 0x132   : > { %v329_v37 = vadd.f32 1e-05, %v325_v35  ;;  %v330_v38 = vadd.f32 1e-05, %v326_v36 }
 0x133   : > { %v323_v39 = vpop.xlane.xlu1 %322 }
 0x134   : > { %631 = vrsqrt.f32 %v329_v37  ;;  %v327_v40 = vmul.f32 0.03125, %v323_v39 }
 0x135   : > { %633 = vrsqrt.f32 %v330_v38 }
 0x136   : > { %v331_v41 = vadd.f32 1e-05, %v327_v40 }
 0x138   : > { %635 = vrsqrt.f32 %v331_v41 }
 0x13d   : > { %v630_v42 = vpop.eup %629 }
 0x13e   : > { %v336_v43 = vmul.f32 %v630_v42, %v304_v12 }
 0x140   : > { %v346_v48 = vmul.f32 %v574_v44, %v336_v43 }
 0x141   : > { %v632_v45 = vpop.eup %631 }
 0x142   : > { %v634_v46 = vpop.eup %633  ;;  %v337_v47 = vmul.f32 %v632_v45, %v305_v20  ;;  %v356_v53 = vadd.f32 %v575_v49, %v346_v48 }
 0x143   : > { %v338_v50 = vmul.f32 %v634_v46, %v306_v13 }
 0x144   : > { %v347_v51 = vmul.f32 %v574_v44, %v337_v47 }
 0x145   : > { %v636_v52 = vpop.eup %635  ;;  %v348_v56 = vmul.f32 %v574_v44, %v338_v50 }
 0x146   : > { %v357_v54 = vadd.f32 %v575_v49, %v347_v51  ;;  %v339_v55 = vmul.f32 %v636_v52, %v307_v21 }
 0x147   : > { %v358_v59 = vadd.f32 %v575_v49, %v348_v56 }
 0x148   : > { %v360_v57 = vpack.c.bf16 %v357_v54, %v356_v53  ;;  %v349_v58 = vmul.f32 %v574_v44, %v339_v55 }
 0x14a   : > { %599 = vmatprep.mubr.msk.bf16.mxu0 %vm286_vm0, %v360_v57  ;;  %v359_v60 = vadd.f32 %v575_v49, %v349_v58 }
 0x14c   : > { %v361_v61 = vpack.c.bf16 %v359_v60, %v358_v59 }
 0x14e   : > { %600 = vmatmul.mubr.msk.bf16.vlgmr.msra.gmra.mxu0 %vm286_vm0, %v361_v61 }
 0x20e   : > { %v601_v62 = vpop.f32.mrf.mxu0 }
 0x20f   : > { %v434_v4 = vadd.f32 %v601_v62, %v576_v63 }
 0x210   : > { %v425_v0 = vpop.f32.mrf.mxu0 }
 0x211   : > { %v426_v1 = vadd.f32 %v576_v63, %v425_v0  ;;  %v589_v9 = vpack.c.bf16 %v434_v4, %v434_v4 }
 0x212   : > { %v602_v2 = vpop.f32.mrf.mxu0 }
 0x213   : > { %v587_v3 = vpack.c.bf16 %v426_v1, %v426_v1  ;;  %v437_v6 = vadd.f32 %v602_v2, %v576_v63  ;;  %459 = vst.msk [vmem:[%s277_s15 + $0x8] sm:$0xf] %vm456_vm1, %v589_v9 }
 0x214   : > { %v428_v5 = vpop.f32.mrf.mxu0 }
 0x215   : > { %457 = vst.msk [vmem:[%s277_s15] sm:$0xf] %vm456_vm1, %v587_v3  ;;  %v429_v7 = vadd.f32 %v576_v63, %v428_v5  ;;  %v590_v10 = vpack.c.bf16 %v437_v6, %v437_v6 }
 0x217   : > { %v588_v8 = vpack.c.bf16 %v429_v7, %v429_v7  ;;  %460 = vst.msk [vmem:[%s277_s15 + $0xc] sm:$0xf] %vm456_vm1, %v590_v10 }
 0x219   : > { %458 = vst.msk [vmem:[%s277_s15 + $0x4] sm:$0xf] %vm456_vm1, %v588_v8 }
 0x21a PF: > { %s15_s20 = sadd.s32 1, %s659_s20   ;;  %s759_s18 = smov %s655_s19 }
 0x21b   : > { %p12_p5 = scmp.ge.s32.totalorder %s15_s20, 4   ;;  %s760_s19 = smov %s762_s21 }
 0x21d   :  { %14 = sbr.rel (!%p12_p5) target bundleno = 2 (0x2), region = 76 }

// kernel: transformer_forward.25
= control target key start
LH: loop header
LB: loop body
LE: loop exit
PB: predicated region body
PF: predicated region fallthrough
CT: control target
= control target key end

     0   :  { %s598_s18 = smov 0   ;;  %s637_s0 = inlined_call_operand.vmem [shape: bf16[64,32], index: 0, kind: input, shape index: {}]   ;;  %s638_s1 = inlined_call_operand.vmem [shape: bf16[32,8], index: 1, kind: input, shape index: {}]   ;;  %s639_s2 = inlined_call_operand.vmem [shape: f32[1,8], index: 2, kind: input, shape index: {}]   ;;  %s640_s3 = inlined_call_operand.vmem [shape: bf16[8,32], index: 3, kind: input, shape index: {}]   ;;  %s641_s4 = inlined_call_operand.vmem [shape: f32[1,32], index: 4, kind: input, shape index: {}]   ;;  %s642_s5 = inlined_call_operand.vmem [shape: bf16[64,32], index: 5, kind: output, shape index: {}]  }
   0x1 LB: > { %s489_s19 = sadd.s32 4294967295, %s566_s18   ;;  %p493_p0 = scmp.ge.s32.totalorder %s566_s18, 1  ;;  %s566_s18 = sphi %s598_s18, %s15_s18  }
   0x2   : > { %p188_p1 = scmp.lt.s32.totalorder %s566_s18, 3 }
   0x4   : > { %p189_p2 = pnand %p493_p0, %p188_p1 }
   0x5   : > { %s494_s22 = sshll.u32 (!%p189_p2), %s489_s19, 2 }
   0x6   : > { %192 = sbr.rel (%p189_p2) target bundleno = 448 (0x1c0), region = 40  ;;  %p217_p3 = scmp.lt.s32.totalorder (!%p189_p2), %s494_s22, 7 }
   0xb   : > { %v548_v0 = vld [vmem:[%s638_s1 + $0x8] sm:$0xff]   ;;  %v549_v1 = vld [vmem:[%s638_s1] sm:$0xff]   ;;  %s644_s22 = smov (!%p217_p3, %s494_s22), 7  ;;  %vm266_vm0 = vcmask 261120   ;;  %vm359_vm1 = vcmask 1043456   ;;  %vm352_vm2 = vcmask 64512  }
   0xc   : > { %525 = vmatprep.subr.bf16.mxu0 %v548_v0  ;;  %s495_s25 = sshll.u32 %s644_s22, 2  ;;  %v344_v4 = vld [vmem:[%s640_s3] sm:$0xf]  ;;  %vm428_vm3 = vcmask 257024  }
   0xd   : > { %526 = vmatpush3.bf16.msra.mxu0 %v548_v0  ;;  %s220_s28 = scalar_lea.vmem %s637_s0, %s495_s25  ;;  %539 = vmatprep.subr.msk.bf16.mxu1 %vm359_vm1, %v344_v4  ;;  %v361_v5 = vsel %vm359_vm1, %v344_v4, 0  ;;  %v498_v6 = vld [vmem:[%s639_s2] ss:$0 sm:$0xff]  ;;  %s226_s12 = scalar_lea.vmem %s642_s5, %s495_s25 }
   0xe   : > { %527 = vmatprep.subr.bf16.mxu0 %v549_v1  ;;  %v550_v2 = vld [vmem:[%s220_s28] sm:$0xff]   ;;  %v551_v3 = vld [vmem:[%s220_s28 + $0x8] sm:$0xff]   ;;  %534 = vmatpush3.bf16.msra.mxu1 %v361_v5 }
   0xf   : > { %529 = vmatprep.mubr.msk.bf16.mxu0 %vm266_vm0, %v550_v2  ;;  %v505_v38 = vld [vmem:[%s641_s4] ss:$0 sm:$0xff] }
  0x11   : > { %528 = vmatpush3.bf16.msra.mxu0 %v549_v1 }
  0x14   : > { %530 = vmatmul.mubr.msk.bf16.vlgmr.msra.gmra.mxu0 %vm266_vm0, %v551_v3 }
  0xd4   : > { %v531_v7 = vpop.f32.mrf.mxu0 }
  0xd5   : > { %v316_v8 = vadd.f32 %v531_v7, %v498_v6 }
  0xd6   : > { %v307_v9 = vpop.f32.mrf.mxu0 }
  0xd7   : > { %v308_v10 = vadd.f32 %v498_v6, %v307_v9  ;;  %v328_v11 = vmul.f32 0.70710677, %v316_v8  ;;  %v324_v30 = vmul.f32 0.5, %v316_v8 }
  0xd8   : > { %v532_v12 = vpop.f32.mrf.mxu0 }
  0xd9   : > { %v326_v13 = vmul.f32 0.70710677, %v308_v10  ;;  %v319_v14 = vadd.f32 %v532_v12, %v498_v6  ;;  %v322_v27 = vmul.f32 0.5, %v308_v10 }
  0xda   : > { %v310_v15 = vpop.f32.mrf.mxu0 }
  0xdb   : > { %552 = verf.f32 %v326_v13  ;;  %v329_v16 = vmul.f32 0.70710677, %v319_v14  ;;  %v311_v17 = vadd.f32 %v498_v6, %v310_v15  ;;  %v325_v26 = vmul.f32 0.5, %v319_v14 }
  0xdc   : > { %554 = verf.f32 %v328_v11 }
  0xdd   : > { %556 = verf.f32 %v329_v16  ;;  %v327_v18 = vmul.f32 0.70710677, %v311_v17  ;;  %v323_v28 = vmul.f32 0.5, %v311_v17 }
  0xdf   : > { %558 = verf.f32 %v327_v18 }
  0xe8   : > { %v553_v19 = vpop.eup %552 }
  0xe9   : > { %v555_v20 = vpop.eup %554  ;;  %v334_v23 = vadd.f32 1.0, %v553_v19 }
  0xea   : > { %v557_v21 = vpop.eup %556  ;;  %v336_v25 = vadd.f32 1.0, %v555_v20 }
  0xeb   : > { %v337_v22 = vadd.f32 1.0, %v557_v21  ;;  %v338_v32 = vmul.f32 %v334_v23, %v322_v27 }
  0xec   : > { %v559_v24 = vpop.eup %558  ;;  %v340_v34 = vmul.f32 %v336_v25, %v324_v30 }
  0xed   : > { %v335_v29 = vadd.f32 1.0, %v559_v24  ;;  %v341_v31 = vmul.f32 %v337_v22, %v325_v26 }
  0xef   : > { %v339_v33 = vmul.f32 %v335_v29, %v323_v28  ;;  %v343_v36 = vpack.c.bf16 %v341_v31, %v340_v34 }
  0xf1   : > { %v342_v35 = vpack.c.bf16 %v339_v33, %v338_v32 }
  0xf3   : > { %535 = vmatprep.mubr.msk.bf16.mxu1 %vm352_vm2, %v342_v35 }
  0xf4   : > { %536 = vmatmul.mubr.msk.bf16.vlgmr.msra.gmra.mxu1 %vm352_vm2, %v343_v36 }
 0x1b4   : > { %v537_v37 = vpop.f32.mrf.mxu1 }
 0x1b5   : > { %v406_v43 = vadd.f32 %v537_v37, %v505_v38 }
 0x1b6   : > { %v397_v39 = vpop.f32.mrf.mxu1 }
 0x1b7   : > { %v398_v40 = vadd.f32 %v505_v38, %v397_v39  ;;  %v516_v48 = vpack.c.bf16 %v406_v43, %v406_v43 }
 0x1b8   : > { %v538_v41 = vpop.f32.mrf.mxu1 }
 0x1b9   : > { %v514_v42 = vpack.c.bf16 %v398_v40, %v398_v40  ;;  %v409_v45 = vadd.f32 %v538_v41, %v505_v38  ;;  %431 = vst.msk [vmem:[%s226_s12 + $0x8] sm:$0xf] %vm428_vm3, %v516_v48 }
 0x1ba   : > { %v400_v44 = vpop.f32.mrf.mxu1 }
 0x1bb   : > { %429 = vst.msk [vmem:[%s226_s12] sm:$0xf] %vm428_vm3, %v514_v42  ;;  %v401_v46 = vadd.f32 %v505_v38, %v400_v44  ;;  %v517_v49 = vpack.c.bf16 %v409_v45, %v409_v45 }
 0x1bd   : > { %v515_v47 = vpack.c.bf16 %v401_v46, %v401_v46  ;;  %432 = vst.msk [vmem:[%s226_s12 + $0xc] sm:$0xf] %vm428_vm3, %v517_v49 }
 0x1bf   : > { %430 = vst.msk [vmem:[%s226_s12 + $0x4] sm:$0xf] %vm428_vm3, %v515_v47 }
 0x1c0 PF: > { %s15_s18 = sadd.s32 1, %s566_s18  }
 0x1c1   : > { %p12_p4 = scmp.ge.s32.totalorder %s15_s18, 4  }
 0x1c3   :  { %14 = sbr.rel (!%p12_p4) target bundleno = 1 (0x1), region = 70 }

// kernel: transformer_forward.29
= control target key start
LH: loop header
LB: loop body
LE: loop exit
PB: predicated region body
PF: predicated region fallthrough
CT: control target
= control target key end

     0   :  { %s659_s21 = smov 0   ;;  %s714_s0 = inlined_call_operand.vmem [shape: bf16[64,32], index: 0, kind: input, shape index: {}]   ;;  %s715_s1 = inlined_call_operand.vmem [shape: bf16[32,8], index: 1, kind: input, shape index: {}]   ;;  %s716_s2 = inlined_call_operand.vmem [shape: f32[1,8], index: 2, kind: input, shape index: {}]   ;;  %s717_s3 = inlined_call_operand.vmem [shape: bf16[8,32], index: 3, kind: input, shape index: {}]   ;;  %s718_s4 = inlined_call_operand.vmem [shape: f32[1,32], index: 4, kind: input, shape index: {}]   ;;  %s719_s5 = inlined_call_operand.vmem [shape: f32[64,32], index: 5, kind: input, shape index: {}]   ;;  %s720_s6 = inlined_call_operand.vmem [shape: f32[64,32], index: 6, kind: output, shape index: {}]  }
   0x1 LB: > { %s549_s22 = sadd.s32 4294967295, %s622_s21   ;;  %p553_p0 = scmp.ge.s32.totalorder %s622_s21, 1  ;;  %s622_s21 = sphi %s659_s21, %s16_s21  }
   0x2   : > { %p224_p1 = scmp.lt.s32.totalorder %s622_s21, 3 }
   0x4   : > { %p225_p2 = pnand %p553_p0, %p224_p1 }
   0x5   : > { %s554_s25 = sshll.u32 (!%p225_p2), %s549_s22, 2 }
   0x6   : > { %228 = sbr.rel (%p225_p2) target bundleno = 450 (0x1c2), region = 44  ;;  %p260_p3 = scmp.lt.s32.totalorder (!%p225_p2), %s554_s25, 7 }
   0xb   : > { %v602_v0 = vld [vmem:[%s715_s1 + $0x8] sm:$0xff]   ;;  %v603_v1 = vld [vmem:[%s715_s1] sm:$0xff]   ;;  %s722_s25 = smov (!%p260_p3, %s554_s25), 7  ;;  %vm315_vm0 = vcmask 261120   ;;  %vm408_vm1 = vcmask 1043456   ;;  %vm401_vm2 = vcmask 64512  }
   0xc   : > { %579 = vmatprep.subr.bf16.mxu0 %v602_v0  ;;  %s555_s28 = sshll.u32 %s722_s25, 2  ;;  %v393_v4 = vld [vmem:[%s717_s3] sm:$0xf]  ;;  %s557_s12 = sshll.u32 %s722_s25, 3 }
   0xd   : > { %580 = vmatpush3.bf16.msra.mxu0 %v602_v0  ;;  %s263_s7 = scalar_lea.vmem %s714_s0, %s555_s28  ;;  %593 = vmatprep.subr.msk.bf16.mxu1 %vm408_vm1, %v393_v4  ;;  %v410_v5 = vsel %vm408_vm1, %v393_v4, 0  ;;  %v560_v6 = vld [vmem:[%s716_s2] ss:$0 sm:$0xff]  ;;  %s269_s17 = scalar_lea.vmem %s719_s5, %s557_s12 }
   0xe   : > { %581 = vmatprep.subr.bf16.mxu0 %v603_v1  ;;  %v679_v2 = vld [vmem:[%s263_s7] sm:$0xff]   ;;  %v681_v3 = vld [vmem:[%s263_s7 + $0x8] sm:$0xff]   ;;  %588 = vmatpush3.bf16.msra.mxu1 %v410_v5  ;;  %s275_s20 = scalar_lea.vmem %s720_s6, %s557_s12  ;;  %v471_v55 = vld [vmem:[%s269_s17 + $0x10] sm:$0xff] }
   0xf   : > { %583 = vmatprep.mubr.msk.bf16.mxu0 %vm315_vm0, %v679_v2  ;;  %v461_v38 = vunpack.c.l.bf16 %v679_v2  ;;  %v567_v39 = vld [vmem:[%s718_s4] ss:$0 sm:$0xff]  ;;  %v463_v43 = vunpack.c.l.bf16 %v681_v3  ;;  %v462_v46 = vunpack.c.h.bf16 %v679_v2  ;;  %v464_v49 = vunpack.c.h.bf16 %v681_v3  ;;  %v470_v54 = vld [vmem:[%s269_s17 + $0x8] sm:$0xff]  ;;  %v472_v58 = vld [vmem:[%s269_s17 + $0x18] sm:$0xff] }
  0x10   : > { %v469_v44 = vld [vmem:[%s269_s17] sm:$0xff] }
  0x11   : > { %582 = vmatpush3.bf16.msra.mxu0 %v603_v1 }
  0x14   : > { %584 = vmatmul.mubr.msk.bf16.vlgmr.msra.gmra.mxu0 %vm315_vm0, %v681_v3 }
  0xd4   : > { %v585_v7 = vpop.f32.mrf.mxu0 }
  0xd5   : > { %v365_v8 = vadd.f32 %v585_v7, %v560_v6 }
  0xd6   : > { %v356_v9 = vpop.f32.mrf.mxu0 }
  0xd7   : > { %v357_v10 = vadd.f32 %v560_v6, %v356_v9  ;;  %v377_v11 = vmul.f32 0.70710677, %v365_v8  ;;  %v373_v30 = vmul.f32 0.5, %v365_v8 }
  0xd8   : > { %v586_v12 = vpop.f32.mrf.mxu0 }
  0xd9   : > { %v375_v13 = vmul.f32 0.70710677, %v357_v10  ;;  %v368_v14 = vadd.f32 %v586_v12, %v560_v6  ;;  %v371_v27 = vmul.f32 0.5, %v357_v10 }
  0xda   : > { %v359_v15 = vpop.f32.mrf.mxu0 }
  0xdb   : > { %608 = verf.f32 %v375_v13  ;;  %v378_v16 = vmul.f32 0.70710677, %v368_v14  ;;  %v360_v17 = vadd.f32 %v560_v6, %v359_v15  ;;  %v374_v26 = vmul.f32 0.5, %v368_v14 }
  0xdc   : > { %610 = verf.f32 %v377_v11 }
  0xdd   : > { %612 = verf.f32 %v378_v16  ;;  %v376_v18 = vmul.f32 0.70710677, %v360_v17  ;;  %v372_v28 = vmul.f32 0.5, %v360_v17 }
  0xdf   : > { %614 = verf.f32 %v376_v18 }
  0xe8   : > { %v609_v19 = vpop.eup %608 }
  0xe9   : > { %v611_v20 = vpop.eup %610  ;;  %v383_v23 = vadd.f32 1.0, %v609_v19 }
  0xea   : > { %v613_v21 = vpop.eup %612  ;;  %v385_v25 = vadd.f32 1.0, %v611_v20 }
  0xeb   : > { %v386_v22 = vadd.f32 1.0, %v613_v21  ;;  %v387_v32 = vmul.f32 %v383_v23, %v371_v27 }
  0xec   : > { %v615_v24 = vpop.eup %614  ;;  %v389_v34 = vmul.f32 %v385_v25, %v373_v30 }
  0xed   : > { %v384_v29 = vadd.f32 1.0, %v615_v24  ;;  %v390_v31 = vmul.f32 %v386_v22, %v374_v26 }
  0xef   : > { %v388_v33 = vmul.f32 %v384_v29, %v372_v28  ;;  %v392_v36 = vpack.c.bf16 %v390_v31, %v389_v34 }
  0xf1   : > { %v391_v35 = vpack.c.bf16 %v388_v33, %v387_v32 }
  0xf3   : > { %589 = vmatprep.mubr.msk.bf16.mxu1 %vm401_vm2, %v391_v35 }
  0xf4   : > { %590 = vmatmul.mubr.msk.bf16.vlgmr.msra.gmra.mxu1 %vm401_vm2, %v392_v36 }
 0x1b4   : > { %v591_v37 = vpop.f32.mrf.mxu1 }
 0x1b5   : > { %v455_v42 = vadd.f32 %v591_v37, %v567_v39 }
 0x1b6   : > { %v446_v40 = vpop.f32.mrf.mxu1 }
 0x1b7   : > { %v447_v41 = vadd.f32 %v567_v39, %v446_v40  ;;  %v467_v53 = vadd.f32 %v463_v43, %v455_v42 }
 0x1b8   : > { %v592_v45 = vpop.f32.mrf.mxu1 }
 0x1b9   : > { %v465_v47 = vadd.f32 %v461_v38, %v447_v41  ;;  %v458_v48 = vadd.f32 %v592_v45, %v567_v39  ;;  %v475_v60 = vadd.f32 %v471_v55, %v467_v53 }
 0x1ba   : > { %v449_v50 = vpop.f32.mrf.mxu1 }
 0x1bb   : > { %v473_v51 = vadd.f32 %v469_v44, %v465_v47  ;;  %v450_v52 = vadd.f32 %v567_v39, %v449_v50  ;;  %v468_v56 = vadd.f32 %v464_v49, %v458_v48  ;;  %479 = vst.msk [vmem:[%s275_s20 + $0x10] sm:$0xff] %vm315_vm0, %v475_v60 }
 0x1bd   : > { %477 = vst.msk [vmem:[%s275_s20] sm:$0xff] %vm315_vm0, %v473_v51  ;;  %v466_v57 = vadd.f32 %v462_v46, %v450_v52  ;;  %v476_v61 = vadd.f32 %v472_v58, %v468_v56 }
 0x1bf   : > { %v474_v59 = vadd.f32 %v470_v54, %v466_v57  ;;  %480 = vst.msk [vmem:[%s275_s20 + $0x18] sm:$0xff] %vm315_vm0, %v476_v61 }
 0x1c1   : > { %478 = vst.msk [vmem:[%s275_s20 + $0x8] sm:$0xff] %vm315_vm0, %v474_v59 }
 0x1c2 PF: > { %s16_s21 = sadd.s32 1, %s622_s21  }
 0x1c3   : > { %p13_p4 = scmp.ge.s32.totalorder %s16_s21, 4  }
 0x1c5   :  { %15 = sbr.rel (!%p13_p4) target bundleno = 1 (0x1), region = 77 }

// kernel: transformer_forward.27
= control target key start
LH: loop header
LB: loop body
LE: loop exit
PB: predicated region body
PF: predicated region fallthrough
CT: control target
= control target key end

     0   :  { %s2493_s6 = smov 0   ;;  %s2829_s0 = inlined_call_operand.vmem [shape: bf16[8,8,96], index: 0, kind: input, shape index: {}]   ;;  %s2830_s1 = inlined_call_operand.vmem [shape: bf16[8,8,32], index: 1, kind: output, shape index: {}]  }
   0x1 LB: > { %s2034_s7 = sadd.s32 4294967295, %s2465_s6   ;;  %p2038_p0 = scmp.ge.s32.totalorder %s2465_s6, 1  ;;  %s2465_s6 = sphi %s2493_s6, %s11_s6  }
   0x2   : > { %p88_p1 = scmp.lt.s32.totalorder %s2465_s6, 3 }
   0x4   : > { %p89_p2 = pnand %p2038_p0, %p88_p1 }
   0x5   : > { %s2039_s8 = sshll.u32 (!%p89_p2), %s2034_s7, 2  ;;  %s2469_s13 = smov (!%p89_p2), 96  }
   0x6   : > { %92 = sbr.rel (%p89_p2) target bundleno = 2699 (0xa8b), region = 24  ;;  %p109_p3 = scmp.lt.s32.totalorder (!%p89_p2), %s2039_s8, 7 }
   0x7   : > { %s2470_s14 = smov (!%p89_p2), 64   ;;  %s2471_s15 = smov (!%p89_p2), 88  }
   0x8   : > { %s2472_s16 = smov (!%p89_p2), 120   ;;  %s2473_s17 = smov (!%p89_p2), 56  }
   0x9   : > { %s2474_s18 = smov (!%p89_p2), 80   ;;  %s2475_s19 = smov (!%p89_p2), 112  }
   0xa   : > { %s2476_s20 = smov (!%p89_p2), 48   ;;  %s2477_s21 = smov (!%p89_p2), 72  }
   0xb   : > { %v2467_v0 = vmov 0.0   ;;  %s2832_s8 = smov (!%p109_p3, %s2039_s8), 7  ;;  %vm2468_vm0 = vmmov 0   ;;  %vm130_vm1 = vcmask 64512   ;;  %vm387_vm2 = vcmask 1043456   ;;  %s2478_s22 = smov 104  }
   0xc   : > { %2145 = vmatprep.subr.bf16.mxu0 %v2467_v0  ;;  %2151 = vmatprep.subr.bf16.mxu1 %v2467_v0  ;;  %s2040_s9 = sshll.u32 %s2832_s8, 2  ;;  %s2479_s23 = smov 40   ;;  %vm1959_vm3 = vcmask 130048   ;;  %vm1964_vm4 = vcmask 195584   ;;  %vm1973_vm5 = vcmask 257024  }
   0xd   : > { %2147 = vmatprep.mubr.msk.bf16.mxu0 %vm2468_vm0, %v2467_v0  ;;  %2153 = vmatprep.mubr.msk.bf16.mxu1 %vm2468_vm0, %v2467_v0  ;;  %s112_s12 = scalar_lea.vmem %s2829_s0, %s2040_s9  ;;  %s2480_s24 = smov 16  }
   0xe   : > { %v121_v1 = vld [vmem:[%s112_s12] sm:$0xf]  ;;  %v122_v2 = vld [vmem:[%s112_s12 + $0x4] sm:$0xf]  ;;  %v123_v3 = vld [vmem:[%s112_s12 + $0x8] sm:$0xf]  ;;  %s118_s29 = scalar_lea.vmem %s2830_s1, %s2040_s9 }
   0xf   : > { %v2515_v4 = vcombine.low %v121_v1, %v121_v1  ;;  %v2517_v5 = vcombine.low %v123_v3, %v123_v3  ;;  %v124_v6 = vld [vmem:[%s112_s12 + $0xc] sm:$0xf]  ;;  %v2520_v7 = vcombine.low %v122_v2, %v122_v2  ;;  %s2481_s25 = smov 8   ;;  %s2482_s26 = smov 24  }
  0x10   : > { %v2523_v8 = vcombine.low %v124_v6, %v124_v6 }
  0x11   : > { %128 = vrot.lane.b32.xlu0 %v2515_v4, %s2469_s13  ;;  %231 = vrot.lane.b32.xlu1 %v2517_v5, %s2469_s13 }
  0x15   : > { %180 = vrot.lane.b32.xlu0 %v2520_v7, %s2469_s13  ;;  %282 = vrot.lane.b32.xlu1 %v2523_v8, %s2469_s13 }
  0x83   : > { %v129_v9 = vpop.permute.xlu0 %128  ;;  %v232_v11 = vpop.permute.xlu1 %231 }
  0x84   : > { %v135_v10 = vsel %vm130_vm1, %v129_v9, 0  ;;  %v237_v14 = vsel %vm130_vm1, %v232_v11, 0 }
  0x85   : > { %2146 = vmatpush3.bf16.xpose.msra.mxu0 %v135_v10 }
  0x86   : > { %2157 = vmatprep.subr.bf16.mxu0 %v2467_v0 }
  0x87   : > { %v181_v12 = vpop.permute.xlu0 %180  ;;  %v283_v15 = vpop.permute.xlu1 %282 }
  0x88   : > { %v186_v13 = vsel %vm130_vm1, %v181_v12, 0  ;;  %v288_v16 = vsel %vm130_vm1, %v283_v15, 0 }
  0x89   : > { %2152 = vmatpush3.bf16.xpose.msra.mxu1 %v186_v13 }
  0x8a   : > { %2163 = vmatprep.subr.bf16.mxu1 %v2467_v0 }
  0x8c   : > { %2148 = vmatmul.mubr.msk.bf16.vlgmr.msra.gmra.mxu0 %vm130_vm1, %v121_v1 }
  0x8d   : > { %2158 = vmatpush3.bf16.xpose.msra.mxu0 %v237_v14  ;;  %2159 = vmatprep.mubr.msk.bf16.mxu0 %vm2468_vm0, %v2467_v0 }
  0x8e   : > { %2169 = vmatprep.subr.bf16.mxu0 %v2467_v0 }
  0x90   : > { %2154 = vmatmul.mubr.msk.bf16.vlgmr.msra.gmra.mxu1 %vm130_vm1, %v122_v2 }
  0x91   : > { %2164 = vmatpush3.bf16.xpose.msra.mxu1 %v288_v16  ;;  %2165 = vmatprep.mubr.msk.bf16.mxu1 %vm2468_vm0, %v2467_v0 }
  0x92   : > { %2175 = vmatprep.subr.bf16.mxu1 %v2467_v0 }
  0x94   : > { %2160 = vmatmul.mubr.msk.bf16.vlgmr.msra.gmra.mxu0 %vm130_vm1, %v123_v3 }
  0x95   : > { %2171 = vmatprep.mubr.msk.bf16.mxu0 %vm2468_vm0, %v2467_v0 }
  0x98   : > { %2166 = vmatmul.mubr.msk.bf16.vlgmr.msra.gmra.mxu1 %vm130_vm1, %v124_v6 }
  0x99   : > { %2177 = vmatprep.mubr.msk.bf16.mxu1 %vm2468_vm0, %v2467_v0 }
 0x14c   : > { %v171_v17 = vpop.f32.mrf.mxu0 }
 0x14d   : > { %v330_v18 = vmul.f32 0.35355338, %v171_v17 }
 0x14e   : > { %v2149_v19 = vpop.f32.mrf.mxu0 }
 0x14f   : > { %v334_v20 = vsel %vm130_vm1, %v330_v18, -inf }
 0x150   : > { %335 = vmax.xlane.f32.xlu0 %v334_v20  ;;  %v174_v21 = vpop.f32.mrf.mxu0  ;;  %v222_v22 = vpop.f32.mrf.mxu1 }
 0x151   : > { %v331_v23 = vmul.f32 0.35355338, %v222_v22 }
 0x152   : > { %v2150_v24 = vpop.f32.mrf.mxu0  ;;  %v2155_v25 = vpop.f32.mrf.mxu1 }
 0x153   : > { %v337_v26 = vsel %vm130_vm1, %v331_v23, -inf }
 0x154   : > { %v273_v27 = vpop.f32.mrf.mxu0  ;;  %338 = vmax.xlane.f32.xlu1 %v337_v26  ;;  %v225_v28 = vpop.f32.mrf.mxu1 }
 0x155   : > { %v332_v29 = vmul.f32 0.35355338, %v273_v27 }
 0x156   : > { %v2156_v30 = vpop.f32.mrf.mxu1  ;;  %v2161_v31 = vpop.f32.mrf.mxu0 }
 0x157   : > { %v340_v32 = vsel %vm130_vm1, %v332_v29, -inf }
 0x158   : > { %341 = vmax.xlane.f32.xlu0 %v340_v32  ;;  %v324_v33 = vpop.f32.mrf.mxu1  ;;  %v276_v34 = vpop.f32.mrf.mxu0 }
 0x159   : > { %v333_v35 = vmul.f32 0.35355338, %v324_v33 }
 0x15a   : > { %v2162_v36 = vpop.f32.mrf.mxu0  ;;  %v2167_v37 = vpop.f32.mrf.mxu1 }
 0x15b   : > { %v343_v38 = vsel %vm130_vm1, %v333_v35, -inf }
 0x15c   : > { %344 = vmax.xlane.f32.xlu0 %v343_v38  ;;  %v327_v39 = vpop.f32.mrf.mxu1 }
 0x15e   : > { %v2168_v40 = vpop.f32.mrf.mxu1 }
 0x165   : > { %382 = vrot.lane.b32.xlu1 %v2515_v4, %s2470_s14 }
 0x1d9   : > { %v336_v41 = vpop.xlane.xlu0 %335 }
 0x1da   : > { %v346_v42 = vsub.f32 %v330_v18, %v336_v41 }
 0x1dc   : > { %v350_v43 = vmul.f32 1.442695, %v346_v42 }
 0x1dd   : > { %v339_v44 = vpop.xlane.xlu1 %338 }
 0x1de   : > { %2395 = vpow2.f32 %v350_v43  ;;  %v347_v45 = vsub.f32 %v331_v23, %v339_v44 }
 0x1e0   : > { %v352_v46 = vmul.f32 1.442695, %v347_v45 }
 0x1e1   : > { %v383_v47 = vpop.permute.xlu1 %382  ;;  %v342_v53 = vpop.xlane.xlu0 %341 }
 0x1e2   : > { %2397 = vpow2.f32 %v352_v46  ;;  %v389_v48 = vsel %vm387_vm2, %v383_v47, 0  ;;  %v348_v55 = vsub.f32 %v332_v29, %v342_v53 }
 0x1e3   : > { %2170 = vmatpush3.bf16.msra.mxu0 %v389_v48 }
 0x1e4   : > { %2181 = vmatprep.subr.bf16.mxu0 %v2467_v0  ;;  %v354_v57 = vmul.f32 1.442695, %v348_v55 }
 0x1e5   : > { %v345_v54 = vpop.xlane.xlu0 %344 }
 0x1e6   : > { %v349_v56 = vsub.f32 %v333_v35, %v345_v54  ;;  %2399 = vpow2.f32 %v354_v57 }
 0x1e8   : > { %v356_v58 = vmul.f32 1.442695, %v349_v56 }
 0x1ea   : > { %2401 = vpow2.f32 %v356_v58 }
 0x1eb   : > { %v2396_v49 = vpop.eup %2395 }
 0x1ec   : > { %v358_v50 = vsel %vm130_vm1, %v2396_v49, 0.0 }
 0x1ed   : > { %359 = vadd.xlane.f32.xlu1 %v358_v50 }
 0x1ef   : > { %v2398_v51 = vpop.eup %2397 }
 0x1f0   : > { %v361_v52 = vsel %vm130_vm1, %v2398_v51, 0.0 }
 0x1f1   : > { %362 = vadd.xlane.f32.xlu0 %v361_v52 }
 0x1f3   : > { %v2400_v59 = vpop.eup %2399 }
 0x1f4   : > { %v364_v61 = vsel %vm130_vm1, %v2400_v59, 0.0 }
 0x1f7   : > { %v2402_v60 = vpop.eup %2401 }
 0x1f8   : > { %v367_v62 = vsel %vm130_vm1, %v2402_v60, 0.0 }
 0x1fe   : > { %479 = vrot.lane.b32.xlu1 %v2517_v5, %s2470_s14 }
 0x202   : > { %527 = vrot.lane.b32.xlu1 %v2523_v8, %s2470_s14 }
 0x207   : > { %431 = vrot.lane.b32.xlu0 %v2520_v7, %s2470_s14 }
 0x226   : > { %365 = vadd.xlane.f32.xlu1 %v364_v61  ;;  %368 = vadd.xlane.f32.xlu0 %v367_v62 }
 0x237   : > { %627 = vrot.lane.b32.xlu1 %v2520_v7, %s2471_s15 }
 0x23b   : > { %677 = vrot.lane.b32.xlu1 %v2517_v5, %s2471_s15 }
 0x23c   : > { %577 = vrot.lane.b32.xlu0 %v2515_v4, %s2471_s15 }
 0x23f   : > { %727 = vrot.lane.b32.xlu1 %v2523_v8, %s2471_s15 }
 0x240   : > { %575 = vrot.lane.b32.xlu0 %v2515_v4, %s2472_s16 }
 0x243   : > { %725 = vrot.lane.b32.xlu1 %v2523_v8, %s2472_s16 }
 0x244   : > { %625 = vrot.lane.b32.xlu0 %v2520_v7, %s2472_s16 }
 0x248   : > { %675 = vrot.lane.b32.xlu0 %v2517_v5, %s2472_s16 }
 0x276   : > { %v360_v63 = vpop.xlane.xlu1 %359 }
 0x277   : > { %2403 = vrcp.f32 %v360_v63 }
 0x27a   : > { %v363_v1 = vpop.xlane.xlu0 %362  ;;  %v480_v9 = vpop.permute.xlu1 %479 }
 0x27b   : > { %2405 = vrcp.f32 %v363_v1  ;;  %v485_v13 = vsel %vm387_vm2, %v480_v9, 0 }
 0x27e   : > { %v432_v2 = vpop.permute.xlu0 %431  ;;  %v528_v15 = vpop.permute.xlu1 %527 }
 0x27f   : > { %v437_v3 = vsel %vm387_vm2, %v432_v2, 0  ;;  %v533_v17 = vsel %vm387_vm2, %v528_v15, 0 }
 0x280   : > { %2176 = vmatpush3.bf16.msra.mxu1 %v437_v3 }
 0x281   : > { %2187 = vmatprep.subr.bf16.mxu1 %v2467_v0 }
 0x284   : > { %v2404_v6 = vpop.eup %2403 }
 0x285   : > { %v374_v10 = vmul.f32 %v2404_v6, %v2396_v49 }
 0x287   : > { %v378_v11 = vpack.c.bf16 %v374_v10, %v374_v10 }
 0x288   : > { %v2406_v12 = vpop.eup %2405 }
 0x289   : > { %2172 = vmatmul.mubr.msk.bf16.vlgmr.msra.gmra.mxu0 %vm130_vm1, %v378_v11  ;;  %v375_v14 = vmul.f32 %v2406_v12, %v2398_v51 }
 0x28a   : > { %2182 = vmatpush3.bf16.msra.mxu0 %v485_v13  ;;  %2183 = vmatprep.mubr.msk.bf16.mxu0 %vm2468_vm0, %v2467_v0 }
 0x28b   : > { %v379_v16 = vpack.c.bf16 %v375_v14, %v375_v14  ;;  %2193 = vmatprep.subr.bf16.mxu0 %v2467_v0 }
 0x28d   : > { %2178 = vmatmul.mubr.msk.bf16.vlgmr.msra.gmra.mxu1 %vm130_vm1, %v379_v16 }
 0x28e   : > { %2188 = vmatpush3.bf16.msra.mxu1 %v533_v17  ;;  %2189 = vmatprep.mubr.msk.bf16.mxu1 %vm2468_vm0, %v2467_v0 }
 0x28f   : > { %2199 = vmatprep.subr.bf16.mxu1 %v2467_v0 }
 0x2af   : > { %v366_v18 = vpop.xlane.xlu1 %365  ;;  %v369_v19 = vpop.xlane.xlu0 %368 }
 0x2b0   : > { %2407 = vrcp.f32 %v366_v18 }
 0x2b1   : > { %2409 = vrcp.f32 %v369_v19 }
 0x2b3   : > { %v628_v20 = vpop.permute.xlu1 %627  ;;  %v578_v21 = vpop.permute.xlu0 %577 }
 0x2b4   : > { %v583_v26 = vsel %vm130_vm1, %v578_v21, 0  ;;  %v633_v29 = vsel %vm130_vm1, %v628_v20, 0 }
 0x2b7   : > { %v678_v28 = vpop.permute.xlu1 %677  ;;  %v576_v31 = vpop.permute.xlu0 %575 }
 0x2b8   : > { %v683_v33 = vsel %vm130_vm1, %v678_v28, 0 }
 0x2bb   : > { %v728_v32 = vpop.permute.xlu1 %727  ;;  %v626_v34 = vpop.permute.xlu0 %625 }
 0x2bc   : > { %v733_v35 = vsel %vm130_vm1, %v728_v32, 0 }
 0x2bd   : > { %v2408_v22 = vpop.eup %2407 }
 0x2be   : > { %v2410_v23 = vpop.eup %2409  ;;  %v376_v24 = vmul.f32 %v2408_v22, %v2400_v59 }
 0x2bf   : > { %v377_v25 = vmul.f32 %v2410_v23, %v2402_v60  ;;  %v676_v36 = vpop.permute.xlu0 %675  ;;  %v726_v37 = vpop.permute.xlu1 %725 }
 0x2c0   : > { %v380_v27 = vpack.c.bf16 %v376_v24, %v376_v24 }
 0x2c1   : > { %v381_v30 = vpack.c.bf16 %v377_v25, %v377_v25 }
 0x2c2   : > { %2184 = vmatmul.mubr.msk.bf16.vlgmr.msra.gmra.mxu0 %vm130_vm1, %v380_v27 }
 0x2c3   : > { %2190 = vmatmul.mubr.msk.bf16.vlgmr.msra.gmra.mxu1 %vm130_vm1, %v381_v30  ;;  %2194 = vmatpush3.bf16.xpose.msra.mxu0 %v583_v26 }
 0x2c4   : > { %2200 = vmatpush3.bf16.xpose.msra.mxu1 %v633_v29  ;;  %2195 = vmatprep.mubr.msk.bf16.mxu0 %vm2468_vm0, %v2467_v0 }
 0x2c5   : > { %2201 = vmatprep.mubr.msk.bf16.mxu1 %vm2468_vm0, %v2467_v0  ;;  %2205 = vmatprep.subr.bf16.mxu0 %v2467_v0 }
 0x2c6   : > { %2211 = vmatprep.subr.bf16.mxu1 %v2467_v0 }
 0x2ca   : > { %2196 = vmatmul.mubr.msk.bf16.vlgmr.msra.gmra.mxu0 %vm130_vm1, %v576_v31 }
 0x2cb   : > { %2202 = vmatmul.mubr.msk.bf16.vlgmr.msra.gmra.mxu1 %vm130_vm1, %v626_v34  ;;  %2206 = vmatpush3.bf16.xpose.msra.mxu0 %v683_v33 }
 0x2cc   : > { %2212 = vmatpush3.bf16.xpose.msra.mxu1 %v733_v35  ;;  %2207 = vmatprep.mubr.msk.bf16.mxu0 %vm2468_vm0, %v2467_v0 }
 0x2cd   : > { %2213 = vmatprep.mubr.msk.bf16.mxu1 %vm2468_vm0, %v2467_v0  ;;  %2217 = vmatprep.subr.bf16.mxu0 %v2467_v0 }
 0x2ce   : > { %2223 = vmatprep.subr.bf16.mxu1 %v2467_v0 }
 0x2d2   : > { %2208 = vmatmul.mubr.msk.bf16.vlgmr.msra.gmra.mxu0 %vm130_vm1, %v676_v36 }
 0x2d3   : > { %2214 = vmatmul.mubr.msk.bf16.vlgmr.msra.gmra.mxu1 %vm130_vm1, %v726_v37  ;;  %2219 = vmatprep.mubr.msk.bf16.mxu0 %vm2468_vm0, %v2467_v0 }
 0x2d4   : > { %2225 = vmatprep.mubr.msk.bf16.mxu1 %vm2468_vm0, %v2467_v0 }
 0x349   : > { %v2607_v38 = vpop.f32.mrf.mxu0 }
 0x34b   : > { %v2173_v39 = vpop.f32.mrf.mxu0 }
 0x34d   : > { %v428_v40 = vpop.f32.mrf.mxu0  ;;  %v2609_v41 = vpop.f32.mrf.mxu1 }
 0x34f   : > { %v2174_v42 = vpop.f32.mrf.mxu0  ;;  %v2179_v43 = vpop.f32.mrf.mxu1 }
 0x351   : > { %v476_v44 = vpop.f32.mrf.mxu1 }
 0x353   : > { %v2180_v45 = vpop.f32.mrf.mxu1 }
 0x382   : > { %v2611_v46 = vpop.f32.mrf.mxu0 }
 0x383   : > { %v2613_v47 = vpop.f32.mrf.mxu1 }
 0x384   : > { %v2185_v48 = vpop.f32.mrf.mxu0 }
 0x385   : > { %v2191_v49 = vpop.f32.mrf.mxu1 }
 0x386   : > { %v524_v50 = vpop.f32.mrf.mxu0 }
 0x387   : > { %v572_v51 = vpop.f32.mrf.mxu1 }
 0x388   : > { %v2186_v52 = vpop.f32.mrf.mxu0 }
 0x389   : > { %v2192_v53 = vpop.f32.mrf.mxu1 }
 0x38a   : > { %v619_v54 = vpop.f32.mrf.mxu0 }
 0x38b   : > { %v775_v55 = vmul.f32 0.35355338, %v619_v54  ;;  %v669_v56 = vpop.f32.mrf.mxu1 }
 0x38c   : > { %v776_v57 = vmul.f32 0.35355338, %v669_v56  ;;  %v2197_v58 = vpop.f32.mrf.mxu0 }
 0x38d   : > { %v779_v59 = vsel %vm130_vm1, %v775_v55, -inf  ;;  %v2203_v60 = vpop.f32.mrf.mxu1 }
 0x38e   : > { %780 = vmax.xlane.f32.xlu0 %v779_v59  ;;  %v622_v61 = vpop.f32.mrf.mxu0  ;;  %v782_v62 = vsel %vm130_vm1, %v776_v57, -inf }
 0x38f   : > { %783 = vmax.xlane.f32.xlu1 %v782_v62  ;;  %v672_v63 = vpop.f32.mrf.mxu1 }
 0x390   : > { %v2198_v1 = vpop.f32.mrf.mxu0 }
 0x391   : > { %v2204_v2 = vpop.f32.mrf.mxu1 }
 0x392   : > { %v719_v3 = vpop.f32.mrf.mxu0 }
 0x393   : > { %v777_v6 = vmul.f32 0.35355338, %v719_v3  ;;  %v769_v9 = vpop.f32.mrf.mxu1 }
 0x394   : > { %v778_v10 = vmul.f32 0.35355338, %v769_v9  ;;  %v2209_v11 = vpop.f32.mrf.mxu0 }
 0x395   : > { %v785_v12 = vsel %vm130_vm1, %v777_v6, -inf  ;;  %v2215_v13 = vpop.f32.mrf.mxu1 }
 0x396   : > { %786 = vmax.xlane.f32.xlu0 %v785_v12  ;;  %v722_v14 = vpop.f32.mrf.mxu0  ;;  %v788_v15 = vsel %vm130_vm1, %v778_v10, -inf }
 0x397   : > { %v772_v16 = vpop.f32.mrf.mxu1 }
 0x398   : > { %v2210_v17 = vpop.f32.mrf.mxu0 }
 0x399   : > { %v2216_v18 = vpop.f32.mrf.mxu1 }
 0x39a   : > { %789 = vmax.xlane.f32.xlu0 %v788_v15 }
 0x3a0   : > { %827 = vrot.lane.b32.xlu1 %v2515_v4, %s2473_s17 }
 0x417   : > { %v781_v19 = vpop.xlane.xlu0 %780 }
 0x418   : > { %v784_v20 = vpop.xlane.xlu1 %783  ;;  %v791_v21 = vsub.f32 %v775_v55, %v781_v19 }
 0x419   : > { %v792_v22 = vsub.f32 %v776_v57, %v784_v20 }
 0x41a   : > { %v795_v23 = vmul.f32 1.442695, %v791_v21 }
 0x41b   : > { %v797_v24 = vmul.f32 1.442695, %v792_v22 }
 0x41c   : > { %2411 = vpow2.f32 %v795_v23  ;;  %v828_v25 = vpop.permute.xlu1 %827 }
 0x41d   : > { %2413 = vpow2.f32 %v797_v24  ;;  %v833_v26 = vsel %vm387_vm2, %v828_v25, 0 }
 0x41e   : > { %2218 = vmatpush3.bf16.msra.mxu0 %v833_v26 }
 0x41f   : > { %2229 = vmatprep.subr.bf16.mxu0 %v2467_v0  ;;  %v787_v31 = vpop.xlane.xlu0 %786 }
 0x420   : > { %v793_v34 = vsub.f32 %v777_v6, %v787_v31 }
 0x422   : > { %v799_v36 = vmul.f32 1.442695, %v793_v34 }
 0x423   : > { %v790_v32 = vpop.xlane.xlu0 %789 }
 0x424   : > { %v794_v33 = vsub.f32 %v778_v10, %v790_v32 }
 0x426   : > { %v801_v35 = vmul.f32 1.442695, %v794_v33 }
 0x428   : > { %2415 = vpow2.f32 %v801_v35 }
 0x429   : > { %v2412_v27 = vpop.eup %2411  ;;  %2417 = vpow2.f32 %v799_v36 }
 0x42a   : > { %v2414_v28 = vpop.eup %2413  ;;  %v803_v29 = vsel %vm130_vm1, %v2412_v27, 0.0 }
 0x42b   : > { %v806_v30 = vsel %vm130_vm1, %v2414_v28, 0.0  ;;  %804 = vadd.xlane.f32.xlu1 %v803_v29 }
 0x42c   : > { %807 = vadd.xlane.f32.xlu0 %v806_v30 }
 0x435   : > { %v2416_v37 = vpop.eup %2415 }
 0x436   : > { %v2418_v39 = vpop.eup %2417  ;;  %v812_v40 = vsel %vm130_vm1, %v2416_v37, 0.0 }
 0x437   : > { %v809_v42 = vsel %vm130_vm1, %v2418_v39, 0.0 }
 0x43c   : > { %923 = vrot.lane.b32.xlu1 %v2517_v5, %s2473_s17 }
 0x440   : > { %971 = vrot.lane.b32.xlu1 %v2523_v8, %s2473_s17 }
 0x442   : > { %875 = vrot.lane.b32.xlu0 %v2520_v7, %s2473_s17 }
 0x461   : > { %813 = vadd.xlane.f32.xlu0 %v812_v40 }
 0x464   : > { %810 = vadd.xlane.f32.xlu1 %v809_v42 }
 0x475   : > { %1071 = vrot.lane.b32.xlu1 %v2520_v7, %s2474_s18 }
 0x477   : > { %1021 = vrot.lane.b32.xlu0 %v2515_v4, %s2474_s18 }
 0x479   : > { %1121 = vrot.lane.b32.xlu1 %v2517_v5, %s2474_s18 }
 0x47b   : > { %1019 = vrot.lane.b32.xlu0 %v2515_v4, %s2475_s19 }
 0x47d   : > { %1171 = vrot.lane.b32.xlu1 %v2523_v8, %s2474_s18 }
 0x47f   : > { %1069 = vrot.lane.b32.xlu0 %v2520_v7, %s2475_s19 }
 0x481   : > { %1169 = vrot.lane.b32.xlu1 %v2523_v8, %s2475_s19 }
 0x483   : > { %1119 = vrot.lane.b32.xlu0 %v2517_v5, %s2475_s19 }
 0x4b4   : > { %v805_v43 = vpop.xlane.xlu1 %804 }
 0x4b5   : > { %2419 = vrcp.f32 %v805_v43  ;;  %v808_v44 = vpop.xlane.xlu0 %807 }
 0x4b6   : > { %2421 = vrcp.f32 %v808_v44 }
 0x4b8   : > { %v924_v49 = vpop.permute.xlu1 %923 }
 0x4b9   : > { %v876_v45 = vpop.permute.xlu0 %875  ;;  %v929_v57 = vsel %vm387_vm2, %v924_v49, 0 }
 0x4ba   : > { %v881_v48 = vsel %vm387_vm2, %v876_v45, 0 }
 0x4bb   : > { %2224 = vmatpush3.bf16.msra.mxu1 %v881_v48 }
 0x4bc   : > { %2235 = vmatprep.subr.bf16.mxu1 %v2467_v0  ;;  %v972_v54 = vpop.permute.xlu1 %971 }
 0x4bd   : > { %v977_v58 = vsel %vm387_vm2, %v972_v54, 0 }
 0x4c2   : > { %v2420_v50 = vpop.eup %2419 }
 0x4c3   : > { %v2422_v51 = vpop.eup %2421  ;;  %v819_v52 = vmul.f32 %v2420_v50, %v2412_v27 }
 0x4c4   : > { %v820_v53 = vmul.f32 %v2422_v51, %v2414_v28 }
 0x4c5   : > { %v823_v55 = vpack.c.bf16 %v819_v52, %v819_v52 }
 0x4c6   : > { %v824_v56 = vpack.c.bf16 %v820_v53, %v820_v53 }
 0x4c7   : > { %2220 = vmatmul.mubr.msk.bf16.vlgmr.msra.gmra.mxu0 %vm130_vm1, %v823_v55 }
 0x4c8   : > { %2226 = vmatmul.mubr.msk.bf16.vlgmr.msra.gmra.mxu1 %vm130_vm1, %v824_v56  ;;  %2230 = vmatpush3.bf16.msra.mxu0 %v929_v57 }
 0x4c9   : > { %2236 = vmatpush3.bf16.msra.mxu1 %v977_v58  ;;  %2237 = vmatprep.mubr.msk.bf16.mxu1 %vm2468_vm0, %v2467_v0 }
 0x4ca   : > { %2247 = vmatprep.subr.bf16.mxu1 %v2467_v0  ;;  %2231 = vmatprep.mubr.msk.bf16.mxu0 %vm2468_vm0, %v2467_v0 }
 0x4cb   : > { %2241 = vmatprep.subr.bf16.mxu0 %v2467_v0 }
 0x4ea   : > { %v814_v59 = vpop.xlane.xlu0 %813 }
 0x4eb   : > { %2423 = vrcp.f32 %v814_v59 }
 0x4ed   : > { %v811_v60 = vpop.xlane.xlu1 %810 }
 0x4ee   : > { %2425 = vrcp.f32 %v811_v60  ;;  %v1022_v62 = vpop.permute.xlu0 %1021 }
 0x4ef   : > { %v1027_v12 = vsel %vm130_vm1, %v1022_v62, 0 }
 0x4f1   : > { %v1072_v61 = vpop.permute.xlu1 %1071 }
 0x4f2   : > { %v1077_v6 = vsel %vm130_vm1, %v1072_v61, 0  ;;  %v1020_v10 = vpop.permute.xlu0 %1019 }
 0x4f5   : > { %v1122_v2 = vpop.permute.xlu1 %1121 }
 0x4f6   : > { %v1070_v15 = vpop.permute.xlu0 %1069  ;;  %v1127_v17 = vsel %vm130_vm1, %v1122_v2, 0 }
 0x4f8   : > { %v2424_v63 = vpop.eup %2423 }
 0x4f9   : > { %v822_v1 = vmul.f32 %v2424_v63, %v2416_v37  ;;  %v1172_v14 = vpop.permute.xlu1 %1171 }
 0x4fa   : > { %v1177_v16 = vsel %vm130_vm1, %v1172_v14, 0  ;;  %v1120_v19 = vpop.permute.xlu0 %1119 }
 0x4fb   : > { %v2426_v3 = vpop.eup %2425  ;;  %v826_v9 = vpack.c.bf16 %v822_v1, %v822_v1 }
 0x4fc   : > { %v821_v11 = vmul.f32 %v2426_v3, %v2418_v39 }
 0x4fd   : > { %2238 = vmatmul.mubr.msk.bf16.vlgmr.msra.gmra.mxu1 %vm130_vm1, %v826_v9  ;;  %v1170_v18 = vpop.permute.xlu1 %1169 }
 0x4fe   : > { %2248 = vmatpush3.bf16.xpose.msra.mxu1 %v1077_v6  ;;  %v825_v13 = vpack.c.bf16 %v821_v11, %v821_v11  ;;  %2249 = vmatprep.mubr.msk.bf16.mxu1 %vm2468_vm0, %v2467_v0 }
 0x4ff   : > { %2259 = vmatprep.subr.bf16.mxu1 %v2467_v0 }
 0x500   : > { %2232 = vmatmul.mubr.msk.bf16.vlgmr.msra.gmra.mxu0 %vm130_vm1, %v825_v13 }
 0x501   : > { %2242 = vmatpush3.bf16.xpose.msra.mxu0 %v1027_v12  ;;  %2243 = vmatprep.mubr.msk.bf16.mxu0 %vm2468_vm0, %v2467_v0 }
 0x502   : > { %2253 = vmatprep.subr.bf16.mxu0 %v2467_v0 }
 0x505   : > { %2250 = vmatmul.mubr.msk.bf16.vlgmr.msra.gmra.mxu1 %vm130_vm1, %v1070_v15 }
 0x506   : > { %2260 = vmatpush3.bf16.xpose.msra.mxu1 %v1177_v16  ;;  %2261 = vmatprep.mubr.msk.bf16.mxu1 %vm2468_vm0, %v2467_v0 }
 0x507   : > { %2271 = vmatprep.subr.bf16.mxu1 %v2467_v0 }
 0x508   : > { %2244 = vmatmul.mubr.msk.bf16.vlgmr.msra.gmra.mxu0 %vm130_vm1, %v1020_v10 }
 0x509   : > { %2254 = vmatpush3.bf16.xpose.msra.mxu0 %v1127_v17  ;;  %2255 = vmatprep.mubr.msk.bf16.mxu0 %vm2468_vm0, %v2467_v0 }
 0x50a   : > { %2265 = vmatprep.subr.bf16.mxu0 %v2467_v0 }
 0x50d   : > { %2262 = vmatmul.mubr.msk.bf16.vlgmr.msra.gmra.mxu1 %vm130_vm1, %v1170_v18 }
 0x50e   : > { %2273 = vmatprep.mubr.msk.bf16.mxu1 %vm2468_vm0, %v2467_v0 }
 0x510   : > { %2256 = vmatmul.mubr.msk.bf16.vlgmr.msra.gmra.mxu0 %vm130_vm1, %v1120_v19 }
 0x511   : > { %2267 = vmatprep.mubr.msk.bf16.mxu0 %vm2468_vm0, %v2467_v0 }
 0x587   : > { %v2675_v20 = vpop.f32.mrf.mxu0 }
 0x588   : > { %v2677_v21 = vpop.f32.mrf.mxu1 }
 0x589   : > { %v2361_v22 = vpack.i.bf16 %v2677_v21, %v2675_v20  ;;  %v2221_v23 = vpop.f32.mrf.mxu0 }
 0x58a   : > { %v2227_v24 = vpop.f32.mrf.mxu1 }
 0x58b   : > { %v872_v25 = vpop.f32.mrf.mxu0 }
 0x58c   : > { %v920_v26 = vpop.f32.mrf.mxu1 }
 0x58d   : > { %v2222_v27 = vpop.f32.mrf.mxu0 }
 0x58e   : > { %v2228_v28 = vpop.f32.mrf.mxu1 }
 0x5bd   : > { %v2681_v29 = vpop.f32.mrf.mxu1 }
 0x5bf   : > { %v2239_v30 = vpop.f32.mrf.mxu1 }
 0x5c0   : > { %v2683_v31 = vpop.f32.mrf.mxu0 }
 0x5c1   : > { %v2371_v32 = vpack.i.bf16 %v2681_v29, %v2683_v31  ;;  %v1016_v33 = vpop.f32.mrf.mxu1 }
 0x5c2   : > { %v2233_v34 = vpop.f32.mrf.mxu0 }
 0x5c3   : > { %v2240_v35 = vpop.f32.mrf.mxu1 }
 0x5c4   : > { %v968_v36 = vpop.f32.mrf.mxu0 }
 0x5c5   : > { %v1113_v37 = vpop.f32.mrf.mxu1 }
 0x5c6   : > { %v1220_v39 = vmul.f32 0.35355338, %v1113_v37  ;;  %v2234_v40 = vpop.f32.mrf.mxu0 }
 0x5c7   : > { %v2251_v42 = vpop.f32.mrf.mxu1 }
 0x5c8   : > { %v1063_v43 = vpop.f32.mrf.mxu0  ;;  %v1226_v44 = vsel %vm130_vm1, %v1220_v39, -inf }
 0x5c9   : > { %v1219_v45 = vmul.f32 0.35355338, %v1063_v43  ;;  %1227 = vmax.xlane.f32.xlu1 %v1226_v44  ;;  %v1116_v48 = vpop.f32.mrf.mxu1 }
 0x5ca   : > { %v2245_v49 = vpop.f32.mrf.mxu0 }
 0x5cb   : > { %v1223_v50 = vsel %vm130_vm1, %v1219_v45, -inf  ;;  %v2252_v51 = vpop.f32.mrf.mxu1 }
 0x5cc   : > { %1224 = vmax.xlane.f32.xlu0 %v1223_v50  ;;  %v1066_v52 = vpop.f32.mrf.mxu0 }
 0x5cd   : > { %v1213_v53 = vpop.f32.mrf.mxu1 }
 0x5ce   : > { %v2246_v54 = vpop.f32.mrf.mxu0  ;;  %v1222_v58 = vmul.f32 0.35355338, %v1213_v53 }
 0x5cf   : > { %v2263_v55 = vpop.f32.mrf.mxu1 }
 0x5d0   : > { %v1163_v56 = vpop.f32.mrf.mxu0  ;;  %v1232_v1 = vsel %vm130_vm1, %v1222_v58, -inf }
 0x5d1   : > { %v1221_v57 = vmul.f32 0.35355338, %v1163_v56  ;;  %v1216_v59 = vpop.f32.mrf.mxu1 }
 0x5d2   : > { %v2257_v60 = vpop.f32.mrf.mxu0 }
 0x5d3   : > { %v1229_v61 = vsel %vm130_vm1, %v1221_v57, -inf  ;;  %v2264_v62 = vpop.f32.mrf.mxu1 }
 0x5d4   : > { %1230 = vmax.xlane.f32.xlu0 %v1229_v61  ;;  %v1166_v63 = vpop.f32.mrf.mxu0 }
 0x5d6   : > { %v2258_v2 = vpop.f32.mrf.mxu0 }
 0x5d8   : > { %1233 = vmax.xlane.f32.xlu0 %v1232_v1 }
 0x5da   : > { %1271 = vrot.lane.b32.xlu1 %v2515_v4, %s2476_s20 }
 0x652   : > { %v1228_v3 = vpop.xlane.xlu1 %1227 }
 0x653   : > { %v1236_v6 = vsub.f32 %v1220_v39, %v1228_v3 }
 0x655   : > { %v1241_v9 = vmul.f32 1.442695, %v1236_v6  ;;  %v1225_v10 = vpop.xlane.xlu0 %1224 }
 0x656   : > { %v1235_v11 = vsub.f32 %v1219_v45, %v1225_v10  ;;  %v1272_v12 = vpop.permute.xlu1 %1271 }
 0x657   : > { %2427 = vpow2.f32 %v1241_v9  ;;  %v1277_v13 = vsel %vm387_vm2, %v1272_v12, 0 }
 0x658   : > { %v1239_v14 = vmul.f32 1.442695, %v1235_v11  ;;  %2266 = vmatpush3.bf16.msra.mxu0 %v1277_v13 }
 0x659   : > { %2277 = vmatprep.subr.bf16.mxu0 %v2467_v0 }
 0x65a   : > { %2429 = vpow2.f32 %v1239_v14 }
 0x65d   : > { %v1231_v19 = vpop.xlane.xlu0 %1230 }
 0x65e   : > { %v1237_v26 = vsub.f32 %v1221_v57, %v1231_v19 }
 0x660   : > { %v1243_v27 = vmul.f32 1.442695, %v1237_v26 }
 0x661   : > { %v1234_v23 = vpop.xlane.xlu0 %1233 }
 0x662   : > { %v1238_v24 = vsub.f32 %v1222_v58, %v1234_v23 }
 0x664   : > { %v2428_v15 = vpop.eup %2427  ;;  %v1245_v25 = vmul.f32 1.442695, %v1238_v24 }
 0x665   : > { %v1250_v16 = vsel %vm130_vm1, %v2428_v15, 0.0 }
 0x666   : > { %1251 = vadd.xlane.f32.xlu0 %v1250_v16  ;;  %2431 = vpow2.f32 %v1245_v25 }
 0x667   : > { %v2430_v17 = vpop.eup %2429  ;;  %2433 = vpow2.f32 %v1243_v27 }
 0x668   : > { %v1247_v18 = vsel %vm130_vm1, %v2430_v17, 0.0 }
 0x669   : > { %1248 = vadd.xlane.f32.xlu1 %v1247_v18 }
 0x673   : > { %v2432_v28 = vpop.eup %2431 }
 0x674   : > { %v1256_v30 = vsel %vm130_vm1, %v2432_v28, 0.0  ;;  %v2434_v33 = vpop.eup %2433 }
 0x675   : > { %v1253_v34 = vsel %vm130_vm1, %v2434_v33, 0.0 }
 0x67a   : > { %1367 = vrot.lane.b32.xlu1 %v2517_v5, %s2476_s20 }
 0x67c   : > { %1319 = vrot.lane.b32.xlu0 %v2520_v7, %s2476_s20 }
 0x67e   : > { %1415 = vrot.lane.b32.xlu1 %v2523_v8, %s2476_s20 }
 0x69b   : > { %1257 = vadd.xlane.f32.xlu0 %v1256_v30 }
 0x6a2   : > { %1254 = vadd.xlane.f32.xlu1 %v1253_v34 }
 0x6b1   : > { %1465 = vrot.lane.b32.xlu0 %v2515_v4, %s2477_s21 }
 0x6b3   : > { %1515 = vrot.lane.b32.xlu1 %v2520_v7, %s2477_s21 }
 0x6b5   : > { %1463 = vrot.lane.b32.xlu0 %v2515_v4, %s2478_s22 }
 0x6b7   : > { %1565 = vrot.lane.b32.xlu1 %v2517_v5, %s2477_s21 }
 0x6b9   : > { %1513 = vrot.lane.b32.xlu0 %v2520_v7, %s2478_s22 }
 0x6bb   : > { %1615 = vrot.lane.b32.xlu1 %v2523_v8, %s2477_s21 }
 0x6bd   : > { %1563 = vrot.lane.b32.xlu0 %v2517_v5, %s2478_s22 }
 0x6bf   : > { %1613 = vrot.lane.b32.xlu1 %v2523_v8, %s2478_s22 }
 0x6ef   : > { %v1252_v35 = vpop.xlane.xlu0 %1251 }
 0x6f0   : > { %2435 = vrcp.f32 %v1252_v35 }
 0x6f2   : > { %v1249_v36 = vpop.xlane.xlu1 %1248 }
 0x6f3   : > { %2437 = vrcp.f32 %v1249_v36  ;;  %v1320_v37 = vpop.permute.xlu0 %1319 }
 0x6f4   : > { %v1325_v39 = vsel %vm387_vm2, %v1320_v37, 0 }
 0x6f5   : > { %2272 = vmatpush3.bf16.msra.mxu1 %v1325_v39 }
 0x6f6   : > { %2283 = vmatprep.subr.bf16.mxu1 %v2467_v0  ;;  %v1368_v40 = vpop.permute.xlu1 %1367 }
 0x6f7   : > { %v1373_v52 = vsel %vm387_vm2, %v1368_v40, 0 }
 0x6fa   : > { %v1416_v44 = vpop.permute.xlu1 %1415 }
 0x6fb   : > { %v1421_v50 = vsel %vm387_vm2, %v1416_v44, 0 }
 0x6fd   : > { %v2436_v42 = vpop.eup %2435 }
 0x6fe   : > { %v1264_v43 = vmul.f32 %v2436_v42, %v2428_v15 }
 0x700   : > { %v2438_v45 = vpop.eup %2437  ;;  %v1268_v48 = vpack.c.bf16 %v1264_v43, %v1264_v43 }
 0x701   : > { %v1263_v49 = vmul.f32 %v2438_v45, %v2430_v17 }
 0x702   : > { %2274 = vmatmul.mubr.msk.bf16.vlgmr.msra.gmra.mxu1 %vm130_vm1, %v1268_v48 }
 0x703   : > { %2284 = vmatpush3.bf16.msra.mxu1 %v1421_v50  ;;  %v1267_v51 = vpack.c.bf16 %v1263_v49, %v1263_v49  ;;  %2285 = vmatprep.mubr.msk.bf16.mxu1 %vm2468_vm0, %v2467_v0 }
 0x704   : > { %2295 = vmatprep.subr.bf16.mxu1 %v2467_v0 }
 0x705   : > { %2268 = vmatmul.mubr.msk.bf16.vlgmr.msra.gmra.mxu0 %vm130_vm1, %v1267_v51 }
 0x706   : > { %2278 = vmatpush3.bf16.msra.mxu0 %v1373_v52  ;;  %2279 = vmatprep.mubr.msk.bf16.mxu0 %vm2468_vm0, %v2467_v0 }
 0x707   : > { %2289 = vmatprep.subr.bf16.mxu0 %v2467_v0 }
 0x724   : > { %v1258_v53 = vpop.xlane.xlu0 %1257 }
 0x725   : > { %2439 = vrcp.f32 %v1258_v53 }
 0x728   : > { %v1466_v56 = vpop.permute.xlu0 %1465 }
 0x729   : > { %v1471_v3 = vsel %vm130_vm1, %v1466_v56, 0 }
 0x72b   : > { %v1255_v54 = vpop.xlane.xlu1 %1254 }
 0x72c   : > { %2441 = vrcp.f32 %v1255_v54  ;;  %v1464_v62 = vpop.permute.xlu0 %1463 }
 0x72f   : > { %v1516_v55 = vpop.permute.xlu1 %1515 }
 0x730   : > { %v1521_v60 = vsel %vm130_vm1, %v1516_v55, 0  ;;  %v1514_v6 = vpop.permute.xlu0 %1513 }
 0x732   : > { %v2440_v57 = vpop.eup %2439 }
 0x733   : > { %v1266_v58 = vmul.f32 %v2440_v57, %v2432_v28  ;;  %v1566_v59 = vpop.permute.xlu1 %1565 }
 0x734   : > { %v1571_v11 = vsel %vm130_vm1, %v1566_v59, 0  ;;  %v1564_v13 = vpop.permute.xlu0 %1563 }
 0x735   : > { %v1270_v61 = vpack.c.bf16 %v1266_v58, %v1266_v58 }
 0x737   : > { %2286 = vmatmul.mubr.msk.bf16.vlgmr.msra.gmra.mxu1 %vm130_vm1, %v1270_v61  ;;  %v1616_v2 = vpop.permute.xlu1 %1615 }
 0x738   : > { %2296 = vmatpush3.bf16.xpose.msra.mxu1 %v1521_v60  ;;  %2297 = vmatprep.mubr.msk.bf16.mxu1 %vm2468_vm0, %v2467_v0  ;;  %v1621_v10 = vsel %vm130_vm1, %v1616_v2, 0 }
 0x739   : > { %v2442_v63 = vpop.eup %2441  ;;  %2307 = vmatprep.subr.bf16.mxu1 %v2467_v0 }
 0x73a   : > { %v1265_v1 = vmul.f32 %v2442_v63, %v2434_v33 }
 0x73b   : > { %v1614_v12 = vpop.permute.xlu1 %1613 }
 0x73c   : > { %v1269_v9 = vpack.c.bf16 %v1265_v1, %v1265_v1 }
 0x73e   : > { %2280 = vmatmul.mubr.msk.bf16.vlgmr.msra.gmra.mxu0 %vm130_vm1, %v1269_v9 }
 0x73f   : > { %2298 = vmatmul.mubr.msk.bf16.vlgmr.msra.gmra.mxu1 %vm130_vm1, %v1514_v6  ;;  %2290 = vmatpush3.bf16.xpose.msra.mxu0 %v1471_v3 }
 0x740   : > { %2291 = vmatprep.mubr.msk.bf16.mxu0 %vm2468_vm0, %v2467_v0  ;;  %2308 = vmatpush3.bf16.xpose.msra.mxu1 %v1621_v10 }
 0x741   : > { %2301 = vmatprep.subr.bf16.mxu0 %v2467_v0  ;;  %2309 = vmatprep.mubr.msk.bf16.mxu1 %vm2468_vm0, %v2467_v0 }
 0x742   : > { %2319 = vmatprep.subr.bf16.mxu1 %v2467_v0 }
 0x746   : > { %2292 = vmatmul.mubr.msk.bf16.vlgmr.msra.gmra.mxu0 %vm130_vm1, %v1464_v62 }
 0x747   : > { %2302 = vmatpush3.bf16.xpose.msra.mxu0 %v1571_v11  ;;  %2310 = vmatmul.mubr.msk.bf16.vlgmr.msra.gmra.mxu1 %vm130_vm1, %v1614_v12 }
 0x748   : > { %2303 = vmatprep.mubr.msk.bf16.mxu0 %vm2468_vm0, %v2467_v0  ;;  %2313 = vmatprep.subr.bf16.mxu0 %v2467_v0 }
 0x749   : > { %2321 = vmatprep.mubr.msk.bf16.mxu1 %vm2468_vm0, %v2467_v0 }
 0x74e   : > { %2304 = vmatmul.mubr.msk.bf16.vlgmr.msra.gmra.mxu0 %vm130_vm1, %v1564_v13 }
 0x74f   : > { %2315 = vmatprep.mubr.msk.bf16.mxu0 %vm2468_vm0, %v2467_v0 }
 0x7c2   : > { %v2747_v14 = vpop.f32.mrf.mxu1 }
 0x7c4   : > { %v2275_v15 = vpop.f32.mrf.mxu1 }
 0x7c5   : > { %v2749_v16 = vpop.f32.mrf.mxu0 }
 0x7c6   : > { %v2366_v17 = vpack.i.bf16 %v2747_v14, %v2749_v16  ;;  %v1364_v18 = vpop.f32.mrf.mxu1 }
 0x7c7   : > { %v2269_v19 = vpop.f32.mrf.mxu0 }
 0x7c8   : > { %v2276_v23 = vpop.f32.mrf.mxu1 }
 0x7c9   : > { %v1316_v24 = vpop.f32.mrf.mxu0 }
 0x7cb   : > { %v2270_v25 = vpop.f32.mrf.mxu0 }
 0x7f7   : > { %v2753_v26 = vpop.f32.mrf.mxu1 }
 0x7f9   : > { %v2287_v27 = vpop.f32.mrf.mxu1 }
 0x7fb   : > { %v1460_v28 = vpop.f32.mrf.mxu1 }
 0x7fd   : > { %v2288_v30 = vpop.f32.mrf.mxu1 }
 0x7fe   : > { %v2755_v33 = vpop.f32.mrf.mxu0 }
 0x7ff   : > { %v2381_v34 = vpack.i.bf16 %v2753_v26, %v2755_v33  ;;  %v1557_v35 = vpop.f32.mrf.mxu1 }
 0x800   : > { %v1664_v36 = vmul.f32 0.35355338, %v1557_v35  ;;  %v2281_v37 = vpop.f32.mrf.mxu0 }
 0x801   : > { %v2299_v39 = vpop.f32.mrf.mxu1 }
 0x802   : > { %v1412_v40 = vpop.f32.mrf.mxu0  ;;  %v1670_v42 = vsel %vm130_vm1, %v1664_v36, -inf }
 0x803   : > { %1671 = vmax.xlane.f32.xlu1 %v1670_v42  ;;  %v1560_v43 = vpop.f32.mrf.mxu1 }
 0x804   : > { %v2282_v44 = vpop.f32.mrf.mxu0 }
 0x805   : > { %v2300_v45 = vpop.f32.mrf.mxu1 }
 0x806   : > { %v1507_v48 = vpop.f32.mrf.mxu0 }
 0x807   : > { %v1663_v49 = vmul.f32 0.35355338, %v1507_v48  ;;  %v1657_v50 = vpop.f32.mrf.mxu1 }
 0x808   : > { %v2293_v51 = vpop.f32.mrf.mxu0  ;;  %v1666_v59 = vmul.f32 0.35355338, %v1657_v50 }
 0x809   : > { %v1667_v52 = vsel %vm130_vm1, %v1663_v49, -inf  ;;  %v2311_v53 = vpop.f32.mrf.mxu1 }
 0x80a   : > { %1668 = vmax.xlane.f32.xlu0 %v1667_v52  ;;  %v1510_v54 = vpop.f32.mrf.mxu0  ;;  %v1676_v1 = vsel %vm130_vm1, %v1666_v59, -inf }
 0x80b   : > { %v1660_v55 = vpop.f32.mrf.mxu1 }
 0x80c   : > { %v2294_v56 = vpop.f32.mrf.mxu0 }
 0x80d   : > { %v2312_v57 = vpop.f32.mrf.mxu1 }
 0x80e   : > { %v1607_v58 = vpop.f32.mrf.mxu0 }
 0x80f   : > { %v1665_v60 = vmul.f32 0.35355338, %v1607_v58 }
 0x810   : > { %v2305_v61 = vpop.f32.mrf.mxu0 }
 0x811   : > { %v1673_v62 = vsel %vm130_vm1, %v1665_v60, -inf }
 0x812   : > { %1674 = vmax.xlane.f32.xlu0 %v1673_v62  ;;  %v1610_v63 = vpop.f32.mrf.mxu0 }
 0x814   : > { %v2306_v2 = vpop.f32.mrf.mxu0  ;;  %1715 = vrot.lane.b32.xlu1 %v2515_v4, %s2479_s23 }
 0x816   : > { %1677 = vmax.xlane.f32.xlu0 %v1676_v1 }
 0x88c   : > { %v1672_v3 = vpop.xlane.xlu1 %1671 }
 0x88d   : > { %v1680_v6 = vsub.f32 %v1664_v36, %v1672_v3 }
 0x88f   : > { %v1685_v9 = vmul.f32 1.442695, %v1680_v6 }
 0x890   : > { %v1716_v10 = vpop.permute.xlu1 %1715 }
 0x891   : > { %2443 = vpow2.f32 %v1685_v9  ;;  %v1721_v11 = vsel %vm387_vm2, %v1716_v10, 0 }
 0x892   : > { %2314 = vmatpush3.bf16.msra.mxu0 %v1721_v11 }
 0x893   : > { %v1669_v12 = vpop.xlane.xlu0 %1668  ;;  %2325 = vmatprep.subr.bf16.mxu0 %v2467_v0 }
 0x894   : > { %v1679_v13 = vsub.f32 %v1663_v49, %v1669_v12 }
 0x896   : > { %v1683_v15 = vmul.f32 1.442695, %v1679_v13 }
 0x898   : > { %2445 = vpow2.f32 %v1683_v15 }
 0x89b   : > { %v1675_v18 = vpop.xlane.xlu0 %1674 }
 0x89c   : > { %v1681_v19 = vsub.f32 %v1665_v60, %v1675_v18 }
 0x89e   : > { %v2444_v23 = vpop.eup %2443  ;;  %v1687_v24 = vmul.f32 1.442695, %v1681_v19 }
 0x89f   : > { %v1694_v4 = vsel %vm130_vm1, %v2444_v23, 0.0  ;;  %v1678_v25 = vpop.xlane.xlu0 %1677 }
 0x8a0   : > { %2447 = vpow2.f32 %v1687_v24  ;;  %1695 = vadd.xlane.f32.xlu0 %v1694_v4  ;;  %v1682_v27 = vsub.f32 %v1666_v59, %v1678_v25 }
 0x8a2   : > { %v1689_v28 = vmul.f32 1.442695, %v1682_v27 }
 0x8a4   : > { %2449 = vpow2.f32 %v1689_v28 }
 0x8a5   : > { %v2446_v30 = vpop.eup %2445 }
 0x8a6   : > { %v1691_v35 = vsel %vm130_vm1, %v2446_v30, 0.0 }
 0x8a7   : > { %1692 = vadd.xlane.f32.xlu1 %v1691_v35 }
 0x8ad   : > { %v2448_v36 = vpop.eup %2447 }
 0x8ae   : > { %v1697_v37 = vsel %vm130_vm1, %v2448_v36, 0.0 }
 0x8af   : > { %1698 = vadd.xlane.f32.xlu1 %v1697_v37 }
 0x8b1   : > { %v2450_v39 = vpop.eup %2449 }
 0x8b2   : > { %v1700_v40 = vsel %vm130_vm1, %v2450_v39, 0.0 }
 0x8b3   : > { %1701 = vadd.xlane.f32.xlu0 %v1700_v40 }
 0x8c0   : > { %1811 = vrot.lane.b32.xlu1 %v2517_v5, %s2479_s23 }
 0x8c4   : > { %1859 = vrot.lane.b32.xlu1 %v2523_v8, %s2479_s23 }
 0x8c8   : > { %2367 = vrot.lane.b32.xlu1 %v2366_v17, %s2480_s24 }
 0x8c9   : > { %1763 = vrot.lane.b32.xlu0 %v2520_v7, %s2479_s23 }
 0x8cd   : > { %2362 = vrot.lane.b32.xlu0 %v2361_v22, %s2481_s25 }
 0x8d1   : > { %2372 = vrot.lane.b32.xlu0 %v2371_v32, %s2481_s25 }
 0x8d5   : > { %2382 = vrot.lane.b32.xlu0 %v2381_v34, %s2480_s24 }
 0x929   : > { %v1696_v5 = vpop.xlane.xlu0 %1695 }
 0x92a   : > { %2451 = vrcp.f32 %v1696_v5 }
 0x930   : > { %v1693_v8 = vpop.xlane.xlu1 %1692 }
 0x931   : > { %2453 = vrcp.f32 %v1693_v8 }
 0x937   : > { %v2452_v7 = vpop.eup %2451 }
 0x938   : > { %v1699_v14 = vpop.xlane.xlu1 %1698  ;;  %v1708_v22 = vmul.f32 %v2452_v7, %v2444_v23 }
 0x939   : > { %2455 = vrcp.f32 %v1699_v14 }
 0x93a   : > { %v1712_v34 = vpack.c.bf16 %v1708_v22, %v1708_v22 }
 0x93c   : > { %v1812_v16 = vpop.permute.xlu1 %1811  ;;  %v1702_v17 = vpop.xlane.xlu0 %1701 }
 0x93d   : > { %2457 = vrcp.f32 %v1702_v17  ;;  %v1817_v29 = vsel %vm387_vm2, %v1812_v16, 0 }
 0x93e   : > { %v2454_v20 = vpop.eup %2453 }
 0x93f   : > { %v1707_v21 = vmul.f32 %v2454_v20, %v2446_v30 }
 0x940   : > { %v1764_v42 = vpop.permute.xlu0 %1763  ;;  %v1860_v26 = vpop.permute.xlu1 %1859 }
 0x941   : > { %v1769_v31 = vsel %vm387_vm2, %v1764_v42, 0  ;;  %v1711_v32 = vpack.c.bf16 %v1707_v21, %v1707_v21  ;;  %v1865_v33 = vsel %vm387_vm2, %v1860_v26, 0 }
 0x942   : > { %2320 = vmatpush3.bf16.msra.mxu1 %v1769_v31 }
 0x943   : > { %2316 = vmatmul.mubr.msk.bf16.vlgmr.msra.gmra.mxu0 %vm130_vm1, %v1711_v32  ;;  %2331 = vmatprep.subr.bf16.mxu1 %v2467_v0 }
 0x944   : > { %2326 = vmatpush3.bf16.msra.mxu0 %v1817_v29  ;;  %2327 = vmatprep.mubr.msk.bf16.mxu0 %vm2468_vm0, %v2467_v0  ;;  %v2363_v9 = vpop.permute.xlu0 %2362  ;;  %v2368_v10 = vpop.permute.xlu1 %2367 }
 0x945   : > { %2322 = vmatmul.mubr.msk.bf16.vlgmr.msra.gmra.mxu1 %vm130_vm1, %v1712_v34  ;;  %v2365_v11 = vunpack.i.h.bf16 %v2363_v9  ;;  %v2364_v12 = vunpack.i.l.bf16 %v2363_v9  ;;  %v2370_v13 = vunpack.i.h.bf16 %v2368_v10  ;;  %v2369_v15 = vunpack.i.l.bf16 %v2368_v10 }
 0x946   : > { %v2456_v43 = vpop.eup %2455  ;;  %2332 = vmatpush3.bf16.msra.mxu1 %v1865_v33  ;;  %2333 = vmatprep.mubr.msk.bf16.mxu1 %vm2468_vm0, %v2467_v0 }
 0x947   : > { %v1709_v44 = vmul.f32 %v2456_v43, %v2448_v36  ;;  %v1956_v18 = vsel %vm130_vm1, %v2609_v41, %v2365_v11  ;;  %v1955_v19 = vsel %vm130_vm1, %v2607_v38, %v2364_v12 }
 0x948   : > { %v2373_v23 = vpop.permute.xlu0 %2372  ;;  %v1960_v27 = vsel %vm1959_vm3, %v1955_v19, %v2369_v15  ;;  %v1961_v28 = vsel %vm1959_vm3, %v1956_v18, %v2370_v13 }
 0x949   : > { %v1713_v45 = vpack.c.bf16 %v1709_v44, %v1709_v44  ;;  %v2375_v37 = vunpack.i.h.bf16 %v2373_v23 }
 0x94a   : > { %v2458_v48 = vpop.eup %2457 }
 0x94b   : > { %2328 = vmatmul.mubr.msk.bf16.vlgmr.msra.gmra.mxu0 %vm130_vm1, %v1713_v45  ;;  %v1710_v49 = vmul.f32 %v2458_v48, %v2450_v39  ;;  %v2374_v39 = vunpack.i.l.bf16 %v2373_v23  ;;  %v1958_v14 = vsel %vm130_vm1, %v2613_v47, %v2375_v37 }
 0x94c   : > { %v2383_v36 = vpop.permute.xlu0 %2382 }
 0x94d   : > { %v1714_v50 = vpack.c.bf16 %v1710_v49, %v1710_v49  ;;  %v2385_v40 = vunpack.i.h.bf16 %v2383_v36  ;;  %v2384_v5 = vunpack.i.l.bf16 %v2383_v36  ;;  %v1957_v7 = vsel %vm130_vm1, %v2611_v46, %v2374_v39 }
 0x94f   : > { %2334 = vmatmul.mubr.msk.bf16.vlgmr.msra.gmra.mxu1 %vm130_vm1, %v1714_v50  ;;  %v1962_v20 = vsel %vm1959_vm3, %v1957_v7, %v2384_v5  ;;  %v1963_v21 = vsel %vm1959_vm3, %v1958_v14, %v2385_v40 }
 0xa03   : > { %v1757_v51 = vpop.f32.mrf.mxu0 }
 0xa05   : > { %v2317_v52 = vpop.f32.mrf.mxu0  ;;  %v1805_v53 = vpop.f32.mrf.mxu1 }
 0xa06   : > { %v2376_v54 = vpack.i.bf16 %v1805_v53, %v1757_v51 }
 0xa07   : > { %v1760_v55 = vpop.f32.mrf.mxu0  ;;  %v2323_v56 = vpop.f32.mrf.mxu1 }
 0xa08   : > { %2377 = vrot.lane.b32.xlu1 %v2376_v54, %s2482_s26 }
 0xa09   : > { %v2318_v57 = vpop.f32.mrf.mxu0  ;;  %v1808_v58 = vpop.f32.mrf.mxu1 }
 0xa0b   : > { %v2324_v0 = vpop.f32.mrf.mxu1  ;;  %v1853_v59 = vpop.f32.mrf.mxu0 }
 0xa0d   : > { %v2329_v60 = vpop.f32.mrf.mxu0 }
 0xa0f   : > { %v1856_v61 = vpop.f32.mrf.mxu0  ;;  %v1901_v62 = vpop.f32.mrf.mxu1 }
 0xa10   : > { %v2386_v63 = vpack.i.bf16 %v1901_v62, %v1853_v59 }
 0xa11   : > { %v2330_v1 = vpop.f32.mrf.mxu0  ;;  %v2335_v2 = vpop.f32.mrf.mxu1 }
 0xa12   : > { %2387 = vrot.lane.b32.xlu1 %v2386_v63, %s2482_s26 }
 0xa13   : > { %v1904_v3 = vpop.f32.mrf.mxu1 }
 0xa15   : > { %v2336_v6 = vpop.f32.mrf.mxu1 }
 0xa7a   : > { %v2378_v24 = vpop.permute.xlu1 %2377 }
 0xa7b   : > { %v2380_v4 = vunpack.i.h.bf16 %v2378_v24  ;;  %v2379_v25 = vunpack.i.l.bf16 %v2378_v24 }
 0xa7d   : > { %v1965_v41 = vsel %vm1964_vm4, %v1960_v27, %v2379_v25  ;;  %v1966_v38 = vsel %vm1964_vm4, %v1961_v28, %v2380_v4 }
 0xa7e   : > { %v1969_v30 = vpack.c.bf16 %v1965_v41, %v1965_v41  ;;  %v1970_v35 = vpack.c.bf16 %v1966_v38, %v1966_v38 }
 0xa80   : > { %1974 = vst.msk [vmem:[%s118_s29] sm:$0xf] %vm1973_vm5, %v1969_v30  ;;  %1975 = vst.msk [vmem:[%s118_s29 + $0x4] sm:$0xf] %vm1973_vm5, %v1970_v35 }
 0xa84   : > { %v2388_v8 = vpop.permute.xlu1 %2387 }
 0xa85   : > { %v2390_v16 = vunpack.i.h.bf16 %v2388_v8  ;;  %v2389_v17 = vunpack.i.l.bf16 %v2388_v8 }
 0xa87   : > { %v1967_v22 = vsel %vm1964_vm4, %v1962_v20, %v2389_v17  ;;  %v1968_v42 = vsel %vm1964_vm4, %v1963_v21, %v2390_v16 }
 0xa88   : > { %v1971_v29 = vpack.c.bf16 %v1967_v22, %v1967_v22  ;;  %v1972_v31 = vpack.c.bf16 %v1968_v42, %v1968_v42 }
 0xa8a   : > { %1976 = vst.msk [vmem:[%s118_s29 + $0x8] sm:$0xf] %vm1973_vm5, %v1971_v29  ;;  %1977 = vst.msk [vmem:[%s118_s29 + $0xc] sm:$0xf] %vm1973_vm5, %v1972_v31 }
 0xa8b PF: > { %s11_s6 = sadd.s32 1, %s2465_s6  }
 0xa8c   : > { %p8_p4 = scmp.ge.s32.totalorder %s11_s6, 4  }
 0xa8e   :  { %10 = sbr.rel (!%p8_p4) target bundleno = 1 (0x1), region = 54 }

// kernel: transformer_forward.30
= control target key start
LH: loop header
LB: loop body
LE: loop exit
PB: predicated region body
PF: predicated region fallthrough
CT: control target
= control target key end

     0   :  { %s1158_s17 = smov 0   ;;  %s1291_s0 = inlined_call_operand.vmem [shape: f32[64,32], index: 0, kind: input, shape index: {}]   ;;  %s1292_s1 = inlined_call_operand.vmem [shape: f32[1,32], index: 1, kind: input, shape index: {}]   ;;  %s1293_s2 = inlined_call_operand.vmem [shape: f32[1,32], index: 2, kind: input, shape index: {}]   ;;  %s1294_s3 = inlined_call_operand.vmem [shape: bf16[32,128], index: 3, kind: input, shape index: {}]   ;;  %s1295_s4 = inlined_call_operand.vmem [shape: f32[1,128], index: 4, kind: input, shape index: {}]   ;;  %s1296_s5 = inlined_call_operand.vmem [shape: bf16[128,32], index: 5, kind: input, shape index: {}]   ;;  %s1297_s6 = inlined_call_operand.vmem [shape: f32[1,32], index: 6, kind: input, shape index: {}]   ;;  %s1298_s7 = inlined_call_operand.vmem [shape: bf16[32,8], index: 7, kind: input, shape index: {}]   ;;  %s1299_s8 = inlined_call_operand.vmem [shape: f32[1,8], index: 8, kind: input, shape index: {}]   ;;  %s1300_s9 = inlined_call_operand.vmem [shape: bf16[8,32], index: 9, kind: input, shape index: {}]   ;;  %s1301_s10 = inlined_call_operand.vmem [shape: f32[1,32], index: 10, kind: input, shape index: {}]   ;;  %s1302_s11 = inlined_call_operand.vmem [shape: f32[64,32], index: 11, kind: output, shape index: {}]  }
   0x1 LB: > { %s935_s18 = sadd.s32 4294967295, %s1096_s17   ;;  %p939_p0 = scmp.ge.s32.totalorder %s1096_s17, 1  ;;  %s1096_s17 = sphi %s1158_s17, %s21_s17  }
   0x2   : > { %p338_p1 = scmp.lt.s32.totalorder %s1096_s17, 3 }
   0x4   : > { %p339_p2 = pnand %p939_p0, %p338_p1 }
   0x5   : > { %s940_s19 = sshll.u32 (!%p339_p2), %s935_s18, 2 }
   0x6   : > { %342 = sbr.rel (%p339_p2) target bundleno = 779 (0x30b), region = 64  ;;  %p379_p3 = scmp.lt.s32.totalorder (!%p339_p2), %s940_s19, 7 }
   0xb   : > { %s1304_s19 = smov (!%p379_p3, %s940_s19), 7  ;;  %vm397_vm0 = vcmask 261120   ;;  %v1046_v28 = vld [vmem:[%s1294_s3 + $0x8] sm:$0xff]   ;;  %v1047_v29 = vld [vmem:[%s1294_s3] sm:$0xff]   ;;  %vm814_vm1 = vcmask 1043456   ;;  %vm807_vm2 = vcmask 64512  }
   0xc   : > { %s941_s20 = sshll.u32 %s1304_s19, 3  ;;  %995 = vmatprep.subr.bf16.mxu0 %v1046_v28  ;;  %v1048_v30 = vld [vmem:[%s1298_s7 + $0x8] sm:$0xff]   ;;  %v944_v45 = vld [vmem:[%s1292_s1] ss:$0 sm:$0xff] }
   0xd   : > { %s382_s23 = scalar_lea.vmem %s1291_s0, %s941_s20  ;;  %996 = vmatpush3.bf16.msra.mxu0 %v1046_v28  ;;  %v945_v50 = vld [vmem:[%s1293_s2] ss:$0 sm:$0xff]  ;;  %s388_s13 = scalar_lea.vmem %s1302_s11, %s941_s20 }
   0xe   : > { %v1174_v0 = vld [vmem:[%s382_s23] sm:$0xff]  ;;  %v1176_v1 = vld [vmem:[%s382_s23 + $0x10] sm:$0xff]  ;;  %v1178_v2 = vld [vmem:[%s382_s23 + $0x8] sm:$0xff]  ;;  %997 = vmatprep.subr.bf16.mxu0 %v1047_v29 }
   0xf   : > { %v398_v3 = vsel %vm397_vm0, %v1174_v0, 0.0  ;;  %v404_v4 = vsel %vm397_vm0, %v1176_v1, 0.0  ;;  %v1184_v5 = vld [vmem:[%s382_s23 + $0x18] sm:$0xff]  ;;  %v401_v6 = vsel %vm397_vm0, %v1178_v2, 0.0  ;;  %v1049_v63 = vld [vmem:[%s1298_s7] sm:$0xff]  }
  0x10   : > { %399 = vadd.xlane.f32.xlu0 %v398_v3  ;;  %405 = vadd.xlane.f32.xlu1 %v404_v4  ;;  %v407_v7 = vsel %vm397_vm0, %v1184_v5, 0.0  ;;  %v1050_v3 = vld [vmem:[%s1296_s5 + $0x38] sm:$0xff]   ;;  %v1051_v4 = vld [vmem:[%s1296_s5 + $0x30] sm:$0xff]  }
  0x11   : > { %998 = vmatpush3.bf16.msra.mxu0 %v1047_v29  ;;  %1003 = vmatprep.subr.bf16.mxu1 %v1050_v3 }
  0x12   : > { %1023 = vmatprep.subr.bf16.mxu0 %v1048_v30  ;;  %1004 = vmatpush3.bf16.msra.mxu1 %v1050_v3 }
  0x13   : > { %1005 = vmatprep.subr.bf16.mxu1 %v1051_v4 }
  0x14   : > { %402 = vadd.xlane.f32.xlu0 %v401_v6  ;;  %408 = vadd.xlane.f32.xlu1 %v407_v7  ;;  %v1052_v6 = vld [vmem:[%s1296_s5 + $0x28] sm:$0xff]   ;;  %v1053_v7 = vld [vmem:[%s1296_s5 + $0x20] sm:$0xff]  }
  0x16   : > { %1006 = vmatpush3.bf16.msra.mxu1 %v1051_v4 }
  0x17   : > { %1007 = vmatprep.subr.bf16.mxu1 %v1052_v6 }
  0x1a   : > { %1008 = vmatpush3.bf16.msra.mxu1 %v1052_v6 }
  0x1b   : > { %1009 = vmatprep.subr.bf16.mxu1 %v1053_v7 }
  0x1e   : > { %1010 = vmatpush3.bf16.msra.mxu1 %v1053_v7 }
  0x99   : > { %v400_v8 = vpop.xlane.xlu0 %399  ;;  %v406_v9 = vpop.xlane.xlu1 %405 }
  0x9a   : > { %v411_v10 = vmul.f32 0.03125, %v400_v8  ;;  %v413_v11 = vmul.f32 0.03125, %v406_v9  ;;  %v1054_v8 = vld [vmem:[%s1296_s5 + $0x18] sm:$0xff]   ;;  %v1055_v9 = vld [vmem:[%s1296_s5 + $0x10] sm:$0xff]  }
  0x9b   : > { %1011 = vmatprep.subr.bf16.mxu1 %v1054_v8 }
  0x9c   : > { %v415_v12 = vsub.f32 %v1174_v0, %v411_v10  ;;  %v417_v13 = vsub.f32 %v1176_v1, %v413_v11  ;;  %1012 = vmatpush3.bf16.msra.mxu1 %v1054_v8  ;;  %v799_v10 = vld [vmem:[%s1300_s9] sm:$0xf] }
  0x9d   : > { %v403_v14 = vpop.xlane.xlu0 %402  ;;  %v409_v15 = vpop.xlane.xlu1 %408  ;;  %1013 = vmatprep.subr.bf16.mxu1 %v1055_v9  ;;  %v816_v11 = vsel %vm814_vm1, %v799_v10, 0 }
  0x9e   : > { %v412_v16 = vmul.f32 0.03125, %v403_v14  ;;  %v414_v17 = vmul.f32 0.03125, %v409_v15  ;;  %v419_v18 = vmul.f32 %v415_v12, %v415_v12  ;;  %v421_v19 = vmul.f32 %v417_v13, %v417_v13  ;;  %v946_v14 = vld [vmem:[%s1295_s4] ss:$0 sm:$0xff] }
  0xa0   : > { %v416_v20 = vsub.f32 %v1178_v2, %v412_v16  ;;  %v418_v21 = vsub.f32 %v1184_v5, %v414_v17  ;;  %v423_v22 = vsel %vm397_vm0, %v419_v18, 0.0  ;;  %v429_v23 = vsel %vm397_vm0, %v421_v19, 0.0  ;;  %1014 = vmatpush3.bf16.msra.mxu1 %v1055_v9 }
  0xa1   : > { %424 = vadd.xlane.f32.xlu0 %v423_v22 }
  0xa2   : > { %v420_v24 = vmul.f32 %v416_v20, %v416_v20  ;;  %v422_v25 = vmul.f32 %v418_v21, %v418_v21 }
  0xa4   : > { %v426_v26 = vsel %vm397_vm0, %v420_v24, 0.0  ;;  %v432_v27 = vsel %vm397_vm0, %v422_v25, 0.0  ;;  %v964_v25 = vld [vmem:[%s1299_s8] ss:$0 sm:$0xff] }
  0xa5   : > { %430 = vadd.xlane.f32.xlu0 %v429_v23  ;;  %427 = vadd.xlane.f32.xlu1 %v426_v26 }
  0xa9   : > { %433 = vadd.xlane.f32.xlu1 %v432_v27 }
 0x12a   : > { %v425_v31 = vpop.xlane.xlu0 %424 }
 0x12b   : > { %v435_v32 = vmul.f32 0.03125, %v425_v31 }
 0x12d   : > { %v439_v33 = vadd.f32 1e-05, %v435_v32 }
 0x12e   : > { %v428_v34 = vpop.xlane.xlu1 %427  ;;  %v431_v35 = vpop.xlane.xlu0 %430 }
 0x12f   : > { %1058 = vrsqrt.f32 %v439_v33  ;;  %v436_v36 = vmul.f32 0.03125, %v428_v34  ;;  %v437_v37 = vmul.f32 0.03125, %v431_v35 }
 0x131   : > { %v440_v38 = vadd.f32 1e-05, %v436_v36  ;;  %v441_v39 = vadd.f32 1e-05, %v437_v37 }
 0x132   : > { %v434_v40 = vpop.xlane.xlu1 %433 }
 0x133   : > { %1060 = vrsqrt.f32 %v440_v38  ;;  %v438_v41 = vmul.f32 0.03125, %v434_v40 }
 0x134   : > { %1062 = vrsqrt.f32 %v441_v39 }
 0x135   : > { %v442_v42 = vadd.f32 1e-05, %v438_v41 }
 0x137   : > { %1064 = vrsqrt.f32 %v442_v42 }
 0x13c   : > { %v1059_v43 = vpop.eup %1058 }
 0x13d   : > { %v447_v44 = vmul.f32 %v1059_v43, %v415_v12  ;;  %v1056_v12 = vld [vmem:[%s1296_s5 + $0x8] sm:$0xff]  }
 0x13e   : > { %1015 = vmatprep.subr.bf16.mxu1 %v1056_v12 }
 0x13f   : > { %v457_v49 = vmul.f32 %v944_v45, %v447_v44  ;;  %1016 = vmatpush3.bf16.msra.mxu1 %v1056_v12 }
 0x140   : > { %v1061_v46 = vpop.eup %1060 }
 0x141   : > { %v1063_v47 = vpop.eup %1062  ;;  %v448_v48 = vmul.f32 %v1061_v46, %v416_v20  ;;  %v467_v54 = vadd.f32 %v945_v50, %v457_v49 }
 0x142   : > { %v449_v51 = vmul.f32 %v1063_v47, %v417_v13  ;;  %v1057_v13 = vld [vmem:[%s1296_s5] sm:$0xff]  }
 0x143   : > { %v458_v52 = vmul.f32 %v944_v45, %v448_v48  ;;  %1017 = vmatprep.subr.bf16.mxu1 %v1057_v13 }
 0x144   : > { %v1065_v53 = vpop.eup %1064  ;;  %v459_v57 = vmul.f32 %v944_v45, %v449_v51  ;;  %1018 = vmatpush3.bf16.msra.mxu1 %v1057_v13 }
 0x145   : > { %v468_v55 = vadd.f32 %v945_v50, %v458_v52  ;;  %v450_v56 = vmul.f32 %v1065_v53, %v418_v21 }
 0x146   : > { %v469_v60 = vadd.f32 %v945_v50, %v459_v57 }
 0x147   : > { %v471_v58 = vpack.c.bf16 %v468_v55, %v467_v54  ;;  %v460_v59 = vmul.f32 %v944_v45, %v450_v56 }
 0x149   : > { %999 = vmatprep.mubr.msk.bf16.mxu0 %vm397_vm0, %v471_v58  ;;  %v470_v61 = vadd.f32 %v945_v50, %v460_v59 }
 0x14b   : > { %v472_v62 = vpack.c.bf16 %v470_v61, %v469_v60 }
 0x14d   : > { %1000 = vmatmul.mubr.msk.bf16.vlgmr.msra.gmra.mxu0 %vm397_vm0, %v472_v62 }
 0x14e   : > { %1024 = vmatpush3.bf16.msra.mxu0 %v1048_v30  ;;  %1027 = vmatprep.mubr.msk.bf16.mxu0 %vm397_vm0, %v471_v58 }
 0x14f   : > { %1025 = vmatprep.subr.bf16.mxu0 %v1049_v63 }
 0x152   : > { %1026 = vmatpush3.bf16.msra.mxu0 %v1049_v63 }
 0x153   : > { %1037 = vmatprep.subr.msk.bf16.mxu0 %vm814_vm1, %v799_v10 }
 0x155   : > { %1028 = vmatmul.mubr.msk.bf16.vlgmr.msra.gmra.mxu0 %vm397_vm0, %v472_v62 }
 0x156   : > { %1032 = vmatpush3.bf16.msra.mxu0 %v816_v11 }
 0x20d   : > { %v1001_v15 = vpop.f32.mrf.mxu0 }
 0x20e   : > { %v1250_v16 = vadd.f32 %v1001_v15, %v946_v14 }
 0x20f   : > { %v536_v17 = vpop.f32.mrf.mxu0 }
 0x210   : > { %v953_v18 = vmul.f32 -1.702, %v1250_v16  ;;  %v1253_v19 = vadd.f32 %v946_v14, %v536_v17 }
 0x211   : > { %v1002_v20 = vpop.f32.mrf.mxu0 }
 0x212   : > { %v563_v21 = vmul.f32 1.442695, %v953_v18  ;;  %v951_v22 = vmul.f32 -1.702, %v1253_v19  ;;  %v1256_v23 = vadd.f32 %v1002_v20, %v946_v14 }
 0x213   : > { %v539_v24 = vpop.f32.mrf.mxu0 }
 0x214   : > { %v559_v26 = vmul.f32 1.442695, %v951_v22  ;;  %v954_v27 = vmul.f32 -1.702, %v1256_v23  ;;  %v1262_v28 = vadd.f32 %v946_v14, %v539_v24  ;;  %1066 = vpow2.f32 %v563_v21 }
 0x215   : > { %v1029_v29 = vpop.f32.mrf.mxu0 }
 0x216   : > { %1068 = vpow2.f32 %v559_v26  ;;  %v565_v30 = vmul.f32 1.442695, %v954_v27  ;;  %v952_v31 = vmul.f32 -1.702, %v1262_v28  ;;  %v771_v32 = vadd.f32 %v1029_v29, %v964_v25  ;;  %v955_v27 = vld [vmem:[%s1297_s6] ss:$0 sm:$0xff] }
 0x217   : > { %v762_v33 = vpop.f32.mrf.mxu0 }
 0x218   : > { %1070 = vpow2.f32 %v565_v30  ;;  %v561_v34 = vmul.f32 1.442695, %v952_v31  ;;  %v783_v35 = vmul.f32 0.70710677, %v771_v32  ;;  %v763_v36 = vadd.f32 %v964_v25, %v762_v33 }
 0x219   : > { %v1030_v37 = vpop.f32.mrf.mxu0  ;;  %v779_v63 = vmul.f32 0.5, %v771_v32 }
 0x21a   : > { %1072 = vpow2.f32 %v561_v34  ;;  %v774_v38 = vadd.f32 %v1030_v37, %v964_v25  ;;  %v781_v39 = vmul.f32 0.70710677, %v763_v36  ;;  %v777_v60 = vmul.f32 0.5, %v763_v36 }
 0x21b   : > { %v765_v40 = vpop.f32.mrf.mxu0  ;;  %1074 = verf.f32 %v783_v35 }
 0x21c   : > { %v784_v41 = vmul.f32 0.70710677, %v774_v38  ;;  %v766_v42 = vadd.f32 %v964_v25, %v765_v40  ;;  %1076 = verf.f32 %v781_v39  ;;  %v780_v59 = vmul.f32 0.5, %v774_v38 }
 0x21e   : > { %1078 = verf.f32 %v784_v41  ;;  %v782_v43 = vmul.f32 0.70710677, %v766_v42  ;;  %v778_v61 = vmul.f32 0.5, %v766_v42 }
 0x220   : > { %1080 = verf.f32 %v782_v43 }
 0x221   : > { %v1067_v44 = vpop.eup %1066 }
 0x222   : > { %v569_v48 = vadd.f32 1.0, %v1067_v44 }
 0x223   : > { %v1069_v45 = vpop.eup %1068 }
 0x224   : > { %v567_v46 = vadd.f32 1.0, %v1069_v45 }
 0x225   : > { %v1071_v47 = vpop.eup %1070 }
 0x226   : > { %v570_v49 = vadd.f32 1.0, %v1071_v47  ;;  %1082 = vrcp.f32 %v567_v46 }
 0x227   : > { %v1073_v50 = vpop.eup %1072 }
 0x228   : > { %1084 = vrcp.f32 %v570_v49  ;;  %v568_v51 = vadd.f32 1.0, %v1073_v50  ;;  %v1075_v52 = vpop.eup %1074 }
 0x229   : > { %1086 = vrcp.f32 %v569_v48  ;;  %v1077_v53 = vpop.eup %1076  ;;  %v791_v58 = vadd.f32 1.0, %v1075_v52 }
 0x22a   : > { %1088 = vrcp.f32 %v568_v51  ;;  %v789_v55 = vadd.f32 1.0, %v1077_v53 }
 0x22b   : > { %v1079_v54 = vpop.eup %1078  ;;  %v795_v7 = vmul.f32 %v791_v58, %v779_v63 }
 0x22c   : > { %v792_v56 = vadd.f32 1.0, %v1079_v54  ;;  %v793_v4 = vmul.f32 %v789_v55, %v777_v60 }
 0x22d   : > { %v1081_v57 = vpop.eup %1080 }
 0x22e   : > { %v790_v62 = vadd.f32 1.0, %v1081_v57  ;;  %v796_v3 = vmul.f32 %v792_v56, %v780_v59 }
 0x230   : > { %v794_v6 = vmul.f32 %v790_v62, %v778_v61  ;;  %v798_v9 = vpack.c.bf16 %v796_v3, %v795_v7 }
 0x232   : > { %v797_v8 = vpack.c.bf16 %v794_v6, %v793_v4 }
 0x233   : > { %v1083_v10 = vpop.eup %1082 }
 0x234   : > { %1033 = vmatprep.mubr.msk.bf16.mxu0 %vm807_vm2, %v797_v8  ;;  %v579_v15 = vmul.f32 %v1083_v10, %v1253_v19  ;;  %v969_v19 = vld [vmem:[%s1301_s10] ss:$0 sm:$0xff] }
 0x235   : > { %v1085_v11 = vpop.eup %1084  ;;  %1034 = vmatmul.mubr.msk.bf16.vlgmr.msra.gmra.mxu0 %vm807_vm2, %v798_v9 }
 0x236   : > { %v1087_v12 = vpop.eup %1086  ;;  %v582_v14 = vmul.f32 %v1085_v11, %v1256_v23 }
 0x237   : > { %v1089_v13 = vpop.eup %1088  ;;  %v581_v18 = vmul.f32 %v1087_v12, %v1250_v16 }
 0x238   : > { %v580_v17 = vmul.f32 %v1089_v13, %v1262_v28 }
 0x239   : > { %v584_v21 = vpack.c.bf16 %v582_v14, %v581_v18 }
 0x23a   : > { %v583_v20 = vpack.c.bf16 %v580_v17, %v579_v15 }
 0x23c   : > { %1019 = vmatprep.mubr.bf16.mxu1 %v583_v20 }
 0x23d   : > { %1020 = vmatmul.mubr.bf16.vlgmr.msra.gmra.mxu1 %v584_v21 }
 0x2f5   : > { %v1035_v22 = vpop.f32.mrf.mxu0 }
 0x2f6   : > { %v861_v34 = vadd.f32 %v1035_v22, %v969_v19 }
 0x2f7   : > { %v852_v24 = vpop.f32.mrf.mxu0 }
 0x2f8   : > { %v853_v28 = vadd.f32 %v969_v19, %v852_v24 }
 0x2f9   : > { %v1036_v25 = vpop.f32.mrf.mxu0 }
 0x2fa   : > { %v864_v36 = vadd.f32 %v1036_v25, %v969_v19 }
 0x2fb   : > { %v855_v29 = vpop.f32.mrf.mxu0 }
 0x2fc   : > { %v856_v37 = vadd.f32 %v969_v19, %v855_v29 }
 0x2fd   : > { %v1021_v26 = vpop.f32.mrf.mxu1 }
 0x2fe   : > { %v699_v30 = vadd.f32 %v1021_v26, %v955_v27 }
 0x2ff   : > { %v690_v23 = vpop.f32.mrf.mxu1 }
 0x300   : > { %v691_v16 = vadd.f32 %v955_v27, %v690_v23  ;;  %v869_v40 = vadd.f32 %v861_v34, %v699_v30 }
 0x301   : > { %v1022_v31 = vpop.f32.mrf.mxu1 }
 0x302   : > { %v867_v32 = vadd.f32 %v853_v28, %v691_v16  ;;  %v702_v33 = vadd.f32 %v1022_v31, %v955_v27  ;;  %v873_v44 = vadd.f32 %v869_v40, %v1176_v1 }
 0x303   : > { %v693_v35 = vpop.f32.mrf.mxu1 }
 0x304   : > { %v871_v38 = vadd.f32 %v867_v32, %v1174_v0  ;;  %v694_v39 = vadd.f32 %v955_v27, %v693_v35  ;;  %v870_v41 = vadd.f32 %v864_v36, %v702_v33  ;;  %877 = vst.msk [vmem:[%s388_s13 + $0x10] sm:$0xff] %vm397_vm0, %v873_v44 }
 0x306   : > { %875 = vst.msk [vmem:[%s388_s13] sm:$0xff] %vm397_vm0, %v871_v38  ;;  %v868_v42 = vadd.f32 %v856_v37, %v694_v39  ;;  %v874_v45 = vadd.f32 %v870_v41, %v1184_v5 }
 0x308   : > { %v872_v43 = vadd.f32 %v868_v42, %v1178_v2  ;;  %878 = vst.msk [vmem:[%s388_s13 + $0x18] sm:$0xff] %vm397_vm0, %v874_v45 }
 0x30a   : > { %876 = vst.msk [vmem:[%s388_s13 + $0x8] sm:$0xff] %vm397_vm0, %v872_v43 }
 0x30b PF: > { %s21_s17 = sadd.s32 1, %s1096_s17  }
 0x30c   : > { %p18_p4 = scmp.ge.s32.totalorder %s21_s17, 4  }
 0x30e   :  { %20 = sbr.rel (!%p18_p4) target bundleno = 1 (0x1), region = 94 }

// kernel: transformer_forward.23
= control target key start
LH: loop header
LB: loop body
LE: loop exit
PB: predicated region body
PF: predicated region fallthrough
CT: control target
= control target key end

     0   :  { %s4763_s6 = smov 0   ;;  %s5643_s0 = inlined_call_operand.vmem [shape: bf16[16,4,96], index: 0, kind: input, shape index: {}]   ;;  %s5644_s1 = inlined_call_operand.vmem [shape: bf16[16,4,32], index: 1, kind: output, shape index: {}]  }
   0x1 LB: > { %s3928_s7 = sadd.s32 4294967295, %s4734_s6   ;;  %p3932_p0 = scmp.ge.s32.totalorder %s4734_s6, 1  ;;  %s4734_s6 = sphi %s4763_s6, %s11_s6  }
   0x2   : > { %p88_p1 = scmp.lt.s32.totalorder %s4734_s6, 3 }
   0x4   : > { %p89_p2 = pnand %p3932_p0, %p88_p1 }
   0x5   : > { %s3933_s8 = sshll.u32 (!%p89_p2), %s3928_s7, 3  ;;  %s4739_s13 = smov (!%p89_p2), 96  }
   0x6   : > { %92 = sbr.rel (%p89_p2) target bundleno = 2800 (0xaf0), region = 24  ;;  %p109_p3 = scmp.lt.s32.totalorder (!%p89_p2), %s3933_s8, 15 }
   0x7   : > { %s4740_s14 = smov (!%p89_p2), 64   ;;  %s4741_s15 = smov (!%p89_p2), 88  }
   0x8   : > { %s4742_s16 = smov (!%p89_p2), 120   ;;  %s4743_s17 = smov (!%p89_p2), 56  }
   0x9   : > { %s4744_s18 = smov (!%p89_p2), 80   ;;  %s4745_s19 = smov (!%p89_p2), 112  }
   0xa   : > { %s4746_s20 = smov (!%p89_p2), 48   ;;  %s4747_s21 = smov (!%p89_p2), 72  }
   0xb   : > { %v133_v0 = vlaneseq  ;;  %v4736_v1 = vmov 1983009808   ;;  %v4737_v3 = vmov 0.0   ;;  %s5646_s8 = smov (!%p109_p3, %s3933_s8), 15  ;;  %vm4738_vm0 = vmmov 0   ;;  %s4748_s22 = smov 104  }
   0xc   : > { %v131_v2 = vunpack.c.l.s4 %v4736_v1  ;;  %4131 = vmatprep.subr.bf16.mxu0 %v4737_v3  ;;  %4137 = vmatprep.subr.bf16.mxu1 %v4737_v3  ;;  %s3934_s9 = sshll.u32 %s5646_s8, 1  ;;  %vm139_vm1 = vcmask 64512   ;;  %vm689_vm2 = vcmask 1041408   ;;  %vm586_vm3 = vcmask 27648   ;;  %s4749_s23 = smov 40  }
   0xd   : > { %v134_v4 = vshrl.u32 %v133_v0, 7  ;;  %4133 = vmatprep.mubr.msk.bf16.mxu0 %vm4738_vm0, %v4737_v3  ;;  %4139 = vmatprep.mubr.msk.bf16.mxu1 %vm4738_vm0, %v4737_v3  ;;  %s112_s12 = scalar_lea.vmem %s5643_s0, %s3934_s9  ;;  %vm685_vm4 = vcmask 31744   ;;  %s4750_s24 = smov 8   ;;  %vm3837_vm5 = vcmask 130048   ;;  %vm3846_vm6 = vcmask 195584  }
   0xe   : > { %v132_v5 = vunpack.c.0.s8 %v131_v2  ;;  %v121_v7 = vld [vmem:[%s112_s12] sm:$0x3]  ;;  %v122_v8 = vld [vmem:[%s112_s12 + $0x2] sm:$0x3]  ;;  %v123_v9 = vld [vmem:[%s112_s12 + $0x4] sm:$0x3]  ;;  %s5600_s29 = scalar_lea.vmem %s5644_s1, %s3934_s9 }
   0xf   : > { %v124_v12 = vld [vmem:[%s112_s12 + $0x6] sm:$0x3]  ;;  %v125_v15 = vld [vmem:[%s112_s12 + $0x8] sm:$0x3]  ;;  %v126_v16 = vld [vmem:[%s112_s12 + $0xa] sm:$0x3] }
  0x10   : > { %v135_v6 = vsub.s32 %v132_v5, %v134_v4  ;;  %v127_v19 = vld [vmem:[%s112_s12 + $0xc] sm:$0x3]  ;;  %v128_v20 = vld [vmem:[%s112_s12 + $0xe] sm:$0x3]  ;;  %s4751_s25 = smov 16   ;;  %s4752_s26 = smov 24  }
  0x11   : > { %vm3863_vm7 = vcmask 254976  }
  0x12   : > { %v4785_v10 = vrot.slane %v121_v7, %v135_v6  ;;  %v4787_v11 = vrot.slane %v123_v9, %v135_v6  ;;  %v4790_v13 = vrot.slane %v122_v8, %v135_v6  ;;  %v4793_v14 = vrot.slane %v124_v12, %v135_v6 }
  0x13   : > { %v4797_v17 = vrot.slane %v125_v15, %v135_v6  ;;  %v4799_v18 = vrot.slane %v126_v16, %v135_v6  ;;  %v4803_v21 = vrot.slane %v127_v19, %v135_v6  ;;  %v4805_v22 = vrot.slane %v128_v20, %v135_v6 }
  0x14   : > { %137 = vrot.lane.b32.xlu0 %v4785_v10, %s4739_s13  ;;  %250 = vrot.lane.b32.xlu1 %v4787_v11, %s4739_s13 }
  0x18   : > { %194 = vrot.lane.b32.xlu0 %v4790_v13, %s4739_s13  ;;  %306 = vrot.lane.b32.xlu1 %v4793_v14, %s4739_s13 }
  0x1c   : > { %362 = vrot.lane.b32.xlu0 %v4797_v17, %s4739_s13  ;;  %418 = vrot.lane.b32.xlu1 %v4799_v18, %s4739_s13 }
  0x20   : > { %474 = vrot.lane.b32.xlu0 %v4803_v21, %s4739_s13  ;;  %530 = vrot.lane.b32.xlu1 %v4805_v22, %s4739_s13 }
  0x24   : > { %683 = vrot.lane.b32.xlu1 %v4785_v10, %s4740_s14  ;;  %733 = vrot.lane.b32.xlu0 %v4790_v13, %s4740_s14 }
  0x28   : > { %781 = vrot.lane.b32.xlu1 %v4787_v11, %s4740_s14 }
  0x2c   : > { %829 = vrot.lane.b32.xlu1 %v4793_v14, %s4740_s14 }
  0x86   : > { %v138_v23 = vpop.permute.xlu0 %137  ;;  %v251_v25 = vpop.permute.xlu1 %250 }
  0x87   : > { %v144_v24 = vsel %vm139_vm1, %v138_v23, 0  ;;  %v256_v28 = vsel %vm139_vm1, %v251_v25, 0 }
  0x88   : > { %4132 = vmatpush3.bf16.xpose.msra.mxu0 %v144_v24 }
  0x89   : > { %4143 = vmatprep.subr.bf16.mxu0 %v4737_v3 }
  0x8a   : > { %v195_v26 = vpop.permute.xlu0 %194  ;;  %v307_v29 = vpop.permute.xlu1 %306 }
  0x8b   : > { %v200_v27 = vsel %vm139_vm1, %v195_v26, 0  ;;  %v312_v30 = vsel %vm139_vm1, %v307_v29, 0 }
  0x8c   : > { %4138 = vmatpush3.bf16.xpose.msra.mxu1 %v200_v27 }
  0x8d   : > { %4149 = vmatprep.subr.bf16.mxu1 %v4737_v3 }
  0x8e   : > { %v363_v31 = vpop.permute.xlu0 %362  ;;  %v419_v33 = vpop.permute.xlu1 %418 }
  0x8f   : > { %4134 = vmatmul.mubr.msk.bf16.vlgmr.msra.gmra.mxu0 %vm139_vm1, %v121_v7  ;;  %v368_v32 = vsel %vm139_vm1, %v363_v31, 0  ;;  %v424_v34 = vsel %vm139_vm1, %v419_v33, 0 }
  0x90   : > { %4144 = vmatpush3.bf16.xpose.msra.mxu0 %v256_v28  ;;  %4145 = vmatprep.mubr.msk.bf16.mxu0 %vm4738_vm0, %v4737_v3 }
  0x91   : > { %4155 = vmatprep.subr.bf16.mxu0 %v4737_v3 }
  0x92   : > { %v475_v35 = vpop.permute.xlu0 %474  ;;  %v531_v37 = vpop.permute.xlu1 %530 }
  0x93   : > { %4140 = vmatmul.mubr.msk.bf16.vlgmr.msra.gmra.mxu1 %vm139_vm1, %v122_v8  ;;  %v480_v36 = vsel %vm139_vm1, %v475_v35, 0  ;;  %v536_v38 = vsel %vm139_vm1, %v531_v37, 0 }
  0x94   : > { %4150 = vmatpush3.bf16.xpose.msra.mxu1 %v312_v30  ;;  %4151 = vmatprep.mubr.msk.bf16.mxu1 %vm4738_vm0, %v4737_v3 }
  0x95   : > { %4161 = vmatprep.subr.bf16.mxu1 %v4737_v3 }
  0x96   : > { %v684_v39 = vpop.permute.xlu1 %683  ;;  %v734_v40 = vpop.permute.xlu0 %733 }
  0x97   : > { %4146 = vmatmul.mubr.msk.bf16.vlgmr.msra.gmra.mxu0 %vm139_vm1, %v123_v9  ;;  %v691_v41 = vsel %vm689_vm2, %v684_v39, 0  ;;  %v739_v42 = vsel %vm689_vm2, %v734_v40, 0 }
  0x98   : > { %4156 = vmatpush3.bf16.xpose.msra.mxu0 %v368_v32  ;;  %4157 = vmatprep.mubr.msk.bf16.mxu0 %vm4738_vm0, %v4737_v3 }
  0x99   : > { %4167 = vmatprep.subr.bf16.mxu0 %v4737_v3 }
  0x9b   : > { %4152 = vmatmul.mubr.msk.bf16.vlgmr.msra.gmra.mxu1 %vm139_vm1, %v124_v12 }
  0x9c   : > { %4162 = vmatpush3.bf16.xpose.msra.mxu1 %v424_v34  ;;  %4163 = vmatprep.mubr.msk.bf16.mxu1 %vm4738_vm0, %v4737_v3 }
  0x9d   : > { %4173 = vmatprep.subr.bf16.mxu1 %v4737_v3 }
  0x9f   : > { %4158 = vmatmul.mubr.msk.bf16.vlgmr.msra.gmra.mxu0 %vm139_vm1, %v125_v15 }
  0xa0   : > { %4168 = vmatpush3.bf16.xpose.msra.mxu0 %v480_v36  ;;  %4169 = vmatprep.mubr.msk.bf16.mxu0 %vm4738_vm0, %v4737_v3  ;;  %v4876_v36 = vpop.permute.xlu1 %781 }
  0xa1   : > { %4179 = vmatprep.subr.bf16.mxu0 %v4737_v3 }
  0xa3   : > { %4164 = vmatmul.mubr.msk.bf16.vlgmr.msra.gmra.mxu1 %vm139_vm1, %v126_v16 }
  0xa4   : > { %4174 = vmatpush3.bf16.xpose.msra.mxu1 %v536_v38  ;;  %4175 = vmatprep.mubr.msk.bf16.mxu1 %vm4738_vm0, %v4737_v3  ;;  %v4878_v37 = vpop.permute.xlu1 %829 }
  0xa5   : > { %4185 = vmatprep.subr.bf16.mxu1 %v4737_v3 }
  0xa7   : > { %4170 = vmatmul.mubr.msk.bf16.vlgmr.msra.gmra.mxu0 %vm139_vm1, %v127_v19 }
  0xa8   : > { %4181 = vmatprep.mubr.msk.bf16.mxu0 %vm4738_vm0, %v4737_v3  ;;  %4180 = vmatpush3.bf16.msra.mxu0 %v691_v41 }
  0xa9   : > { %4191 = vmatprep.subr.bf16.mxu0 %v4737_v3 }
  0xab   : > { %4176 = vmatmul.mubr.msk.bf16.vlgmr.msra.gmra.mxu1 %vm139_vm1, %v128_v20 }
  0xac   : > { %4187 = vmatprep.mubr.msk.bf16.mxu1 %vm4738_vm0, %v4737_v3  ;;  %4186 = vmatpush3.bf16.msra.mxu1 %v739_v42 }
  0xad   : > { %4197 = vmatprep.subr.bf16.mxu1 %v4737_v3 }
 0x14f   : > { %v180_v43 = vpop.f32.mrf.mxu0 }
 0x150   : > { %v578_v44 = vmul.f32 0.35355338, %v180_v43 }
 0x151   : > { %v4135_v45 = vpop.f32.mrf.mxu0 }
 0x152   : > { %v587_v46 = vsel %vm586_vm3, %v578_v44, -inf }
 0x153   : > { %588 = vmax.xlane.f32.xlu0 %v587_v46  ;;  %v183_v47 = vpop.f32.mrf.mxu0  ;;  %v236_v48 = vpop.f32.mrf.mxu1 }
 0x154   : > { %v579_v49 = vmul.f32 0.35355338, %v236_v48 }
 0x155   : > { %v4136_v50 = vpop.f32.mrf.mxu0  ;;  %v4141_v51 = vpop.f32.mrf.mxu1 }
 0x156   : > { %v590_v52 = vsel %vm586_vm3, %v579_v49, -inf }
 0x157   : > { %v292_v53 = vpop.f32.mrf.mxu0  ;;  %591 = vmax.xlane.f32.xlu1 %v590_v52  ;;  %v239_v54 = vpop.f32.mrf.mxu1 }
 0x158   : > { %v580_v55 = vmul.f32 0.35355338, %v292_v53 }
 0x159   : > { %v4142_v56 = vpop.f32.mrf.mxu1  ;;  %v4147_v57 = vpop.f32.mrf.mxu0 }
 0x15a   : > { %v593_v58 = vsel %vm586_vm3, %v580_v55, -inf }
 0x15b   : > { %594 = vmax.xlane.f32.xlu0 %v593_v58  ;;  %v295_v59 = vpop.f32.mrf.mxu0  ;;  %v348_v60 = vpop.f32.mrf.mxu1 }
 0x15c   : > { %v581_v61 = vmul.f32 0.35355338, %v348_v60 }
 0x15d   : > { %v4148_v62 = vpop.f32.mrf.mxu0  ;;  %v4153_v63 = vpop.f32.mrf.mxu1 }
 0x15e   : > { %v596_v0 = vsel %vm586_vm3, %v581_v61, -inf }
 0x15f   : > { %597 = vmax.xlane.f32.xlu0 %v596_v0  ;;  %v351_v1 = vpop.f32.mrf.mxu1  ;;  %v404_v2 = vpop.f32.mrf.mxu0 }
 0x160   : > { %v582_v4 = vmul.f32 0.35355338, %v404_v2 }
 0x161   : > { %v4154_v5 = vpop.f32.mrf.mxu1  ;;  %v4159_v6 = vpop.f32.mrf.mxu0 }
 0x162   : > { %v599_v7 = vsel %vm586_vm3, %v582_v4, -inf }
 0x163   : > { %v460_v8 = vpop.f32.mrf.mxu1  ;;  %600 = vmax.xlane.f32.xlu1 %v599_v7  ;;  %v407_v9 = vpop.f32.mrf.mxu0 }
 0x164   : > { %v583_v12 = vmul.f32 0.35355338, %v460_v8 }
 0x165   : > { %v4160_v15 = vpop.f32.mrf.mxu0  ;;  %v4165_v16 = vpop.f32.mrf.mxu1 }
 0x166   : > { %v602_v19 = vsel %vm586_vm3, %v583_v12, -inf }
 0x167   : > { %603 = vmax.xlane.f32.xlu0 %v602_v19  ;;  %v463_v20 = vpop.f32.mrf.mxu1  ;;  %v516_v23 = vpop.f32.mrf.mxu0 }
 0x168   : > { %v4867_v24 = vmul.f32 0.35355338, %v516_v23 }
 0x169   : > { %v4166_v25 = vpop.f32.mrf.mxu1  ;;  %v4171_v26 = vpop.f32.mrf.mxu0 }
 0x16a   : > { %v605_v27 = vsel %vm586_vm3, %v4867_v24, -inf }
 0x16b   : > { %v572_v28 = vpop.f32.mrf.mxu1  ;;  %606 = vmax.xlane.f32.xlu1 %v605_v27  ;;  %v519_v29 = vpop.f32.mrf.mxu0 }
 0x16c   : > { %v585_v30 = vmul.f32 0.35355338, %v572_v28 }
 0x16d   : > { %v4172_v31 = vpop.f32.mrf.mxu0  ;;  %v4177_v32 = vpop.f32.mrf.mxu1 }
 0x16e   : > { %v608_v33 = vsel %vm586_vm3, %v585_v30, -inf }
 0x16f   : > { %609 = vmax.xlane.f32.xlu0 %v608_v33  ;;  %v575_v34 = vpop.f32.mrf.mxu1 }
 0x170   : > { %v787_v34 = vsel %vm689_vm2, %v4876_v36, 0 }
 0x171   : > { %v4178_v35 = vpop.f32.mrf.mxu1 }
 0x17c   : > { %925 = vrot.lane.b32.xlu1 %v4799_v18, %s4740_s14 }
 0x185   : > { %877 = vrot.lane.b32.xlu0 %v4797_v17, %s4740_s14 }
 0x1dc   : > { %v589_v38 = vpop.xlane.xlu0 %588 }
 0x1dd   : > { %v611_v39 = vsub.f32 %v578_v44, %v589_v38 }
 0x1df   : > { %v619_v40 = vmul.f32 1.442695, %v611_v39 }
 0x1e0   : > { %v592_v41 = vpop.xlane.xlu1 %591 }
 0x1e1   : > { %4600 = vpow2.f32 %v619_v40  ;;  %v612_v42 = vsub.f32 %v579_v49, %v592_v41  ;;  %v835_v41 = vsel %vm689_vm2, %v4878_v37, 0 }
 0x1e3   : > { %v621_v43 = vmul.f32 1.442695, %v612_v42 }
 0x1e4   : > { %v595_v45 = vpop.xlane.xlu0 %594 }
 0x1e5   : > { %4602 = vpow2.f32 %v621_v43  ;;  %v613_v46 = vsub.f32 %v580_v55, %v595_v45 }
 0x1e7   : > { %v623_v47 = vmul.f32 1.442695, %v613_v46 }
 0x1e8   : > { %v598_v48 = vpop.xlane.xlu0 %597 }
 0x1e9   : > { %4604 = vpow2.f32 %v623_v47  ;;  %v614_v50 = vsub.f32 %v581_v61, %v598_v48 }
 0x1eb   : > { %v625_v51 = vmul.f32 1.442695, %v614_v50 }
 0x1ec   : > { %v601_v52 = vpop.xlane.xlu1 %600 }
 0x1ed   : > { %4606 = vpow2.f32 %v625_v51  ;;  %v615_v53 = vsub.f32 %v582_v4, %v601_v52 }
 0x1ee   : > { %v4880_v54 = vpop.eup %4600 }
 0x1ef   : > { %v627_v56 = vmul.f32 1.442695, %v615_v53  ;;  %v635_v44 = vsel %vm586_vm3, %v4880_v54, 0.0 }
 0x1f0   : > { %636 = vadd.xlane.f32.xlu1 %v635_v44  ;;  %v604_v49 = vpop.xlane.xlu0 %603 }
 0x1f1   : > { %4608 = vpow2.f32 %v627_v56  ;;  %v616_v57 = vsub.f32 %v583_v12, %v604_v49 }
 0x1f2   : > { %v4884_v58 = vpop.eup %4602 }
 0x1f3   : > { %v629_v55 = vmul.f32 1.442695, %v616_v57  ;;  %v638_v59 = vsel %vm586_vm3, %v4884_v58, 0.0 }
 0x1f4   : > { %639 = vadd.xlane.f32.xlu0 %v638_v59  ;;  %v607_v5 = vpop.xlane.xlu1 %606 }
 0x1f5   : > { %4610 = vpow2.f32 %v629_v55  ;;  %v617_v6 = vsub.f32 %v4867_v24, %v607_v5 }
 0x1f6   : > { %v4888_v60 = vpop.eup %4604 }
 0x1f7   : > { %v641_v61 = vsel %vm586_vm3, %v4888_v60, 0.0  ;;  %v631_v8 = vmul.f32 1.442695, %v617_v6 }
 0x1f8   : > { %642 = vadd.xlane.f32.xlu1 %v641_v61  ;;  %v610_v7 = vpop.xlane.xlu0 %609  ;;  %v926_v23 = vpop.permute.xlu1 %925 }
 0x1f9   : > { %v618_v9 = vsub.f32 %v585_v30, %v610_v7  ;;  %4612 = vpow2.f32 %v631_v8  ;;  %v931_v48 = vsel %vm689_vm2, %v926_v23, 0 }
 0x1fa   : > { %v4892_v62 = vpop.eup %4606 }
 0x1fb   : > { %v644_v63 = vsel %vm586_vm3, %v4892_v62, 0.0  ;;  %v633_v12 = vmul.f32 1.442695, %v618_v9 }
 0x1fc   : > { %645 = vadd.xlane.f32.xlu0 %v644_v63  ;;  %v878_v24 = vpop.permute.xlu0 %877 }
 0x1fd   : > { %4614 = vpow2.f32 %v633_v12  ;;  %v883_v45 = vsel %vm689_vm2, %v878_v24, 0 }
 0x1fe   : > { %v4896_v0 = vpop.eup %4608 }
 0x1ff   : > { %v647_v1 = vsel %vm586_vm3, %v4896_v0, 0.0 }
 0x200   : > { %648 = vadd.xlane.f32.xlu1 %v647_v1 }
 0x202   : > { %v4900_v2 = vpop.eup %4610 }
 0x203   : > { %v650_v4 = vsel %vm586_vm3, %v4900_v2, 0.0 }
 0x204   : > { %651 = vadd.xlane.f32.xlu0 %v650_v4 }
 0x206   : > { %v4909_v15 = vpop.eup %4612 }
 0x207   : > { %v653_v16 = vsel %vm586_vm3, %v4909_v15, 0.0 }
 0x20a   : > { %v4913_v19 = vpop.eup %4614 }
 0x20b   : > { %v656_v20 = vsel %vm586_vm3, %v4913_v19, 0.0 }
 0x211   : > { %1021 = vrot.lane.b32.xlu1 %v4805_v22, %s4740_s14 }
 0x21a   : > { %973 = vrot.lane.b32.xlu0 %v4803_v21, %s4740_s14 }
 0x235   : > { %654 = vadd.xlane.f32.xlu1 %v653_v16 }
 0x239   : > { %657 = vadd.xlane.f32.xlu0 %v656_v20 }
 0x246   : > { %1121 = vrot.lane.b32.xlu1 %v4790_v13, %s4741_s15 }
 0x24a   : > { %1119 = vrot.lane.b32.xlu1 %v4790_v13, %s4742_s16 }
 0x24e   : > { %1221 = vrot.lane.b32.xlu1 %v4793_v14, %s4741_s15 }
 0x24f   : > { %1071 = vrot.lane.b32.xlu0 %v4785_v10, %s4741_s15 }
 0x252   : > { %1219 = vrot.lane.b32.xlu1 %v4793_v14, %s4742_s16 }
 0x253   : > { %1069 = vrot.lane.b32.xlu0 %v4785_v10, %s4742_s16 }
 0x256   : > { %1321 = vrot.lane.b32.xlu1 %v4799_v18, %s4741_s15 }
 0x257   : > { %1171 = vrot.lane.b32.xlu0 %v4787_v11, %s4741_s15 }
 0x25a   : > { %1319 = vrot.lane.b32.xlu1 %v4799_v18, %s4742_s16 }
 0x25b   : > { %1169 = vrot.lane.b32.xlu0 %v4787_v11, %s4742_s16 }
 0x25e   : > { %1421 = vrot.lane.b32.xlu1 %v4805_v22, %s4741_s15 }
 0x25f   : > { %1271 = vrot.lane.b32.xlu0 %v4797_v17, %s4741_s15 }
 0x262   : > { %1419 = vrot.lane.b32.xlu1 %v4805_v22, %s4742_s16 }
 0x263   : > { %1269 = vrot.lane.b32.xlu0 %v4797_v17, %s4742_s16 }
 0x266   : > { %1573 = vrot.lane.b32.xlu1 %v4785_v10, %s4743_s17 }
 0x267   : > { %1371 = vrot.lane.b32.xlu0 %v4803_v21, %s4741_s15 }
 0x26a   : > { %1669 = vrot.lane.b32.xlu1 %v4787_v11, %s4743_s17 }
 0x26b   : > { %1369 = vrot.lane.b32.xlu0 %v4803_v21, %s4742_s16 }
 0x26e   : > { %1717 = vrot.lane.b32.xlu1 %v4793_v14, %s4743_s17 }
 0x26f   : > { %1621 = vrot.lane.b32.xlu0 %v4790_v13, %s4743_s17 }
 0x279   : > { %v637_v25 = vpop.xlane.xlu1 %636 }
 0x27a   : > { %4616 = vrcp.f32 %v637_v25 }
 0x27d   : > { %v640_v26 = vpop.xlane.xlu0 %639 }
 0x27e   : > { %4618 = vrcp.f32 %v640_v26 }
 0x281   : > { %v643_v27 = vpop.xlane.xlu1 %642 }
 0x282   : > { %4620 = vrcp.f32 %v643_v27 }
 0x285   : > { %v646_v28 = vpop.xlane.xlu0 %645 }
 0x286   : > { %4622 = vrcp.f32 %v646_v28 }
 0x287   : > { %v4617_v29 = vpop.eup %4616 }
 0x288   : > { %v667_v30 = vmul.f32 %v4617_v29, %v4880_v54 }
 0x289   : > { %v649_v31 = vpop.xlane.xlu1 %648 }
 0x28a   : > { %4624 = vrcp.f32 %v649_v31  ;;  %v675_v32 = vpack.c.bf16 %v667_v30, %v667_v30 }
 0x28b   : > { %v4619_v33 = vpop.eup %4618 }
 0x28c   : > { %4182 = vmatmul.mubr.msk.bf16.vlgmr.msra.gmra.mxu0 %vm685_vm4, %v675_v32  ;;  %v668_v35 = vmul.f32 %v4619_v33, %v4884_v58 }
 0x28d   : > { %4192 = vmatpush3.bf16.msra.mxu0 %v787_v34  ;;  %v652_v38 = vpop.xlane.xlu0 %651  ;;  %4193 = vmatprep.mubr.msk.bf16.mxu0 %vm4738_vm0, %v4737_v3  ;;  %v1022_v44 = vpop.permute.xlu1 %1021 }
 0x28e   : > { %4626 = vrcp.f32 %v652_v38  ;;  %v676_v39 = vpack.c.bf16 %v668_v35, %v668_v35  ;;  %4203 = vmatprep.subr.bf16.mxu0 %v4737_v3  ;;  %v1027_v57 = vsel %vm689_vm2, %v1022_v44, 0 }
 0x28f   : > { %v4621_v40 = vpop.eup %4620 }
 0x290   : > { %4188 = vmatmul.mubr.msk.bf16.vlgmr.msra.gmra.mxu1 %vm685_vm4, %v676_v39  ;;  %v669_v36 = vmul.f32 %v4621_v40, %v4888_v60 }
 0x291   : > { %4198 = vmatpush3.bf16.msra.mxu1 %v835_v41  ;;  %4199 = vmatprep.mubr.msk.bf16.mxu1 %vm4738_vm0, %v4737_v3  ;;  %v974_v51 = vpop.permute.xlu0 %973 }
 0x292   : > { %v677_v42 = vpack.c.bf16 %v669_v36, %v669_v36  ;;  %4209 = vmatprep.subr.bf16.mxu1 %v4737_v3  ;;  %v979_v54 = vsel %vm689_vm2, %v974_v51, 0 }
 0x293   : > { %v4623_v43 = vpop.eup %4622 }
 0x294   : > { %4194 = vmatmul.mubr.msk.bf16.vlgmr.msra.gmra.mxu0 %vm685_vm4, %v677_v42  ;;  %v670_v46 = vmul.f32 %v4623_v43, %v4892_v62 }
 0x295   : > { %4204 = vmatpush3.bf16.msra.mxu0 %v883_v45  ;;  %4205 = vmatprep.mubr.msk.bf16.mxu0 %vm4738_vm0, %v4737_v3 }
 0x296   : > { %v678_v37 = vpack.c.bf16 %v670_v46, %v670_v46  ;;  %4215 = vmatprep.subr.bf16.mxu0 %v4737_v3 }
 0x297   : > { %v4625_v47 = vpop.eup %4624 }
 0x298   : > { %4200 = vmatmul.mubr.msk.bf16.vlgmr.msra.gmra.mxu1 %vm685_vm4, %v678_v37  ;;  %v671_v50 = vmul.f32 %v4625_v47, %v4896_v0 }
 0x299   : > { %4210 = vmatpush3.bf16.msra.mxu1 %v931_v48  ;;  %4211 = vmatprep.mubr.msk.bf16.mxu1 %vm4738_vm0, %v4737_v3 }
 0x29a   : > { %v679_v52 = vpack.c.bf16 %v671_v50, %v671_v50  ;;  %4221 = vmatprep.subr.bf16.mxu1 %v4737_v3 }
 0x29b   : > { %v4627_v53 = vpop.eup %4626 }
 0x29c   : > { %4206 = vmatmul.mubr.msk.bf16.vlgmr.msra.gmra.mxu0 %vm685_vm4, %v679_v52  ;;  %v672_v56 = vmul.f32 %v4627_v53, %v4900_v2 }
 0x29d   : > { %4216 = vmatpush3.bf16.msra.mxu0 %v979_v54  ;;  %4217 = vmatprep.mubr.msk.bf16.mxu0 %vm4738_vm0, %v4737_v3 }
 0x29e   : > { %v680_v49 = vpack.c.bf16 %v672_v56, %v672_v56  ;;  %4227 = vmatprep.subr.bf16.mxu0 %v4737_v3 }
 0x2a0   : > { %4212 = vmatmul.mubr.msk.bf16.vlgmr.msra.gmra.mxu1 %vm685_vm4, %v680_v49 }
 0x2a1   : > { %4222 = vmatpush3.bf16.msra.mxu1 %v1027_v57  ;;  %4223 = vmatprep.mubr.msk.bf16.mxu1 %vm4738_vm0, %v4737_v3 }
 0x2a2   : > { %4233 = vmatprep.subr.bf16.mxu1 %v4737_v3 }
 0x2be   : > { %v655_v58 = vpop.xlane.xlu1 %654 }
 0x2bf   : > { %4628 = vrcp.f32 %v655_v58 }
 0x2c2   : > { %v658_v55 = vpop.xlane.xlu0 %657  ;;  %v1122_v59 = vpop.permute.xlu1 %1121 }
 0x2c3   : > { %4630 = vrcp.f32 %v658_v55  ;;  %v1127_v9 = vsel %vm139_vm1, %v1122_v59, 0 }
 0x2c6   : > { %v1072_v60 = vpop.permute.xlu0 %1071  ;;  %v1120_v62 = vpop.permute.xlu1 %1119 }
 0x2c7   : > { %v1077_v2 = vsel %vm139_vm1, %v1072_v60, 0 }
 0x2ca   : > { %v1070_v61 = vpop.permute.xlu0 %1069  ;;  %v1222_v6 = vpop.permute.xlu1 %1221 }
 0x2cb   : > { %v1227_v20 = vsel %vm139_vm1, %v1222_v6, 0 }
 0x2cc   : > { %v4629_v63 = vpop.eup %4628 }
 0x2cd   : > { %v673_v0 = vmul.f32 %v4629_v63, %v4909_v15 }
 0x2ce   : > { %v1172_v1 = vpop.permute.xlu0 %1171  ;;  %v1220_v15 = vpop.permute.xlu1 %1219 }
 0x2cf   : > { %v681_v4 = vpack.c.bf16 %v673_v0, %v673_v0  ;;  %v1177_v16 = vsel %vm139_vm1, %v1172_v1, 0 }
 0x2d0   : > { %v4631_v5 = vpop.eup %4630 }
 0x2d1   : > { %4218 = vmatmul.mubr.msk.bf16.vlgmr.msra.gmra.mxu0 %vm685_vm4, %v681_v4  ;;  %v674_v7 = vmul.f32 %v4631_v5, %v4913_v19 }
 0x2d2   : > { %4228 = vmatpush3.bf16.xpose.msra.mxu0 %v1077_v2  ;;  %4229 = vmatprep.mubr.msk.bf16.mxu0 %vm4738_vm0, %v4737_v3  ;;  %v1170_v8 = vpop.permute.xlu0 %1169  ;;  %v1322_v23 = vpop.permute.xlu1 %1321 }
 0x2d3   : > { %v682_v12 = vpack.c.bf16 %v674_v7, %v674_v7  ;;  %4239 = vmatprep.subr.bf16.mxu0 %v4737_v3  ;;  %v1327_v27 = vsel %vm139_vm1, %v1322_v23, 0 }
 0x2d5   : > { %4224 = vmatmul.mubr.msk.bf16.vlgmr.msra.gmra.mxu1 %vm685_vm4, %v682_v12 }
 0x2d6   : > { %4234 = vmatpush3.bf16.xpose.msra.mxu1 %v1127_v9  ;;  %4235 = vmatprep.mubr.msk.bf16.mxu1 %vm4738_vm0, %v4737_v3  ;;  %v1272_v19 = vpop.permute.xlu0 %1271  ;;  %v1320_v26 = vpop.permute.xlu1 %1319 }
 0x2d7   : > { %4245 = vmatprep.subr.bf16.mxu1 %v4737_v3  ;;  %v1277_v25 = vsel %vm139_vm1, %v1272_v19, 0 }
 0x2d9   : > { %4230 = vmatmul.mubr.msk.bf16.vlgmr.msra.gmra.mxu0 %vm139_vm1, %v1070_v61 }
 0x2da   : > { %4240 = vmatpush3.bf16.xpose.msra.mxu0 %v1177_v16  ;;  %4241 = vmatprep.mubr.msk.bf16.mxu0 %vm4738_vm0, %v4737_v3  ;;  %v1270_v24 = vpop.permute.xlu0 %1269  ;;  %v1422_v30 = vpop.permute.xlu1 %1421 }
 0x2db   : > { %4251 = vmatprep.subr.bf16.mxu0 %v4737_v3  ;;  %v1427_v31 = vsel %vm139_vm1, %v1422_v30, 0 }
 0x2dd   : > { %4236 = vmatmul.mubr.msk.bf16.vlgmr.msra.gmra.mxu1 %vm139_vm1, %v1120_v62 }
 0x2de   : > { %4246 = vmatpush3.bf16.xpose.msra.mxu1 %v1227_v20  ;;  %4247 = vmatprep.mubr.msk.bf16.mxu1 %vm4738_vm0, %v4737_v3  ;;  %v1372_v28 = vpop.permute.xlu0 %1371  ;;  %v1420_v33 = vpop.permute.xlu1 %1419 }
 0x2df   : > { %4257 = vmatprep.subr.bf16.mxu1 %v4737_v3  ;;  %v1377_v29 = vsel %vm139_vm1, %v1372_v28, 0 }
 0x2e1   : > { %4242 = vmatmul.mubr.msk.bf16.vlgmr.msra.gmra.mxu0 %vm139_vm1, %v1170_v8 }
 0x2e2   : > { %4252 = vmatpush3.bf16.xpose.msra.mxu0 %v1277_v25  ;;  %4253 = vmatprep.mubr.msk.bf16.mxu0 %vm4738_vm0, %v4737_v3  ;;  %v1370_v32 = vpop.permute.xlu0 %1369  ;;  %v1574_v47 = vpop.permute.xlu1 %1573 }
 0x2e3   : > { %4263 = vmatprep.subr.bf16.mxu0 %v4737_v3  ;;  %v1579_v51 = vsel %vm689_vm2, %v1574_v47, 0 }
 0x2e5   : > { %4248 = vmatmul.mubr.msk.bf16.vlgmr.msra.gmra.mxu1 %vm139_vm1, %v1220_v15 }
 0x2e6   : > { %4258 = vmatpush3.bf16.xpose.msra.mxu1 %v1327_v27  ;;  %4259 = vmatprep.mubr.msk.bf16.mxu1 %vm4738_vm0, %v4737_v3  ;;  %v1622_v52 = vpop.permute.xlu0 %1621 }
 0x2e7   : > { %4269 = vmatprep.subr.bf16.mxu1 %v4737_v3  ;;  %v1627_v56 = vsel %vm689_vm2, %v1622_v52, 0 }
 0x2e9   : > { %4254 = vmatmul.mubr.msk.bf16.vlgmr.msra.gmra.mxu0 %vm139_vm1, %v1270_v24 }
 0x2ea   : > { %4264 = vmatpush3.bf16.xpose.msra.mxu0 %v1377_v29  ;;  %4265 = vmatprep.mubr.msk.bf16.mxu0 %vm4738_vm0, %v4737_v3 }
 0x2eb   : > { %4275 = vmatprep.subr.bf16.mxu0 %v4737_v3 }
 0x2ed   : > { %4260 = vmatmul.mubr.msk.bf16.vlgmr.msra.gmra.mxu1 %vm139_vm1, %v1320_v26 }
 0x2ee   : > { %4270 = vmatpush3.bf16.xpose.msra.mxu1 %v1427_v31  ;;  %4271 = vmatprep.mubr.msk.bf16.mxu1 %vm4738_vm0, %v4737_v3 }
 0x2ef   : > { %4281 = vmatprep.subr.bf16.mxu1 %v4737_v3 }
 0x2f1   : > { %4266 = vmatmul.mubr.msk.bf16.vlgmr.msra.gmra.mxu0 %vm139_vm1, %v1370_v32 }
 0x2f2   : > { %4277 = vmatprep.mubr.msk.bf16.mxu0 %vm4738_vm0, %v4737_v3  ;;  %4276 = vmatpush3.bf16.msra.mxu0 %v1579_v51 }
 0x2f3   : > { %4287 = vmatprep.subr.bf16.mxu0 %v4737_v3 }
 0x2f5   : > { %4272 = vmatmul.mubr.msk.bf16.vlgmr.msra.gmra.mxu1 %vm139_vm1, %v1420_v33 }
 0x2f6   : > { %4283 = vmatprep.mubr.msk.bf16.mxu1 %vm4738_vm0, %v4737_v3  ;;  %4282 = vmatpush3.bf16.msra.mxu1 %v1627_v56 }
 0x2f7   : > { %4293 = vmatprep.subr.bf16.mxu1 %v4737_v3 }
 0x34c   : > { %v5027_v34 = vpop.f32.mrf.mxu0 }
 0x34e   : > { %v4183_v35 = vpop.f32.mrf.mxu0 }
 0x350   : > { %v730_v38 = vpop.f32.mrf.mxu0  ;;  %v5029_v39 = vpop.f32.mrf.mxu1 }
 0x352   : > { %v4184_v40 = vpop.f32.mrf.mxu0  ;;  %v4189_v41 = vpop.f32.mrf.mxu1 }
 0x354   : > { %v778_v36 = vpop.f32.mrf.mxu1  ;;  %v5031_v42 = vpop.f32.mrf.mxu0 }
 0x356   : > { %v4190_v43 = vpop.f32.mrf.mxu1  ;;  %v4195_v45 = vpop.f32.mrf.mxu0 }
 0x358   : > { %v826_v46 = vpop.f32.mrf.mxu0  ;;  %v5033_v37 = vpop.f32.mrf.mxu1 }
 0x35a   : > { %v4196_v48 = vpop.f32.mrf.mxu0  ;;  %v4201_v50 = vpop.f32.mrf.mxu1 }
 0x35c   : > { %v874_v53 = vpop.f32.mrf.mxu1  ;;  %v5036_v54 = vpop.f32.mrf.mxu0 }
 0x35e   : > { %v4202_v44 = vpop.f32.mrf.mxu1  ;;  %v4207_v49 = vpop.f32.mrf.mxu0 }
 0x360   : > { %v922_v57 = vpop.f32.mrf.mxu0  ;;  %v5041_v58 = vpop.f32.mrf.mxu1 }
 0x362   : > { %v4208_v55 = vpop.f32.mrf.mxu0  ;;  %v4213_v59 = vpop.f32.mrf.mxu1 }
 0x364   : > { %v970_v60 = vpop.f32.mrf.mxu1 }
 0x366   : > { %v4214_v61 = vpop.f32.mrf.mxu1 }
 0x391   : > { %v5043_v62 = vpop.f32.mrf.mxu0 }
 0x393   : > { %v4219_v63 = vpop.f32.mrf.mxu0 }
 0x395   : > { %v1018_v0 = vpop.f32.mrf.mxu0  ;;  %v5045_v1 = vpop.f32.mrf.mxu1 }
 0x397   : > { %v4220_v2 = vpop.f32.mrf.mxu0  ;;  %v4225_v4 = vpop.f32.mrf.mxu1 }
 0x399   : > { %v1066_v5 = vpop.f32.mrf.mxu1  ;;  %v1113_v6 = vpop.f32.mrf.mxu0 }
 0x39a   : > { %v1469_v7 = vmul.f32 0.35355338, %v1113_v6 }
 0x39b   : > { %v4226_v8 = vpop.f32.mrf.mxu1  ;;  %v4231_v9 = vpop.f32.mrf.mxu0 }
 0x39c   : > { %v1477_v12 = vsel %vm586_vm3, %v1469_v7, -inf  ;;  %v5062_v9 = vpop.permute.xlu1 %1669 }
 0x39d   : > { %v1163_v15 = vpop.f32.mrf.mxu1  ;;  %1478 = vmax.xlane.f32.xlu0 %v1477_v12  ;;  %v1116_v16 = vpop.f32.mrf.mxu0 }
 0x39e   : > { %v1470_v19 = vmul.f32 0.35355338, %v1163_v15 }
 0x39f   : > { %v4232_v20 = vpop.f32.mrf.mxu0  ;;  %v4237_v23 = vpop.f32.mrf.mxu1 }
 0x3a0   : > { %v1480_v24 = vsel %vm586_vm3, %v1470_v19, -inf  ;;  %v5064_v12 = vpop.permute.xlu1 %1717 }
 0x3a1   : > { %1481 = vmax.xlane.f32.xlu1 %v1480_v24  ;;  %v1166_v25 = vpop.f32.mrf.mxu1  ;;  %v1213_v26 = vpop.f32.mrf.mxu0 }
 0x3a2   : > { %v1471_v27 = vmul.f32 0.35355338, %v1213_v26 }
 0x3a3   : > { %v4238_v28 = vpop.f32.mrf.mxu1  ;;  %v4243_v29 = vpop.f32.mrf.mxu0 }
 0x3a4   : > { %v1483_v30 = vsel %vm586_vm3, %v1471_v27, -inf }
 0x3a5   : > { %v1263_v31 = vpop.f32.mrf.mxu1  ;;  %1484 = vmax.xlane.f32.xlu0 %v1483_v30  ;;  %v1216_v32 = vpop.f32.mrf.mxu0 }
 0x3a6   : > { %v1472_v33 = vmul.f32 0.35355338, %v1263_v31 }
 0x3a7   : > { %v4244_v35 = vpop.f32.mrf.mxu0  ;;  %v4249_v38 = vpop.f32.mrf.mxu1 }
 0x3a8   : > { %v1486_v40 = vsel %vm586_vm3, %v1472_v33, -inf }
 0x3a9   : > { %v1266_v41 = vpop.f32.mrf.mxu1  ;;  %1487 = vmax.xlane.f32.xlu0 %v1486_v40  ;;  %v1313_v36 = vpop.f32.mrf.mxu0 }
 0x3aa   : > { %v1473_v43 = vmul.f32 0.35355338, %v1313_v36 }
 0x3ab   : > { %v4250_v45 = vpop.f32.mrf.mxu1  ;;  %v4255_v46 = vpop.f32.mrf.mxu0 }
 0x3ac   : > { %v1489_v47 = vsel %vm586_vm3, %v1473_v43, -inf }
 0x3ad   : > { %v1363_v48 = vpop.f32.mrf.mxu1  ;;  %1490 = vmax.xlane.f32.xlu1 %v1489_v47  ;;  %v1316_v50 = vpop.f32.mrf.mxu0 }
 0x3ae   : > { %v1474_v51 = vmul.f32 0.35355338, %v1363_v48 }
 0x3af   : > { %v4256_v52 = vpop.f32.mrf.mxu0  ;;  %v4261_v53 = vpop.f32.mrf.mxu1 }
 0x3b0   : > { %v1492_v56 = vsel %vm586_vm3, %v1474_v51, -inf }
 0x3b1   : > { %v1366_v44 = vpop.f32.mrf.mxu1  ;;  %1493 = vmax.xlane.f32.xlu0 %v1492_v56  ;;  %v1413_v49 = vpop.f32.mrf.mxu0 }
 0x3b2   : > { %v5053_v57 = vmul.f32 0.35355338, %v1413_v49 }
 0x3b3   : > { %v4262_v55 = vpop.f32.mrf.mxu1  ;;  %v4267_v59 = vpop.f32.mrf.mxu0 }
 0x3b4   : > { %v1495_v60 = vsel %vm586_vm3, %v5053_v57, -inf }
 0x3b5   : > { %v1463_v61 = vpop.f32.mrf.mxu1  ;;  %1496 = vmax.xlane.f32.xlu1 %v1495_v60  ;;  %v1416_v63 = vpop.f32.mrf.mxu0 }
 0x3b6   : > { %v1476_v0 = vmul.f32 0.35355338, %v1463_v61 }
 0x3b7   : > { %v4268_v2 = vpop.f32.mrf.mxu0  ;;  %v4273_v4 = vpop.f32.mrf.mxu1 }
 0x3b8   : > { %v1498_v5 = vsel %vm586_vm3, %v1476_v0, -inf }
 0x3b9   : > { %1499 = vmax.xlane.f32.xlu0 %v1498_v5  ;;  %v1466_v6 = vpop.f32.mrf.mxu1 }
 0x3bb   : > { %v4274_v8 = vpop.f32.mrf.mxu1 }
 0x3c6   : > { %1813 = vrot.lane.b32.xlu1 %v4799_v18, %s4743_s17 }
 0x3cf   : > { %1765 = vrot.lane.b32.xlu0 %v4797_v17, %s4743_s17 }
 0x426   : > { %v1479_v15 = vpop.xlane.xlu0 %1478 }
 0x427   : > { %v1501_v16 = vsub.f32 %v1469_v7, %v1479_v15 }
 0x429   : > { %v1509_v20 = vmul.f32 1.442695, %v1501_v16 }
 0x42a   : > { %v1482_v23 = vpop.xlane.xlu1 %1481 }
 0x42b   : > { %4632 = vpow2.f32 %v1509_v20  ;;  %v1502_v24 = vsub.f32 %v1470_v19, %v1482_v23 }
 0x42d   : > { %v1511_v25 = vmul.f32 1.442695, %v1502_v24 }
 0x42e   : > { %v1485_v26 = vpop.xlane.xlu0 %1484 }
 0x42f   : > { %4634 = vpow2.f32 %v1511_v25  ;;  %v1503_v28 = vsub.f32 %v1471_v27, %v1485_v26  ;;  %v1675_v26 = vsel %vm689_vm2, %v5062_v9, 0 }
 0x431   : > { %v1513_v29 = vmul.f32 1.442695, %v1503_v28 }
 0x432   : > { %v1488_v30 = vpop.xlane.xlu0 %1487 }
 0x433   : > { %4636 = vpow2.f32 %v1513_v29  ;;  %v1504_v31 = vsub.f32 %v1472_v33, %v1488_v30 }
 0x435   : > { %v1515_v32 = vmul.f32 1.442695, %v1504_v31 }
 0x436   : > { %v1491_v35 = vpop.xlane.xlu1 %1490 }
 0x437   : > { %4638 = vpow2.f32 %v1515_v32  ;;  %v1505_v38 = vsub.f32 %v1473_v43, %v1491_v35  ;;  %v1723_v32 = vsel %vm689_vm2, %v5064_v12, 0 }
 0x438   : > { %v5066_v40 = vpop.eup %4632 }
 0x439   : > { %v1517_v41 = vmul.f32 1.442695, %v1505_v38  ;;  %v1525_v7 = vsel %vm586_vm3, %v5066_v40, 0.0 }
 0x43a   : > { %1526 = vadd.xlane.f32.xlu1 %v1525_v7  ;;  %v1494_v19 = vpop.xlane.xlu0 %1493 }
 0x43b   : > { %4640 = vpow2.f32 %v1517_v41  ;;  %v1506_v36 = vsub.f32 %v1474_v51, %v1494_v19 }
 0x43c   : > { %v5070_v45 = vpop.eup %4634 }
 0x43d   : > { %v1519_v27 = vmul.f32 1.442695, %v1506_v36  ;;  %v1528_v33 = vsel %vm586_vm3, %v5070_v45, 0.0 }
 0x43e   : > { %1529 = vadd.xlane.f32.xlu0 %v1528_v33  ;;  %v1497_v56 = vpop.xlane.xlu1 %1496 }
 0x43f   : > { %4642 = vpow2.f32 %v1519_v27  ;;  %v1507_v44 = vsub.f32 %v5053_v57, %v1497_v56 }
 0x440   : > { %v5074_v46 = vpop.eup %4636 }
 0x441   : > { %v1531_v43 = vsel %vm586_vm3, %v5074_v46, 0.0  ;;  %v1521_v55 = vmul.f32 1.442695, %v1507_v44 }
 0x442   : > { %1532 = vadd.xlane.f32.xlu1 %v1531_v43  ;;  %v1500_v49 = vpop.xlane.xlu0 %1499  ;;  %v1814_v57 = vpop.permute.xlu1 %1813 }
 0x443   : > { %v1508_v59 = vsub.f32 %v1476_v0, %v1500_v49  ;;  %4644 = vpow2.f32 %v1521_v55  ;;  %v1819_v19 = vsel %vm689_vm2, %v1814_v57, 0 }
 0x444   : > { %v5078_v47 = vpop.eup %4638 }
 0x445   : > { %v1534_v48 = vsel %vm586_vm3, %v5078_v47, 0.0  ;;  %v1523_v60 = vmul.f32 1.442695, %v1508_v59 }
 0x446   : > { %1535 = vadd.xlane.f32.xlu0 %v1534_v48  ;;  %v1766_v0 = vpop.permute.xlu0 %1765 }
 0x447   : > { %4646 = vpow2.f32 %v1523_v60 }
 0x448   : > { %v5082_v50 = vpop.eup %4640 }
 0x449   : > { %v1537_v51 = vsel %vm586_vm3, %v5082_v50, 0.0 }
 0x44a   : > { %1538 = vadd.xlane.f32.xlu1 %v1537_v51 }
 0x44c   : > { %v5086_v52 = vpop.eup %4642 }
 0x44d   : > { %v1540_v53 = vsel %vm586_vm3, %v5086_v52, 0.0 }
 0x44e   : > { %1541 = vadd.xlane.f32.xlu0 %v1540_v53 }
 0x450   : > { %v5095_v61 = vpop.eup %4644 }
 0x451   : > { %v1543_v63 = vsel %vm586_vm3, %v5095_v61, 0.0 }
 0x454   : > { %v5099_v2 = vpop.eup %4646 }
 0x455   : > { %v1546_v4 = vsel %vm586_vm3, %v5099_v2, 0.0 }
 0x45b   : > { %1909 = vrot.lane.b32.xlu1 %v4805_v22, %s4743_s17 }
 0x464   : > { %1861 = vrot.lane.b32.xlu0 %v4803_v21, %s4743_s17 }
 0x47f   : > { %1544 = vadd.xlane.f32.xlu1 %v1543_v63 }
 0x483   : > { %1547 = vadd.xlane.f32.xlu0 %v1546_v4 }
 0x490   : > { %2009 = vrot.lane.b32.xlu1 %v4790_v13, %s4744_s18 }
 0x494   : > { %2007 = vrot.lane.b32.xlu1 %v4790_v13, %s4745_s19 }
 0x498   : > { %2109 = vrot.lane.b32.xlu1 %v4793_v14, %s4744_s18 }
 0x499   : > { %1959 = vrot.lane.b32.xlu0 %v4785_v10, %s4744_s18 }
 0x49c   : > { %2107 = vrot.lane.b32.xlu1 %v4793_v14, %s4745_s19 }
 0x49d   : > { %1957 = vrot.lane.b32.xlu0 %v4785_v10, %s4745_s19 }
 0x4a0   : > { %2209 = vrot.lane.b32.xlu1 %v4799_v18, %s4744_s18 }
 0x4a1   : > { %2059 = vrot.lane.b32.xlu0 %v4787_v11, %s4744_s18 }
 0x4a4   : > { %2207 = vrot.lane.b32.xlu1 %v4799_v18, %s4745_s19 }
 0x4a5   : > { %2057 = vrot.lane.b32.xlu0 %v4787_v11, %s4745_s19 }
 0x4a8   : > { %2309 = vrot.lane.b32.xlu1 %v4805_v22, %s4744_s18 }
 0x4a9   : > { %2159 = vrot.lane.b32.xlu0 %v4797_v17, %s4744_s18 }
 0x4ac   : > { %2307 = vrot.lane.b32.xlu1 %v4805_v22, %s4745_s19 }
 0x4ad   : > { %2157 = vrot.lane.b32.xlu0 %v4797_v17, %s4745_s19 }
 0x4b0   : > { %2461 = vrot.lane.b32.xlu1 %v4785_v10, %s4746_s20 }
 0x4b1   : > { %2259 = vrot.lane.b32.xlu0 %v4803_v21, %s4744_s18 }
 0x4b4   : > { %2557 = vrot.lane.b32.xlu1 %v4787_v11, %s4746_s20 }
 0x4b5   : > { %2257 = vrot.lane.b32.xlu0 %v4803_v21, %s4745_s19 }
 0x4b8   : > { %2605 = vrot.lane.b32.xlu1 %v4793_v14, %s4746_s20 }
 0x4b9   : > { %2509 = vrot.lane.b32.xlu0 %v4790_v13, %s4746_s20 }
 0x4c3   : > { %v1527_v5 = vpop.xlane.xlu1 %1526 }
 0x4c4   : > { %4648 = vrcp.f32 %v1527_v5 }
 0x4c7   : > { %v1530_v6 = vpop.xlane.xlu0 %1529 }
 0x4c8   : > { %4650 = vrcp.f32 %v1530_v6 }
 0x4cb   : > { %v1533_v8 = vpop.xlane.xlu1 %1532 }
 0x4cc   : > { %4652 = vrcp.f32 %v1533_v8 }
 0x4cf   : > { %v1536_v15 = vpop.xlane.xlu0 %1535 }
 0x4d0   : > { %4654 = vrcp.f32 %v1536_v15 }
 0x4d1   : > { %v4649_v16 = vpop.eup %4648 }
 0x4d2   : > { %v1557_v20 = vmul.f32 %v4649_v16, %v5066_v40  ;;  %v1771_v40 = vsel %vm689_vm2, %v1766_v0, 0 }
 0x4d3   : > { %v1539_v23 = vpop.xlane.xlu1 %1538 }
 0x4d4   : > { %4656 = vrcp.f32 %v1539_v23  ;;  %v1565_v24 = vpack.c.bf16 %v1557_v20, %v1557_v20 }
 0x4d5   : > { %v4651_v25 = vpop.eup %4650 }
 0x4d6   : > { %4278 = vmatmul.mubr.msk.bf16.vlgmr.msra.gmra.mxu0 %vm685_vm4, %v1565_v24  ;;  %v1558_v28 = vmul.f32 %v4651_v25, %v5070_v45 }
 0x4d7   : > { %4288 = vmatpush3.bf16.msra.mxu0 %v1675_v26  ;;  %v1542_v29 = vpop.xlane.xlu0 %1541  ;;  %4289 = vmatprep.mubr.msk.bf16.mxu0 %vm4738_vm0, %v4737_v3 }
 0x4d8   : > { %4658 = vrcp.f32 %v1542_v29  ;;  %v1566_v30 = vpack.c.bf16 %v1558_v28, %v1558_v28  ;;  %4299 = vmatprep.subr.bf16.mxu0 %v4737_v3 }
 0x4d9   : > { %v4653_v31 = vpop.eup %4652 }
 0x4da   : > { %4284 = vmatmul.mubr.msk.bf16.vlgmr.msra.gmra.mxu1 %vm685_vm4, %v1566_v30  ;;  %v1559_v9 = vmul.f32 %v4653_v31, %v5074_v46 }
 0x4db   : > { %4294 = vmatpush3.bf16.msra.mxu1 %v1723_v32  ;;  %4295 = vmatprep.mubr.msk.bf16.mxu1 %vm4738_vm0, %v4737_v3  ;;  %v1862_v45 = vpop.permute.xlu0 %1861 }
 0x4dc   : > { %v1567_v35 = vpack.c.bf16 %v1559_v9, %v1559_v9  ;;  %4305 = vmatprep.subr.bf16.mxu1 %v4737_v3  ;;  %v1867_v46 = vsel %vm689_vm2, %v1862_v45, 0 }
 0x4dd   : > { %v4655_v38 = vpop.eup %4654 }
 0x4de   : > { %4290 = vmatmul.mubr.msk.bf16.vlgmr.msra.gmra.mxu0 %vm685_vm4, %v1567_v35  ;;  %v1560_v41 = vmul.f32 %v4655_v38, %v5078_v47  ;;  %v1910_v47 = vpop.permute.xlu1 %1909 }
 0x4df   : > { %4300 = vmatpush3.bf16.msra.mxu0 %v1771_v40  ;;  %4301 = vmatprep.mubr.msk.bf16.mxu0 %vm4738_vm0, %v4737_v3 }
 0x4e0   : > { %v1568_v12 = vpack.c.bf16 %v1560_v41, %v1560_v41  ;;  %4311 = vmatprep.subr.bf16.mxu0 %v4737_v3 }
 0x4e1   : > { %v4657_v7 = vpop.eup %4656 }
 0x4e2   : > { %4296 = vmatmul.mubr.msk.bf16.vlgmr.msra.gmra.mxu1 %vm685_vm4, %v1568_v12  ;;  %v1561_v36 = vmul.f32 %v4657_v7, %v5082_v50  ;;  %v1915_v50 = vsel %vm689_vm2, %v1910_v47, 0 }
 0x4e3   : > { %4306 = vmatpush3.bf16.msra.mxu1 %v1819_v19  ;;  %4307 = vmatprep.mubr.msk.bf16.mxu1 %vm4738_vm0, %v4737_v3 }
 0x4e4   : > { %v1569_v27 = vpack.c.bf16 %v1561_v36, %v1561_v36  ;;  %4317 = vmatprep.subr.bf16.mxu1 %v4737_v3 }
 0x4e5   : > { %v4659_v33 = vpop.eup %4658 }
 0x4e6   : > { %4302 = vmatmul.mubr.msk.bf16.vlgmr.msra.gmra.mxu0 %vm685_vm4, %v1569_v27  ;;  %v1562_v43 = vmul.f32 %v4659_v33, %v5086_v52 }
 0x4e7   : > { %4312 = vmatpush3.bf16.msra.mxu0 %v1867_v46  ;;  %4313 = vmatprep.mubr.msk.bf16.mxu0 %vm4738_vm0, %v4737_v3 }
 0x4e8   : > { %v1570_v48 = vpack.c.bf16 %v1562_v43, %v1562_v43  ;;  %4323 = vmatprep.subr.bf16.mxu0 %v4737_v3 }
 0x4ea   : > { %4308 = vmatmul.mubr.msk.bf16.vlgmr.msra.gmra.mxu1 %vm685_vm4, %v1570_v48 }
 0x4eb   : > { %4318 = vmatpush3.bf16.msra.mxu1 %v1915_v50  ;;  %4319 = vmatprep.mubr.msk.bf16.mxu1 %vm4738_vm0, %v4737_v3 }
 0x4ec   : > { %4329 = vmatprep.subr.bf16.mxu1 %v4737_v3 }
 0x508   : > { %v1545_v51 = vpop.xlane.xlu1 %1544 }
 0x509   : > { %4660 = vrcp.f32 %v1545_v51 }
 0x50c   : > { %v1548_v52 = vpop.xlane.xlu0 %1547  ;;  %v2010_v53 = vpop.permute.xlu1 %2009 }
 0x50d   : > { %4662 = vrcp.f32 %v1548_v52  ;;  %v2015_v8 = vsel %vm139_vm1, %v2010_v53, 0 }
 0x510   : > { %v1960_v56 = vpop.permute.xlu0 %1959  ;;  %v2008_v49 = vpop.permute.xlu1 %2007 }
 0x511   : > { %v1965_v63 = vsel %vm139_vm1, %v1960_v56, 0 }
 0x514   : > { %v1958_v44 = vpop.permute.xlu0 %1957  ;;  %v2110_v0 = vpop.permute.xlu1 %2109 }
 0x515   : > { %v2115_v20 = vsel %vm139_vm1, %v2110_v0, 0 }
 0x516   : > { %v4661_v55 = vpop.eup %4660 }
 0x517   : > { %v1563_v59 = vmul.f32 %v4661_v55, %v5095_v61 }
 0x518   : > { %v2060_v60 = vpop.permute.xlu0 %2059  ;;  %v2108_v61 = vpop.permute.xlu1 %2107 }
 0x519   : > { %v1571_v4 = vpack.c.bf16 %v1563_v59, %v1563_v59  ;;  %v2065_v16 = vsel %vm139_vm1, %v2060_v60, 0 }
 0x51a   : > { %v4663_v57 = vpop.eup %4662 }
 0x51b   : > { %4314 = vmatmul.mubr.msk.bf16.vlgmr.msra.gmra.mxu0 %vm685_vm4, %v1571_v4  ;;  %v1564_v5 = vmul.f32 %v4663_v57, %v5099_v2 }
 0x51c   : > { %4324 = vmatpush3.bf16.xpose.msra.mxu0 %v1965_v63  ;;  %4325 = vmatprep.mubr.msk.bf16.mxu0 %vm4738_vm0, %v4737_v3  ;;  %v2058_v6 = vpop.permute.xlu0 %2057  ;;  %v2210_v23 = vpop.permute.xlu1 %2209 }
 0x51d   : > { %v1572_v15 = vpack.c.bf16 %v1564_v5, %v1564_v5  ;;  %4335 = vmatprep.subr.bf16.mxu0 %v4737_v3  ;;  %v2215_v28 = vsel %vm139_vm1, %v2210_v23, 0 }
 0x51f   : > { %4320 = vmatmul.mubr.msk.bf16.vlgmr.msra.gmra.mxu1 %vm685_vm4, %v1572_v15 }
 0x520   : > { %4330 = vmatpush3.bf16.xpose.msra.mxu1 %v2015_v8  ;;  %4331 = vmatprep.mubr.msk.bf16.mxu1 %vm4738_vm0, %v4737_v3  ;;  %v2160_v2 = vpop.permute.xlu0 %2159  ;;  %v2208_v26 = vpop.permute.xlu1 %2207 }
 0x521   : > { %4341 = vmatprep.subr.bf16.mxu1 %v4737_v3  ;;  %v2165_v25 = vsel %vm139_vm1, %v2160_v2, 0 }
 0x523   : > { %4326 = vmatmul.mubr.msk.bf16.vlgmr.msra.gmra.mxu0 %vm139_vm1, %v1958_v44 }
 0x524   : > { %4336 = vmatpush3.bf16.xpose.msra.mxu0 %v2065_v16  ;;  %4337 = vmatprep.mubr.msk.bf16.mxu0 %vm4738_vm0, %v4737_v3  ;;  %v2158_v24 = vpop.permute.xlu0 %2157  ;;  %v2310_v31 = vpop.permute.xlu1 %2309 }
 0x525   : > { %4347 = vmatprep.subr.bf16.mxu0 %v4737_v3  ;;  %v2315_v32 = vsel %vm139_vm1, %v2310_v31, 0 }
 0x527   : > { %4332 = vmatmul.mubr.msk.bf16.vlgmr.msra.gmra.mxu1 %vm139_vm1, %v2008_v49 }
 0x528   : > { %4342 = vmatpush3.bf16.xpose.msra.mxu1 %v2115_v20  ;;  %4343 = vmatprep.mubr.msk.bf16.mxu1 %vm4738_vm0, %v4737_v3  ;;  %v2260_v29 = vpop.permute.xlu0 %2259  ;;  %v2308_v35 = vpop.permute.xlu1 %2307 }
 0x529   : > { %4353 = vmatprep.subr.bf16.mxu1 %v4737_v3  ;;  %v2265_v30 = vsel %vm139_vm1, %v2260_v29, 0 }
 0x52b   : > { %4338 = vmatmul.mubr.msk.bf16.vlgmr.msra.gmra.mxu0 %vm139_vm1, %v2058_v6 }
 0x52c   : > { %4348 = vmatpush3.bf16.xpose.msra.mxu0 %v2165_v25  ;;  %4349 = vmatprep.mubr.msk.bf16.mxu0 %vm4738_vm0, %v4737_v3  ;;  %v2258_v9 = vpop.permute.xlu0 %2257  ;;  %v2462_v50 = vpop.permute.xlu1 %2461 }
 0x52d   : > { %4359 = vmatprep.subr.bf16.mxu0 %v4737_v3  ;;  %v2467_v53 = vsel %vm689_vm2, %v2462_v50, 0 }
 0x52f   : > { %4344 = vmatmul.mubr.msk.bf16.vlgmr.msra.gmra.mxu1 %vm139_vm1, %v2108_v61 }
 0x530   : > { %4354 = vmatpush3.bf16.xpose.msra.mxu1 %v2215_v28  ;;  %4355 = vmatprep.mubr.msk.bf16.mxu1 %vm4738_vm0, %v4737_v3  ;;  %v2510_v56 = vpop.permute.xlu0 %2509 }
 0x531   : > { %4365 = vmatprep.subr.bf16.mxu1 %v4737_v3  ;;  %v2515_v55 = vsel %vm689_vm2, %v2510_v56, 0 }
 0x533   : > { %4350 = vmatmul.mubr.msk.bf16.vlgmr.msra.gmra.mxu0 %vm139_vm1, %v2158_v24 }
 0x534   : > { %4360 = vmatpush3.bf16.xpose.msra.mxu0 %v2265_v30  ;;  %4361 = vmatprep.mubr.msk.bf16.mxu0 %vm4738_vm0, %v4737_v3 }
 0x535   : > { %4371 = vmatprep.subr.bf16.mxu0 %v4737_v3 }
 0x537   : > { %4356 = vmatmul.mubr.msk.bf16.vlgmr.msra.gmra.mxu1 %vm139_vm1, %v2208_v26 }
 0x538   : > { %4366 = vmatpush3.bf16.xpose.msra.mxu1 %v2315_v32  ;;  %4367 = vmatprep.mubr.msk.bf16.mxu1 %vm4738_vm0, %v4737_v3 }
 0x539   : > { %4377 = vmatprep.subr.bf16.mxu1 %v4737_v3 }
 0x53b   : > { %4362 = vmatmul.mubr.msk.bf16.vlgmr.msra.gmra.mxu0 %vm139_vm1, %v2258_v9 }
 0x53c   : > { %4373 = vmatprep.mubr.msk.bf16.mxu0 %vm4738_vm0, %v4737_v3  ;;  %4372 = vmatpush3.bf16.msra.mxu0 %v2467_v53 }
 0x53d   : > { %4383 = vmatprep.subr.bf16.mxu0 %v4737_v3 }
 0x53f   : > { %4368 = vmatmul.mubr.msk.bf16.vlgmr.msra.gmra.mxu1 %vm139_vm1, %v2308_v35 }
 0x540   : > { %4379 = vmatprep.mubr.msk.bf16.mxu1 %vm4738_vm0, %v4737_v3  ;;  %4378 = vmatpush3.bf16.msra.mxu1 %v2515_v55 }
 0x541   : > { %4389 = vmatprep.subr.bf16.mxu1 %v4737_v3 }
 0x596   : > { %v5213_v38 = vpop.f32.mrf.mxu0 }
 0x598   : > { %v4279_v40 = vpop.f32.mrf.mxu0 }
 0x59a   : > { %v1618_v41 = vpop.f32.mrf.mxu0  ;;  %v5215_v12 = vpop.f32.mrf.mxu1 }
 0x59b   : > { %v4540_v7 = vpack.i.bf16 %v5215_v12, %v5213_v38 }
 0x59c   : > { %v4280_v19 = vpop.f32.mrf.mxu0  ;;  %v4285_v36 = vpop.f32.mrf.mxu1 }
 0x59e   : > { %v1666_v45 = vpop.f32.mrf.mxu1  ;;  %v5219_v27 = vpop.f32.mrf.mxu0 }
 0x5a0   : > { %v4286_v33 = vpop.f32.mrf.mxu1  ;;  %v4291_v46 = vpop.f32.mrf.mxu0 }
 0x5a2   : > { %v1714_v43 = vpop.f32.mrf.mxu0  ;;  %v5221_v47 = vpop.f32.mrf.mxu1 }
 0x5a3   : > { %v4545_v48 = vpack.i.bf16 %v5221_v47, %v5219_v27 }
 0x5a4   : > { %v4292_v51 = vpop.f32.mrf.mxu0  ;;  %v4297_v52 = vpop.f32.mrf.mxu1 }
 0x5a6   : > { %v1762_v44 = vpop.f32.mrf.mxu1  ;;  %v5226_v49 = vpop.f32.mrf.mxu0 }
 0x5a8   : > { %v4298_v59 = vpop.f32.mrf.mxu1  ;;  %v4303_v60 = vpop.f32.mrf.mxu0 }
 0x5aa   : > { %v1810_v63 = vpop.f32.mrf.mxu0  ;;  %v5231_v4 = vpop.f32.mrf.mxu1 }
 0x5ab   : > { %v4550_v57 = vpack.i.bf16 %v5231_v4, %v5226_v49 }
 0x5ac   : > { %v4304_v0 = vpop.f32.mrf.mxu0  ;;  %v4309_v5 = vpop.f32.mrf.mxu1 }
 0x5ae   : > { %v1858_v6 = vpop.f32.mrf.mxu1 }
 0x5b0   : > { %v4310_v8 = vpop.f32.mrf.mxu1 }
 0x5db   : > { %v5235_v15 = vpop.f32.mrf.mxu0 }
 0x5dd   : > { %v4315_v61 = vpop.f32.mrf.mxu0 }
 0x5df   : > { %v1906_v16 = vpop.f32.mrf.mxu0  ;;  %v5237_v2 = vpop.f32.mrf.mxu1 }
 0x5e0   : > { %v4555_v20 = vpack.i.bf16 %v5237_v2, %v5235_v15 }
 0x5e1   : > { %v4316_v23 = vpop.f32.mrf.mxu0  ;;  %v4321_v24 = vpop.f32.mrf.mxu1 }
 0x5e3   : > { %v1954_v25 = vpop.f32.mrf.mxu1  ;;  %v2001_v26 = vpop.f32.mrf.mxu0 }
 0x5e4   : > { %v2357_v28 = vmul.f32 0.35355338, %v2001_v26 }
 0x5e5   : > { %v4322_v29 = vpop.f32.mrf.mxu1  ;;  %v4327_v30 = vpop.f32.mrf.mxu0 }
 0x5e6   : > { %v2365_v31 = vsel %vm586_vm3, %v2357_v28, -inf }
 0x5e7   : > { %v2051_v32 = vpop.f32.mrf.mxu1  ;;  %2366 = vmax.xlane.f32.xlu0 %v2365_v31  ;;  %v2004_v9 = vpop.f32.mrf.mxu0 }
 0x5e8   : > { %v2358_v35 = vmul.f32 0.35355338, %v2051_v32 }
 0x5e9   : > { %v4328_v40 = vpop.f32.mrf.mxu0  ;;  %v4333_v41 = vpop.f32.mrf.mxu1 }
 0x5ea   : > { %v2368_v19 = vsel %vm586_vm3, %v2358_v35, -inf }
 0x5eb   : > { %2369 = vmax.xlane.f32.xlu1 %v2368_v19  ;;  %v2054_v36 = vpop.f32.mrf.mxu1  ;;  %v2101_v45 = vpop.f32.mrf.mxu0 }
 0x5ec   : > { %v2359_v33 = vmul.f32 0.35355338, %v2101_v45 }
 0x5ed   : > { %v4334_v46 = vpop.f32.mrf.mxu1  ;;  %v4339_v43 = vpop.f32.mrf.mxu0 }
 0x5ee   : > { %v2371_v50 = vsel %vm586_vm3, %v2359_v33, -inf }
 0x5ef   : > { %v2151_v51 = vpop.f32.mrf.mxu1  ;;  %2372 = vmax.xlane.f32.xlu0 %v2371_v50  ;;  %v2104_v52 = vpop.f32.mrf.mxu0 }
 0x5f0   : > { %v2360_v53 = vmul.f32 0.35355338, %v2151_v51  ;;  %v5256_v51 = vpop.permute.xlu1 %2557 }
 0x5f1   : > { %v4340_v56 = vpop.f32.mrf.mxu0  ;;  %v4345_v44 = vpop.f32.mrf.mxu1 }
 0x5f2   : > { %v2374_v55 = vsel %vm586_vm3, %v2360_v53, -inf }
 0x5f3   : > { %v2154_v59 = vpop.f32.mrf.mxu1  ;;  %2375 = vmax.xlane.f32.xlu0 %v2374_v55  ;;  %v2201_v60 = vpop.f32.mrf.mxu0 }
 0x5f4   : > { %v2361_v63 = vmul.f32 0.35355338, %v2201_v60  ;;  %v5258_v52 = vpop.permute.xlu1 %2605 }
 0x5f5   : > { %v4346_v0 = vpop.f32.mrf.mxu1  ;;  %v4351_v5 = vpop.f32.mrf.mxu0 }
 0x5f6   : > { %v2377_v6 = vsel %vm586_vm3, %v2361_v63, -inf }
 0x5f7   : > { %v2251_v8 = vpop.f32.mrf.mxu1  ;;  %2378 = vmax.xlane.f32.xlu1 %v2377_v6  ;;  %v2204_v61 = vpop.f32.mrf.mxu0 }
 0x5f8   : > { %v2362_v16 = vmul.f32 0.35355338, %v2251_v8 }
 0x5f9   : > { %v4352_v23 = vpop.f32.mrf.mxu0  ;;  %v4357_v24 = vpop.f32.mrf.mxu1 }
 0x5fa   : > { %v2380_v25 = vsel %vm586_vm3, %v2362_v16, -inf }
 0x5fb   : > { %v2254_v26 = vpop.f32.mrf.mxu1  ;;  %2381 = vmax.xlane.f32.xlu0 %v2380_v25  ;;  %v2301_v29 = vpop.f32.mrf.mxu0 }
 0x5fc   : > { %v5247_v30 = vmul.f32 0.35355338, %v2301_v29 }
 0x5fd   : > { %v4358_v31 = vpop.f32.mrf.mxu1  ;;  %v4363_v32 = vpop.f32.mrf.mxu0 }
 0x5fe   : > { %v2383_v9 = vsel %vm586_vm3, %v5247_v30, -inf }
 0x5ff   : > { %v2351_v40 = vpop.f32.mrf.mxu1  ;;  %2384 = vmax.xlane.f32.xlu1 %v2383_v9  ;;  %v2304_v41 = vpop.f32.mrf.mxu0 }
 0x600   : > { %v2364_v19 = vmul.f32 0.35355338, %v2351_v40 }
 0x601   : > { %v4364_v36 = vpop.f32.mrf.mxu0  ;;  %v4369_v45 = vpop.f32.mrf.mxu1 }
 0x602   : > { %v2386_v46 = vsel %vm586_vm3, %v2364_v19, -inf }
 0x603   : > { %2387 = vmax.xlane.f32.xlu0 %v2386_v46  ;;  %v2354_v43 = vpop.f32.mrf.mxu1 }
 0x605   : > { %v4370_v50 = vpop.f32.mrf.mxu1 }
 0x610   : > { %2701 = vrot.lane.b32.xlu1 %v4799_v18, %s4746_s20 }
 0x619   : > { %2653 = vrot.lane.b32.xlu0 %v4797_v17, %s4746_s20 }
 0x670   : > { %v2367_v56 = vpop.xlane.xlu0 %2366 }
 0x671   : > { %v2389_v44 = vsub.f32 %v2357_v28, %v2367_v56 }
 0x673   : > { %v2397_v55 = vmul.f32 1.442695, %v2389_v44 }
 0x674   : > { %v2370_v59 = vpop.xlane.xlu1 %2369 }
 0x675   : > { %4664 = vpow2.f32 %v2397_v55  ;;  %v2390_v60 = vsub.f32 %v2358_v35, %v2370_v59 }
 0x677   : > { %v2399_v0 = vmul.f32 1.442695, %v2390_v60 }
 0x678   : > { %v2373_v5 = vpop.xlane.xlu0 %2372 }
 0x679   : > { %4666 = vpow2.f32 %v2399_v0  ;;  %v2391_v6 = vsub.f32 %v2359_v33, %v2373_v5 }
 0x67b   : > { %v2401_v8 = vmul.f32 1.442695, %v2391_v6 }
 0x67c   : > { %v2376_v61 = vpop.xlane.xlu0 %2375 }
 0x67d   : > { %4668 = vpow2.f32 %v2401_v8  ;;  %v2392_v23 = vsub.f32 %v2360_v53, %v2376_v61 }
 0x67f   : > { %v2403_v24 = vmul.f32 1.442695, %v2392_v23 }
 0x680   : > { %v2379_v25 = vpop.xlane.xlu1 %2378 }
 0x681   : > { %4670 = vpow2.f32 %v2403_v24  ;;  %v2393_v26 = vsub.f32 %v2361_v63, %v2379_v25 }
 0x682   : > { %v5260_v29 = vpop.eup %4664 }
 0x683   : > { %v2405_v31 = vmul.f32 1.442695, %v2393_v26  ;;  %v2413_v28 = vsel %vm586_vm3, %v5260_v29, 0.0 }
 0x684   : > { %2414 = vadd.xlane.f32.xlu1 %v2413_v28  ;;  %v2382_v35 = vpop.xlane.xlu0 %2381 }
 0x685   : > { %4672 = vpow2.f32 %v2405_v31  ;;  %v2394_v32 = vsub.f32 %v2362_v16, %v2382_v35 }
 0x686   : > { %v5264_v9 = vpop.eup %4666 }
 0x687   : > { %v2407_v33 = vmul.f32 1.442695, %v2394_v32  ;;  %v2416_v53 = vsel %vm586_vm3, %v5264_v9, 0.0 }
 0x688   : > { %2417 = vadd.xlane.f32.xlu0 %v2416_v53  ;;  %v2385_v50 = vpop.xlane.xlu1 %2384 }
 0x689   : > { %4674 = vpow2.f32 %v2407_v33  ;;  %v2395_v56 = vsub.f32 %v5247_v30, %v2385_v50  ;;  %v2563_v33 = vsel %vm689_vm2, %v5256_v51, 0 }
 0x68a   : > { %v5268_v40 = vpop.eup %4668 }
 0x68b   : > { %v2419_v63 = vsel %vm586_vm3, %v5268_v40, 0.0  ;;  %v2409_v55 = vmul.f32 1.442695, %v2395_v56 }
 0x68c   : > { %2420 = vadd.xlane.f32.xlu1 %v2419_v63  ;;  %v2388_v44 = vpop.xlane.xlu0 %2387  ;;  %v2702_v30 = vpop.permute.xlu1 %2701 }
 0x68d   : > { %v2396_v59 = vsub.f32 %v2364_v19, %v2388_v44  ;;  %4676 = vpow2.f32 %v2409_v55  ;;  %v2707_v44 = vsel %vm689_vm2, %v2702_v30, 0 }
 0x68e   : > { %v5272_v41 = vpop.eup %4670 }
 0x68f   : > { %v2422_v36 = vsel %vm586_vm3, %v5272_v41, 0.0  ;;  %v2411_v60 = vmul.f32 1.442695, %v2396_v59 }
 0x690   : > { %2423 = vadd.xlane.f32.xlu0 %v2422_v36  ;;  %v2654_v19 = vpop.permute.xlu0 %2653 }
 0x691   : > { %4678 = vpow2.f32 %v2411_v60  ;;  %v2659_v50 = vsel %vm689_vm2, %v2654_v19, 0 }
 0x692   : > { %v5276_v16 = vpop.eup %4672 }
 0x693   : > { %v2425_v45 = vsel %vm586_vm3, %v5276_v16, 0.0 }
 0x694   : > { %2426 = vadd.xlane.f32.xlu1 %v2425_v45  ;;  %v2611_v45 = vsel %vm689_vm2, %v5258_v52, 0 }
 0x696   : > { %v5280_v46 = vpop.eup %4674 }
 0x697   : > { %v2428_v43 = vsel %vm586_vm3, %v5280_v46, 0.0 }
 0x698   : > { %2429 = vadd.xlane.f32.xlu0 %v2428_v43 }
 0x69a   : > { %v5289_v0 = vpop.eup %4676 }
 0x69b   : > { %v2431_v5 = vsel %vm586_vm3, %v5289_v0, 0.0 }
 0x69e   : > { %v5293_v6 = vpop.eup %4678 }
 0x69f   : > { %v2434_v8 = vsel %vm586_vm3, %v5293_v6, 0.0 }
 0x6a5   : > { %2797 = vrot.lane.b32.xlu1 %v4805_v22, %s4746_s20 }
 0x6ae   : > { %2749 = vrot.lane.b32.xlu0 %v4803_v21, %s4746_s20 }
 0x6c9   : > { %2432 = vadd.xlane.f32.xlu1 %v2431_v5 }
 0x6cd   : > { %2435 = vadd.xlane.f32.xlu0 %v2434_v8 }
 0x6da   : > { %2897 = vrot.lane.b32.xlu1 %v4790_v13, %s4747_s21 }
 0x6de   : > { %2895 = vrot.lane.b32.xlu1 %v4790_v13, %s4748_s22 }
 0x6e2   : > { %2997 = vrot.lane.b32.xlu1 %v4793_v14, %s4747_s21 }
 0x6e3   : > { %2847 = vrot.lane.b32.xlu0 %v4785_v10, %s4747_s21 }
 0x6e6   : > { %2995 = vrot.lane.b32.xlu1 %v4793_v14, %s4748_s22 }
 0x6e7   : > { %2845 = vrot.lane.b32.xlu0 %v4785_v10, %s4748_s22 }
 0x6ea   : > { %3097 = vrot.lane.b32.xlu1 %v4799_v18, %s4747_s21 }
 0x6eb   : > { %2947 = vrot.lane.b32.xlu0 %v4787_v11, %s4747_s21 }
 0x6ee   : > { %3095 = vrot.lane.b32.xlu1 %v4799_v18, %s4748_s22 }
 0x6ef   : > { %2945 = vrot.lane.b32.xlu0 %v4787_v11, %s4748_s22 }
 0x6f2   : > { %3197 = vrot.lane.b32.xlu1 %v4805_v22, %s4747_s21 }
 0x6f3   : > { %3047 = vrot.lane.b32.xlu0 %v4797_v17, %s4747_s21 }
 0x6f6   : > { %3195 = vrot.lane.b32.xlu1 %v4805_v22, %s4748_s22 }
 0x6f7   : > { %3045 = vrot.lane.b32.xlu0 %v4797_v17, %s4748_s22 }
 0x6fa   : > { %3349 = vrot.lane.b32.xlu1 %v4785_v10, %s4749_s23 }
 0x6fb   : > { %3147 = vrot.lane.b32.xlu0 %v4803_v21, %s4747_s21 }
 0x6ff   : > { %3145 = vrot.lane.b32.xlu0 %v4803_v21, %s4748_s22 }
 0x70d   : > { %v2415_v61 = vpop.xlane.xlu1 %2414 }
 0x70e   : > { %4680 = vrcp.f32 %v2415_v61 }
 0x711   : > { %v2418_v23 = vpop.xlane.xlu0 %2417 }
 0x712   : > { %4682 = vrcp.f32 %v2418_v23 }
 0x715   : > { %v2421_v24 = vpop.xlane.xlu1 %2420 }
 0x716   : > { %4684 = vrcp.f32 %v2421_v24 }
 0x719   : > { %v2424_v25 = vpop.xlane.xlu0 %2423 }
 0x71a   : > { %4686 = vrcp.f32 %v2424_v25 }
 0x71b   : > { %v4681_v26 = vpop.eup %4680 }
 0x71c   : > { %v2445_v31 = vmul.f32 %v4681_v26, %v5260_v29 }
 0x71d   : > { %v2427_v28 = vpop.xlane.xlu1 %2426 }
 0x71e   : > { %4688 = vrcp.f32 %v2427_v28  ;;  %v2453_v35 = vpack.c.bf16 %v2445_v31, %v2445_v31 }
 0x71f   : > { %v4683_v32 = vpop.eup %4682 }
 0x720   : > { %4374 = vmatmul.mubr.msk.bf16.vlgmr.msra.gmra.mxu0 %vm685_vm4, %v2453_v35  ;;  %v2446_v53 = vmul.f32 %v4683_v32, %v5264_v9 }
 0x721   : > { %4384 = vmatpush3.bf16.msra.mxu0 %v2563_v33  ;;  %v2430_v63 = vpop.xlane.xlu0 %2429  ;;  %4385 = vmatprep.mubr.msk.bf16.mxu0 %vm4738_vm0, %v4737_v3  ;;  %v2798_v30 = vpop.permute.xlu1 %2797 }
 0x722   : > { %4690 = vrcp.f32 %v2430_v63  ;;  %v2454_v36 = vpack.c.bf16 %v2446_v53, %v2446_v53  ;;  %4395 = vmatprep.subr.bf16.mxu0 %v4737_v3  ;;  %v2803_v19 = vsel %vm689_vm2, %v2798_v30, 0 }
 0x723   : > { %v4685_v29 = vpop.eup %4684 }
 0x724   : > { %4380 = vmatmul.mubr.msk.bf16.vlgmr.msra.gmra.mxu1 %vm685_vm4, %v2454_v36  ;;  %v2447_v51 = vmul.f32 %v4685_v29, %v5268_v40 }
 0x725   : > { %4390 = vmatpush3.bf16.msra.mxu1 %v2611_v45  ;;  %4391 = vmatprep.mubr.msk.bf16.mxu1 %vm4738_vm0, %v4737_v3  ;;  %v2750_v59 = vpop.permute.xlu0 %2749 }
 0x726   : > { %v2455_v9 = vpack.c.bf16 %v2447_v51, %v2447_v51  ;;  %4401 = vmatprep.subr.bf16.mxu1 %v4737_v3  ;;  %v2755_v5 = vsel %vm689_vm2, %v2750_v59, 0 }
 0x727   : > { %v4687_v43 = vpop.eup %4686 }
 0x728   : > { %4386 = vmatmul.mubr.msk.bf16.vlgmr.msra.gmra.mxu0 %vm685_vm4, %v2455_v9  ;;  %v2448_v56 = vmul.f32 %v4687_v43, %v5272_v41 }
 0x729   : > { %4396 = vmatpush3.bf16.msra.mxu0 %v2659_v50  ;;  %4397 = vmatprep.mubr.msk.bf16.mxu0 %vm4738_vm0, %v4737_v3 }
 0x72a   : > { %v2456_v52 = vpack.c.bf16 %v2448_v56, %v2448_v56  ;;  %4407 = vmatprep.subr.bf16.mxu0 %v4737_v3 }
 0x72b   : > { %v4689_v40 = vpop.eup %4688 }
 0x72c   : > { %4392 = vmatmul.mubr.msk.bf16.vlgmr.msra.gmra.mxu1 %vm685_vm4, %v2456_v52  ;;  %v2449_v55 = vmul.f32 %v4689_v40, %v5276_v16 }
 0x72d   : > { %4402 = vmatpush3.bf16.msra.mxu1 %v2707_v44  ;;  %4403 = vmatprep.mubr.msk.bf16.mxu1 %vm4738_vm0, %v4737_v3 }
 0x72e   : > { %v2457_v41 = vpack.c.bf16 %v2449_v55, %v2449_v55  ;;  %4413 = vmatprep.subr.bf16.mxu1 %v4737_v3 }
 0x72f   : > { %v4691_v60 = vpop.eup %4690 }
 0x730   : > { %4398 = vmatmul.mubr.msk.bf16.vlgmr.msra.gmra.mxu0 %vm685_vm4, %v2457_v41  ;;  %v2450_v8 = vmul.f32 %v4691_v60, %v5280_v46 }
 0x731   : > { %4408 = vmatpush3.bf16.msra.mxu0 %v2755_v5  ;;  %4409 = vmatprep.mubr.msk.bf16.mxu0 %vm4738_vm0, %v4737_v3 }
 0x732   : > { %v2458_v16 = vpack.c.bf16 %v2450_v8, %v2450_v8  ;;  %4419 = vmatprep.subr.bf16.mxu0 %v4737_v3 }
 0x734   : > { %4404 = vmatmul.mubr.msk.bf16.vlgmr.msra.gmra.mxu1 %vm685_vm4, %v2458_v16 }
 0x735   : > { %4414 = vmatpush3.bf16.msra.mxu1 %v2803_v19  ;;  %4415 = vmatprep.mubr.msk.bf16.mxu1 %vm4738_vm0, %v4737_v3 }
 0x736   : > { %4425 = vmatprep.subr.bf16.mxu1 %v4737_v3 }
 0x752   : > { %v2433_v61 = vpop.xlane.xlu1 %2432 }
 0x753   : > { %4692 = vrcp.f32 %v2433_v61 }
 0x756   : > { %v2436_v46 = vpop.xlane.xlu0 %2435  ;;  %v2898_v23 = vpop.permute.xlu1 %2897 }
 0x757   : > { %4694 = vrcp.f32 %v2436_v46  ;;  %v2903_v45 = vsel %vm139_vm1, %v2898_v23, 0 }
 0x75a   : > { %v2848_v24 = vpop.permute.xlu0 %2847  ;;  %v2896_v26 = vpop.permute.xlu1 %2895 }
 0x75b   : > { %v2853_v32 = vsel %vm139_vm1, %v2848_v24, 0 }
 0x75e   : > { %v2846_v25 = vpop.permute.xlu0 %2845  ;;  %v2998_v63 = vpop.permute.xlu1 %2997 }
 0x75f   : > { %v3003_v43 = vsel %vm139_vm1, %v2998_v63, 0 }
 0x760   : > { %v4693_v31 = vpop.eup %4692 }
 0x761   : > { %v2451_v28 = vmul.f32 %v4693_v31, %v5289_v0 }
 0x762   : > { %v2948_v35 = vpop.permute.xlu0 %2947  ;;  %v2996_v0 = vpop.permute.xlu1 %2995 }
 0x763   : > { %v2459_v33 = vpack.c.bf16 %v2451_v28, %v2451_v28  ;;  %v2953_v9 = vsel %vm139_vm1, %v2948_v35, 0 }
 0x764   : > { %v4695_v53 = vpop.eup %4694 }
 0x765   : > { %4410 = vmatmul.mubr.msk.bf16.vlgmr.msra.gmra.mxu0 %vm685_vm4, %v2459_v33  ;;  %v2452_v36 = vmul.f32 %v4695_v53, %v5293_v6 }
 0x766   : > { %4420 = vmatpush3.bf16.xpose.msra.mxu0 %v2853_v32  ;;  %4421 = vmatprep.mubr.msk.bf16.mxu0 %vm4738_vm0, %v4737_v3  ;;  %v2946_v29 = vpop.permute.xlu0 %2945  ;;  %v3098_v50 = vpop.permute.xlu1 %3097 }
 0x767   : > { %v2460_v51 = vpack.c.bf16 %v2452_v36, %v2452_v36  ;;  %4431 = vmatprep.subr.bf16.mxu0 %v4737_v3  ;;  %v3103_v44 = vsel %vm139_vm1, %v3098_v50, 0 }
 0x769   : > { %4416 = vmatmul.mubr.msk.bf16.vlgmr.msra.gmra.mxu1 %vm685_vm4, %v2460_v51 }
 0x76a   : > { %4426 = vmatpush3.bf16.xpose.msra.mxu1 %v2903_v45  ;;  %4427 = vmatprep.mubr.msk.bf16.mxu1 %vm4738_vm0, %v4737_v3  ;;  %v3048_v6 = vpop.permute.xlu0 %3047  ;;  %v3096_v40 = vpop.permute.xlu1 %3095 }
 0x76b   : > { %4437 = vmatprep.subr.bf16.mxu1 %v4737_v3  ;;  %v3053_v52 = vsel %vm139_vm1, %v3048_v6, 0 }
 0x76d   : > { %4422 = vmatmul.mubr.msk.bf16.vlgmr.msra.gmra.mxu0 %vm139_vm1, %v2846_v25 }
 0x76e   : > { %4432 = vmatpush3.bf16.xpose.msra.mxu0 %v2953_v9  ;;  %4433 = vmatprep.mubr.msk.bf16.mxu0 %vm4738_vm0, %v4737_v3  ;;  %v3046_v56 = vpop.permute.xlu0 %3045  ;;  %v3198_v41 = vpop.permute.xlu1 %3197 }
 0x76f   : > { %4443 = vmatprep.subr.bf16.mxu0 %v4737_v3  ;;  %v3203_v60 = vsel %vm139_vm1, %v3198_v41, 0 }
 0x771   : > { %4428 = vmatmul.mubr.msk.bf16.vlgmr.msra.gmra.mxu1 %vm139_vm1, %v2896_v26 }
 0x772   : > { %4438 = vmatpush3.bf16.xpose.msra.mxu1 %v3003_v43  ;;  %4439 = vmatprep.mubr.msk.bf16.mxu1 %vm4738_vm0, %v4737_v3  ;;  %v3148_v55 = vpop.permute.xlu0 %3147  ;;  %v3196_v10 = vpop.permute.xlu1 %3195 }
 0x773   : > { %4449 = vmatprep.subr.bf16.mxu1 %v4737_v3  ;;  %v3153_v59 = vsel %vm139_vm1, %v3148_v55, 0 }
 0x775   : > { %4434 = vmatmul.mubr.msk.bf16.vlgmr.msra.gmra.mxu0 %vm139_vm1, %v2946_v29 }
 0x776   : > { %4444 = vmatpush3.bf16.xpose.msra.mxu0 %v3053_v52  ;;  %4445 = vmatprep.mubr.msk.bf16.mxu0 %vm4738_vm0, %v4737_v3  ;;  %v3146_v5 = vpop.permute.xlu0 %3145  ;;  %v3350_v33 = vpop.permute.xlu1 %3349 }
 0x777   : > { %4455 = vmatprep.subr.bf16.mxu0 %v4737_v3  ;;  %v3355_v36 = vsel %vm689_vm2, %v3350_v33, 0 }
 0x779   : > { %4440 = vmatmul.mubr.msk.bf16.vlgmr.msra.gmra.mxu1 %vm139_vm1, %v2996_v0 }
 0x77a   : > { %4450 = vmatpush3.bf16.xpose.msra.mxu1 %v3103_v44  ;;  %4451 = vmatprep.mubr.msk.bf16.mxu1 %vm4738_vm0, %v4737_v3 }
 0x77b   : > { %4461 = vmatprep.subr.bf16.mxu1 %v4737_v3 }
 0x77d   : > { %4446 = vmatmul.mubr.msk.bf16.vlgmr.msra.gmra.mxu0 %vm139_vm1, %v3046_v56 }
 0x77e   : > { %4456 = vmatpush3.bf16.xpose.msra.mxu0 %v3153_v59  ;;  %4457 = vmatprep.mubr.msk.bf16.mxu0 %vm4738_vm0, %v4737_v3 }
 0x77f   : > { %4467 = vmatprep.subr.bf16.mxu0 %v4737_v3 }
 0x781   : > { %4452 = vmatmul.mubr.msk.bf16.vlgmr.msra.gmra.mxu1 %vm139_vm1, %v3096_v40 }
 0x782   : > { %4462 = vmatpush3.bf16.xpose.msra.mxu1 %v3203_v60  ;;  %4463 = vmatprep.mubr.msk.bf16.mxu1 %vm4738_vm0, %v4737_v3 }
 0x783   : > { %4473 = vmatprep.subr.bf16.mxu1 %v4737_v3 }
 0x785   : > { %4458 = vmatmul.mubr.msk.bf16.vlgmr.msra.gmra.mxu0 %vm139_vm1, %v3146_v5 }
 0x786   : > { %4469 = vmatprep.mubr.msk.bf16.mxu0 %vm4738_vm0, %v4737_v3  ;;  %4468 = vmatpush3.bf16.msra.mxu0 %v3355_v36 }
 0x787   : > { %4479 = vmatprep.subr.bf16.mxu0 %v4737_v3 }
 0x789   : > { %4464 = vmatmul.mubr.msk.bf16.vlgmr.msra.gmra.mxu1 %vm139_vm1, %v3196_v10 }
 0x78a   : > { %4475 = vmatprep.mubr.msk.bf16.mxu1 %vm4738_vm0, %v4737_v3 }
 0x7e0   : > { %v5401_v8 = vpop.f32.mrf.mxu0 }
 0x7e2   : > { %v4375_v30 = vpop.f32.mrf.mxu0 }
 0x7e4   : > { %v2506_v16 = vpop.f32.mrf.mxu0  ;;  %v5403_v19 = vpop.f32.mrf.mxu1 }
 0x7e5   : > { %v4560_v61 = vpack.i.bf16 %v5403_v19, %v5401_v8 }
 0x7e6   : > { %v4376_v46 = vpop.f32.mrf.mxu0  ;;  %v4381_v23 = vpop.f32.mrf.mxu1 }
 0x7e8   : > { %v2554_v24 = vpop.f32.mrf.mxu1  ;;  %v5407_v25 = vpop.f32.mrf.mxu0 }
 0x7ea   : > { %v4382_v26 = vpop.f32.mrf.mxu1  ;;  %v4387_v31 = vpop.f32.mrf.mxu0 }
 0x7ec   : > { %v2602_v28 = vpop.f32.mrf.mxu0  ;;  %v5409_v35 = vpop.f32.mrf.mxu1 }
 0x7ed   : > { %v4565_v32 = vpack.i.bf16 %v5409_v35, %v5407_v25 }
 0x7ee   : > { %v4388_v53 = vpop.f32.mrf.mxu0  ;;  %v4393_v63 = vpop.f32.mrf.mxu1 }
 0x7f0   : > { %v2650_v29 = vpop.f32.mrf.mxu1  ;;  %v5414_v45 = vpop.f32.mrf.mxu0 }
 0x7f2   : > { %v4394_v51 = vpop.f32.mrf.mxu1  ;;  %v4399_v0 = vpop.f32.mrf.mxu0 }
 0x7f4   : > { %v2698_v9 = vpop.f32.mrf.mxu0  ;;  %v5417_v6 = vpop.f32.mrf.mxu1 }
 0x7f5   : > { %v4570_v43 = vpack.i.bf16 %v5417_v6, %v5414_v45 }
 0x7f6   : > { %v4400_v50 = vpop.f32.mrf.mxu0  ;;  %v4405_v56 = vpop.f32.mrf.mxu1 }
 0x7f8   : > { %v2746_v52 = vpop.f32.mrf.mxu1 }
 0x7fa   : > { %v4406_v40 = vpop.f32.mrf.mxu1 }
 0x825   : > { %v5421_v44 = vpop.f32.mrf.mxu0 }
 0x827   : > { %v4411_v55 = vpop.f32.mrf.mxu0 }
 0x829   : > { %v2794_v59 = vpop.f32.mrf.mxu0  ;;  %v5423_v41 = vpop.f32.mrf.mxu1 }
 0x82a   : > { %v4575_v60 = vpack.i.bf16 %v5423_v41, %v5421_v44 }
 0x82b   : > { %v4412_v5 = vpop.f32.mrf.mxu0  ;;  %v4417_v10 = vpop.f32.mrf.mxu1 }
 0x82d   : > { %v2842_v30 = vpop.f32.mrf.mxu1  ;;  %v2889_v16 = vpop.f32.mrf.mxu0 }
 0x82e   : > { %v3245_v46 = vmul.f32 0.35355338, %v2889_v16 }
 0x82f   : > { %v4418_v23 = vpop.f32.mrf.mxu1  ;;  %v4423_v24 = vpop.f32.mrf.mxu0 }
 0x830   : > { %v3253_v26 = vsel %vm586_vm3, %v3245_v46, -inf }
 0x831   : > { %v2939_v31 = vpop.f32.mrf.mxu1  ;;  %3254 = vmax.xlane.f32.xlu0 %v3253_v26  ;;  %v2892_v28 = vpop.f32.mrf.mxu0 }
 0x832   : > { %v3246_v33 = vmul.f32 0.35355338, %v2939_v31 }
 0x833   : > { %v4424_v53 = vpop.f32.mrf.mxu0  ;;  %v4429_v63 = vpop.f32.mrf.mxu1 }
 0x834   : > { %v3256_v36 = vsel %vm586_vm3, %v3246_v33, -inf }
 0x835   : > { %3257 = vmax.xlane.f32.xlu1 %v3256_v36  ;;  %v2942_v29 = vpop.f32.mrf.mxu1  ;;  %v2989_v51 = vpop.f32.mrf.mxu0 }
 0x836   : > { %v3247_v0 = vmul.f32 0.35355338, %v2989_v51 }
 0x837   : > { %v4430_v9 = vpop.f32.mrf.mxu1  ;;  %v4435_v50 = vpop.f32.mrf.mxu0 }
 0x838   : > { %v3259_v56 = vsel %vm586_vm3, %v3247_v0, -inf }
 0x839   : > { %v3039_v52 = vpop.f32.mrf.mxu1  ;;  %3260 = vmax.xlane.f32.xlu0 %v3259_v56  ;;  %v2992_v40 = vpop.f32.mrf.mxu0 }
 0x83a   : > { %v3248_v55 = vmul.f32 0.35355338, %v3039_v52 }
 0x83b   : > { %v4436_v59 = vpop.f32.mrf.mxu0  ;;  %v4441_v5 = vpop.f32.mrf.mxu1 }
 0x83c   : > { %v3262_v10 = vsel %vm586_vm3, %v3248_v55, -inf }
 0x83d   : > { %v3042_v30 = vpop.f32.mrf.mxu1  ;;  %3263 = vmax.xlane.f32.xlu0 %v3262_v10  ;;  %v3089_v16 = vpop.f32.mrf.mxu0 }
 0x83e   : > { %v5431_v23 = vmul.f32 0.35355338, %v3089_v16 }
 0x83f   : > { %v4442_v24 = vpop.f32.mrf.mxu1  ;;  %v4447_v26 = vpop.f32.mrf.mxu0 }
 0x840   : > { %v3265_v31 = vsel %vm586_vm3, %v5431_v23, -inf }
 0x841   : > { %v3139_v28 = vpop.f32.mrf.mxu1  ;;  %3266 = vmax.xlane.f32.xlu1 %v3265_v31  ;;  %v3092_v53 = vpop.f32.mrf.mxu0 }
 0x842   : > { %v5435_v63 = vmul.f32 0.35355338, %v3139_v28 }
 0x843   : > { %v4448_v36 = vpop.f32.mrf.mxu0  ;;  %v4453_v29 = vpop.f32.mrf.mxu1 }
 0x844   : > { %v3268_v51 = vsel %vm586_vm3, %v5435_v63, -inf }
 0x845   : > { %v3142_v9 = vpop.f32.mrf.mxu1  ;;  %3269 = vmax.xlane.f32.xlu0 %v3268_v51  ;;  %v3189_v50 = vpop.f32.mrf.mxu0 }
 0x846   : > { %v3251_v56 = vmul.f32 0.35355338, %v3189_v50 }
 0x847   : > { %v4454_v52 = vpop.f32.mrf.mxu1  ;;  %v4459_v40 = vpop.f32.mrf.mxu0 }
 0x848   : > { %v3271_v59 = vsel %vm586_vm3, %v3251_v56, -inf }
 0x849   : > { %v3239_v5 = vpop.f32.mrf.mxu1  ;;  %3272 = vmax.xlane.f32.xlu1 %v3271_v59  ;;  %v3192_v10 = vpop.f32.mrf.mxu0 }
 0x84a   : > { %v3252_v30 = vmul.f32 0.35355338, %v3239_v5 }
 0x84b   : > { %v4465_v16 = vpop.f32.mrf.mxu1  ;;  %v4460_v24 = vpop.f32.mrf.mxu0 }
 0x84c   : > { %v3274_v26 = vsel %vm586_vm3, %v3252_v30, -inf }
 0x84d   : > { %3275 = vmax.xlane.f32.xlu0 %v3274_v26  ;;  %v3242_v31 = vpop.f32.mrf.mxu1 }
 0x84f   : > { %v4466_v28 = vpop.f32.mrf.mxu1 }
 0x85a   : > { %3445 = vrot.lane.b32.xlu1 %v4787_v11, %s4749_s23 }
 0x85e   : > { %3493 = vrot.lane.b32.xlu1 %v4793_v14, %s4749_s23 }
 0x863   : > { %3397 = vrot.lane.b32.xlu0 %v4790_v13, %s4749_s23 }
 0x8ba   : > { %v3255_v53 = vpop.xlane.xlu0 %3254 }
 0x8bb   : > { %v3277_v36 = vsub.f32 %v3245_v46, %v3255_v53 }
 0x8bd   : > { %v3285_v29 = vmul.f32 1.442695, %v3277_v36 }
 0x8be   : > { %v3258_v51 = vpop.xlane.xlu1 %3257 }
 0x8bf   : > { %4696 = vpow2.f32 %v3285_v29  ;;  %v3278_v9 = vsub.f32 %v3246_v33, %v3258_v51 }
 0x8c1   : > { %v3287_v50 = vmul.f32 1.442695, %v3278_v9 }
 0x8c2   : > { %v3261_v52 = vpop.xlane.xlu0 %3260 }
 0x8c3   : > { %4698 = vpow2.f32 %v3287_v50  ;;  %v3279_v40 = vsub.f32 %v3247_v0, %v3261_v52 }
 0x8c5   : > { %v3289_v59 = vmul.f32 1.442695, %v3279_v40 }
 0x8c6   : > { %v3264_v5 = vpop.xlane.xlu0 %3263 }
 0x8c7   : > { %4700 = vpow2.f32 %v3289_v59  ;;  %v3280_v11 = vsub.f32 %v3248_v55, %v3264_v5 }
 0x8c9   : > { %v3291_v10 = vmul.f32 1.442695, %v3280_v11 }
 0x8ca   : > { %v3267_v36 = vpop.xlane.xlu1 %3266 }
 0x8cb   : > { %4702 = vpow2.f32 %v3291_v10  ;;  %v3281_v29 = vsub.f32 %v5431_v23, %v3267_v36 }
 0x8cc   : > { %v5447_v14 = vpop.eup %4696 }
 0x8cd   : > { %v3301_v13 = vsel %vm586_vm3, %v5447_v14, 0.0  ;;  %v3293_v50 = vmul.f32 1.442695, %v3281_v29 }
 0x8ce   : > { %3302 = vadd.xlane.f32.xlu1 %v3301_v13  ;;  %v3270_v16 = vpop.xlane.xlu0 %3269 }
 0x8cf   : > { %v3282_v9 = vsub.f32 %v5435_v63, %v3270_v16  ;;  %4704 = vpow2.f32 %v3293_v50 }
 0x8d0   : > { %v5451_v46 = vpop.eup %4698 }
 0x8d1   : > { %v3304_v33 = vsel %vm586_vm3, %v5451_v46, 0.0  ;;  %v3295_v40 = vmul.f32 1.442695, %v3282_v9 }
 0x8d2   : > { %3305 = vadd.xlane.f32.xlu0 %v3304_v33  ;;  %v3273_v51 = vpop.xlane.xlu1 %3272 }
 0x8d3   : > { %v3283_v52 = vsub.f32 %v3251_v56, %v3273_v51  ;;  %4706 = vpow2.f32 %v3295_v40 }
 0x8d4   : > { %v5455_v0 = vpop.eup %4700 }
 0x8d5   : > { %v3307_v55 = vsel %vm586_vm3, %v5455_v0, 0.0  ;;  %v3297_v59 = vmul.f32 1.442695, %v3283_v52 }
 0x8d6   : > { %3308 = vadd.xlane.f32.xlu1 %v3307_v55  ;;  %v3276_v24 = vpop.xlane.xlu0 %3275 }
 0x8d7   : > { %v3284_v5 = vsub.f32 %v3252_v30, %v3276_v24  ;;  %4708 = vpow2.f32 %v3297_v59 }
 0x8d8   : > { %v5459_v26 = vpop.eup %4702 }
 0x8d9   : > { %v3310_v31 = vsel %vm586_vm3, %v5459_v26, 0.0  ;;  %v3299_v11 = vmul.f32 1.442695, %v3284_v5 }
 0x8da   : > { %3311 = vadd.xlane.f32.xlu0 %v3310_v31  ;;  %v3398_v28 = vpop.permute.xlu0 %3397 }
 0x8db   : > { %v3403_v53 = vsel %vm689_vm2, %v3398_v28, 0  ;;  %4710 = vpow2.f32 %v3299_v11 }
 0x8dc   : > { %4474 = vmatpush3.bf16.msra.mxu1 %v3403_v53 }
 0x8dd   : > { %4485 = vmatprep.subr.bf16.mxu1 %v4737_v3 }
 0x8e7   : > { %3589 = vrot.lane.b32.xlu1 %v4799_v18, %s4749_s23  ;;  %v5471_v18 = vpop.eup %4704 }
 0x8e8   : > { %v5473_v10 = vpop.eup %4706 }
 0x8e9   : > { %v5477_v23 = vpop.eup %4708  ;;  %v3316_v56 = vsel %vm586_vm3, %v5473_v10, 0.0 }
 0x8ea   : > { %v3319_v63 = vsel %vm586_vm3, %v5477_v23, 0.0  ;;  %v5483_v30 = vpop.eup %4710 }
 0x8eb   : > { %v3322_v13 = vsel %vm586_vm3, %v5483_v30, 0.0 }
 0x8f0   : > { %3541 = vrot.lane.b32.xlu0 %v4797_v17, %s4749_s23  ;;  %v3313_v17 = vsel %vm586_vm3, %v5471_v18, 0.0 }
 0x90b   : > { %3314 = vadd.xlane.f32.xlu1 %v3313_v17 }
 0x90f   : > { %3320 = vadd.xlane.f32.xlu1 %v3319_v63  ;;  %3317 = vadd.xlane.f32.xlu0 %v3316_v56 }
 0x913   : > { %3323 = vadd.xlane.f32.xlu0 %v3322_v13 }
 0x920   : > { %3685 = vrot.lane.b32.xlu1 %v4805_v22, %s4749_s23 }
 0x924   : > { %4546 = vrot.lane.b32.xlu1 %v4545_v48, %s4750_s24 }
 0x928   : > { %4556 = vrot.lane.b32.xlu1 %v4555_v20, %s4750_s24 }
 0x929   : > { %3637 = vrot.lane.b32.xlu0 %v4803_v21, %s4749_s23  ;;  %v3446_v21 = vpop.permute.xlu1 %3445 }
 0x92c   : > { %4566 = vrot.lane.b32.xlu1 %v4565_v32, %s4751_s25 }
 0x92d   : > { %4541 = vrot.lane.b32.xlu0 %v4540_v7, %s4750_s24  ;;  %v3494_v22 = vpop.permute.xlu1 %3493 }
 0x92e   : > { %v3499_v8 = vsel %vm689_vm2, %v3494_v22, 0 }
 0x930   : > { %4576 = vrot.lane.b32.xlu1 %v4575_v60, %s4751_s25 }
 0x931   : > { %4551 = vrot.lane.b32.xlu0 %v4550_v57, %s4750_s24  ;;  %v3451_v57 = vsel %vm689_vm2, %v3446_v21, 0 }
 0x935   : > { %4561 = vrot.lane.b32.xlu0 %v4560_v61, %s4751_s25 }
 0x939   : > { %4571 = vrot.lane.b32.xlu0 %v4570_v43, %s4751_s25 }
 0x957   : > { %v3303_v38 = vpop.xlane.xlu1 %3302 }
 0x958   : > { %4712 = vrcp.f32 %v3303_v38 }
 0x95b   : > { %v3306_v12 = vpop.xlane.xlu0 %3305 }
 0x95c   : > { %4714 = vrcp.f32 %v3306_v12 }
 0x95f   : > { %v3309_v7 = vpop.xlane.xlu1 %3308 }
 0x960   : > { %4716 = vrcp.f32 %v3309_v7 }
 0x963   : > { %v3312_v27 = vpop.xlane.xlu0 %3311  ;;  %v3590_v6 = vpop.permute.xlu1 %3589 }
 0x964   : > { %4718 = vrcp.f32 %v3312_v27  ;;  %v3595_v44 = vsel %vm689_vm2, %v3590_v6, 0 }
 0x965   : > { %v4713_v47 = vpop.eup %4712 }
 0x966   : > { %v3333_v48 = vmul.f32 %v4713_v47, %v5447_v14 }
 0x967   : > { %v3542_v61 = vpop.permute.xlu0 %3541 }
 0x968   : > { %v3341_v49 = vpack.c.bf16 %v3333_v48, %v3333_v48  ;;  %v3547_v45 = vsel %vm689_vm2, %v3542_v61, 0 }
 0x969   : > { %v4715_v4 = vpop.eup %4714 }
 0x96a   : > { %v3334_v15 = vmul.f32 %v4715_v4, %v5451_v46  ;;  %4470 = vmatmul.mubr.msk.bf16.vlgmr.msra.gmra.mxu0 %vm685_vm4, %v3341_v49 }
 0x96b   : > { %4480 = vmatpush3.bf16.msra.mxu0 %v3451_v57  ;;  %4481 = vmatprep.mubr.msk.bf16.mxu0 %vm4738_vm0, %v4737_v3 }
 0x96c   : > { %v3342_v2 = vpack.c.bf16 %v3334_v15, %v3334_v15  ;;  %4491 = vmatprep.subr.bf16.mxu0 %v4737_v3 }
 0x96d   : > { %v4717_v20 = vpop.eup %4716 }
 0x96e   : > { %v3335_v19 = vmul.f32 %v4717_v20, %v5455_v0  ;;  %4476 = vmatmul.mubr.msk.bf16.vlgmr.msra.gmra.mxu1 %vm685_vm4, %v3342_v2 }
 0x96f   : > { %4486 = vmatpush3.bf16.msra.mxu1 %v3499_v8  ;;  %4487 = vmatprep.mubr.msk.bf16.mxu1 %vm4738_vm0, %v4737_v3 }
 0x970   : > { %v3343_v25 = vpack.c.bf16 %v3335_v19, %v3335_v19  ;;  %4497 = vmatprep.subr.bf16.mxu1 %v4737_v3 }
 0x971   : > { %v4719_v35 = vpop.eup %4718 }
 0x972   : > { %v3336_v32 = vmul.f32 %v4719_v35, %v5459_v26  ;;  %4482 = vmatmul.mubr.msk.bf16.vlgmr.msra.gmra.mxu0 %vm685_vm4, %v3343_v25 }
 0x973   : > { %4492 = vmatpush3.bf16.msra.mxu0 %v3547_v45  ;;  %4493 = vmatprep.mubr.msk.bf16.mxu0 %vm4738_vm0, %v4737_v3 }
 0x974   : > { %v3344_v43 = vpack.c.bf16 %v3336_v32, %v3336_v32  ;;  %4503 = vmatprep.subr.bf16.mxu0 %v4737_v3 }
 0x976   : > { %4488 = vmatmul.mubr.msk.bf16.vlgmr.msra.gmra.mxu1 %vm685_vm4, %v3344_v43 }
 0x977   : > { %4498 = vmatpush3.bf16.msra.mxu1 %v3595_v44  ;;  %4499 = vmatprep.mubr.msk.bf16.mxu1 %vm4738_vm0, %v4737_v3 }
 0x978   : > { %4509 = vmatprep.subr.bf16.mxu1 %v4737_v3 }
 0x994   : > { %v3315_v41 = vpop.xlane.xlu1 %3314 }
 0x995   : > { %4720 = vrcp.f32 %v3315_v41 }
 0x998   : > { %v3321_v60 = vpop.xlane.xlu1 %3320  ;;  %v3318_v14 = vpop.xlane.xlu0 %3317 }
 0x999   : > { %4722 = vrcp.f32 %v3321_v60 }
 0x99a   : > { %4724 = vrcp.f32 %v3318_v14 }
 0x99c   : > { %v3686_v46 = vpop.permute.xlu1 %3685  ;;  %v3324_v33 = vpop.xlane.xlu0 %3323 }
 0x99d   : > { %4726 = vrcp.f32 %v3324_v33  ;;  %v3691_v5 = vsel %vm689_vm2, %v3686_v46, 0 }
 0x9a0   : > { %v5539_v16 = vpop.permute.xlu1 %4546  ;;  %v3638_v0 = vpop.permute.xlu0 %3637 }
 0x9a1   : > { %v3643_v53 = vsel %vm689_vm2, %v3638_v0, 0 }
 0x9a2   : > { %v4721_v55 = vpop.eup %4720 }
 0x9a3   : > { %v3337_v24 = vmul.f32 %v4721_v55, %v5471_v18 }
 0x9a4   : > { %v4557_v26 = vpop.permute.xlu1 %4556  ;;  %v5542_v31 = vpop.permute.xlu0 %4541 }
 0x9a5   : > { %v3345_v28 = vpack.c.bf16 %v3337_v24, %v3337_v24  ;;  %v4559_v40 = vunpack.i.h.bf16 %v4557_v26  ;;  %v4558_v11 = vunpack.i.l.bf16 %v4557_v26 }
 0x9a6   : > { %v4723_v36 = vpop.eup %4722 }
 0x9a7   : > { %v4725_v29 = vpop.eup %4724  ;;  %4494 = vmatmul.mubr.msk.bf16.vlgmr.msra.gmra.mxu0 %vm685_vm4, %v3345_v28  ;;  %v3339_v52 = vmul.f32 %v4723_v36, %v5477_v23  ;;  %v3836_v56 = vsel %vm139_vm1, %v5045_v1, %v4559_v40  ;;  %v3835_v22 = vsel %vm139_vm1, %v5043_v62, %v4558_v11 }
 0x9a8   : > { %v3338_v51 = vmul.f32 %v4725_v29, %v5473_v10  ;;  %v5547_v9 = vpop.permute.xlu1 %4566  ;;  %v4552_v50 = vpop.permute.xlu0 %4551  ;;  %4504 = vmatpush3.bf16.msra.mxu0 %v3643_v53  ;;  %4505 = vmatprep.mubr.msk.bf16.mxu0 %vm4738_vm0, %v4737_v3 }
 0x9a9   : > { %v3347_v63 = vpack.c.bf16 %v3339_v52, %v3339_v52  ;;  %v4554_v38 = vunpack.i.h.bf16 %v4552_v50  ;;  %v4553_v12 = vunpack.i.l.bf16 %v4552_v50 }
 0x9aa   : > { %v3346_v59 = vpack.c.bf16 %v3338_v51, %v3338_v51  ;;  %v4727_v18 = vpop.eup %4726 }
 0x9ab   : > { %v3340_v23 = vmul.f32 %v4727_v18, %v5483_v30  ;;  %v3833_v62 = vsel %vm139_vm1, %v5036_v54, %v4553_v12  ;;  %v4544_v18 = vunpack.i.h.bf16 %v5542_v31 }
 0x9ac   : > { %4500 = vmatmul.mubr.msk.bf16.vlgmr.msra.gmra.mxu1 %vm685_vm4, %v3346_v59  ;;  %v4577_v17 = vpop.permute.xlu1 %4576  ;;  %v5554_v10 = vpop.permute.xlu0 %4561 }
 0x9ad   : > { %v4579_v13 = vunpack.i.h.bf16 %v4577_v17  ;;  %v4578_v21 = vunpack.i.l.bf16 %v4577_v17  ;;  %4510 = vmatpush3.bf16.msra.mxu1 %v3691_v5  ;;  %4511 = vmatprep.mubr.msk.bf16.mxu1 %vm4738_vm0, %v4737_v3  ;;  %v3348_v49 = vpack.c.bf16 %v3340_v23, %v3340_v23  ;;  %v3834_v3 = vsel %vm139_vm1, %v5041_v58, %v4554_v38 }
 0x9ae   : > { %v4543_v17 = vunpack.i.l.bf16 %v5542_v31 }
 0x9af   : > { %v5564_v7 = vsel %vm3837_vm5, %v3835_v22, %v4578_v21  ;;  %v5567_v27 = vsel %vm3837_vm5, %v3836_v56, %v4579_v13  ;;  %4506 = vmatmul.mubr.msk.bf16.vlgmr.msra.gmra.mxu0 %vm685_vm4, %v3347_v63  ;;  %v4564_v63 = vunpack.i.h.bf16 %v5554_v10  ;;  %v4563_v56 = vunpack.i.l.bf16 %v5554_v10 }
 0x9b0   : > { %v4572_v1 = vpop.permute.xlu0 %4571  ;;  %v3830_v21 = vsel %vm139_vm1, %v5029_v39, %v4544_v18  ;;  %v3829_v23 = vsel %vm139_vm1, %v5027_v34, %v4543_v17 }
 0x9b1   : > { %v4574_v47 = vunpack.i.h.bf16 %v4572_v1  ;;  %v4573_v48 = vunpack.i.l.bf16 %v4572_v1  ;;  %v3838_v12 = vsel %vm3837_vm5, %v3829_v23, %v4563_v56  ;;  %v3839_v1 = vsel %vm3837_vm5, %v3830_v21, %v4564_v63 }
 0x9b3   : > { %v5575_v30 = vsel %vm3837_vm5, %v3833_v62, %v4573_v48  ;;  %v5578_v4 = vsel %vm3837_vm5, %v3834_v3, %v4574_v47  ;;  %v4549_v47 = vunpack.i.h.bf16 %v5539_v16  ;;  %v4548_v48 = vunpack.i.l.bf16 %v5539_v16 }
 0x9b4   : > { %4512 = vmatmul.mubr.msk.bf16.vlgmr.msra.gmra.mxu1 %vm685_vm4, %v3348_v49  ;;  %v4569_v49 = vunpack.i.h.bf16 %v5547_v9  ;;  %v4568_v3 = vunpack.i.l.bf16 %v5547_v9 }
 0xa2a   : > { %v3391_v57 = vpop.f32.mrf.mxu0 }
 0xa2c   : > { %v4471_v15 = vpop.f32.mrf.mxu0 }
 0xa2d   : > { %v3831_v15 = vsel %vm139_vm1, %v5031_v42, %v4548_v48 }
 0xa2e   : > { %v3394_v2 = vpop.f32.mrf.mxu0  ;;  %v3439_v20 = vpop.f32.mrf.mxu1  ;;  %v3840_v16 = vsel %vm3837_vm5, %v3831_v15, %v4568_v3 }
 0xa2f   : > { %v4580_v8 = vpack.i.bf16 %v3439_v20, %v3391_v57  ;;  %v3832_v57 = vsel %vm139_vm1, %v5033_v37, %v4549_v47 }
 0xa30   : > { %v4472_v19 = vpop.f32.mrf.mxu0  ;;  %v4477_v61 = vpop.f32.mrf.mxu1 }
 0xa31   : > { %4581 = vrot.lane.b32.xlu0 %v4580_v8, %s4752_s26  ;;  %v3841_v8 = vsel %vm3837_vm5, %v3832_v57, %v4569_v49 }
 0xa32   : > { %v3442_v58 = vpop.f32.mrf.mxu1  ;;  %v3487_v54 = vpop.f32.mrf.mxu0 }
 0xa34   : > { %v4478_v25 = vpop.f32.mrf.mxu1  ;;  %v4483_v35 = vpop.f32.mrf.mxu0 }
 0xa36   : > { %v3490_v32 = vpop.f32.mrf.mxu0  ;;  %v3535_v45 = vpop.f32.mrf.mxu1 }
 0xa37   : > { %v4585_v6 = vpack.i.bf16 %v3535_v45, %v3487_v54 }
 0xa38   : > { %v4484_v43 = vpop.f32.mrf.mxu0  ;;  %v4489_v44 = vpop.f32.mrf.mxu1 }
 0xa39   : > { %4586 = vrot.lane.b32.xlu1 %v4585_v6, %s4752_s26 }
 0xa3a   : > { %v3538_v41 = vpop.f32.mrf.mxu1 }
 0xa3c   : > { %v4490_v60 = vpop.f32.mrf.mxu1 }
 0xa67   : > { %v3583_v14 = vpop.f32.mrf.mxu0 }
 0xa69   : > { %v4495_v46 = vpop.f32.mrf.mxu0 }
 0xa6b   : > { %v3586_v33 = vpop.f32.mrf.mxu0 }
 0xa6c   : > { %v3631_v0 = vpop.f32.mrf.mxu1 }
 0xa6d   : > { %v4590_v55 = vpack.i.bf16 %v3631_v0, %v3583_v14  ;;  %v4496_v24 = vpop.f32.mrf.mxu0 }
 0xa6e   : > { %v4501_v26 = vpop.f32.mrf.mxu1 }
 0xa6f   : > { %4591 = vrot.lane.b32.xlu0 %v4590_v55, %s4752_s26  ;;  %v3679_v28 = vpop.f32.mrf.mxu0 }
 0xa70   : > { %v3634_v53 = vpop.f32.mrf.mxu1 }
 0xa71   : > { %v4507_v36 = vpop.f32.mrf.mxu0 }
 0xa72   : > { %v4502_v29 = vpop.f32.mrf.mxu1 }
 0xa73   : > { %v3682_v51 = vpop.f32.mrf.mxu0 }
 0xa74   : > { %v3727_v50 = vpop.f32.mrf.mxu1 }
 0xa75   : > { %v4595_v52 = vpack.i.bf16 %v3727_v50, %v3679_v28  ;;  %v4508_v40 = vpop.f32.mrf.mxu0 }
 0xa76   : > { %v4513_v59 = vpop.f32.mrf.mxu1 }
 0xa77   : > { %4596 = vrot.lane.b32.xlu1 %v4595_v52, %s4752_s26 }
 0xa78   : > { %v3730_v5 = vpop.f32.mrf.mxu1 }
 0xa7a   : > { %v4514_v11 = vpop.f32.mrf.mxu1 }
 0xaa3   : > { %v4582_v13 = vpop.permute.xlu0 %4581 }
 0xaa4   : > { %v4584_v22 = vunpack.i.h.bf16 %v4582_v13  ;;  %v4583_v38 = vunpack.i.l.bf16 %v4582_v13 }
 0xaa6   : > { %v3847_v39 = vsel %vm3846_vm6, %v3838_v12, %v4583_v38  ;;  %v3848_v31 = vsel %vm3846_vm6, %v3839_v1, %v4584_v22 }
 0xaa7   : > { %v3855_v34 = vpack.c.bf16 %v3847_v39, %v3847_v39  ;;  %v3856_v10 = vpack.c.bf16 %v3848_v31, %v3848_v31 }
 0xaa9   : > { %3864 = vst.msk [vmem:[%s5600_s29] sm:$0x3] %vm3863_vm7, %v3855_v34  ;;  %3865 = vst.msk [vmem:[%s5600_s29 + $0x2] sm:$0x3] %vm3863_vm7, %v3856_v10 }
 0xaab   : > { %v4587_v62 = vpop.permute.xlu1 %4586 }
 0xaac   : > { %v4589_v2 = vunpack.i.h.bf16 %v4587_v62  ;;  %v4588_v20 = vunpack.i.l.bf16 %v4587_v62 }
 0xaae   : > { %v3850_v9 = vsel %vm3846_vm6, %v3841_v8, %v4589_v2  ;;  %v3849_v19 = vsel %vm3846_vm6, %v3840_v16, %v4588_v20 }
 0xaaf   : > { %v3858_v61 = vpack.c.bf16 %v3850_v9, %v3850_v9  ;;  %v3857_v58 = vpack.c.bf16 %v3849_v19, %v3849_v19 }
 0xab1   : > { %3867 = vst.msk [vmem:[%s5600_s29 + $0x6] sm:$0x3] %vm3863_vm7, %v3858_v61  ;;  %3866 = vst.msk [vmem:[%s5600_s29 + $0x4] sm:$0x3] %vm3863_vm7, %v3857_v58 }
 0xae1   : > { %v4592_v37 = vpop.permute.xlu0 %4591 }
 0xae2   : > { %v4594_v42 = vunpack.i.h.bf16 %v4592_v37  ;;  %v4593_v54 = vunpack.i.l.bf16 %v4592_v37 }
 0xae4   : > { %v3851_v25 = vsel %vm3846_vm6, %v5575_v30, %v4593_v54  ;;  %v3852_v35 = vsel %vm3846_vm6, %v5578_v4, %v4594_v42 }
 0xae5   : > { %v3859_v32 = vpack.c.bf16 %v3851_v25, %v3851_v25  ;;  %v3860_v45 = vpack.c.bf16 %v3852_v35, %v3852_v35 }
 0xae7   : > { %3868 = vst.msk [vmem:[%s5600_s29 + $0x8] sm:$0x3] %vm3863_vm7, %v3859_v32  ;;  %3869 = vst.msk [vmem:[%s5600_s29 + $0xa] sm:$0x3] %vm3863_vm7, %v3860_v45 }
 0xae9   : > { %v4597_v6 = vpop.permute.xlu1 %4596 }
 0xaea   : > { %v4599_v43 = vunpack.i.h.bf16 %v4597_v6  ;;  %v4598_v44 = vunpack.i.l.bf16 %v4597_v6 }
 0xaec   : > { %v3854_v41 = vsel %vm3846_vm6, %v5567_v27, %v4599_v43  ;;  %v3853_v60 = vsel %vm3846_vm6, %v5564_v7, %v4598_v44 }
 0xaed   : > { %v3862_v14 = vpack.c.bf16 %v3854_v41, %v3854_v41  ;;  %v3861_v30 = vpack.c.bf16 %v3853_v60, %v3853_v60 }
 0xaef   : > { %3871 = vst.msk [vmem:[%s5600_s29 + $0xe] sm:$0x3] %vm3863_vm7, %v3862_v14  ;;  %3870 = vst.msk [vmem:[%s5600_s29 + $0xc] sm:$0x3] %vm3863_vm7, %v3861_v30 }
 0xaf0 PF: > { %s11_s6 = sadd.s32 1, %s4734_s6  }
 0xaf1   : > { %p8_p4 = scmp.ge.s32.totalorder %s11_s6, 4  }
 0xaf3   :  { %10 = sbr.rel (!%p8_p4) target bundleno = 1 (0x1), region = 54 }

// kernel: transformer_forward.38
= control target key start
LH: loop header
LB: loop body
LE: loop exit
PB: predicated region body
PF: predicated region fallthrough
CT: control target
= control target key end

     0   :  { %s583_s18 = smov 0   ;;  %s635_s0 = inlined_call_operand.vmem [shape: bf16[64,32], index: 0, kind: input, shape index: {}]   ;;  %s636_s1 = inlined_call_operand.vmem [shape: bf16[32,8], index: 1, kind: input, shape index: {}]   ;;  %s637_s2 = inlined_call_operand.vmem [shape: f32[1,8], index: 2, kind: input, shape index: {}]   ;;  %s638_s3 = inlined_call_operand.vmem [shape: bf16[8,32], index: 3, kind: input, shape index: {}]   ;;  %s639_s4 = inlined_call_operand.vmem [shape: f32[1,32], index: 4, kind: input, shape index: {}]   ;;  %s640_s5 = inlined_call_operand.vmem [shape: f32[64,32], index: 5, kind: output, shape index: {}]  }
   0x1 LB: > { %s480_s19 = sadd.s32 4294967295, %s551_s18   ;;  %p484_p0 = scmp.ge.s32.totalorder %s551_s18, 1  ;;  %s551_s18 = sphi %s583_s18, %s15_s18  }
   0x2   : > { %p188_p1 = scmp.lt.s32.totalorder %s551_s18, 3 }
   0x4   : > { %p189_p2 = pnand %p484_p0, %p188_p1 }
   0x5   : > { %s485_s22 = sshll.u32 (!%p189_p2), %s480_s19, 2 }
   0x6   : > { %192 = sbr.rel (%p189_p2) target bundleno = 448 (0x1c0), region = 40  ;;  %p217_p3 = scmp.lt.s32.totalorder (!%p189_p2), %s485_s22, 7 }
   0xb   : > { %v531_v0 = vld [vmem:[%s636_s1 + $0x8] sm:$0xff]   ;;  %v532_v1 = vld [vmem:[%s636_s1] sm:$0xff]   ;;  %s642_s22 = smov (!%p217_p3, %s485_s22), 7  ;;  %vm266_vm0 = vcmask 261120   ;;  %vm359_vm1 = vcmask 1043456   ;;  %vm352_vm2 = vcmask 64512  }
   0xc   : > { %508 = vmatprep.subr.bf16.mxu0 %v531_v0  ;;  %s486_s25 = sshll.u32 %s642_s22, 2  ;;  %v344_v4 = vld [vmem:[%s638_s3] sm:$0xf]  ;;  %s488_s8 = sshll.u32 %s642_s22, 3 }
   0xd   : > { %509 = vmatpush3.bf16.msra.mxu0 %v531_v0  ;;  %s220_s28 = scalar_lea.vmem %s635_s0, %s486_s25  ;;  %522 = vmatprep.subr.msk.bf16.mxu1 %vm359_vm1, %v344_v4  ;;  %v361_v5 = vsel %vm359_vm1, %v344_v4, 0  ;;  %v489_v6 = vld [vmem:[%s637_s2] ss:$0 sm:$0xff]  ;;  %s226_s13 = scalar_lea.vmem %s640_s5, %s488_s8 }
   0xe   : > { %510 = vmatprep.subr.bf16.mxu0 %v532_v1  ;;  %v603_v2 = vld [vmem:[%s220_s28] sm:$0xff]   ;;  %v605_v3 = vld [vmem:[%s220_s28 + $0x8] sm:$0xff]   ;;  %517 = vmatpush3.bf16.msra.mxu1 %v361_v5 }
   0xf   : > { %512 = vmatprep.mubr.msk.bf16.mxu0 %vm266_vm0, %v603_v2  ;;  %v412_v38 = vunpack.c.l.bf16 %v603_v2  ;;  %v496_v39 = vld [vmem:[%s639_s4] ss:$0 sm:$0xff]  ;;  %v413_v43 = vunpack.c.h.bf16 %v603_v2  ;;  %v414_v46 = vunpack.c.l.bf16 %v605_v3  ;;  %v415_v49 = vunpack.c.h.bf16 %v605_v3 }
  0x11   : > { %511 = vmatpush3.bf16.msra.mxu0 %v532_v1 }
  0x14   : > { %513 = vmatmul.mubr.msk.bf16.vlgmr.msra.gmra.mxu0 %vm266_vm0, %v605_v3 }
  0xd4   : > { %v514_v7 = vpop.f32.mrf.mxu0 }
  0xd5   : > { %v316_v8 = vadd.f32 %v514_v7, %v489_v6 }
  0xd6   : > { %v307_v9 = vpop.f32.mrf.mxu0 }
  0xd7   : > { %v308_v10 = vadd.f32 %v489_v6, %v307_v9  ;;  %v328_v11 = vmul.f32 0.70710677, %v316_v8  ;;  %v324_v30 = vmul.f32 0.5, %v316_v8 }
  0xd8   : > { %v515_v12 = vpop.f32.mrf.mxu0 }
  0xd9   : > { %v326_v13 = vmul.f32 0.70710677, %v308_v10  ;;  %v319_v14 = vadd.f32 %v515_v12, %v489_v6  ;;  %v322_v27 = vmul.f32 0.5, %v308_v10 }
  0xda   : > { %v310_v15 = vpop.f32.mrf.mxu0 }
  0xdb   : > { %537 = verf.f32 %v326_v13  ;;  %v329_v16 = vmul.f32 0.70710677, %v319_v14  ;;  %v311_v17 = vadd.f32 %v489_v6, %v310_v15  ;;  %v325_v26 = vmul.f32 0.5, %v319_v14 }
  0xdc   : > { %539 = verf.f32 %v328_v11 }
  0xdd   : > { %541 = verf.f32 %v329_v16  ;;  %v327_v18 = vmul.f32 0.70710677, %v311_v17  ;;  %v323_v28 = vmul.f32 0.5, %v311_v17 }
  0xdf   : > { %543 = verf.f32 %v327_v18 }
  0xe8   : > { %v538_v19 = vpop.eup %537 }
  0xe9   : > { %v540_v20 = vpop.eup %539  ;;  %v334_v23 = vadd.f32 1.0, %v538_v19 }
  0xea   : > { %v542_v21 = vpop.eup %541  ;;  %v336_v25 = vadd.f32 1.0, %v540_v20 }
  0xeb   : > { %v337_v22 = vadd.f32 1.0, %v542_v21  ;;  %v338_v32 = vmul.f32 %v334_v23, %v322_v27 }
  0xec   : > { %v544_v24 = vpop.eup %543  ;;  %v340_v34 = vmul.f32 %v336_v25, %v324_v30 }
  0xed   : > { %v335_v29 = vadd.f32 1.0, %v544_v24  ;;  %v341_v31 = vmul.f32 %v337_v22, %v325_v26 }
  0xef   : > { %v339_v33 = vmul.f32 %v335_v29, %v323_v28  ;;  %v343_v36 = vpack.c.bf16 %v341_v31, %v340_v34 }
  0xf1   : > { %v342_v35 = vpack.c.bf16 %v339_v33, %v338_v32 }
  0xf3   : > { %518 = vmatprep.mubr.msk.bf16.mxu1 %vm352_vm2, %v342_v35 }
  0xf4   : > { %519 = vmatmul.mubr.msk.bf16.vlgmr.msra.gmra.mxu1 %vm352_vm2, %v343_v36 }
 0x1b4   : > { %v520_v37 = vpop.f32.mrf.mxu1 }
 0x1b5   : > { %v406_v45 = vadd.f32 %v520_v37, %v496_v39 }
 0x1b6   : > { %v397_v40 = vpop.f32.mrf.mxu1 }
 0x1b7   : > { %v398_v41 = vadd.f32 %v496_v39, %v397_v40  ;;  %v418_v52 = vadd.f32 %v414_v46, %v406_v45 }
 0x1b8   : > { %v521_v42 = vpop.f32.mrf.mxu1 }
 0x1b9   : > { %v416_v44 = vadd.f32 %v412_v38, %v398_v41  ;;  %v409_v48 = vadd.f32 %v521_v42, %v496_v39  ;;  %422 = vst.msk [vmem:[%s226_s13 + $0x10] sm:$0xff] %vm266_vm0, %v418_v52 }
 0x1ba   : > { %v400_v47 = vpop.f32.mrf.mxu1 }
 0x1bb   : > { %420 = vst.msk [vmem:[%s226_s13] sm:$0xff] %vm266_vm0, %v416_v44  ;;  %v401_v50 = vadd.f32 %v496_v39, %v400_v47  ;;  %v419_v53 = vadd.f32 %v415_v49, %v409_v48 }
 0x1bd   : > { %v417_v51 = vadd.f32 %v413_v43, %v401_v50  ;;  %423 = vst.msk [vmem:[%s226_s13 + $0x18] sm:$0xff] %vm266_vm0, %v419_v53 }
 0x1bf   : > { %421 = vst.msk [vmem:[%s226_s13 + $0x8] sm:$0xff] %vm266_vm0, %v417_v51 }
 0x1c0 PF: > { %s15_s18 = sadd.s32 1, %s551_s18  }
 0x1c1   : > { %p12_p4 = scmp.ge.s32.totalorder %s15_s18, 4  }
 0x1c3   :  { %14 = sbr.rel (!%p12_p4) target bundleno = 1 (0x1), region = 70 }

// kernel: transformer_forward.40
= control target key start
LH: loop header
LB: loop body
LE: loop exit
PB: predicated region body
PF: predicated region fallthrough
CT: control target
= control target key end

     0   :  { %s565_s18 = smov 0   ;;  %s614_s0 = inlined_call_operand.vmem [shape: f32[64,32], index: 0, kind: input, shape index: {}]   ;;  %s615_s1 = inlined_call_operand.vmem [shape: bf16[32,8], index: 1, kind: input, shape index: {}]   ;;  %s616_s2 = inlined_call_operand.vmem [shape: f32[1,8], index: 2, kind: input, shape index: {}]   ;;  %s617_s3 = inlined_call_operand.vmem [shape: bf16[8,32], index: 3, kind: input, shape index: {}]   ;;  %s618_s4 = inlined_call_operand.vmem [shape: f32[1,32], index: 4, kind: input, shape index: {}]   ;;  %s619_s5 = inlined_call_operand.vmem [shape: f32[64,32], index: 5, kind: output, shape index: {}]  }
   0x1 LB: > { %s468_s19 = sadd.s32 4294967295, %s533_s18   ;;  %p472_p0 = scmp.ge.s32.totalorder %s533_s18, 1  ;;  %s533_s18 = sphi %s565_s18, %s15_s18  }
   0x2   : > { %p188_p1 = scmp.lt.s32.totalorder %s533_s18, 3 }
   0x4   : > { %p189_p2 = pnand %p472_p0, %p188_p1 }
   0x5   : > { %s473_s22 = sshll.u32 (!%p189_p2), %s468_s19, 2 }
   0x6   : > { %192 = sbr.rel (%p189_p2) target bundleno = 448 (0x1c0), region = 40  ;;  %p217_p3 = scmp.lt.s32.totalorder (!%p189_p2), %s473_s22, 7 }
   0xb   : > { %v517_v0 = vld [vmem:[%s615_s1 + $0x8] sm:$0xff]   ;;  %v518_v1 = vld [vmem:[%s615_s1] sm:$0xff]   ;;  %s621_s22 = smov (!%p217_p3, %s473_s22), 7  ;;  %vm258_vm0 = vcmask 261120   ;;  %vm351_vm1 = vcmask 1043456   ;;  %vm344_vm2 = vcmask 64512  }
   0xc   : > { %494 = vmatprep.subr.bf16.mxu0 %v517_v0  ;;  %s474_s25 = sshll.u32 %s621_s22, 3  ;;  %v336_v8 = vld [vmem:[%s617_s3] sm:$0xf] }
   0xd   : > { %495 = vmatpush3.bf16.msra.mxu0 %v517_v0  ;;  %s220_s28 = scalar_lea.vmem %s614_s0, %s474_s25  ;;  %508 = vmatprep.subr.msk.bf16.mxu1 %vm351_vm1, %v336_v8  ;;  %v353_v9 = vsel %vm351_vm1, %v336_v8, 0  ;;  %v477_v10 = vld [vmem:[%s616_s2] ss:$0 sm:$0xff]  ;;  %s226_s12 = scalar_lea.vmem %s619_s5, %s474_s25 }
   0xe   : > { %496 = vmatprep.subr.bf16.mxu0 %v518_v1  ;;  %v229_v2 = vld [vmem:[%s220_s28] sm:$0xff]  ;;  %v587_v3 = vld [vmem:[%s220_s28 + $0x8] sm:$0xff]  ;;  %v231_v4 = vld [vmem:[%s220_s28 + $0x10] sm:$0xff]  ;;  %503 = vmatpush3.bf16.msra.mxu1 %v353_v9 }
   0xf   : > { %v233_v5 = vpack.c.bf16 %v587_v3, %v229_v2  ;;  %v232_v6 = vld [vmem:[%s220_s28 + $0x18] sm:$0xff]  ;;  %v482_v42 = vld [vmem:[%s618_s4] ss:$0 sm:$0xff] }
  0x10   : > { %v234_v7 = vpack.c.bf16 %v232_v6, %v231_v4 }
  0x11   : > { %497 = vmatpush3.bf16.msra.mxu0 %v518_v1  ;;  %498 = vmatprep.mubr.msk.bf16.mxu0 %vm258_vm0, %v233_v5 }
  0x14   : > { %499 = vmatmul.mubr.msk.bf16.vlgmr.msra.gmra.mxu0 %vm258_vm0, %v234_v7 }
  0xd4   : > { %v500_v11 = vpop.f32.mrf.mxu0 }
  0xd5   : > { %v308_v12 = vadd.f32 %v500_v11, %v477_v10 }
  0xd6   : > { %v299_v13 = vpop.f32.mrf.mxu0 }
  0xd7   : > { %v300_v14 = vadd.f32 %v477_v10, %v299_v13  ;;  %v320_v15 = vmul.f32 0.70710677, %v308_v12  ;;  %v316_v34 = vmul.f32 0.5, %v308_v12 }
  0xd8   : > { %v501_v16 = vpop.f32.mrf.mxu0 }
  0xd9   : > { %v318_v17 = vmul.f32 0.70710677, %v300_v14  ;;  %v311_v18 = vadd.f32 %v501_v16, %v477_v10  ;;  %v314_v31 = vmul.f32 0.5, %v300_v14 }
  0xda   : > { %v302_v19 = vpop.f32.mrf.mxu0 }
  0xdb   : > { %519 = verf.f32 %v318_v17  ;;  %v321_v20 = vmul.f32 0.70710677, %v311_v18  ;;  %v303_v21 = vadd.f32 %v477_v10, %v302_v19  ;;  %v317_v30 = vmul.f32 0.5, %v311_v18 }
  0xdc   : > { %521 = verf.f32 %v320_v15 }
  0xdd   : > { %523 = verf.f32 %v321_v20  ;;  %v319_v22 = vmul.f32 0.70710677, %v303_v21  ;;  %v315_v32 = vmul.f32 0.5, %v303_v21 }
  0xdf   : > { %525 = verf.f32 %v319_v22 }
  0xe8   : > { %v520_v23 = vpop.eup %519 }
  0xe9   : > { %v522_v24 = vpop.eup %521  ;;  %v326_v27 = vadd.f32 1.0, %v520_v23 }
  0xea   : > { %v524_v25 = vpop.eup %523  ;;  %v328_v29 = vadd.f32 1.0, %v522_v24 }
  0xeb   : > { %v329_v26 = vadd.f32 1.0, %v524_v25  ;;  %v330_v36 = vmul.f32 %v326_v27, %v314_v31 }
  0xec   : > { %v526_v28 = vpop.eup %525  ;;  %v332_v38 = vmul.f32 %v328_v29, %v316_v34 }
  0xed   : > { %v327_v33 = vadd.f32 1.0, %v526_v28  ;;  %v333_v35 = vmul.f32 %v329_v26, %v317_v30 }
  0xef   : > { %v331_v37 = vmul.f32 %v327_v33, %v315_v32  ;;  %v335_v40 = vpack.c.bf16 %v333_v35, %v332_v38 }
  0xf1   : > { %v334_v39 = vpack.c.bf16 %v331_v37, %v330_v36 }
  0xf3   : > { %504 = vmatprep.mubr.msk.bf16.mxu1 %vm344_vm2, %v334_v39 }
  0xf4   : > { %505 = vmatmul.mubr.msk.bf16.vlgmr.msra.gmra.mxu1 %vm344_vm2, %v335_v40 }
 0x1b4   : > { %v506_v41 = vpop.f32.mrf.mxu1 }
 0x1b5   : > { %v398_v47 = vadd.f32 %v506_v41, %v482_v42 }
 0x1b6   : > { %v389_v43 = vpop.f32.mrf.mxu1 }
 0x1b7   : > { %v390_v44 = vadd.f32 %v482_v42, %v389_v43  ;;  %v406_v52 = vadd.f32 %v398_v47, %v231_v4 }
 0x1b8   : > { %v507_v45 = vpop.f32.mrf.mxu1 }
 0x1b9   : > { %v404_v46 = vadd.f32 %v390_v44, %v229_v2  ;;  %v401_v49 = vadd.f32 %v507_v45, %v482_v42  ;;  %410 = vst.msk [vmem:[%s226_s12 + $0x10] sm:$0xff] %vm258_vm0, %v406_v52 }
 0x1ba   : > { %v392_v48 = vpop.f32.mrf.mxu1 }
 0x1bb   : > { %408 = vst.msk [vmem:[%s226_s12] sm:$0xff] %vm258_vm0, %v404_v46  ;;  %v393_v50 = vadd.f32 %v482_v42, %v392_v48  ;;  %v407_v53 = vadd.f32 %v401_v49, %v232_v6 }
 0x1bd   : > { %v405_v51 = vadd.f32 %v393_v50, %v587_v3  ;;  %411 = vst.msk [vmem:[%s226_s12 + $0x18] sm:$0xff] %vm258_vm0, %v407_v53 }
 0x1bf   : > { %409 = vst.msk [vmem:[%s226_s12 + $0x8] sm:$0xff] %vm258_vm0, %v405_v51 }
 0x1c0 PF: > { %s15_s18 = sadd.s32 1, %s533_s18  }
 0x1c1   : > { %p12_p4 = scmp.ge.s32.totalorder %s15_s18, 4  }
 0x1c3   :  { %14 = sbr.rel (!%p12_p4) target bundleno = 1 (0x1), region = 70 }

// kernel: transformer_forward.42
= control target key start
LH: loop header
LB: loop body
LE: loop exit
PB: predicated region body
PF: predicated region fallthrough
CT: control target
= control target key end

     0   :  { %s824_s24 = smov 0   ;;  %s924_s0 = inlined_call_operand.vmem [shape: f32[64,32], index: 0, kind: input, shape index: {}]   ;;  %s925_s1 = inlined_call_operand.vmem [shape: f32[1,32], index: 1, kind: input, shape index: {}]   ;;  %s926_s2 = inlined_call_operand.vmem [shape: f32[1,32], index: 2, kind: input, shape index: {}]   ;;  %s927_s3 = inlined_call_operand.vmem [shape: bf16[32,128], index: 3, kind: input, shape index: {}]   ;;  %s928_s4 = inlined_call_operand.vmem [shape: f32[1,128], index: 4, kind: input, shape index: {}]   ;;  %s929_s5 = inlined_call_operand.vmem [shape: bf16[128,32], index: 5, kind: input, shape index: {}]   ;;  %s930_s6 = inlined_call_operand.vmem [shape: f32[1,32], index: 6, kind: input, shape index: {}]   ;;  %s931_s7 = inlined_call_operand.vmem [shape: f32[64,32], index: 7, kind: output, shape index: {}]  }
   0x1 LB: > { %s661_s25 = sadd.s32 4294967295, %s782_s24   ;;  %p665_p0 = scmp.ge.s32.totalorder %s782_s24, 1  ;;  %s782_s24 = sphi %s824_s24, %s17_s24  }
   0x2   : > { %p238_p1 = scmp.lt.s32.totalorder %s782_s24, 3 }
   0x4   : > { %p239_p2 = pnand %p665_p0, %p238_p1 }
   0x5   : > { %s666_s26 = sshll.u32 (!%p239_p2), %s661_s25, 2 }
   0x6   : > { %242 = sbr.rel (%p239_p2) target bundleno = 777 (0x309), region = 48  ;;  %p271_p3 = scmp.lt.s32.totalorder (!%p239_p2), %s666_s26, 7 }
   0xb   : > { %s933_s26 = smov (!%p271_p3, %s666_s26), 7  ;;  %vm289_vm0 = vcmask 261120   ;;  %v742_v28 = vld [vmem:[%s927_s3 + $0x8] sm:$0xff]   ;;  %v743_v29 = vld [vmem:[%s927_s3] sm:$0xff]   ;;  %v744_v62 = vld [vmem:[%s929_s5 + $0x38] sm:$0xff]  }
   0xc   : > { %s667_s27 = sshll.u32 %s933_s26, 3  ;;  %706 = vmatprep.subr.bf16.mxu0 %v742_v28  ;;  %v670_v44 = vld [vmem:[%s925_s1] ss:$0 sm:$0xff]  ;;  %714 = vmatprep.subr.bf16.mxu1 %v744_v62  ;;  %v745_v63 = vld [vmem:[%s929_s5 + $0x30] sm:$0xff]  }
   0xd   : > { %s274_s30 = scalar_lea.vmem %s924_s0, %s667_s27  ;;  %707 = vmatpush3.bf16.msra.mxu0 %v742_v28  ;;  %v671_v49 = vld [vmem:[%s926_s2] ss:$0 sm:$0xff]  ;;  %715 = vmatpush3.bf16.msra.mxu1 %v744_v62  ;;  %s280_s18 = scalar_lea.vmem %s931_s7, %s667_s27 }
   0xe   : > { %v840_v0 = vld [vmem:[%s274_s30] sm:$0xff]  ;;  %v842_v1 = vld [vmem:[%s274_s30 + $0x10] sm:$0xff]  ;;  %v844_v2 = vld [vmem:[%s274_s30 + $0x8] sm:$0xff]  ;;  %708 = vmatprep.subr.bf16.mxu0 %v743_v29  ;;  %716 = vmatprep.subr.bf16.mxu1 %v745_v63 }
   0xf   : > { %v290_v3 = vsel %vm289_vm0, %v840_v0, 0.0  ;;  %v296_v4 = vsel %vm289_vm0, %v842_v1, 0.0  ;;  %v850_v5 = vld [vmem:[%s274_s30 + $0x18] sm:$0xff]  ;;  %v293_v6 = vsel %vm289_vm0, %v844_v2, 0.0 }
  0x10   : > { %291 = vadd.xlane.f32.xlu0 %v290_v3  ;;  %297 = vadd.xlane.f32.xlu1 %v296_v4  ;;  %v299_v7 = vsel %vm289_vm0, %v850_v5, 0.0  ;;  %v746_v3 = vld [vmem:[%s929_s5 + $0x28] sm:$0xff]   ;;  %v747_v4 = vld [vmem:[%s929_s5 + $0x20] sm:$0xff]  }
  0x11   : > { %709 = vmatpush3.bf16.msra.mxu0 %v743_v29  ;;  %717 = vmatpush3.bf16.msra.mxu1 %v745_v63 }
  0x12   : > { %718 = vmatprep.subr.bf16.mxu1 %v746_v3 }
  0x14   : > { %294 = vadd.xlane.f32.xlu0 %v293_v6  ;;  %300 = vadd.xlane.f32.xlu1 %v299_v7  ;;  %v748_v6 = vld [vmem:[%s929_s5 + $0x18] sm:$0xff]   ;;  %v749_v7 = vld [vmem:[%s929_s5 + $0x10] sm:$0xff]  }
  0x15   : > { %719 = vmatpush3.bf16.msra.mxu1 %v746_v3 }
  0x16   : > { %720 = vmatprep.subr.bf16.mxu1 %v747_v4 }
  0x19   : > { %721 = vmatpush3.bf16.msra.mxu1 %v747_v4 }
  0x1a   : > { %722 = vmatprep.subr.bf16.mxu1 %v748_v6 }
  0x1d   : > { %723 = vmatpush3.bf16.msra.mxu1 %v748_v6 }
  0x1e   : > { %724 = vmatprep.subr.bf16.mxu1 %v749_v7 }
  0x21   : > { %725 = vmatpush3.bf16.msra.mxu1 %v749_v7 }
  0x99   : > { %v292_v8 = vpop.xlane.xlu0 %291  ;;  %v298_v9 = vpop.xlane.xlu1 %297 }
  0x9a   : > { %v303_v10 = vmul.f32 0.03125, %v292_v8  ;;  %v305_v11 = vmul.f32 0.03125, %v298_v9  ;;  %v750_v8 = vld [vmem:[%s929_s5 + $0x8] sm:$0xff]   ;;  %v751_v9 = vld [vmem:[%s929_s5] sm:$0xff]  }
  0x9b   : > { %726 = vmatprep.subr.bf16.mxu1 %v750_v8 }
  0x9c   : > { %v307_v12 = vsub.f32 %v840_v0, %v303_v10  ;;  %v309_v13 = vsub.f32 %v842_v1, %v305_v11  ;;  %727 = vmatpush3.bf16.msra.mxu1 %v750_v8  ;;  %v672_v10 = vld [vmem:[%s928_s4] ss:$0 sm:$0xff] }
  0x9d   : > { %v295_v14 = vpop.xlane.xlu0 %294  ;;  %v301_v15 = vpop.xlane.xlu1 %300  ;;  %728 = vmatprep.subr.bf16.mxu1 %v751_v9 }
  0x9e   : > { %v304_v16 = vmul.f32 0.03125, %v295_v14  ;;  %v306_v17 = vmul.f32 0.03125, %v301_v15  ;;  %v311_v18 = vmul.f32 %v307_v12, %v307_v12  ;;  %v313_v19 = vmul.f32 %v309_v13, %v309_v13 }
  0xa0   : > { %v308_v20 = vsub.f32 %v844_v2, %v304_v16  ;;  %v310_v21 = vsub.f32 %v850_v5, %v306_v17  ;;  %v315_v22 = vsel %vm289_vm0, %v311_v18, 0.0  ;;  %v321_v23 = vsel %vm289_vm0, %v313_v19, 0.0  ;;  %729 = vmatpush3.bf16.msra.mxu1 %v751_v9 }
  0xa1   : > { %316 = vadd.xlane.f32.xlu0 %v315_v22 }
  0xa2   : > { %v312_v24 = vmul.f32 %v308_v20, %v308_v20  ;;  %v314_v25 = vmul.f32 %v310_v21, %v310_v21 }
  0xa4   : > { %v318_v26 = vsel %vm289_vm0, %v312_v24, 0.0  ;;  %v324_v27 = vsel %vm289_vm0, %v314_v25, 0.0 }
  0xa5   : > { %322 = vadd.xlane.f32.xlu0 %v321_v23  ;;  %319 = vadd.xlane.f32.xlu1 %v318_v26 }
  0xa9   : > { %325 = vadd.xlane.f32.xlu1 %v324_v27 }
 0x12a   : > { %v317_v30 = vpop.xlane.xlu0 %316 }
 0x12b   : > { %v327_v31 = vmul.f32 0.03125, %v317_v30 }
 0x12d   : > { %v331_v32 = vadd.f32 1e-05, %v327_v31 }
 0x12e   : > { %v320_v33 = vpop.xlane.xlu1 %319  ;;  %v323_v34 = vpop.xlane.xlu0 %322 }
 0x12f   : > { %752 = vrsqrt.f32 %v331_v32  ;;  %v328_v35 = vmul.f32 0.03125, %v320_v33  ;;  %v329_v36 = vmul.f32 0.03125, %v323_v34 }
 0x131   : > { %v332_v37 = vadd.f32 1e-05, %v328_v35  ;;  %v333_v38 = vadd.f32 1e-05, %v329_v36 }
 0x132   : > { %v326_v39 = vpop.xlane.xlu1 %325 }
 0x133   : > { %754 = vrsqrt.f32 %v332_v37  ;;  %v330_v40 = vmul.f32 0.03125, %v326_v39 }
 0x134   : > { %756 = vrsqrt.f32 %v333_v38 }
 0x135   : > { %v334_v41 = vadd.f32 1e-05, %v330_v40 }
 0x137   : > { %758 = vrsqrt.f32 %v334_v41 }
 0x13c   : > { %v753_v42 = vpop.eup %752 }
 0x13d   : > { %v339_v43 = vmul.f32 %v753_v42, %v307_v12 }
 0x13f   : > { %v349_v48 = vmul.f32 %v670_v44, %v339_v43 }
 0x140   : > { %v755_v45 = vpop.eup %754 }
 0x141   : > { %v757_v46 = vpop.eup %756  ;;  %v340_v47 = vmul.f32 %v755_v45, %v308_v20  ;;  %v359_v53 = vadd.f32 %v671_v49, %v349_v48 }
 0x142   : > { %v341_v50 = vmul.f32 %v757_v46, %v309_v13  ;;  %v681_v46 = vld [vmem:[%s930_s6] ss:$0 sm:$0xff] }
 0x143   : > { %v350_v51 = vmul.f32 %v670_v44, %v340_v47 }
 0x144   : > { %v759_v52 = vpop.eup %758  ;;  %v351_v56 = vmul.f32 %v670_v44, %v341_v50 }
 0x145   : > { %v360_v54 = vadd.f32 %v671_v49, %v350_v51  ;;  %v342_v55 = vmul.f32 %v759_v52, %v310_v21 }
 0x146   : > { %v361_v59 = vadd.f32 %v671_v49, %v351_v56 }
 0x147   : > { %v363_v57 = vpack.c.bf16 %v360_v54, %v359_v53  ;;  %v352_v58 = vmul.f32 %v670_v44, %v342_v55 }
 0x149   : > { %710 = vmatprep.mubr.msk.bf16.mxu0 %vm289_vm0, %v363_v57  ;;  %v362_v60 = vadd.f32 %v671_v49, %v352_v58 }
 0x14b   : > { %v364_v61 = vpack.c.bf16 %v362_v60, %v361_v59 }
 0x14d   : > { %711 = vmatmul.mubr.msk.bf16.vlgmr.msra.gmra.mxu0 %vm289_vm0, %v364_v61 }
 0x20d   : > { %v712_v11 = vpop.f32.mrf.mxu0 }
 0x20e   : > { %v437_v12 = vadd.f32 %v712_v11, %v672_v10 }
 0x20f   : > { %v428_v13 = vpop.f32.mrf.mxu0 }
 0x210   : > { %v679_v14 = vmul.f32 -1.702, %v437_v12  ;;  %v429_v15 = vadd.f32 %v672_v10, %v428_v13 }
 0x211   : > { %v713_v16 = vpop.f32.mrf.mxu0 }
 0x212   : > { %v455_v17 = vmul.f32 1.442695, %v679_v14  ;;  %v677_v18 = vmul.f32 -1.702, %v429_v15  ;;  %v440_v19 = vadd.f32 %v713_v16, %v672_v10 }
 0x213   : > { %v431_v20 = vpop.f32.mrf.mxu0 }
 0x214   : > { %v451_v21 = vmul.f32 1.442695, %v677_v18  ;;  %v680_v22 = vmul.f32 -1.702, %v440_v19  ;;  %v432_v23 = vadd.f32 %v672_v10, %v431_v20  ;;  %760 = vpow2.f32 %v455_v17 }
 0x216   : > { %762 = vpow2.f32 %v451_v21  ;;  %v457_v24 = vmul.f32 1.442695, %v680_v22  ;;  %v678_v25 = vmul.f32 -1.702, %v432_v23 }
 0x218   : > { %764 = vpow2.f32 %v457_v24  ;;  %v453_v26 = vmul.f32 1.442695, %v678_v25 }
 0x21a   : > { %766 = vpow2.f32 %v453_v26 }
 0x221   : > { %v761_v27 = vpop.eup %760 }
 0x222   : > { %v461_v31 = vadd.f32 1.0, %v761_v27 }
 0x223   : > { %v763_v28 = vpop.eup %762 }
 0x224   : > { %v459_v29 = vadd.f32 1.0, %v763_v28 }
 0x225   : > { %v765_v30 = vpop.eup %764 }
 0x226   : > { %v462_v32 = vadd.f32 1.0, %v765_v30  ;;  %768 = vrcp.f32 %v459_v29 }
 0x227   : > { %v767_v33 = vpop.eup %766 }
 0x228   : > { %770 = vrcp.f32 %v462_v32  ;;  %v460_v34 = vadd.f32 1.0, %v767_v33 }
 0x229   : > { %772 = vrcp.f32 %v461_v31 }
 0x22a   : > { %774 = vrcp.f32 %v460_v34 }
 0x233   : > { %v769_v35 = vpop.eup %768 }
 0x234   : > { %v471_v40 = vmul.f32 %v769_v35, %v429_v15 }
 0x235   : > { %v771_v36 = vpop.eup %770 }
 0x236   : > { %v773_v37 = vpop.eup %772  ;;  %v474_v39 = vmul.f32 %v771_v36, %v440_v19 }
 0x237   : > { %v775_v38 = vpop.eup %774  ;;  %v473_v42 = vmul.f32 %v773_v37, %v437_v12 }
 0x238   : > { %v472_v41 = vmul.f32 %v775_v38, %v432_v23 }
 0x239   : > { %v476_v44 = vpack.c.bf16 %v474_v39, %v473_v42 }
 0x23a   : > { %v475_v43 = vpack.c.bf16 %v472_v41, %v471_v40 }
 0x23c   : > { %730 = vmatprep.mubr.bf16.mxu1 %v475_v43 }
 0x23d   : > { %731 = vmatmul.mubr.bf16.vlgmr.msra.gmra.mxu1 %v476_v44 }
 0x2fd   : > { %v732_v45 = vpop.f32.mrf.mxu1 }
 0x2fe   : > { %v591_v51 = vadd.f32 %v732_v45, %v681_v46 }
 0x2ff   : > { %v582_v47 = vpop.f32.mrf.mxu1 }
 0x300   : > { %v583_v48 = vadd.f32 %v681_v46, %v582_v47  ;;  %v599_v56 = vadd.f32 %v591_v51, %v842_v1 }
 0x301   : > { %v733_v49 = vpop.f32.mrf.mxu1 }
 0x302   : > { %v597_v50 = vadd.f32 %v583_v48, %v840_v0  ;;  %v594_v53 = vadd.f32 %v733_v49, %v681_v46  ;;  %603 = vst.msk [vmem:[%s280_s18 + $0x10] sm:$0xff] %vm289_vm0, %v599_v56 }
 0x303   : > { %v585_v52 = vpop.f32.mrf.mxu1 }
 0x304   : > { %601 = vst.msk [vmem:[%s280_s18] sm:$0xff] %vm289_vm0, %v597_v50  ;;  %v586_v54 = vadd.f32 %v681_v46, %v585_v52  ;;  %v600_v57 = vadd.f32 %v594_v53, %v850_v5 }
 0x306   : > { %v598_v55 = vadd.f32 %v586_v54, %v844_v2  ;;  %604 = vst.msk [vmem:[%s280_s18 + $0x18] sm:$0xff] %vm289_vm0, %v600_v57 }
 0x308   : > { %602 = vst.msk [vmem:[%s280_s18 + $0x8] sm:$0xff] %vm289_vm0, %v598_v55 }
 0x309 PF: > { %s17_s24 = sadd.s32 1, %s782_s24  }
 0x30a   : > { %p14_p4 = scmp.ge.s32.totalorder %s17_s24, 4  }
 0x30c   :  { %16 = sbr.rel (!%p14_p4) target bundleno = 1 (0x1), region = 78 }

// kernel: transformer_forward.43
= control target key start
LH: loop header
LB: loop body
LE: loop exit
PB: predicated region body
PF: predicated region fallthrough
CT: control target
= control target key end

     0   :  { %s896_s27 = smov 0   ;;  %s977_s0 = inlined_call_operand.vmem [shape: f32[64,32], index: 0, kind: input, shape index: {}]   ;;  %s978_s1 = inlined_call_operand.vmem [shape: f32[1,32], index: 1, kind: input, shape index: {}]   ;;  %s979_s2 = inlined_call_operand.vmem [shape: f32[1,32], index: 2, kind: input, shape index: {}]   ;;  %s980_s3 = inlined_call_operand.vmem [shape: bf16[32,128], index: 3, kind: input, shape index: {}]   ;;  %s981_s4 = inlined_call_operand.vmem [shape: f32[1,128], index: 4, kind: input, shape index: {}]   ;;  %s982_s5 = inlined_call_operand.vmem [shape: bf16[128,32], index: 5, kind: input, shape index: {}]   ;;  %s983_s6 = inlined_call_operand.vmem [shape: f32[1,32], index: 6, kind: input, shape index: {}]   ;;  %s984_s7 = inlined_call_operand.vmem [shape: f32[64,32], index: 7, kind: input, shape index: {}]   ;;  %s985_s8 = inlined_call_operand.vmem [shape: f32[64,32], index: 8, kind: output, shape index: {}]  }
   0x1 LB: > { %s726_s28 = sadd.s32 4294967295, %s849_s27   ;;  %p730_p0 = scmp.ge.s32.totalorder %s849_s27, 1  ;;  %s849_s27 = sphi %s896_s27, %s18_s27  }
   0x2   : > { %p274_p1 = scmp.lt.s32.totalorder %s849_s27, 3 }
   0x4   : > { %p275_p2 = pnand %p730_p0, %p274_p1 }
   0x5   : > { %s731_s29 = sshll.u32 (!%p275_p2), %s726_s28, 2 }
   0x6   : > { %278 = sbr.rel (%p275_p2) target bundleno = 777 (0x309), region = 52  ;;  %p314_p3 = scmp.lt.s32.totalorder (!%p275_p2), %s731_s29, 7 }
   0xb   : > { %s987_s29 = smov (!%p314_p3, %s731_s29), 7  ;;  %vm338_vm0 = vcmask 261120   ;;  %v809_v28 = vld [vmem:[%s980_s3 + $0x8] sm:$0xff]   ;;  %v810_v29 = vld [vmem:[%s980_s3] sm:$0xff]   ;;  %v811_v62 = vld [vmem:[%s982_s5 + $0x38] sm:$0xff]  }
   0xc   : > { %s904_s30 = sshll.u32 %s987_s29, 3  ;;  %773 = vmatprep.subr.bf16.mxu0 %v809_v28  ;;  %v737_v44 = vld [vmem:[%s978_s1] ss:$0 sm:$0xff]  ;;  %781 = vmatprep.subr.bf16.mxu1 %v811_v62  ;;  %v812_v63 = vld [vmem:[%s982_s5 + $0x30] sm:$0xff]  }
   0xd   : > { %s317_s11 = scalar_lea.vmem %s977_s0, %s904_s30  ;;  %774 = vmatpush3.bf16.msra.mxu0 %v809_v28  ;;  %v738_v49 = vld [vmem:[%s979_s2] ss:$0 sm:$0xff]  ;;  %782 = vmatpush3.bf16.msra.mxu1 %v811_v62  ;;  %s323_s20 = scalar_lea.vmem %s984_s7, %s904_s30 }
   0xe   : > { %v332_v0 = vld [vmem:[%s317_s11] sm:$0xff]  ;;  %v334_v1 = vld [vmem:[%s317_s11 + $0x10] sm:$0xff]  ;;  %v333_v2 = vld [vmem:[%s317_s11 + $0x8] sm:$0xff]  ;;  %775 = vmatprep.subr.bf16.mxu0 %v810_v29  ;;  %783 = vmatprep.subr.bf16.mxu1 %v812_v63  ;;  %s329_s25 = scalar_lea.vmem %s985_s8, %s904_s30 }
   0xf   : > { %v339_v3 = vsel %vm338_vm0, %v332_v0, 0.0  ;;  %v345_v4 = vsel %vm338_vm0, %v334_v1, 0.0  ;;  %v335_v5 = vld [vmem:[%s317_s11 + $0x18] sm:$0xff]  ;;  %v342_v6 = vsel %vm338_vm0, %v333_v2, 0.0 }
  0x10   : > { %340 = vadd.xlane.f32.xlu0 %v339_v3  ;;  %346 = vadd.xlane.f32.xlu1 %v345_v4  ;;  %v348_v7 = vsel %vm338_vm0, %v335_v5, 0.0  ;;  %v816_v3 = vld [vmem:[%s982_s5 + $0x10] sm:$0xff]   ;;  %v817_v4 = vld [vmem:[%s982_s5 + $0x8] sm:$0xff]  }
  0x11   : > { %776 = vmatpush3.bf16.msra.mxu0 %v810_v29  ;;  %784 = vmatpush3.bf16.msra.mxu1 %v812_v63 }
  0x14   : > { %343 = vadd.xlane.f32.xlu0 %v342_v6  ;;  %349 = vadd.xlane.f32.xlu1 %v348_v7  ;;  %v739_v6 = vld [vmem:[%s981_s4] ss:$0 sm:$0xff] }
  0x99   : > { %v341_v8 = vpop.xlane.xlu0 %340  ;;  %v347_v9 = vpop.xlane.xlu1 %346 }
  0x9a   : > { %v352_v10 = vmul.f32 0.03125, %v341_v8  ;;  %v354_v11 = vmul.f32 0.03125, %v347_v9 }
  0x9c   : > { %v356_v12 = vsub.f32 %v332_v0, %v352_v10  ;;  %v358_v13 = vsub.f32 %v334_v1, %v354_v11  ;;  %v813_v0 = vld [vmem:[%s982_s5 + $0x28] sm:$0xff]   ;;  %v814_v1 = vld [vmem:[%s982_s5 + $0x20] sm:$0xff]  }
  0x9d   : > { %v344_v14 = vpop.xlane.xlu0 %343  ;;  %v350_v15 = vpop.xlane.xlu1 %349  ;;  %785 = vmatprep.subr.bf16.mxu1 %v813_v0 }
  0x9e   : > { %v353_v16 = vmul.f32 0.03125, %v344_v14  ;;  %v355_v17 = vmul.f32 0.03125, %v350_v15  ;;  %v360_v18 = vmul.f32 %v356_v12, %v356_v12  ;;  %v362_v19 = vmul.f32 %v358_v13, %v358_v13  ;;  %786 = vmatpush3.bf16.msra.mxu1 %v813_v0 }
  0x9f   : > { %787 = vmatprep.subr.bf16.mxu1 %v814_v1 }
  0xa0   : > { %v357_v20 = vsub.f32 %v333_v2, %v353_v16  ;;  %v359_v21 = vsub.f32 %v335_v5, %v355_v17  ;;  %v364_v22 = vsel %vm338_vm0, %v360_v18, 0.0  ;;  %v370_v23 = vsel %vm338_vm0, %v362_v19, 0.0  ;;  %v815_v2 = vld [vmem:[%s982_s5 + $0x18] sm:$0xff]   ;;  %v818_v5 = vld [vmem:[%s982_s5] sm:$0xff]  }
  0xa1   : > { %365 = vadd.xlane.f32.xlu0 %v364_v22 }
  0xa2   : > { %v361_v24 = vmul.f32 %v357_v20, %v357_v20  ;;  %v363_v25 = vmul.f32 %v359_v21, %v359_v21  ;;  %788 = vmatpush3.bf16.msra.mxu1 %v814_v1 }
  0xa3   : > { %789 = vmatprep.subr.bf16.mxu1 %v815_v2 }
  0xa4   : > { %v367_v26 = vsel %vm338_vm0, %v361_v24, 0.0  ;;  %v373_v27 = vsel %vm338_vm0, %v363_v25, 0.0 }
  0xa5   : > { %371 = vadd.xlane.f32.xlu0 %v370_v23  ;;  %368 = vadd.xlane.f32.xlu1 %v367_v26 }
  0xa6   : > { %790 = vmatpush3.bf16.msra.mxu1 %v815_v2 }
  0xa7   : > { %791 = vmatprep.subr.bf16.mxu1 %v816_v3 }
  0xa9   : > { %374 = vadd.xlane.f32.xlu1 %v373_v27 }
  0xaa   : > { %792 = vmatpush3.bf16.msra.mxu1 %v816_v3 }
  0xab   : > { %793 = vmatprep.subr.bf16.mxu1 %v817_v4 }
  0xae   : > { %794 = vmatpush3.bf16.msra.mxu1 %v817_v4 }
  0xaf   : > { %795 = vmatprep.subr.bf16.mxu1 %v818_v5 }
  0xb2   : > { %796 = vmatpush3.bf16.msra.mxu1 %v818_v5 }
 0x12a   : > { %v366_v30 = vpop.xlane.xlu0 %365 }
 0x12b   : > { %v376_v31 = vmul.f32 0.03125, %v366_v30 }
 0x12d   : > { %v380_v32 = vadd.f32 1e-05, %v376_v31 }
 0x12e   : > { %v369_v33 = vpop.xlane.xlu1 %368  ;;  %v372_v34 = vpop.xlane.xlu0 %371 }
 0x12f   : > { %819 = vrsqrt.f32 %v380_v32  ;;  %v377_v35 = vmul.f32 0.03125, %v369_v33  ;;  %v378_v36 = vmul.f32 0.03125, %v372_v34 }
 0x131   : > { %v381_v37 = vadd.f32 1e-05, %v377_v35  ;;  %v382_v38 = vadd.f32 1e-05, %v378_v36 }
 0x132   : > { %v375_v39 = vpop.xlane.xlu1 %374 }
 0x133   : > { %821 = vrsqrt.f32 %v381_v37  ;;  %v379_v40 = vmul.f32 0.03125, %v375_v39 }
 0x134   : > { %823 = vrsqrt.f32 %v382_v38 }
 0x135   : > { %v383_v41 = vadd.f32 1e-05, %v379_v40 }
 0x137   : > { %825 = vrsqrt.f32 %v383_v41 }
 0x13c   : > { %v820_v42 = vpop.eup %819 }
 0x13d   : > { %v388_v43 = vmul.f32 %v820_v42, %v356_v12  ;;  %v748_v42 = vld [vmem:[%s983_s6] ss:$0 sm:$0xff] }
 0x13f   : > { %v398_v48 = vmul.f32 %v737_v44, %v388_v43 }
 0x140   : > { %v822_v45 = vpop.eup %821 }
 0x141   : > { %v824_v46 = vpop.eup %823  ;;  %v389_v47 = vmul.f32 %v822_v45, %v357_v20  ;;  %v408_v53 = vadd.f32 %v738_v49, %v398_v48 }
 0x142   : > { %v390_v50 = vmul.f32 %v824_v46, %v358_v13 }
 0x143   : > { %v399_v51 = vmul.f32 %v737_v44, %v389_v47 }
 0x144   : > { %v826_v52 = vpop.eup %825  ;;  %v400_v56 = vmul.f32 %v737_v44, %v390_v50  ;;  %v647_v50 = vld [vmem:[%s323_s20 + $0x8] sm:$0xff] }
 0x145   : > { %v409_v54 = vadd.f32 %v738_v49, %v399_v51  ;;  %v391_v55 = vmul.f32 %v826_v52, %v359_v21  ;;  %v648_v51 = vld [vmem:[%s323_s20 + $0x10] sm:$0xff] }
 0x146   : > { %v410_v59 = vadd.f32 %v738_v49, %v400_v56 }
 0x147   : > { %v412_v57 = vpack.c.bf16 %v409_v54, %v408_v53  ;;  %v401_v58 = vmul.f32 %v737_v44, %v391_v55  ;;  %v646_v44 = vld [vmem:[%s323_s20] sm:$0xff]  ;;  %v649_v54 = vld [vmem:[%s323_s20 + $0x18] sm:$0xff] }
 0x149   : > { %777 = vmatprep.mubr.msk.bf16.mxu0 %vm338_vm0, %v412_v57  ;;  %v411_v60 = vadd.f32 %v738_v49, %v401_v58 }
 0x14b   : > { %v413_v61 = vpack.c.bf16 %v411_v60, %v410_v59 }
 0x14d   : > { %778 = vmatmul.mubr.msk.bf16.vlgmr.msra.gmra.mxu0 %vm338_vm0, %v413_v61 }
 0x20d   : > { %v779_v7 = vpop.f32.mrf.mxu0 }
 0x20e   : > { %v486_v8 = vadd.f32 %v779_v7, %v739_v6 }
 0x20f   : > { %v477_v9 = vpop.f32.mrf.mxu0 }
 0x210   : > { %v746_v10 = vmul.f32 -1.702, %v486_v8  ;;  %v478_v11 = vadd.f32 %v739_v6, %v477_v9 }
 0x211   : > { %v780_v12 = vpop.f32.mrf.mxu0 }
 0x212   : > { %v504_v13 = vmul.f32 1.442695, %v746_v10  ;;  %v744_v14 = vmul.f32 -1.702, %v478_v11  ;;  %v489_v15 = vadd.f32 %v780_v12, %v739_v6 }
 0x213   : > { %v480_v16 = vpop.f32.mrf.mxu0 }
 0x214   : > { %v500_v17 = vmul.f32 1.442695, %v744_v14  ;;  %v747_v18 = vmul.f32 -1.702, %v489_v15  ;;  %v481_v19 = vadd.f32 %v739_v6, %v480_v16  ;;  %827 = vpow2.f32 %v504_v13 }
 0x216   : > { %829 = vpow2.f32 %v500_v17  ;;  %v506_v20 = vmul.f32 1.442695, %v747_v18  ;;  %v745_v21 = vmul.f32 -1.702, %v481_v19 }
 0x218   : > { %831 = vpow2.f32 %v506_v20  ;;  %v502_v22 = vmul.f32 1.442695, %v745_v21 }
 0x21a   : > { %833 = vpow2.f32 %v502_v22 }
 0x221   : > { %v828_v23 = vpop.eup %827 }
 0x222   : > { %v510_v27 = vadd.f32 1.0, %v828_v23 }
 0x223   : > { %v830_v24 = vpop.eup %829 }
 0x224   : > { %v508_v25 = vadd.f32 1.0, %v830_v24 }
 0x225   : > { %v832_v26 = vpop.eup %831 }
 0x226   : > { %v511_v28 = vadd.f32 1.0, %v832_v26  ;;  %835 = vrcp.f32 %v508_v25 }
 0x227   : > { %v834_v29 = vpop.eup %833 }
 0x228   : > { %837 = vrcp.f32 %v511_v28  ;;  %v509_v30 = vadd.f32 1.0, %v834_v29 }
 0x229   : > { %839 = vrcp.f32 %v510_v27 }
 0x22a   : > { %841 = vrcp.f32 %v509_v30 }
 0x233   : > { %v836_v31 = vpop.eup %835 }
 0x234   : > { %v520_v36 = vmul.f32 %v836_v31, %v478_v11 }
 0x235   : > { %v838_v32 = vpop.eup %837 }
 0x236   : > { %v840_v33 = vpop.eup %839  ;;  %v523_v35 = vmul.f32 %v838_v32, %v489_v15 }
 0x237   : > { %v842_v34 = vpop.eup %841  ;;  %v522_v38 = vmul.f32 %v840_v33, %v486_v8 }
 0x238   : > { %v521_v37 = vmul.f32 %v842_v34, %v481_v19 }
 0x239   : > { %v525_v40 = vpack.c.bf16 %v523_v35, %v522_v38 }
 0x23a   : > { %v524_v39 = vpack.c.bf16 %v521_v37, %v520_v36 }
 0x23c   : > { %797 = vmatprep.mubr.bf16.mxu1 %v524_v39 }
 0x23d   : > { %798 = vmatmul.mubr.bf16.vlgmr.msra.gmra.mxu1 %v525_v40 }
 0x2fd   : > { %v799_v41 = vpop.f32.mrf.mxu1 }
 0x2fe   : > { %v640_v48 = vadd.f32 %v799_v41, %v748_v42 }
 0x2ff   : > { %v631_v43 = vpop.f32.mrf.mxu1 }
 0x300   : > { %v632_v45 = vadd.f32 %v748_v42, %v631_v43  ;;  %v652_v56 = vadd.f32 %v648_v51, %v640_v48 }
 0x301   : > { %v800_v46 = vpop.f32.mrf.mxu1 }
 0x302   : > { %v650_v47 = vadd.f32 %v646_v44, %v632_v45  ;;  %v643_v52 = vadd.f32 %v800_v46, %v748_v42  ;;  %656 = vst.msk [vmem:[%s329_s25 + $0x10] sm:$0xff] %vm338_vm0, %v652_v56 }
 0x303   : > { %v634_v49 = vpop.f32.mrf.mxu1 }
 0x304   : > { %654 = vst.msk [vmem:[%s329_s25] sm:$0xff] %vm338_vm0, %v650_v47  ;;  %v635_v53 = vadd.f32 %v748_v42, %v634_v49  ;;  %v653_v57 = vadd.f32 %v649_v54, %v643_v52 }
 0x306   : > { %v651_v55 = vadd.f32 %v647_v50, %v635_v53  ;;  %657 = vst.msk [vmem:[%s329_s25 + $0x18] sm:$0xff] %vm338_vm0, %v653_v57 }
 0x308   : > { %655 = vst.msk [vmem:[%s329_s25 + $0x8] sm:$0xff] %vm338_vm0, %v651_v55 }
 0x309 PF: > { %s18_s27 = sadd.s32 1, %s849_s27  }
 0x30a   : > { %p15_p4 = scmp.ge.s32.totalorder %s18_s27, 4  }
 0x30c   :  { %17 = sbr.rel (!%p15_p4) target bundleno = 1 (0x1), region = 85 }

</bundles_post_ra>
